<compile_context>
chip_gen: v7x
topology: tpu7x:2x2x1
jax: 0.10.0
libtpu: 0.0.40
codegen_flags: <defaults>
</compile_context>

<pallas_src>
import functools

import jax
import jax.numpy as jnp
import numpy as np
from jax.experimental import pallas as pl
from jax.experimental.pallas import tpu as pltpu

NEG_SLOPE = 0.01  # torch.nn.LeakyReLU default
ROW_PAD = 16      # bf16 sublane-tile height: keep every scratch row-block aligned to this


def _leaky(x):
    return jnp.where(x > 0, x, NEG_SLOPE * x)


def _round_up(n, m):
    return ((n + m - 1) // m) * m


# ---------------------------------------------------------------------------
# Fused kernel
# ---------------------------------------------------------------------------
def _fused_kernel(x_ref, mask_ref,
                  w1a_ref, w1b_ref, w1c_ref, b1_ref, s1_ref, t1_ref,
                  w2a_ref, w2b_ref, w2c_ref, b2_ref, s2_ref, t2_ref,
                  ws_ref, bs_ref, ss_ref, ts_ref,
                  f1w_ref, f1b_ref, f2w_ref, f2b_ref,
                  o_ref,
                  col_scr, *, dhw):
    D, H, W = dhw
    N = D * H * W
    Cin = x_ref.shape[1]
    Cout = o_ref.shape[1]

    x2d = x_ref[0]                                        # (Cin, N) f32

    def conv3(src, c, w_kd_refs):
        """'same' 3x3x3 conv of src (c, N) f32 -> (Cout, N) f32 via 3 kd-chunk im2col GEMMs.

        Each kd builds one (9*cpad, N) bf16 chunk in the shared scratch (dead right after its
        dot, so the scratch is reused across kd and across both convolutions).  Roll + mask in
        f32; the bf16 cast is fused into the scratch store.  cpad is the 16-row-padded channel
        block size (padding rows are explicit zeros, matching zero weight columns).
        """
        cpad = w_kd_refs[0].shape[1] // 9
        if cpad > c:
            src = jnp.concatenate(
                [src, jnp.zeros((cpad - c, src.shape[1]), src.dtype)], axis=0)
        acc = None
        for kd in range(3):
            for kh in range(3):
                for kw in range(3):
                    row = kh * 3 + kw
                    t = (kd * 3 + kh) * 3 + kw
                    off = (kd - 1) * H * W + (kh - 1) * W + (kw - 1)
                    s = (-off) % N
                    shifted = pltpu.roll(src, shift=s, axis=1) if s else src
                    if t == 13:                           # center tap: always valid
                        tap = shifted
                    else:
                        tap = shifted * mask_ref[t:t + 1, :]   # (1, N) 0/1 validity of this tap
                    col_scr[row * cpad:(row + 1) * cpad, :] = tap.astype(jnp.bfloat16)
            part = jnp.dot(w_kd_refs[kd][...], col_scr[0:9 * cpad, :],
                           preferred_element_type=jnp.float32)  # (Cout, N) f32
            acc = part if acc is None else acc + part
        return acc

    # conv1 + bias + BN1 + LeakyReLU  (h1 never leaves VMEM/vregs)
    h1 = conv3(x2d, Cin, (w1a_ref, w1b_ref, w1c_ref))
    h1 = _leaky((h1 + b1_ref[...]) * s1_ref[...] + t1_ref[...])

    # conv2 + bias + BN2
    h2 = conv3(h1, Cout, (w2a_ref, w2b_ref, w2c_ref))
    h2 = (h2 + b2_ref[...]) * s2_ref[...] + t2_ref[...]

    # Squeeze-and-Excitation: global average pool (lanes) -> FC -> ReLU -> FC -> sigmoid.
    # The FCs are tiny; do them on the VPU (multiply + reduce), no MXU.
    y = jnp.mean(h2, axis=1, keepdims=True)                       # (Cout, 1)
    z = jnp.maximum(
        jnp.sum(f1w_ref[...] * y, axis=0, keepdims=True) + f1b_ref[...], 0.0)   # (1, Cr)
    g = jax.nn.sigmoid(
        jnp.sum(f2w_ref[...] * z, axis=1, keepdims=True) + f2b_ref[...])        # (Cout, 1)
    h2 = h2 * g                                                   # per-channel gate

    # shortcut: 1x1x1 ConvTranspose (== per-voxel matmul) + BN
    res = jnp.dot(ws_ref[...], x2d.astype(jnp.bfloat16),
                  preferred_element_type=jnp.float32)             # (Cout, N)
    res = (res + bs_ref[...]) * ss_ref[...] + ts_ref[...]

    o_ref[0] = _leaky(h2 + res)


# ---------------------------------------------------------------------------
# Glue: parameter conversion + pallas_call wrapper
# ---------------------------------------------------------------------------
def ct3_to_conv(w_ct):
    """ConvTranspose3d weight (Cin, Cout, 3,3,3) -> equivalent 'same'-conv weight (3,3,3,Cin,Cout)."""
    w = jnp.transpose(w_ct, (2, 3, 4, 0, 1))
    return w[::-1, ::-1, ::-1]


def conv_weight_to_gemm_chunks(w_ct):
    """-> 3 per-kd bf16 GEMM chunks (Cout, 9*Cpad); rows [tap(kh,kw)][padded cin], pad cols zero."""
    w = ct3_to_conv(w_ct)                                  # (3,3,3,Cin,Cout)
    ci, co = w.shape[3], w.shape[4]
    cpad = _round_up(ci, ROW_PAD)
    if cpad > ci:
        w = jnp.concatenate([w, jnp.zeros((3, 3, 3, cpad - ci, co), w.dtype)], axis=3)
    full = w.reshape(27 * cpad, co).T.astype(jnp.bfloat16)  # (Cout, 27*Cpad), taps kd-major
    return tuple(full[:, kd * 9 * cpad:(kd + 1) * 9 * cpad] for kd in range(3))


def bn_fold(gamma, beta, mean, var, eps=1e-5):
    scale = gamma / jnp.sqrt(var + eps)
    shift = beta - mean * scale
    return scale.reshape(-1, 1), shift.reshape(-1, 1)       # column vectors for (C, N) broadcast


def _tap_mask(D, H, W):
    """(27, D*H*W) f32 0/1 mask: validity of each 3x3x3 tap at each output voxel (zero padding)."""
    d = np.arange(D)[:, None, None]
    h = np.arange(H)[None, :, None]
    w = np.arange(W)[None, None, :]
    rows = []
    for kd in range(3):
        for kh in range(3):
            for kw in range(3):
                valid = ((0 <= d + kd - 1) & (d + kd - 1 < D) &
                         (0 <= h + kh - 1) & (h + kh - 1 < H) &
                         (0 <= w + kw - 1) & (w + kw - 1 < W))
                rows.append(valid.astype(np.float32).reshape(-1))
    return jnp.asarray(np.stack(rows, axis=0))


def prep_params(rp):
    """Torch-style raw params -> kernel params (bf16 GEMM weight chunks, BN folded, SE prepped)."""
    s1, t1 = bn_fold(*rp["bn1"])
    s2, t2 = bn_fold(*rp["bn2"])
    ss, ts = bn_fold(*rp["bns"])
    return {
        "w1": conv_weight_to_gemm_chunks(rp["w1_ct"]),
        "b1": rp["b1"].reshape(-1, 1), "s1": s1, "t1": t1,
        "w2": conv_weight_to_gemm_chunks(rp["w2_ct"]),
        "b2": rp["b2"].reshape(-1, 1), "s2": s2, "t2": t2,
        "wsf": rp["ws_ct"][:, :, 0, 0, 0].T.astype(jnp.bfloat16),
        "bs": rp["bs"].reshape(-1, 1), "ss": ss, "ts": ts,
        # SE FCs evaluated on the VPU: fc1 weight pre-transposed to (Cout, Cr), row/col biases.
        "f1wT": rp["f1w"].T, "f1b": rp["f1b"].reshape(1, -1),
        "f2w": rp["f2w"], "f2b": rp["f2b"].reshape(-1, 1),
    }


def _full_spec(a):
    # NOTE: once weights get large, these constant-index-map blocks could be single-buffered
    # (pipeline_mode=pl.Buffered(1)) to save VMEM on v7x.
    return pl.BlockSpec(a.shape, lambda b: (0,) * a.ndim)


def decoder_se_resnet_block(x_ncdhw, p):
    """x_ncdhw: (B, Cin, D, H, W) float32 -> (B, Cout, D, H, W) float32."""
    B, Cin, D, H, W = x_ncdhw.shape
    N = D * H * W
    Cout = p["s1"].shape[0]
    x2 = x_ncdhw.reshape(B, Cin, N).astype(jnp.float32)      # channels-first, flat spatial (free)
    mask = _tap_mask(D, H, W)

    plist = [*p["w1"], p["b1"], p["s1"], p["t1"],
             *p["w2"], p["b2"], p["s2"], p["t2"],
             p["wsf"], p["bs"], p["ss"], p["ts"],
             p["f1wT"], p["f1b"], p["f2w"], p["f2b"]]

    cpad1 = p["w1"][0].shape[1] // 9
    cpad2 = p["w2"][0].shape[1] // 9
    col_rows = 9 * max(cpad1, cpad2)

    # Explicit VMEM budget: shared bf16 col scratch + double-buffered I/O blocks + params
    # + headroom for the live f32 h1/h2/residual values.
    scratch_bytes = col_rows * N * 2
    io_bytes = 2 * 2 * (Cin + Cout) * N * 4
    param_bytes = sum(int(a.size) * a.dtype.itemsize for a in plist) + int(mask.size) * 4
    interm_bytes = 8 * Cout * N * 4
    vmem_limit = int(min(max(2 * (scratch_bytes + io_bytes + param_bytes + interm_bytes),
                             32 << 20), 100 << 20))

    flops = B * (2 * N * 9 * 3 * (cpad1 + cpad2) * Cout      # two 3x3x3 convs (kd-chunked GEMMs)
                 + 2 * N * Cin * Cout                        # 1x1x1 shortcut
                 + 16 * N * Cout)                            # BN / SE gate / adds / LeakyReLU
    cost = pl.CostEstimate(
        flops=int(flops),
        transcendentals=int(B * Cout),
        bytes_accessed=int(x2.size * 4 + B * Cout * N * 4 + param_bytes))

    out = pl.pallas_call(
        functools.partial(_fused_kernel, dhw=(D, H, W)),
        grid=(B,),
        in_specs=([pl.BlockSpec((1, Cin, N), lambda b: (b, 0, 0)), _full_spec(mask)]
                  + [_full_spec(a) for a in plist]),
        out_specs=pl.BlockSpec((1, Cout, N), lambda b: (b, 0, 0)),
        out_shape=jax.ShapeDtypeStruct((B, Cout, N), jnp.float32),
        scratch_shapes=[pltpu.VMEM((col_rows, N), jnp.bfloat16)],
        compiler_params=pltpu.CompilerParams(
            dimension_semantics=("parallel",),
            vmem_limit_bytes=vmem_limit),
        cost_estimate=cost,
    )(x2, mask, *plist)
    return out.reshape(B, Cout, D, H, W)                     # contiguous reshape, no transpose


# ---------------------------------------------------------------------------
# Pure-JAX reference (all f32, independent of the kernel's GEMM formulation)
# ---------------------------------------------------------------------------
def _conv3_same(x, w, b):
    B, D, H, W, _ = x.shape
    Co = w.shape[-1]
    xp = jnp.pad(x, ((0, 0), (1, 1), (1, 1), (1, 1), (0, 0)))
    out = jnp.zeros((B, D, H, W, Co), jnp.float32)
    for kd in range(3):
        for kh in range(3):
            for kw in range(3):
                out = out + jnp.einsum("bdhwi,io->bdhwo",
                                       xp[:, kd:kd + D, kh:kh + H, kw:kw + W, :],
                                       w[kd, kh, kw])
    return out + b


def _bn(x, gamma, beta, mean, var, eps=1e-5):
    return (x - mean) / jnp.sqrt(var + eps) * gamma + beta


def reference(x_ncdhw, rp):
    x = jnp.transpose(x_ncdhw, (0, 2, 3, 4, 1)).astype(jnp.float32)   # NDHWC
    h = _leaky(_bn(_conv3_same(x, ct3_to_conv(rp["w1_ct"]), rp["b1"]), *rp["bn1"]))
    h2 = _bn(_conv3_same(h, ct3_to_conv(rp["w2_ct"]), rp["b2"]), *rp["bn2"])
    y = jnp.mean(h2, axis=(1, 2, 3))
    y = jnp.maximum(y @ rp["f1w"].T + rp["f1b"], 0.0)
    y = jax.nn.sigmoid(y @ rp["f2w"].T + rp["f2b"])
    h2 = h2 * y[:, None, None, None, :]
    r = _bn(jnp.einsum("bdhwi,io->bdhwo", x, rp["ws_ct"][:, :, 0, 0, 0]) + rp["bs"], *rp["bns"])
    return jnp.transpose(_leaky(h2 + r), (0, 4, 1, 2, 3))


# ---------------------------------------------------------------------------
# Deterministic synthetic parameters, matching the PyTorch module's shapes
# ---------------------------------------------------------------------------
def make_raw_params(key, cin, cout, reduction=16):
    cr = max(cout // reduction, 1)
    ks = jax.random.split(key, 24)
    n = lambda k, shape, s=0.1: s * jax.random.normal(k, shape, jnp.float32)
    u = lambda k, shape: jax.random.uniform(k, shape, jnp.float32, 0.5, 1.5)
    return {
        # ConvTranspose3d weights are (in, out, kd, kh, kw)
        "w1_ct": n(ks[0], (cin, cout, 3, 3, 3)), "b1": n(ks[1], (cout,)),
        "w2_ct": n(ks[2], (cout, cout, 3, 3, 3)), "b2": n(ks[3], (cout,)),
        # BatchNorm3d (gamma, beta, running_mean, running_var) -- inference mode
        "bn1": (u(ks[4], (cout,)), n(ks[5], (cout,)), n(ks[6], (cout,)), u(ks[7], (cout,))),
        "bn2": (u(ks[8], (cout,)), n(ks[9], (cout,)), n(ks[10], (cout,)), u(ks[11], (cout,))),
        # shortcut: ConvTranspose3d(cin, cout, kernel=1) + BN  (cin != cout here)
        "ws_ct": n(ks[12], (cin, cout, 1, 1, 1)), "bs": n(ks[13], (cout,)),
        "bns": (u(ks[14], (cout,)), n(ks[15], (cout,)), n(ks[16], (cout,)), u(ks[17], (cout,))),
        # SE block Linear weights in PyTorch (out, in) layout
        "f1w": n(ks[18], (cr, cout), 0.3), "f1b": n(ks[19], (cr,), 0.3),
        "f2w": n(ks[20], (cout, cr), 0.3), "f2b": n(ks[21], (cout,), 0.3),
    }


if __name__ == "__main__":
    B, CIN, COUT, D, H, W = 2, 8, 32, 8, 8, 8
    key = jax.random.PRNGKey(0)
    kx, kp = jax.random.split(key)
    x = jax.random.normal(kx, (B, CIN, D, H, W), jnp.float32)   # PyTorch NCDHW layout
    raw = make_raw_params(kp, CIN, COUT)
    params = prep_params(raw)

    out = jax.block_until_ready(decoder_se_resnet_block(x, params))
    ref = jax.block_until_ready(reference(x, raw))

    assert out.shape == (B, COUT, D, H, W), out.shape
    # Tolerance accounts for bf16 MXU operands (f32 accumulation) vs. the all-f32 reference.
    np.testing.assert_allclose(np.asarray(out), np.asarray(ref), rtol=5e-2, atol=5e-2)
    print("KERNEL_OK")
</pallas_src>

<mosaic_0001>
module attributes {stable_mosaic.version = 11 : i64} {
  func.func @_fused_kernel(%arg0: i32, %arg1: memref<1x8x512xf32, #tpu.memory_space<vmem>>, %arg2: memref<27x512xf32, #tpu.memory_space<vmem>>, %arg3: memref<32x144xbf16, #tpu.memory_space<vmem>>, %arg4: memref<32x144xbf16, #tpu.memory_space<vmem>>, %arg5: memref<32x144xbf16, #tpu.memory_space<vmem>>, %arg6: memref<32x1xf32, #tpu.memory_space<vmem>>, %arg7: memref<32x1xf32, #tpu.memory_space<vmem>>, %arg8: memref<32x1xf32, #tpu.memory_space<vmem>>, %arg9: memref<32x288xbf16, #tpu.memory_space<vmem>>, %arg10: memref<32x288xbf16, #tpu.memory_space<vmem>>, %arg11: memref<32x288xbf16, #tpu.memory_space<vmem>>, %arg12: memref<32x1xf32, #tpu.memory_space<vmem>>, %arg13: memref<32x1xf32, #tpu.memory_space<vmem>>, %arg14: memref<32x1xf32, #tpu.memory_space<vmem>>, %arg15: memref<32x8xbf16, #tpu.memory_space<vmem>>, %arg16: memref<32x1xf32, #tpu.memory_space<vmem>>, %arg17: memref<32x1xf32, #tpu.memory_space<vmem>>, %arg18: memref<32x1xf32, #tpu.memory_space<vmem>>, %arg19: memref<32x2xf32, #tpu.memory_space<vmem>>, %arg20: memref<1x2xf32, #tpu.memory_space<vmem>>, %arg21: memref<32x2xf32, #tpu.memory_space<vmem>>, %arg22: memref<32x1xf32, #tpu.memory_space<vmem>>, %arg23: memref<1x32x512xf32, #tpu.memory_space<vmem>>, %arg24: memref<288x512xbf16, #tpu.memory_space<vmem>>) attributes {dimension_semantics = [#tpu.dimension_semantics<parallel>], iteration_bounds = array<i64: 2>, scalar_prefetch = 0 : i64, scratch_operands = 1 : i64, tpu.core_type = #tpu.core_type<tc>, window_params = [{transform_indices = @transform_0, window_bounds = array<i64: 1, 8, 512>}, {pipeline_mode = #tpu.pipeline_mode<synchronous>, transform_indices = @transform_1, window_bounds = array<i64: 27, 512>}, {pipeline_mode = #tpu.pipeline_mode<synchronous>, transform_indices = @transform_2, window_bounds = array<i64: 32, 144>}, {pipeline_mode = #tpu.pipeline_mode<synchronous>, transform_indices = @transform_3, window_bounds = array<i64: 32, 144>}, {pipeline_mode = #tpu.pipeline_mode<synchronous>, transform_indices = @transform_4, window_bounds = array<i64: 32, 144>}, {pipeline_mode = #tpu.pipeline_mode<synchronous>, transform_indices = @transform_5, window_bounds = array<i64: 32, 1>}, {pipeline_mode = #tpu.pipeline_mode<synchronous>, transform_indices = @transform_6, window_bounds = array<i64: 32, 1>}, {pipeline_mode = #tpu.pipeline_mode<synchronous>, transform_indices = @transform_7, window_bounds = array<i64: 32, 1>}, {pipeline_mode = #tpu.pipeline_mode<synchronous>, transform_indices = @transform_8, window_bounds = array<i64: 32, 288>}, {pipeline_mode = #tpu.pipeline_mode<synchronous>, transform_indices = @transform_9, window_bounds = array<i64: 32, 288>}, {pipeline_mode = #tpu.pipeline_mode<synchronous>, transform_indices = @transform_10, window_bounds = array<i64: 32, 288>}, {pipeline_mode = #tpu.pipeline_mode<synchronous>, transform_indices = @transform_11, window_bounds = array<i64: 32, 1>}, {pipeline_mode = #tpu.pipeline_mode<synchronous>, transform_indices = @transform_12, window_bounds = array<i64: 32, 1>}, {pipeline_mode = #tpu.pipeline_mode<synchronous>, transform_indices = @transform_13, window_bounds = array<i64: 32, 1>}, {pipeline_mode = #tpu.pipeline_mode<synchronous>, transform_indices = @transform_14, window_bounds = array<i64: 32, 8>}, {pipeline_mode = #tpu.pipeline_mode<synchronous>, transform_indices = @transform_15, window_bounds = array<i64: 32, 1>}, {pipeline_mode = #tpu.pipeline_mode<synchronous>, transform_indices = @transform_16, window_bounds = array<i64: 32, 1>}, {pipeline_mode = #tpu.pipeline_mode<synchronous>, transform_indices = @transform_17, window_bounds = array<i64: 32, 1>}, {pipeline_mode = #tpu.pipeline_mode<synchronous>, transform_indices = @transform_18, window_bounds = array<i64: 32, 2>}, {pipeline_mode = #tpu.pipeline_mode<synchronous>, transform_indices = @transform_19, window_bounds = array<i64: 1, 2>}, {pipeline_mode = #tpu.pipeline_mode<synchronous>, transform_indices = @transform_20, window_bounds = array<i64: 32, 2>}, {pipeline_mode = #tpu.pipeline_mode<synchronous>, transform_indices = @transform_21, window_bounds = array<i64: 32, 1>}, {transform_indices = @transform_22, window_bounds = array<i64: 1, 32, 512>}]} {
    %c0 = arith.constant 0 : index
    %c0_0 = arith.constant 0 : index
    %c0_1 = arith.constant 0 : index
    %0 = vector.load %arg1[%c0, %c0_0, %c0_1] : memref<1x8x512xf32, #tpu.memory_space<vmem>>, vector<1x8x512xf32>
    %1 = vector.shape_cast %0 : vector<1x8x512xf32> to vector<8x512xf32>
    %cst = arith.constant 0.000000e+00 : f32
    %2 = vector.broadcast %cst : f32 to vector<8x512xf32>
    %3 = tpu.concatenate %1, %2 in 0 : vector<8x512xf32>, vector<8x512xf32> -> vector<16x512xf32>
    %c73_i32 = arith.constant 73 : i32
    %4 = tpu.dynamic_rotate %3 by %c73_i32 dim 1 : vector<16x512xf32>, i32 -> vector<16x512xf32>
    %c0_2 = arith.constant 0 : index
    %c0_3 = arith.constant 0 : index
    %5 = vector.load %arg2[%c0_2, %c0_3] : memref<27x512xf32, #tpu.memory_space<vmem>>, vector<1x512xf32>
    %6 = vector.broadcast %5 : vector<1x512xf32> to vector<16x512xf32>
    %7 = arith.mulf %4, %6 : vector<16x512xf32>
    %8 = arith.truncf %7 : vector<16x512xf32> to vector<16x512xbf16>
    %c0_4 = arith.constant 0 : index
    %c0_5 = arith.constant 0 : index
    %9 = vector.load %arg24[%c0_4, %c0_5] : memref<288x512xbf16, #tpu.memory_space<vmem>>, vector<16x512xbf16>
    tpu.vector_store %arg24[%c0_4, %c0_5], %8 {strides = array<i32>} : memref<288x512xbf16, #tpu.memory_space<vmem>>, vector<16x512xbf16>,
    %c72_i32 = arith.constant 72 : i32
    %10 = tpu.dynamic_rotate %3 by %c72_i32 dim 1 : vector<16x512xf32>, i32 -> vector<16x512xf32>
    %c1 = arith.constant 1 : index
    %c0_6 = arith.constant 0 : index
    %11 = vector.load %arg2[%c1, %c0_6] : memref<27x512xf32, #tpu.memory_space<vmem>>, vector<1x512xf32>
    %12 = vector.broadcast %11 : vector<1x512xf32> to vector<16x512xf32>
    %13 = arith.mulf %10, %12 : vector<16x512xf32>
    %14 = arith.truncf %13 : vector<16x512xf32> to vector<16x512xbf16>
    %c16 = arith.constant 16 : index
    %c0_7 = arith.constant 0 : index
    %15 = vector.load %arg24[%c16, %c0_7] : memref<288x512xbf16, #tpu.memory_space<vmem>>, vector<16x512xbf16>
    tpu.vector_store %arg24[%c16, %c0_7], %14 {strides = array<i32>} : memref<288x512xbf16, #tpu.memory_space<vmem>>, vector<16x512xbf16>,
    %c71_i32 = arith.constant 71 : i32
    %16 = tpu.dynamic_rotate %3 by %c71_i32 dim 1 : vector<16x512xf32>, i32 -> vector<16x512xf32>
    %c2 = arith.constant 2 : index
    %c0_8 = arith.constant 0 : index
    %17 = vector.load %arg2[%c2, %c0_8] : memref<27x512xf32, #tpu.memory_space<vmem>>, vector<1x512xf32>
    %18 = vector.broadcast %17 : vector<1x512xf32> to vector<16x512xf32>
    %19 = arith.mulf %16, %18 : vector<16x512xf32>
    %20 = arith.truncf %19 : vector<16x512xf32> to vector<16x512xbf16>
    %c32 = arith.constant 32 : index
    %c0_9 = arith.constant 0 : index
    %21 = vector.load %arg24[%c32, %c0_9] : memref<288x512xbf16, #tpu.memory_space<vmem>>, vector<16x512xbf16>
    tpu.vector_store %arg24[%c32, %c0_9], %20 {strides = array<i32>} : memref<288x512xbf16, #tpu.memory_space<vmem>>, vector<16x512xbf16>,
    %c65_i32 = arith.constant 65 : i32
    %22 = tpu.dynamic_rotate %3 by %c65_i32 dim 1 : vector<16x512xf32>, i32 -> vector<16x512xf32>
    %c3 = arith.constant 3 : index
    %c0_10 = arith.constant 0 : index
    %23 = vector.load %arg2[%c3, %c0_10] : memref<27x512xf32, #tpu.memory_space<vmem>>, vector<1x512xf32>
    %24 = vector.broadcast %23 : vector<1x512xf32> to vector<16x512xf32>
    %25 = arith.mulf %22, %24 : vector<16x512xf32>
    %26 = arith.truncf %25 : vector<16x512xf32> to vector<16x512xbf16>
    %c48 = arith.constant 48 : index
    %c0_11 = arith.constant 0 : index
    %27 = vector.load %arg24[%c48, %c0_11] : memref<288x512xbf16, #tpu.memory_space<vmem>>, vector<16x512xbf16>
    tpu.vector_store %arg24[%c48, %c0_11], %26 {strides = array<i32>} : memref<288x512xbf16, #tpu.memory_space<vmem>>, vector<16x512xbf16>,
    %c64_i32 = arith.constant 64 : i32
    %28 = tpu.dynamic_rotate %3 by %c64_i32 dim 1 : vector<16x512xf32>, i32 -> vector<16x512xf32>
    %c4 = arith.constant 4 : index
    %c0_12 = arith.constant 0 : index
    %29 = vector.load %arg2[%c4, %c0_12] : memref<27x512xf32, #tpu.memory_space<vmem>>, vector<1x512xf32>
    %30 = vector.broadcast %29 : vector<1x512xf32> to vector<16x512xf32>
    %31 = arith.mulf %28, %30 : vector<16x512xf32>
    %32 = arith.truncf %31 : vector<16x512xf32> to vector<16x512xbf16>
    %c64 = arith.constant 64 : index
    %c0_13 = arith.constant 0 : index
    %33 = vector.load %arg24[%c64, %c0_13] : memref<288x512xbf16, #tpu.memory_space<vmem>>, vector<16x512xbf16>
    tpu.vector_store %arg24[%c64, %c0_13], %32 {strides = array<i32>} : memref<288x512xbf16, #tpu.memory_space<vmem>>, vector<16x512xbf16>,
    %c63_i32 = arith.constant 63 : i32
    %34 = tpu.dynamic_rotate %3 by %c63_i32 dim 1 : vector<16x512xf32>, i32 -> vector<16x512xf32>
    %c5 = arith.constant 5 : index
    %c0_14 = arith.constant 0 : index
    %35 = vector.load %arg2[%c5, %c0_14] : memref<27x512xf32, #tpu.memory_space<vmem>>, vector<1x512xf32>
    %36 = vector.broadcast %35 : vector<1x512xf32> to vector<16x512xf32>
    %37 = arith.mulf %34, %36 : vector<16x512xf32>
    %38 = arith.truncf %37 : vector<16x512xf32> to vector<16x512xbf16>
    %c80 = arith.constant 80 : index
    %c0_15 = arith.constant 0 : index
    %39 = vector.load %arg24[%c80, %c0_15] : memref<288x512xbf16, #tpu.memory_space<vmem>>, vector<16x512xbf16>
    tpu.vector_store %arg24[%c80, %c0_15], %38 {strides = array<i32>} : memref<288x512xbf16, #tpu.memory_space<vmem>>, vector<16x512xbf16>,
    %c57_i32 = arith.constant 57 : i32
    %40 = tpu.dynamic_rotate %3 by %c57_i32 dim 1 : vector<16x512xf32>, i32 -> vector<16x512xf32>
    %c6 = arith.constant 6 : index
    %c0_16 = arith.constant 0 : index
    %41 = vector.load %arg2[%c6, %c0_16] : memref<27x512xf32, #tpu.memory_space<vmem>>, vector<1x512xf32>
    %42 = vector.broadcast %41 : vector<1x512xf32> to vector<16x512xf32>
    %43 = arith.mulf %40, %42 : vector<16x512xf32>
    %44 = arith.truncf %43 : vector<16x512xf32> to vector<16x512xbf16>
    %c96 = arith.constant 96 : index
    %c0_17 = arith.constant 0 : index
    %45 = vector.load %arg24[%c96, %c0_17] : memref<288x512xbf16, #tpu.memory_space<vmem>>, vector<16x512xbf16>
    tpu.vector_store %arg24[%c96, %c0_17], %44 {strides = array<i32>} : memref<288x512xbf16, #tpu.memory_space<vmem>>, vector<16x512xbf16>,
    %c56_i32 = arith.constant 56 : i32
    %46 = tpu.dynamic_rotate %3 by %c56_i32 dim 1 : vector<16x512xf32>, i32 -> vector<16x512xf32>
    %c7 = arith.constant 7 : index
    %c0_18 = arith.constant 0 : index
    %47 = vector.load %arg2[%c7, %c0_18] : memref<27x512xf32, #tpu.memory_space<vmem>>, vector<1x512xf32>
    %48 = vector.broadcast %47 : vector<1x512xf32> to vector<16x512xf32>
    %49 = arith.mulf %46, %48 : vector<16x512xf32>
    %50 = arith.truncf %49 : vector<16x512xf32> to vector<16x512xbf16>
    %c112 = arith.constant 112 : index
    %c0_19 = arith.constant 0 : index
    %51 = vector.load %arg24[%c112, %c0_19] : memref<288x512xbf16, #tpu.memory_space<vmem>>, vector<16x512xbf16>
    tpu.vector_store %arg24[%c112, %c0_19], %50 {strides = array<i32>} : memref<288x512xbf16, #tpu.memory_space<vmem>>, vector<16x512xbf16>,
    %c55_i32 = arith.constant 55 : i32
    %52 = tpu.dynamic_rotate %3 by %c55_i32 dim 1 : vector<16x512xf32>, i32 -> vector<16x512xf32>
    %c8 = arith.constant 8 : index
    %c0_20 = arith.constant 0 : index
    %53 = vector.load %arg2[%c8, %c0_20] : memref<27x512xf32, #tpu.memory_space<vmem>>, vector<1x512xf32>
    %54 = vector.broadcast %53 : vector<1x512xf32> to vector<16x512xf32>
    %55 = arith.mulf %52, %54 : vector<16x512xf32>
    %56 = arith.truncf %55 : vector<16x512xf32> to vector<16x512xbf16>
    %c128 = arith.constant 128 : index
    %c0_21 = arith.constant 0 : index
    %57 = vector.load %arg24[%c128, %c0_21] : memref<288x512xbf16, #tpu.memory_space<vmem>>, vector<16x512xbf16>
    tpu.vector_store %arg24[%c128, %c0_21], %56 {strides = array<i32>} : memref<288x512xbf16, #tpu.memory_space<vmem>>, vector<16x512xbf16>,
    %c0_22 = arith.constant 0 : index
    %c0_23 = arith.constant 0 : index
    %58 = vector.load %arg3[%c0_22, %c0_23] : memref<32x144xbf16, #tpu.memory_space<vmem>>, vector<32x144xbf16>
    %c0_24 = arith.constant 0 : index
    %c0_25 = arith.constant 0 : index
    %59 = vector.load %arg24[%c0_24, %c0_25] : memref<288x512xbf16, #tpu.memory_space<vmem>>, vector<144x512xbf16>
    %cst_26 = arith.constant dense<0.000000e+00> : vector<32x512xf32>
    %60 = tpu.matmul %58, %59, %cst_26 {dimension_numbers = #tpu.dot_dimension_numbers<[1], [0], [0], [1], [0, 0, 1, 1], [], []>} : vector<32x144xbf16>, vector<144x512xbf16>, vector<32x512xf32> -> vector<32x512xf32>
    %c9_i32 = arith.constant 9 : i32
    %61 = tpu.dynamic_rotate %3 by %c9_i32 dim 1 : vector<16x512xf32>, i32 -> vector<16x512xf32>
    %c9 = arith.constant 9 : index
    %c0_27 = arith.constant 0 : index
    %62 = vector.load %arg2[%c9, %c0_27] : memref<27x512xf32, #tpu.memory_space<vmem>>, vector<1x512xf32>
    %63 = vector.broadcast %62 : vector<1x512xf32> to vector<16x512xf32>
    %64 = arith.mulf %61, %63 : vector<16x512xf32>
    %65 = arith.truncf %64 : vector<16x512xf32> to vector<16x512xbf16>
    %c0_28 = arith.constant 0 : index
    %c0_29 = arith.constant 0 : index
    %66 = vector.load %arg24[%c0_28, %c0_29] : memref<288x512xbf16, #tpu.memory_space<vmem>>, vector<16x512xbf16>
    tpu.vector_store %arg24[%c0_28, %c0_29], %65 {strides = array<i32>} : memref<288x512xbf16, #tpu.memory_space<vmem>>, vector<16x512xbf16>,
    %c8_i32 = arith.constant 8 : i32
    %67 = tpu.dynamic_rotate %3 by %c8_i32 dim 1 : vector<16x512xf32>, i32 -> vector<16x512xf32>
    %c10 = arith.constant 10 : index
    %c0_30 = arith.constant 0 : index
    %68 = vector.load %arg2[%c10, %c0_30] : memref<27x512xf32, #tpu.memory_space<vmem>>, vector<1x512xf32>
    %69 = vector.broadcast %68 : vector<1x512xf32> to vector<16x512xf32>
    %70 = arith.mulf %67, %69 : vector<16x512xf32>
    %71 = arith.truncf %70 : vector<16x512xf32> to vector<16x512xbf16>
    %c16_31 = arith.constant 16 : index
    %c0_32 = arith.constant 0 : index
    %72 = vector.load %arg24[%c16_31, %c0_32] : memref<288x512xbf16, #tpu.memory_space<vmem>>, vector<16x512xbf16>
    tpu.vector_store %arg24[%c16_31, %c0_32], %71 {strides = array<i32>} : memref<288x512xbf16, #tpu.memory_space<vmem>>, vector<16x512xbf16>,
    %c7_i32 = arith.constant 7 : i32
    %73 = tpu.dynamic_rotate %3 by %c7_i32 dim 1 : vector<16x512xf32>, i32 -> vector<16x512xf32>
    %c11 = arith.constant 11 : index
    %c0_33 = arith.constant 0 : index
    %74 = vector.load %arg2[%c11, %c0_33] : memref<27x512xf32, #tpu.memory_space<vmem>>, vector<1x512xf32>
    %75 = vector.broadcast %74 : vector<1x512xf32> to vector<16x512xf32>
    %76 = arith.mulf %73, %75 : vector<16x512xf32>
    %77 = arith.truncf %76 : vector<16x512xf32> to vector<16x512xbf16>
    %c32_34 = arith.constant 32 : index
    %c0_35 = arith.constant 0 : index
    %78 = vector.load %arg24[%c32_34, %c0_35] : memref<288x512xbf16, #tpu.memory_space<vmem>>, vector<16x512xbf16>
    tpu.vector_store %arg24[%c32_34, %c0_35], %77 {strides = array<i32>} : memref<288x512xbf16, #tpu.memory_space<vmem>>, vector<16x512xbf16>,
    %c1_i32 = arith.constant 1 : i32
    %79 = tpu.dynamic_rotate %3 by %c1_i32 dim 1 : vector<16x512xf32>, i32 -> vector<16x512xf32>
    %c12 = arith.constant 12 : index
    %c0_36 = arith.constant 0 : index
    %80 = vector.load %arg2[%c12, %c0_36] : memref<27x512xf32, #tpu.memory_space<vmem>>, vector<1x512xf32>
    %81 = vector.broadcast %80 : vector<1x512xf32> to vector<16x512xf32>
    %82 = arith.mulf %79, %81 : vector<16x512xf32>
    %83 = arith.truncf %82 : vector<16x512xf32> to vector<16x512xbf16>
    %c48_37 = arith.constant 48 : index
    %c0_38 = arith.constant 0 : index
    %84 = vector.load %arg24[%c48_37, %c0_38] : memref<288x512xbf16, #tpu.memory_space<vmem>>, vector<16x512xbf16>
    tpu.vector_store %arg24[%c48_37, %c0_38], %83 {strides = array<i32>} : memref<288x512xbf16, #tpu.memory_space<vmem>>, vector<16x512xbf16>,
    %85 = arith.truncf %3 : vector<16x512xf32> to vector<16x512xbf16>
    %c64_39 = arith.constant 64 : index
    %c0_40 = arith.constant 0 : index
    %86 = vector.load %arg24[%c64_39, %c0_40] : memref<288x512xbf16, #tpu.memory_space<vmem>>, vector<16x512xbf16>
    tpu.vector_store %arg24[%c64_39, %c0_40], %85 {strides = array<i32>} : memref<288x512xbf16, #tpu.memory_space<vmem>>, vector<16x512xbf16>,
    %c511_i32 = arith.constant 511 : i32
    %87 = tpu.dynamic_rotate %3 by %c511_i32 dim 1 : vector<16x512xf32>, i32 -> vector<16x512xf32>
    %c14 = arith.constant 14 : index
    %c0_41 = arith.constant 0 : index
    %88 = vector.load %arg2[%c14, %c0_41] : memref<27x512xf32, #tpu.memory_space<vmem>>, vector<1x512xf32>
    %89 = vector.broadcast %88 : vector<1x512xf32> to vector<16x512xf32>
    %90 = arith.mulf %87, %89 : vector<16x512xf32>
    %91 = arith.truncf %90 : vector<16x512xf32> to vector<16x512xbf16>
    %c80_42 = arith.constant 80 : index
    %c0_43 = arith.constant 0 : index
    %92 = vector.load %arg24[%c80_42, %c0_43] : memref<288x512xbf16, #tpu.memory_space<vmem>>, vector<16x512xbf16>
    tpu.vector_store %arg24[%c80_42, %c0_43], %91 {strides = array<i32>} : memref<288x512xbf16, #tpu.memory_space<vmem>>, vector<16x512xbf16>,
    %c505_i32 = arith.constant 505 : i32
    %93 = tpu.dynamic_rotate %3 by %c505_i32 dim 1 : vector<16x512xf32>, i32 -> vector<16x512xf32>
    %c15 = arith.constant 15 : index
    %c0_44 = arith.constant 0 : index
    %94 = vector.load %arg2[%c15, %c0_44] : memref<27x512xf32, #tpu.memory_space<vmem>>, vector<1x512xf32>
    %95 = vector.broadcast %94 : vector<1x512xf32> to vector<16x512xf32>
    %96 = arith.mulf %93, %95 : vector<16x512xf32>
    %97 = arith.truncf %96 : vector<16x512xf32> to vector<16x512xbf16>
    %c96_45 = arith.constant 96 : index
    %c0_46 = arith.constant 0 : index
    %98 = vector.load %arg24[%c96_45, %c0_46] : memref<288x512xbf16, #tpu.memory_space<vmem>>, vector<16x512xbf16>
    tpu.vector_store %arg24[%c96_45, %c0_46], %97 {strides = array<i32>} : memref<288x512xbf16, #tpu.memory_space<vmem>>, vector<16x512xbf16>,
    %c504_i32 = arith.constant 504 : i32
    %99 = tpu.dynamic_rotate %3 by %c504_i32 dim 1 : vector<16x512xf32>, i32 -> vector<16x512xf32>
    %c16_47 = arith.constant 16 : index
    %c0_48 = arith.constant 0 : index
    %100 = vector.load %arg2[%c16_47, %c0_48] : memref<27x512xf32, #tpu.memory_space<vmem>>, vector<1x512xf32>
    %101 = vector.broadcast %100 : vector<1x512xf32> to vector<16x512xf32>
    %102 = arith.mulf %99, %101 : vector<16x512xf32>
    %103 = arith.truncf %102 : vector<16x512xf32> to vector<16x512xbf16>
    %c112_49 = arith.constant 112 : index
    %c0_50 = arith.constant 0 : index
    %104 = vector.load %arg24[%c112_49, %c0_50] : memref<288x512xbf16, #tpu.memory_space<vmem>>, vector<16x512xbf16>
    tpu.vector_store %arg24[%c112_49, %c0_50], %103 {strides = array<i32>} : memref<288x512xbf16, #tpu.memory_space<vmem>>, vector<16x512xbf16>,
    %c503_i32 = arith.constant 503 : i32
    %105 = tpu.dynamic_rotate %3 by %c503_i32 dim 1 : vector<16x512xf32>, i32 -> vector<16x512xf32>
    %c17 = arith.constant 17 : index
    %c0_51 = arith.constant 0 : index
    %106 = vector.load %arg2[%c17, %c0_51] : memref<27x512xf32, #tpu.memory_space<vmem>>, vector<1x512xf32>
    %107 = vector.broadcast %106 : vector<1x512xf32> to vector<16x512xf32>
    %108 = arith.mulf %105, %107 : vector<16x512xf32>
    %109 = arith.truncf %108 : vector<16x512xf32> to vector<16x512xbf16>
    %c128_52 = arith.constant 128 : index
    %c0_53 = arith.constant 0 : index
    %110 = vector.load %arg24[%c128_52, %c0_53] : memref<288x512xbf16, #tpu.memory_space<vmem>>, vector<16x512xbf16>
    tpu.vector_store %arg24[%c128_52, %c0_53], %109 {strides = array<i32>} : memref<288x512xbf16, #tpu.memory_space<vmem>>, vector<16x512xbf16>,
    %c0_54 = arith.constant 0 : index
    %c0_55 = arith.constant 0 : index
    %111 = vector.load %arg4[%c0_54, %c0_55] : memref<32x144xbf16, #tpu.memory_space<vmem>>, vector<32x144xbf16>
    %c0_56 = arith.constant 0 : index
    %c0_57 = arith.constant 0 : index
    %112 = vector.load %arg24[%c0_56, %c0_57] : memref<288x512xbf16, #tpu.memory_space<vmem>>, vector<144x512xbf16>
    %cst_58 = arith.constant dense<0.000000e+00> : vector<32x512xf32>
    %113 = tpu.matmul %111, %112, %cst_58 {dimension_numbers = #tpu.dot_dimension_numbers<[1], [0], [0], [1], [0, 0, 1, 1], [], []>} : vector<32x144xbf16>, vector<144x512xbf16>, vector<32x512xf32> -> vector<32x512xf32>
    %114 = arith.addf %60, %113 : vector<32x512xf32>
    %c457_i32 = arith.constant 457 : i32
    %115 = tpu.dynamic_rotate %3 by %c457_i32 dim 1 : vector<16x512xf32>, i32 -> vector<16x512xf32>
    %c18 = arith.constant 18 : index
    %c0_59 = arith.constant 0 : index
    %116 = vector.load %arg2[%c18, %c0_59] : memref<27x512xf32, #tpu.memory_space<vmem>>, vector<1x512xf32>
    %117 = vector.broadcast %116 : vector<1x512xf32> to vector<16x512xf32>
    %118 = arith.mulf %115, %117 : vector<16x512xf32>
    %119 = arith.truncf %118 : vector<16x512xf32> to vector<16x512xbf16>
    %c0_60 = arith.constant 0 : index
    %c0_61 = arith.constant 0 : index
    %120 = vector.load %arg24[%c0_60, %c0_61] : memref<288x512xbf16, #tpu.memory_space<vmem>>, vector<16x512xbf16>
    tpu.vector_store %arg24[%c0_60, %c0_61], %119 {strides = array<i32>} : memref<288x512xbf16, #tpu.memory_space<vmem>>, vector<16x512xbf16>,
    %c456_i32 = arith.constant 456 : i32
    %121 = tpu.dynamic_rotate %3 by %c456_i32 dim 1 : vector<16x512xf32>, i32 -> vector<16x512xf32>
    %c19 = arith.constant 19 : index
    %c0_62 = arith.constant 0 : index
    %122 = vector.load %arg2[%c19, %c0_62] : memref<27x512xf32, #tpu.memory_space<vmem>>, vector<1x512xf32>
    %123 = vector.broadcast %122 : vector<1x512xf32> to vector<16x512xf32>
    %124 = arith.mulf %121, %123 : vector<16x512xf32>
    %125 = arith.truncf %124 : vector<16x512xf32> to vector<16x512xbf16>
    %c16_63 = arith.constant 16 : index
    %c0_64 = arith.constant 0 : index
    %126 = vector.load %arg24[%c16_63, %c0_64] : memref<288x512xbf16, #tpu.memory_space<vmem>>, vector<16x512xbf16>
    tpu.vector_store %arg24[%c16_63, %c0_64], %125 {strides = array<i32>} : memref<288x512xbf16, #tpu.memory_space<vmem>>, vector<16x512xbf16>,
    %c455_i32 = arith.constant 455 : i32
    %127 = tpu.dynamic_rotate %3 by %c455_i32 dim 1 : vector<16x512xf32>, i32 -> vector<16x512xf32>
    %c20 = arith.constant 20 : index
    %c0_65 = arith.constant 0 : index
    %128 = vector.load %arg2[%c20, %c0_65] : memref<27x512xf32, #tpu.memory_space<vmem>>, vector<1x512xf32>
    %129 = vector.broadcast %128 : vector<1x512xf32> to vector<16x512xf32>
    %130 = arith.mulf %127, %129 : vector<16x512xf32>
    %131 = arith.truncf %130 : vector<16x512xf32> to vector<16x512xbf16>
    %c32_66 = arith.constant 32 : index
    %c0_67 = arith.constant 0 : index
    %132 = vector.load %arg24[%c32_66, %c0_67] : memref<288x512xbf16, #tpu.memory_space<vmem>>, vector<16x512xbf16>
    tpu.vector_store %arg24[%c32_66, %c0_67], %131 {strides = array<i32>} : memref<288x512xbf16, #tpu.memory_space<vmem>>, vector<16x512xbf16>,
    %c449_i32 = arith.constant 449 : i32
    %133 = tpu.dynamic_rotate %3 by %c449_i32 dim 1 : vector<16x512xf32>, i32 -> vector<16x512xf32>
    %c21 = arith.constant 21 : index
    %c0_68 = arith.constant 0 : index
    %134 = vector.load %arg2[%c21, %c0_68] : memref<27x512xf32, #tpu.memory_space<vmem>>, vector<1x512xf32>
    %135 = vector.broadcast %134 : vector<1x512xf32> to vector<16x512xf32>
    %136 = arith.mulf %133, %135 : vector<16x512xf32>
    %137 = arith.truncf %136 : vector<16x512xf32> to vector<16x512xbf16>
    %c48_69 = arith.constant 48 : index
    %c0_70 = arith.constant 0 : index
    %138 = vector.load %arg24[%c48_69, %c0_70] : memref<288x512xbf16, #tpu.memory_space<vmem>>, vector<16x512xbf16>
    tpu.vector_store %arg24[%c48_69, %c0_70], %137 {strides = array<i32>} : memref<288x512xbf16, #tpu.memory_space<vmem>>, vector<16x512xbf16>,
    %c448_i32 = arith.constant 448 : i32
    %139 = tpu.dynamic_rotate %3 by %c448_i32 dim 1 : vector<16x512xf32>, i32 -> vector<16x512xf32>
    %c22 = arith.constant 22 : index
    %c0_71 = arith.constant 0 : index
    %140 = vector.load %arg2[%c22, %c0_71] : memref<27x512xf32, #tpu.memory_space<vmem>>, vector<1x512xf32>
    %141 = vector.broadcast %140 : vector<1x512xf32> to vector<16x512xf32>
    %142 = arith.mulf %139, %141 : vector<16x512xf32>
    %143 = arith.truncf %142 : vector<16x512xf32> to vector<16x512xbf16>
    %c64_72 = arith.constant 64 : index
    %c0_73 = arith.constant 0 : index
    %144 = vector.load %arg24[%c64_72, %c0_73] : memref<288x512xbf16, #tpu.memory_space<vmem>>, vector<16x512xbf16>
    tpu.vector_store %arg24[%c64_72, %c0_73], %143 {strides = array<i32>} : memref<288x512xbf16, #tpu.memory_space<vmem>>, vector<16x512xbf16>,
    %c447_i32 = arith.constant 447 : i32
    %145 = tpu.dynamic_rotate %3 by %c447_i32 dim 1 : vector<16x512xf32>, i32 -> vector<16x512xf32>
    %c23 = arith.constant 23 : index
    %c0_74 = arith.constant 0 : index
    %146 = vector.load %arg2[%c23, %c0_74] : memref<27x512xf32, #tpu.memory_space<vmem>>, vector<1x512xf32>
    %147 = vector.broadcast %146 : vector<1x512xf32> to vector<16x512xf32>
    %148 = arith.mulf %145, %147 : vector<16x512xf32>
    %149 = arith.truncf %148 : vector<16x512xf32> to vector<16x512xbf16>
    %c80_75 = arith.constant 80 : index
    %c0_76 = arith.constant 0 : index
    %150 = vector.load %arg24[%c80_75, %c0_76] : memref<288x512xbf16, #tpu.memory_space<vmem>>, vector<16x512xbf16>
    tpu.vector_store %arg24[%c80_75, %c0_76], %149 {strides = array<i32>} : memref<288x512xbf16, #tpu.memory_space<vmem>>, vector<16x512xbf16>,
    %c441_i32 = arith.constant 441 : i32
    %151 = tpu.dynamic_rotate %3 by %c441_i32 dim 1 : vector<16x512xf32>, i32 -> vector<16x512xf32>
    %c24 = arith.constant 24 : index
    %c0_77 = arith.constant 0 : index
    %152 = vector.load %arg2[%c24, %c0_77] : memref<27x512xf32, #tpu.memory_space<vmem>>, vector<1x512xf32>
    %153 = vector.broadcast %152 : vector<1x512xf32> to vector<16x512xf32>
    %154 = arith.mulf %151, %153 : vector<16x512xf32>
    %155 = arith.truncf %154 : vector<16x512xf32> to vector<16x512xbf16>
    %c96_78 = arith.constant 96 : index
    %c0_79 = arith.constant 0 : index
    %156 = vector.load %arg24[%c96_78, %c0_79] : memref<288x512xbf16, #tpu.memory_space<vmem>>, vector<16x512xbf16>
    tpu.vector_store %arg24[%c96_78, %c0_79], %155 {strides = array<i32>} : memref<288x512xbf16, #tpu.memory_space<vmem>>, vector<16x512xbf16>,
    %c440_i32 = arith.constant 440 : i32
    %157 = tpu.dynamic_rotate %3 by %c440_i32 dim 1 : vector<16x512xf32>, i32 -> vector<16x512xf32>
    %c25 = arith.constant 25 : index
    %c0_80 = arith.constant 0 : index
    %158 = vector.load %arg2[%c25, %c0_80] : memref<27x512xf32, #tpu.memory_space<vmem>>, vector<1x512xf32>
    %159 = vector.broadcast %158 : vector<1x512xf32> to vector<16x512xf32>
    %160 = arith.mulf %157, %159 : vector<16x512xf32>
    %161 = arith.truncf %160 : vector<16x512xf32> to vector<16x512xbf16>
    %c112_81 = arith.constant 112 : index
    %c0_82 = arith.constant 0 : index
    %162 = vector.load %arg24[%c112_81, %c0_82] : memref<288x512xbf16, #tpu.memory_space<vmem>>, vector<16x512xbf16>
    tpu.vector_store %arg24[%c112_81, %c0_82], %161 {strides = array<i32>} : memref<288x512xbf16, #tpu.memory_space<vmem>>, vector<16x512xbf16>,
    %c439_i32 = arith.constant 439 : i32
    %163 = tpu.dynamic_rotate %3 by %c439_i32 dim 1 : vector<16x512xf32>, i32 -> vector<16x512xf32>
    %c26 = arith.constant 26 : index
    %c0_83 = arith.constant 0 : index
    %164 = vector.load %arg2[%c26, %c0_83] : memref<27x512xf32, #tpu.memory_space<vmem>>, vector<1x512xf32>
    %165 = vector.broadcast %164 : vector<1x512xf32> to vector<16x512xf32>
    %166 = arith.mulf %163, %165 : vector<16x512xf32>
    %167 = arith.truncf %166 : vector<16x512xf32> to vector<16x512xbf16>
    %c128_84 = arith.constant 128 : index
    %c0_85 = arith.constant 0 : index
    %168 = vector.load %arg24[%c128_84, %c0_85] : memref<288x512xbf16, #tpu.memory_space<vmem>>, vector<16x512xbf16>
    tpu.vector_store %arg24[%c128_84, %c0_85], %167 {strides = array<i32>} : memref<288x512xbf16, #tpu.memory_space<vmem>>, vector<16x512xbf16>,
    %c0_86 = arith.constant 0 : index
    %c0_87 = arith.constant 0 : index
    %169 = vector.load %arg5[%c0_86, %c0_87] : memref<32x144xbf16, #tpu.memory_space<vmem>>, vector<32x144xbf16>
    %c0_88 = arith.constant 0 : index
    %c0_89 = arith.constant 0 : index
    %170 = vector.load %arg24[%c0_88, %c0_89] : memref<288x512xbf16, #tpu.memory_space<vmem>>, vector<144x512xbf16>
    %cst_90 = arith.constant dense<0.000000e+00> : vector<32x512xf32>
    %171 = tpu.matmul %169, %170, %cst_90 {dimension_numbers = #tpu.dot_dimension_numbers<[1], [0], [0], [1], [0, 0, 1, 1], [], []>} : vector<32x144xbf16>, vector<144x512xbf16>, vector<32x512xf32> -> vector<32x512xf32>
    %172 = arith.addf %114, %171 : vector<32x512xf32>
    %c0_91 = arith.constant 0 : index
    %c0_92 = arith.constant 0 : index
    %173 = vector.load %arg6[%c0_91, %c0_92] : memref<32x1xf32, #tpu.memory_space<vmem>>, vector<32x1xf32>
    %174 = vector.broadcast %173 : vector<32x1xf32> to vector<32x512xf32>
    %175 = arith.addf %172, %174 : vector<32x512xf32>
    %c0_93 = arith.constant 0 : index
    %c0_94 = arith.constant 0 : index
    %176 = vector.load %arg7[%c0_93, %c0_94] : memref<32x1xf32, #tpu.memory_space<vmem>>, vector<32x1xf32>
    %177 = vector.broadcast %176 : vector<32x1xf32> to vector<32x512xf32>
    %178 = arith.mulf %175, %177 : vector<32x512xf32>
    %c0_95 = arith.constant 0 : index
    %c0_96 = arith.constant 0 : index
    %179 = vector.load %arg8[%c0_95, %c0_96] : memref<32x1xf32, #tpu.memory_space<vmem>>, vector<32x1xf32>
    %180 = vector.broadcast %179 : vector<32x1xf32> to vector<32x512xf32>
    %181 = arith.addf %178, %180 : vector<32x512xf32>
    %cst_97 = arith.constant 0.000000e+00 : f32
    %182 = vector.broadcast %cst_97 : f32 to vector<32x512xf32>
    %183 = arith.cmpf ogt, %181, %182 : vector<32x512xf32>
    %cst_98 = arith.constant 0.00999999977 : f32
    %184 = vector.broadcast %cst_98 : f32 to vector<32x512xf32>
    %185 = arith.mulf %184, %181 : vector<32x512xf32>
    %186 = arith.select %183, %181, %185 : vector<32x512xi1>, vector<32x512xf32>
    %c73_i32_99 = arith.constant 73 : i32
    %187 = tpu.dynamic_rotate %186 by %c73_i32_99 dim 1 : vector<32x512xf32>, i32 -> vector<32x512xf32>
    %c0_100 = arith.constant 0 : index
    %c0_101 = arith.constant 0 : index
    %188 = vector.load %arg2[%c0_100, %c0_101] : memref<27x512xf32, #tpu.memory_space<vmem>>, vector<1x512xf32>
    %189 = vector.broadcast %188 : vector<1x512xf32> to vector<32x512xf32>
    %190 = arith.mulf %187, %189 : vector<32x512xf32>
    %191 = arith.truncf %190 : vector<32x512xf32> to vector<32x512xbf16>
    %c0_102 = arith.constant 0 : index
    %c0_103 = arith.constant 0 : index
    %192 = vector.load %arg24[%c0_102, %c0_103] : memref<288x512xbf16, #tpu.memory_space<vmem>>, vector<32x512xbf16>
    tpu.vector_store %arg24[%c0_102, %c0_103], %191 {strides = array<i32>} : memref<288x512xbf16, #tpu.memory_space<vmem>>, vector<32x512xbf16>,
    %c72_i32_104 = arith.constant 72 : i32
    %193 = tpu.dynamic_rotate %186 by %c72_i32_104 dim 1 : vector<32x512xf32>, i32 -> vector<32x512xf32>
    %c1_105 = arith.constant 1 : index
    %c0_106 = arith.constant 0 : index
    %194 = vector.load %arg2[%c1_105, %c0_106] : memref<27x512xf32, #tpu.memory_space<vmem>>, vector<1x512xf32>
    %195 = vector.broadcast %194 : vector<1x512xf32> to vector<32x512xf32>
    %196 = arith.mulf %193, %195 : vector<32x512xf32>
    %197 = arith.truncf %196 : vector<32x512xf32> to vector<32x512xbf16>
    %c32_107 = arith.constant 32 : index
    %c0_108 = arith.constant 0 : index
    %198 = vector.load %arg24[%c32_107, %c0_108] : memref<288x512xbf16, #tpu.memory_space<vmem>>, vector<32x512xbf16>
    tpu.vector_store %arg24[%c32_107, %c0_108], %197 {strides = array<i32>} : memref<288x512xbf16, #tpu.memory_space<vmem>>, vector<32x512xbf16>,
    %c71_i32_109 = arith.constant 71 : i32
    %199 = tpu.dynamic_rotate %186 by %c71_i32_109 dim 1 : vector<32x512xf32>, i32 -> vector<32x512xf32>
    %c2_110 = arith.constant 2 : index
    %c0_111 = arith.constant 0 : index
    %200 = vector.load %arg2[%c2_110, %c0_111] : memref<27x512xf32, #tpu.memory_space<vmem>>, vector<1x512xf32>
    %201 = vector.broadcast %200 : vector<1x512xf32> to vector<32x512xf32>
    %202 = arith.mulf %199, %201 : vector<32x512xf32>
    %203 = arith.truncf %202 : vector<32x512xf32> to vector<32x512xbf16>
    %c64_112 = arith.constant 64 : index
    %c0_113 = arith.constant 0 : index
    %204 = vector.load %arg24[%c64_112, %c0_113] : memref<288x512xbf16, #tpu.memory_space<vmem>>, vector<32x512xbf16>
    tpu.vector_store %arg24[%c64_112, %c0_113], %203 {strides = array<i32>} : memref<288x512xbf16, #tpu.memory_space<vmem>>, vector<32x512xbf16>,
    %c65_i32_114 = arith.constant 65 : i32
    %205 = tpu.dynamic_rotate %186 by %c65_i32_114 dim 1 : vector<32x512xf32>, i32 -> vector<32x512xf32>
    %c3_115 = arith.constant 3 : index
    %c0_116 = arith.constant 0 : index
    %206 = vector.load %arg2[%c3_115, %c0_116] : memref<27x512xf32, #tpu.memory_space<vmem>>, vector<1x512xf32>
    %207 = vector.broadcast %206 : vector<1x512xf32> to vector<32x512xf32>
    %208 = arith.mulf %205, %207 : vector<32x512xf32>
    %209 = arith.truncf %208 : vector<32x512xf32> to vector<32x512xbf16>
    %c96_117 = arith.constant 96 : index
    %c0_118 = arith.constant 0 : index
    %210 = vector.load %arg24[%c96_117, %c0_118] : memref<288x512xbf16, #tpu.memory_space<vmem>>, vector<32x512xbf16>
    tpu.vector_store %arg24[%c96_117, %c0_118], %209 {strides = array<i32>} : memref<288x512xbf16, #tpu.memory_space<vmem>>, vector<32x512xbf16>,
    %c64_i32_119 = arith.constant 64 : i32
    %211 = tpu.dynamic_rotate %186 by %c64_i32_119 dim 1 : vector<32x512xf32>, i32 -> vector<32x512xf32>
    %c4_120 = arith.constant 4 : index
    %c0_121 = arith.constant 0 : index
    %212 = vector.load %arg2[%c4_120, %c0_121] : memref<27x512xf32, #tpu.memory_space<vmem>>, vector<1x512xf32>
    %213 = vector.broadcast %212 : vector<1x512xf32> to vector<32x512xf32>
    %214 = arith.mulf %211, %213 : vector<32x512xf32>
    %215 = arith.truncf %214 : vector<32x512xf32> to vector<32x512xbf16>
    %c128_122 = arith.constant 128 : index
    %c0_123 = arith.constant 0 : index
    %216 = vector.load %arg24[%c128_122, %c0_123] : memref<288x512xbf16, #tpu.memory_space<vmem>>, vector<32x512xbf16>
    tpu.vector_store %arg24[%c128_122, %c0_123], %215 {strides = array<i32>} : memref<288x512xbf16, #tpu.memory_space<vmem>>, vector<32x512xbf16>,
    %c63_i32_124 = arith.constant 63 : i32
    %217 = tpu.dynamic_rotate %186 by %c63_i32_124 dim 1 : vector<32x512xf32>, i32 -> vector<32x512xf32>
    %c5_125 = arith.constant 5 : index
    %c0_126 = arith.constant 0 : index
    %218 = vector.load %arg2[%c5_125, %c0_126] : memref<27x512xf32, #tpu.memory_space<vmem>>, vector<1x512xf32>
    %219 = vector.broadcast %218 : vector<1x512xf32> to vector<32x512xf32>
    %220 = arith.mulf %217, %219 : vector<32x512xf32>
    %221 = arith.truncf %220 : vector<32x512xf32> to vector<32x512xbf16>
    %c160 = arith.constant 160 : index
    %c0_127 = arith.constant 0 : index
    %222 = vector.load %arg24[%c160, %c0_127] : memref<288x512xbf16, #tpu.memory_space<vmem>>, vector<32x512xbf16>
    tpu.vector_store %arg24[%c160, %c0_127], %221 {strides = array<i32>} : memref<288x512xbf16, #tpu.memory_space<vmem>>, vector<32x512xbf16>,
    %c57_i32_128 = arith.constant 57 : i32
    %223 = tpu.dynamic_rotate %186 by %c57_i32_128 dim 1 : vector<32x512xf32>, i32 -> vector<32x512xf32>
    %c6_129 = arith.constant 6 : index
    %c0_130 = arith.constant 0 : index
    %224 = vector.load %arg2[%c6_129, %c0_130] : memref<27x512xf32, #tpu.memory_space<vmem>>, vector<1x512xf32>
    %225 = vector.broadcast %224 : vector<1x512xf32> to vector<32x512xf32>
    %226 = arith.mulf %223, %225 : vector<32x512xf32>
    %227 = arith.truncf %226 : vector<32x512xf32> to vector<32x512xbf16>
    %c192 = arith.constant 192 : index
    %c0_131 = arith.constant 0 : index
    %228 = vector.load %arg24[%c192, %c0_131] : memref<288x512xbf16, #tpu.memory_space<vmem>>, vector<32x512xbf16>
    tpu.vector_store %arg24[%c192, %c0_131], %227 {strides = array<i32>} : memref<288x512xbf16, #tpu.memory_space<vmem>>, vector<32x512xbf16>,
    %c56_i32_132 = arith.constant 56 : i32
    %229 = tpu.dynamic_rotate %186 by %c56_i32_132 dim 1 : vector<32x512xf32>, i32 -> vector<32x512xf32>
    %c7_133 = arith.constant 7 : index
    %c0_134 = arith.constant 0 : index
    %230 = vector.load %arg2[%c7_133, %c0_134] : memref<27x512xf32, #tpu.memory_space<vmem>>, vector<1x512xf32>
    %231 = vector.broadcast %230 : vector<1x512xf32> to vector<32x512xf32>
    %232 = arith.mulf %229, %231 : vector<32x512xf32>
    %233 = arith.truncf %232 : vector<32x512xf32> to vector<32x512xbf16>
    %c224 = arith.constant 224 : index
    %c0_135 = arith.constant 0 : index
    %234 = vector.load %arg24[%c224, %c0_135] : memref<288x512xbf16, #tpu.memory_space<vmem>>, vector<32x512xbf16>
    tpu.vector_store %arg24[%c224, %c0_135], %233 {strides = array<i32>} : memref<288x512xbf16, #tpu.memory_space<vmem>>, vector<32x512xbf16>,
    %c55_i32_136 = arith.constant 55 : i32
    %235 = tpu.dynamic_rotate %186 by %c55_i32_136 dim 1 : vector<32x512xf32>, i32 -> vector<32x512xf32>
    %c8_137 = arith.constant 8 : index
    %c0_138 = arith.constant 0 : index
    %236 = vector.load %arg2[%c8_137, %c0_138] : memref<27x512xf32, #tpu.memory_space<vmem>>, vector<1x512xf32>
    %237 = vector.broadcast %236 : vector<1x512xf32> to vector<32x512xf32>
    %238 = arith.mulf %235, %237 : vector<32x512xf32>
    %239 = arith.truncf %238 : vector<32x512xf32> to vector<32x512xbf16>
    %c256 = arith.constant 256 : index
    %c0_139 = arith.constant 0 : index
    %240 = vector.load %arg24[%c256, %c0_139] : memref<288x512xbf16, #tpu.memory_space<vmem>>, vector<32x512xbf16>
    tpu.vector_store %arg24[%c256, %c0_139], %239 {strides = array<i32>} : memref<288x512xbf16, #tpu.memory_space<vmem>>, vector<32x512xbf16>,
    %c0_140 = arith.constant 0 : index
    %c0_141 = arith.constant 0 : index
    %241 = vector.load %arg9[%c0_140, %c0_141] : memref<32x288xbf16, #tpu.memory_space<vmem>>, vector<32x288xbf16>
    %c0_142 = arith.constant 0 : index
    %c0_143 = arith.constant 0 : index
    %242 = vector.load %arg24[%c0_142, %c0_143] : memref<288x512xbf16, #tpu.memory_space<vmem>>, vector<288x512xbf16>
    %cst_144 = arith.constant dense<0.000000e+00> : vector<32x512xf32>
    %243 = tpu.matmul %241, %242, %cst_144 {dimension_numbers = #tpu.dot_dimension_numbers<[1], [0], [0], [1], [0, 0, 1, 1], [], []>} : vector<32x288xbf16>, vector<288x512xbf16>, vector<32x512xf32> -> vector<32x512xf32>
    %c9_i32_145 = arith.constant 9 : i32
    %244 = tpu.dynamic_rotate %186 by %c9_i32_145 dim 1 : vector<32x512xf32>, i32 -> vector<32x512xf32>
    %c9_146 = arith.constant 9 : index
    %c0_147 = arith.constant 0 : index
    %245 = vector.load %arg2[%c9_146, %c0_147] : memref<27x512xf32, #tpu.memory_space<vmem>>, vector<1x512xf32>
    %246 = vector.broadcast %245 : vector<1x512xf32> to vector<32x512xf32>
    %247 = arith.mulf %244, %246 : vector<32x512xf32>
    %248 = arith.truncf %247 : vector<32x512xf32> to vector<32x512xbf16>
    %c0_148 = arith.constant 0 : index
    %c0_149 = arith.constant 0 : index
    %249 = vector.load %arg24[%c0_148, %c0_149] : memref<288x512xbf16, #tpu.memory_space<vmem>>, vector<32x512xbf16>
    tpu.vector_store %arg24[%c0_148, %c0_149], %248 {strides = array<i32>} : memref<288x512xbf16, #tpu.memory_space<vmem>>, vector<32x512xbf16>,
    %c8_i32_150 = arith.constant 8 : i32
    %250 = tpu.dynamic_rotate %186 by %c8_i32_150 dim 1 : vector<32x512xf32>, i32 -> vector<32x512xf32>
    %c10_151 = arith.constant 10 : index
    %c0_152 = arith.constant 0 : index
    %251 = vector.load %arg2[%c10_151, %c0_152] : memref<27x512xf32, #tpu.memory_space<vmem>>, vector<1x512xf32>
    %252 = vector.broadcast %251 : vector<1x512xf32> to vector<32x512xf32>
    %253 = arith.mulf %250, %252 : vector<32x512xf32>
    %254 = arith.truncf %253 : vector<32x512xf32> to vector<32x512xbf16>
    %c32_153 = arith.constant 32 : index
    %c0_154 = arith.constant 0 : index
    %255 = vector.load %arg24[%c32_153, %c0_154] : memref<288x512xbf16, #tpu.memory_space<vmem>>, vector<32x512xbf16>
    tpu.vector_store %arg24[%c32_153, %c0_154], %254 {strides = array<i32>} : memref<288x512xbf16, #tpu.memory_space<vmem>>, vector<32x512xbf16>,
    %c7_i32_155 = arith.constant 7 : i32
    %256 = tpu.dynamic_rotate %186 by %c7_i32_155 dim 1 : vector<32x512xf32>, i32 -> vector<32x512xf32>
    %c11_156 = arith.constant 11 : index
    %c0_157 = arith.constant 0 : index
    %257 = vector.load %arg2[%c11_156, %c0_157] : memref<27x512xf32, #tpu.memory_space<vmem>>, vector<1x512xf32>
    %258 = vector.broadcast %257 : vector<1x512xf32> to vector<32x512xf32>
    %259 = arith.mulf %256, %258 : vector<32x512xf32>
    %260 = arith.truncf %259 : vector<32x512xf32> to vector<32x512xbf16>
    %c64_158 = arith.constant 64 : index
    %c0_159 = arith.constant 0 : index
    %261 = vector.load %arg24[%c64_158, %c0_159] : memref<288x512xbf16, #tpu.memory_space<vmem>>, vector<32x512xbf16>
    tpu.vector_store %arg24[%c64_158, %c0_159], %260 {strides = array<i32>} : memref<288x512xbf16, #tpu.memory_space<vmem>>, vector<32x512xbf16>,
    %c1_i32_160 = arith.constant 1 : i32
    %262 = tpu.dynamic_rotate %186 by %c1_i32_160 dim 1 : vector<32x512xf32>, i32 -> vector<32x512xf32>
    %c12_161 = arith.constant 12 : index
    %c0_162 = arith.constant 0 : index
    %263 = vector.load %arg2[%c12_161, %c0_162] : memref<27x512xf32, #tpu.memory_space<vmem>>, vector<1x512xf32>
    %264 = vector.broadcast %263 : vector<1x512xf32> to vector<32x512xf32>
    %265 = arith.mulf %262, %264 : vector<32x512xf32>
    %266 = arith.truncf %265 : vector<32x512xf32> to vector<32x512xbf16>
    %c96_163 = arith.constant 96 : index
    %c0_164 = arith.constant 0 : index
    %267 = vector.load %arg24[%c96_163, %c0_164] : memref<288x512xbf16, #tpu.memory_space<vmem>>, vector<32x512xbf16>
    tpu.vector_store %arg24[%c96_163, %c0_164], %266 {strides = array<i32>} : memref<288x512xbf16, #tpu.memory_space<vmem>>, vector<32x512xbf16>,
    %268 = arith.truncf %186 : vector<32x512xf32> to vector<32x512xbf16>
    %c128_165 = arith.constant 128 : index
    %c0_166 = arith.constant 0 : index
    %269 = vector.load %arg24[%c128_165, %c0_166] : memref<288x512xbf16, #tpu.memory_space<vmem>>, vector<32x512xbf16>
    tpu.vector_store %arg24[%c128_165, %c0_166], %268 {strides = array<i32>} : memref<288x512xbf16, #tpu.memory_space<vmem>>, vector<32x512xbf16>,
    %c511_i32_167 = arith.constant 511 : i32
    %270 = tpu.dynamic_rotate %186 by %c511_i32_167 dim 1 : vector<32x512xf32>, i32 -> vector<32x512xf32>
    %c14_168 = arith.constant 14 : index
    %c0_169 = arith.constant 0 : index
    %271 = vector.load %arg2[%c14_168, %c0_169] : memref<27x512xf32, #tpu.memory_space<vmem>>, vector<1x512xf32>
    %272 = vector.broadcast %271 : vector<1x512xf32> to vector<32x512xf32>
    %273 = arith.mulf %270, %272 : vector<32x512xf32>
    %274 = arith.truncf %273 : vector<32x512xf32> to vector<32x512xbf16>
    %c160_170 = arith.constant 160 : index
    %c0_171 = arith.constant 0 : index
    %275 = vector.load %arg24[%c160_170, %c0_171] : memref<288x512xbf16, #tpu.memory_space<vmem>>, vector<32x512xbf16>
    tpu.vector_store %arg24[%c160_170, %c0_171], %274 {strides = array<i32>} : memref<288x512xbf16, #tpu.memory_space<vmem>>, vector<32x512xbf16>,
    %c505_i32_172 = arith.constant 505 : i32
    %276 = tpu.dynamic_rotate %186 by %c505_i32_172 dim 1 : vector<32x512xf32>, i32 -> vector<32x512xf32>
    %c15_173 = arith.constant 15 : index
    %c0_174 = arith.constant 0 : index
    %277 = vector.load %arg2[%c15_173, %c0_174] : memref<27x512xf32, #tpu.memory_space<vmem>>, vector<1x512xf32>
    %278 = vector.broadcast %277 : vector<1x512xf32> to vector<32x512xf32>
    %279 = arith.mulf %276, %278 : vector<32x512xf32>
    %280 = arith.truncf %279 : vector<32x512xf32> to vector<32x512xbf16>
    %c192_175 = arith.constant 192 : index
    %c0_176 = arith.constant 0 : index
    %281 = vector.load %arg24[%c192_175, %c0_176] : memref<288x512xbf16, #tpu.memory_space<vmem>>, vector<32x512xbf16>
    tpu.vector_store %arg24[%c192_175, %c0_176], %280 {strides = array<i32>} : memref<288x512xbf16, #tpu.memory_space<vmem>>, vector<32x512xbf16>,
    %c504_i32_177 = arith.constant 504 : i32
    %282 = tpu.dynamic_rotate %186 by %c504_i32_177 dim 1 : vector<32x512xf32>, i32 -> vector<32x512xf32>
    %c16_178 = arith.constant 16 : index
    %c0_179 = arith.constant 0 : index
    %283 = vector.load %arg2[%c16_178, %c0_179] : memref<27x512xf32, #tpu.memory_space<vmem>>, vector<1x512xf32>
    %284 = vector.broadcast %283 : vector<1x512xf32> to vector<32x512xf32>
    %285 = arith.mulf %282, %284 : vector<32x512xf32>
    %286 = arith.truncf %285 : vector<32x512xf32> to vector<32x512xbf16>
    %c224_180 = arith.constant 224 : index
    %c0_181 = arith.constant 0 : index
    %287 = vector.load %arg24[%c224_180, %c0_181] : memref<288x512xbf16, #tpu.memory_space<vmem>>, vector<32x512xbf16>
    tpu.vector_store %arg24[%c224_180, %c0_181], %286 {strides = array<i32>} : memref<288x512xbf16, #tpu.memory_space<vmem>>, vector<32x512xbf16>,
    %c503_i32_182 = arith.constant 503 : i32
    %288 = tpu.dynamic_rotate %186 by %c503_i32_182 dim 1 : vector<32x512xf32>, i32 -> vector<32x512xf32>
    %c17_183 = arith.constant 17 : index
    %c0_184 = arith.constant 0 : index
    %289 = vector.load %arg2[%c17_183, %c0_184] : memref<27x512xf32, #tpu.memory_space<vmem>>, vector<1x512xf32>
    %290 = vector.broadcast %289 : vector<1x512xf32> to vector<32x512xf32>
    %291 = arith.mulf %288, %290 : vector<32x512xf32>
    %292 = arith.truncf %291 : vector<32x512xf32> to vector<32x512xbf16>
    %c256_185 = arith.constant 256 : index
    %c0_186 = arith.constant 0 : index
    %293 = vector.load %arg24[%c256_185, %c0_186] : memref<288x512xbf16, #tpu.memory_space<vmem>>, vector<32x512xbf16>
    tpu.vector_store %arg24[%c256_185, %c0_186], %292 {strides = array<i32>} : memref<288x512xbf16, #tpu.memory_space<vmem>>, vector<32x512xbf16>,
    %c0_187 = arith.constant 0 : index
    %c0_188 = arith.constant 0 : index
    %294 = vector.load %arg10[%c0_187, %c0_188] : memref<32x288xbf16, #tpu.memory_space<vmem>>, vector<32x288xbf16>
    %c0_189 = arith.constant 0 : index
    %c0_190 = arith.constant 0 : index
    %295 = vector.load %arg24[%c0_189, %c0_190] : memref<288x512xbf16, #tpu.memory_space<vmem>>, vector<288x512xbf16>
    %cst_191 = arith.constant dense<0.000000e+00> : vector<32x512xf32>
    %296 = tpu.matmul %294, %295, %cst_191 {dimension_numbers = #tpu.dot_dimension_numbers<[1], [0], [0], [1], [0, 0, 1, 1], [], []>} : vector<32x288xbf16>, vector<288x512xbf16>, vector<32x512xf32> -> vector<32x512xf32>
    %297 = arith.addf %243, %296 : vector<32x512xf32>
    %c457_i32_192 = arith.constant 457 : i32
    %298 = tpu.dynamic_rotate %186 by %c457_i32_192 dim 1 : vector<32x512xf32>, i32 -> vector<32x512xf32>
    %c18_193 = arith.constant 18 : index
    %c0_194 = arith.constant 0 : index
    %299 = vector.load %arg2[%c18_193, %c0_194] : memref<27x512xf32, #tpu.memory_space<vmem>>, vector<1x512xf32>
    %300 = vector.broadcast %299 : vector<1x512xf32> to vector<32x512xf32>
    %301 = arith.mulf %298, %300 : vector<32x512xf32>
    %302 = arith.truncf %301 : vector<32x512xf32> to vector<32x512xbf16>
    %c0_195 = arith.constant 0 : index
    %c0_196 = arith.constant 0 : index
    %303 = vector.load %arg24[%c0_195, %c0_196] : memref<288x512xbf16, #tpu.memory_space<vmem>>, vector<32x512xbf16>
    tpu.vector_store %arg24[%c0_195, %c0_196], %302 {strides = array<i32>} : memref<288x512xbf16, #tpu.memory_space<vmem>>, vector<32x512xbf16>,
    %c456_i32_197 = arith.constant 456 : i32
    %304 = tpu.dynamic_rotate %186 by %c456_i32_197 dim 1 : vector<32x512xf32>, i32 -> vector<32x512xf32>
    %c19_198 = arith.constant 19 : index
    %c0_199 = arith.constant 0 : index
    %305 = vector.load %arg2[%c19_198, %c0_199] : memref<27x512xf32, #tpu.memory_space<vmem>>, vector<1x512xf32>
    %306 = vector.broadcast %305 : vector<1x512xf32> to vector<32x512xf32>
    %307 = arith.mulf %304, %306 : vector<32x512xf32>
    %308 = arith.truncf %307 : vector<32x512xf32> to vector<32x512xbf16>
    %c32_200 = arith.constant 32 : index
    %c0_201 = arith.constant 0 : index
    %309 = vector.load %arg24[%c32_200, %c0_201] : memref<288x512xbf16, #tpu.memory_space<vmem>>, vector<32x512xbf16>
    tpu.vector_store %arg24[%c32_200, %c0_201], %308 {strides = array<i32>} : memref<288x512xbf16, #tpu.memory_space<vmem>>, vector<32x512xbf16>,
    %c455_i32_202 = arith.constant 455 : i32
    %310 = tpu.dynamic_rotate %186 by %c455_i32_202 dim 1 : vector<32x512xf32>, i32 -> vector<32x512xf32>
    %c20_203 = arith.constant 20 : index
    %c0_204 = arith.constant 0 : index
    %311 = vector.load %arg2[%c20_203, %c0_204] : memref<27x512xf32, #tpu.memory_space<vmem>>, vector<1x512xf32>
    %312 = vector.broadcast %311 : vector<1x512xf32> to vector<32x512xf32>
    %313 = arith.mulf %310, %312 : vector<32x512xf32>
    %314 = arith.truncf %313 : vector<32x512xf32> to vector<32x512xbf16>
    %c64_205 = arith.constant 64 : index
    %c0_206 = arith.constant 0 : index
    %315 = vector.load %arg24[%c64_205, %c0_206] : memref<288x512xbf16, #tpu.memory_space<vmem>>, vector<32x512xbf16>
    tpu.vector_store %arg24[%c64_205, %c0_206], %314 {strides = array<i32>} : memref<288x512xbf16, #tpu.memory_space<vmem>>, vector<32x512xbf16>,
    %c449_i32_207 = arith.constant 449 : i32
    %316 = tpu.dynamic_rotate %186 by %c449_i32_207 dim 1 : vector<32x512xf32>, i32 -> vector<32x512xf32>
    %c21_208 = arith.constant 21 : index
    %c0_209 = arith.constant 0 : index
    %317 = vector.load %arg2[%c21_208, %c0_209] : memref<27x512xf32, #tpu.memory_space<vmem>>, vector<1x512xf32>
    %318 = vector.broadcast %317 : vector<1x512xf32> to vector<32x512xf32>
    %319 = arith.mulf %316, %318 : vector<32x512xf32>
    %320 = arith.truncf %319 : vector<32x512xf32> to vector<32x512xbf16>
    %c96_210 = arith.constant 96 : index
    %c0_211 = arith.constant 0 : index
    %321 = vector.load %arg24[%c96_210, %c0_211] : memref<288x512xbf16, #tpu.memory_space<vmem>>, vector<32x512xbf16>
    tpu.vector_store %arg24[%c96_210, %c0_211], %320 {strides = array<i32>} : memref<288x512xbf16, #tpu.memory_space<vmem>>, vector<32x512xbf16>,
    %c448_i32_212 = arith.constant 448 : i32
    %322 = tpu.dynamic_rotate %186 by %c448_i32_212 dim 1 : vector<32x512xf32>, i32 -> vector<32x512xf32>
    %c22_213 = arith.constant 22 : index
    %c0_214 = arith.constant 0 : index
    %323 = vector.load %arg2[%c22_213, %c0_214] : memref<27x512xf32, #tpu.memory_space<vmem>>, vector<1x512xf32>
    %324 = vector.broadcast %323 : vector<1x512xf32> to vector<32x512xf32>
    %325 = arith.mulf %322, %324 : vector<32x512xf32>
    %326 = arith.truncf %325 : vector<32x512xf32> to vector<32x512xbf16>
    %c128_215 = arith.constant 128 : index
    %c0_216 = arith.constant 0 : index
    %327 = vector.load %arg24[%c128_215, %c0_216] : memref<288x512xbf16, #tpu.memory_space<vmem>>, vector<32x512xbf16>
    tpu.vector_store %arg24[%c128_215, %c0_216], %326 {strides = array<i32>} : memref<288x512xbf16, #tpu.memory_space<vmem>>, vector<32x512xbf16>,
    %c447_i32_217 = arith.constant 447 : i32
    %328 = tpu.dynamic_rotate %186 by %c447_i32_217 dim 1 : vector<32x512xf32>, i32 -> vector<32x512xf32>
    %c23_218 = arith.constant 23 : index
    %c0_219 = arith.constant 0 : index
    %329 = vector.load %arg2[%c23_218, %c0_219] : memref<27x512xf32, #tpu.memory_space<vmem>>, vector<1x512xf32>
    %330 = vector.broadcast %329 : vector<1x512xf32> to vector<32x512xf32>
    %331 = arith.mulf %328, %330 : vector<32x512xf32>
    %332 = arith.truncf %331 : vector<32x512xf32> to vector<32x512xbf16>
    %c160_220 = arith.constant 160 : index
    %c0_221 = arith.constant 0 : index
    %333 = vector.load %arg24[%c160_220, %c0_221] : memref<288x512xbf16, #tpu.memory_space<vmem>>, vector<32x512xbf16>
    tpu.vector_store %arg24[%c160_220, %c0_221], %332 {strides = array<i32>} : memref<288x512xbf16, #tpu.memory_space<vmem>>, vector<32x512xbf16>,
    %c441_i32_222 = arith.constant 441 : i32
    %334 = tpu.dynamic_rotate %186 by %c441_i32_222 dim 1 : vector<32x512xf32>, i32 -> vector<32x512xf32>
    %c24_223 = arith.constant 24 : index
    %c0_224 = arith.constant 0 : index
    %335 = vector.load %arg2[%c24_223, %c0_224] : memref<27x512xf32, #tpu.memory_space<vmem>>, vector<1x512xf32>
    %336 = vector.broadcast %335 : vector<1x512xf32> to vector<32x512xf32>
    %337 = arith.mulf %334, %336 : vector<32x512xf32>
    %338 = arith.truncf %337 : vector<32x512xf32> to vector<32x512xbf16>
    %c192_225 = arith.constant 192 : index
    %c0_226 = arith.constant 0 : index
    %339 = vector.load %arg24[%c192_225, %c0_226] : memref<288x512xbf16, #tpu.memory_space<vmem>>, vector<32x512xbf16>
    tpu.vector_store %arg24[%c192_225, %c0_226], %338 {strides = array<i32>} : memref<288x512xbf16, #tpu.memory_space<vmem>>, vector<32x512xbf16>,
    %c440_i32_227 = arith.constant 440 : i32
    %340 = tpu.dynamic_rotate %186 by %c440_i32_227 dim 1 : vector<32x512xf32>, i32 -> vector<32x512xf32>
    %c25_228 = arith.constant 25 : index
    %c0_229 = arith.constant 0 : index
    %341 = vector.load %arg2[%c25_228, %c0_229] : memref<27x512xf32, #tpu.memory_space<vmem>>, vector<1x512xf32>
    %342 = vector.broadcast %341 : vector<1x512xf32> to vector<32x512xf32>
    %343 = arith.mulf %340, %342 : vector<32x512xf32>
    %344 = arith.truncf %343 : vector<32x512xf32> to vector<32x512xbf16>
    %c224_230 = arith.constant 224 : index
    %c0_231 = arith.constant 0 : index
    %345 = vector.load %arg24[%c224_230, %c0_231] : memref<288x512xbf16, #tpu.memory_space<vmem>>, vector<32x512xbf16>
    tpu.vector_store %arg24[%c224_230, %c0_231], %344 {strides = array<i32>} : memref<288x512xbf16, #tpu.memory_space<vmem>>, vector<32x512xbf16>,
    %c439_i32_232 = arith.constant 439 : i32
    %346 = tpu.dynamic_rotate %186 by %c439_i32_232 dim 1 : vector<32x512xf32>, i32 -> vector<32x512xf32>
    %c26_233 = arith.constant 26 : index
    %c0_234 = arith.constant 0 : index
    %347 = vector.load %arg2[%c26_233, %c0_234] : memref<27x512xf32, #tpu.memory_space<vmem>>, vector<1x512xf32>
    %348 = vector.broadcast %347 : vector<1x512xf32> to vector<32x512xf32>
    %349 = arith.mulf %346, %348 : vector<32x512xf32>
    %350 = arith.truncf %349 : vector<32x512xf32> to vector<32x512xbf16>
    %c256_235 = arith.constant 256 : index
    %c0_236 = arith.constant 0 : index
    %351 = vector.load %arg24[%c256_235, %c0_236] : memref<288x512xbf16, #tpu.memory_space<vmem>>, vector<32x512xbf16>
    tpu.vector_store %arg24[%c256_235, %c0_236], %350 {strides = array<i32>} : memref<288x512xbf16, #tpu.memory_space<vmem>>, vector<32x512xbf16>,
    %c0_237 = arith.constant 0 : index
    %c0_238 = arith.constant 0 : index
    %352 = vector.load %arg11[%c0_237, %c0_238] : memref<32x288xbf16, #tpu.memory_space<vmem>>, vector<32x288xbf16>
    %c0_239 = arith.constant 0 : index
    %c0_240 = arith.constant 0 : index
    %353 = vector.load %arg24[%c0_239, %c0_240] : memref<288x512xbf16, #tpu.memory_space<vmem>>, vector<288x512xbf16>
    %cst_241 = arith.constant dense<0.000000e+00> : vector<32x512xf32>
    %354 = tpu.matmul %352, %353, %cst_241 {dimension_numbers = #tpu.dot_dimension_numbers<[1], [0], [0], [1], [0, 0, 1, 1], [], []>} : vector<32x288xbf16>, vector<288x512xbf16>, vector<32x512xf32> -> vector<32x512xf32>
    %355 = arith.addf %297, %354 : vector<32x512xf32>
    %c0_242 = arith.constant 0 : index
    %c0_243 = arith.constant 0 : index
    %356 = vector.load %arg12[%c0_242, %c0_243] : memref<32x1xf32, #tpu.memory_space<vmem>>, vector<32x1xf32>
    %357 = vector.broadcast %356 : vector<32x1xf32> to vector<32x512xf32>
    %358 = arith.addf %355, %357 : vector<32x512xf32>
    %c0_244 = arith.constant 0 : index
    %c0_245 = arith.constant 0 : index
    %359 = vector.load %arg13[%c0_244, %c0_245] : memref<32x1xf32, #tpu.memory_space<vmem>>, vector<32x1xf32>
    %360 = vector.broadcast %359 : vector<32x1xf32> to vector<32x512xf32>
    %361 = arith.mulf %358, %360 : vector<32x512xf32>
    %c0_246 = arith.constant 0 : index
    %c0_247 = arith.constant 0 : index
    %362 = vector.load %arg14[%c0_246, %c0_247] : memref<32x1xf32, #tpu.memory_space<vmem>>, vector<32x1xf32>
    %363 = vector.broadcast %362 : vector<32x1xf32> to vector<32x512xf32>
    %364 = arith.addf %361, %363 : vector<32x512xf32>
    %cst_248 = arith.constant dense<0.000000e+00> : vector<32xf32>
    %365 = vector.multi_reduction <add>, %364, %cst_248 [1] : vector<32x512xf32> to vector<32xf32>
    %366 = vector.shape_cast %365 : vector<32xf32> to vector<32x1xf32>
    %cst_249 = arith.constant 5.120000e+02 : f32
    %367 = vector.broadcast %cst_249 : f32 to vector<32x1xf32>
    %368 = arith.divf %366, %367 : vector<32x1xf32>
    %c0_250 = arith.constant 0 : index
    %c0_251 = arith.constant 0 : index
    %369 = vector.load %arg19[%c0_250, %c0_251] : memref<32x2xf32, #tpu.memory_space<vmem>>, vector<32x2xf32>
    %370 = vector.broadcast %368 : vector<32x1xf32> to vector<32x2xf32>
    %371 = arith.mulf %369, %370 : vector<32x2xf32>
    %cst_252 = arith.constant dense<0.000000e+00> : vector<2xf32>
    %372 = vector.multi_reduction <add>, %371, %cst_252 [0] : vector<32x2xf32> to vector<2xf32>
    %373 = vector.shape_cast %372 : vector<2xf32> to vector<1x2xf32>
    %c0_253 = arith.constant 0 : index
    %c0_254 = arith.constant 0 : index
    %374 = vector.load %arg20[%c0_253, %c0_254] : memref<1x2xf32, #tpu.memory_space<vmem>>, vector<1x2xf32>
    %375 = arith.addf %373, %374 : vector<1x2xf32>
    %cst_255 = arith.constant 0.000000e+00 : f32
    %376 = vector.broadcast %cst_255 : f32 to vector<1x2xf32>
    %377 = arith.maximumf %375, %376 : vector<1x2xf32>
    %c0_256 = arith.constant 0 : index
    %c0_257 = arith.constant 0 : index
    %378 = vector.load %arg21[%c0_256, %c0_257] : memref<32x2xf32, #tpu.memory_space<vmem>>, vector<32x2xf32>
    %379 = vector.broadcast %377 : vector<1x2xf32> to vector<32x2xf32>
    %380 = arith.mulf %378, %379 : vector<32x2xf32>
    %cst_258 = arith.constant dense<0.000000e+00> : vector<32xf32>
    %381 = vector.multi_reduction <add>, %380, %cst_258 [1] : vector<32x2xf32> to vector<32xf32>
    %382 = vector.shape_cast %381 : vector<32xf32> to vector<32x1xf32>
    %c0_259 = arith.constant 0 : index
    %c0_260 = arith.constant 0 : index
    %383 = vector.load %arg22[%c0_259, %c0_260] : memref<32x1xf32, #tpu.memory_space<vmem>>, vector<32x1xf32>
    %384 = arith.addf %382, %383 : vector<32x1xf32>
    %385 = arith.negf %384 : vector<32x1xf32>
    %386 = math.exp %385 : vector<32x1xf32>
    %cst_261 = arith.constant 1.000000e+00 : f32
    %387 = vector.broadcast %cst_261 : f32 to vector<32x1xf32>
    %388 = arith.addf %387, %386 : vector<32x1xf32>
    %389 = arith.divf %387, %388 : vector<32x1xf32>
    %390 = vector.broadcast %389 : vector<32x1xf32> to vector<32x512xf32>
    %391 = arith.mulf %364, %390 : vector<32x512xf32>
    %c0_262 = arith.constant 0 : index
    %c0_263 = arith.constant 0 : index
    %392 = vector.load %arg15[%c0_262, %c0_263] : memref<32x8xbf16, #tpu.memory_space<vmem>>, vector<32x8xbf16>
    %393 = arith.truncf %1 : vector<8x512xf32> to vector<8x512xbf16>
    %cst_264 = arith.constant dense<0.000000e+00> : vector<32x512xf32>
    %394 = tpu.matmul %392, %393, %cst_264 {dimension_numbers = #tpu.dot_dimension_numbers<[1], [0], [0], [1], [0, 0, 1, 1], [], []>} : vector<32x8xbf16>, vector<8x512xbf16>, vector<32x512xf32> -> vector<32x512xf32>
    %c0_265 = arith.constant 0 : index
    %c0_266 = arith.constant 0 : index
    %395 = vector.load %arg16[%c0_265, %c0_266] : memref<32x1xf32, #tpu.memory_space<vmem>>, vector<32x1xf32>
    %396 = vector.broadcast %395 : vector<32x1xf32> to vector<32x512xf32>
    %397 = arith.addf %394, %396 : vector<32x512xf32>
    %c0_267 = arith.constant 0 : index
    %c0_268 = arith.constant 0 : index
    %398 = vector.load %arg17[%c0_267, %c0_268] : memref<32x1xf32, #tpu.memory_space<vmem>>, vector<32x1xf32>
    %399 = vector.broadcast %398 : vector<32x1xf32> to vector<32x512xf32>
    %400 = arith.mulf %397, %399 : vector<32x512xf32>
    %c0_269 = arith.constant 0 : index
    %c0_270 = arith.constant 0 : index
    %401 = vector.load %arg18[%c0_269, %c0_270] : memref<32x1xf32, #tpu.memory_space<vmem>>, vector<32x1xf32>
    %402 = vector.broadcast %401 : vector<32x1xf32> to vector<32x512xf32>
    %403 = arith.addf %400, %402 : vector<32x512xf32>
    %404 = arith.addf %391, %403 : vector<32x512xf32>
    %cst_271 = arith.constant 0.000000e+00 : f32
    %405 = vector.broadcast %cst_271 : f32 to vector<32x512xf32>
    %406 = arith.cmpf ogt, %404, %405 : vector<32x512xf32>
    %cst_272 = arith.constant 0.00999999977 : f32
    %407 = vector.broadcast %cst_272 : f32 to vector<32x512xf32>
    %408 = arith.mulf %407, %404 : vector<32x512xf32>
    %409 = arith.select %406, %404, %408 : vector<32x512xi1>, vector<32x512xf32>
    %c0_273 = arith.constant 0 : index
    %c0_274 = arith.constant 0 : index
    %c0_275 = arith.constant 0 : index
    %410 = vector.load %arg23[%c0_273, %c0_274, %c0_275] : memref<1x32x512xf32, #tpu.memory_space<vmem>>, vector<1x32x512xf32>
    %411 = vector.shape_cast %410 : vector<1x32x512xf32> to vector<32x512xf32>
    %412 = vector.shape_cast %409 : vector<32x512xf32> to vector<1x32x512xf32>
    tpu.vector_store %arg23[%c0_273, %c0_274, %c0_275], %412 {strides = array<i32>} : memref<1x32x512xf32, #tpu.memory_space<vmem>>, vector<1x32x512xf32>,
    return
  }
  func.func @transform_0(%arg0: i32) -> (i32, i32, i32) {
    %c0_i32 = arith.constant 0 : i32
    %c0_i32_0 = arith.constant 0 : i32
    %c0_i32_1 = arith.constant 0 : i32
    return %arg0, %c0_i32, %c0_i32_0 : i32, i32, i32
  }
  func.func @transform_1(%arg0: i32) -> (i32, i32) {
    %c0_i32 = arith.constant 0 : i32
    %c0_i32_0 = arith.constant 0 : i32
    %c0_i32_1 = arith.constant 0 : i32
    return %c0_i32, %c0_i32_0 : i32, i32
  }
  func.func @transform_2(%arg0: i32) -> (i32, i32) {
    %c0_i32 = arith.constant 0 : i32
    %c0_i32_0 = arith.constant 0 : i32
    %c0_i32_1 = arith.constant 0 : i32
    return %c0_i32, %c0_i32_0 : i32, i32
  }
  func.func @transform_3(%arg0: i32) -> (i32, i32) {
    %c0_i32 = arith.constant 0 : i32
    %c0_i32_0 = arith.constant 0 : i32
    %c0_i32_1 = arith.constant 0 : i32
    return %c0_i32, %c0_i32_0 : i32, i32
  }
  func.func @transform_4(%arg0: i32) -> (i32, i32) {
    %c0_i32 = arith.constant 0 : i32
    %c0_i32_0 = arith.constant 0 : i32
    %c0_i32_1 = arith.constant 0 : i32
    return %c0_i32, %c0_i32_0 : i32, i32
  }
  func.func @transform_5(%arg0: i32) -> (i32, i32) {
    %c0_i32 = arith.constant 0 : i32
    %c0_i32_0 = arith.constant 0 : i32
    %c0_i32_1 = arith.constant 0 : i32
    return %c0_i32, %c0_i32_0 : i32, i32
  }
  func.func @transform_6(%arg0: i32) -> (i32, i32) {
    %c0_i32 = arith.constant 0 : i32
    %c0_i32_0 = arith.constant 0 : i32
    %c0_i32_1 = arith.constant 0 : i32
    return %c0_i32, %c0_i32_0 : i32, i32
  }
  func.func @transform_7(%arg0: i32) -> (i32, i32) {
    %c0_i32 = arith.constant 0 : i32
    %c0_i32_0 = arith.constant 0 : i32
    %c0_i32_1 = arith.constant 0 : i32
    return %c0_i32, %c0_i32_0 : i32, i32
  }
  func.func @transform_8(%arg0: i32) -> (i32, i32) {
    %c0_i32 = arith.constant 0 : i32
    %c0_i32_0 = arith.constant 0 : i32
    %c0_i32_1 = arith.constant 0 : i32
    return %c0_i32, %c0_i32_0 : i32, i32
  }
  func.func @transform_9(%arg0: i32) -> (i32, i32) {
    %c0_i32 = arith.constant 0 : i32
    %c0_i32_0 = arith.constant 0 : i32
    %c0_i32_1 = arith.constant 0 : i32
    return %c0_i32, %c0_i32_0 : i32, i32
  }
  func.func @transform_10(%arg0: i32) -> (i32, i32) {
    %c0_i32 = arith.constant 0 : i32
    %c0_i32_0 = arith.constant 0 : i32
    %c0_i32_1 = arith.constant 0 : i32
    return %c0_i32, %c0_i32_0 : i32, i32
  }
  func.func @transform_11(%arg0: i32) -> (i32, i32) {
    %c0_i32 = arith.constant 0 : i32
    %c0_i32_0 = arith.constant 0 : i32
    %c0_i32_1 = arith.constant 0 : i32
    return %c0_i32, %c0_i32_0 : i32, i32
  }
  func.func @transform_12(%arg0: i32) -> (i32, i32) {
    %c0_i32 = arith.constant 0 : i32
    %c0_i32_0 = arith.constant 0 : i32
    %c0_i32_1 = arith.constant 0 : i32
    return %c0_i32, %c0_i32_0 : i32, i32
  }
  func.func @transform_13(%arg0: i32) -> (i32, i32) {
    %c0_i32 = arith.constant 0 : i32
    %c0_i32_0 = arith.constant 0 : i32
    %c0_i32_1 = arith.constant 0 : i32
    return %c0_i32, %c0_i32_0 : i32, i32
  }
  func.func @transform_14(%arg0: i32) -> (i32, i32) {
    %c0_i32 = arith.constant 0 : i32
    %c0_i32_0 = arith.constant 0 : i32
    %c0_i32_1 = arith.constant 0 : i32
    return %c0_i32, %c0_i32_0 : i32, i32
  }
  func.func @transform_15(%arg0: i32) -> (i32, i32) {
    %c0_i32 = arith.constant 0 : i32
    %c0_i32_0 = arith.constant 0 : i32
    %c0_i32_1 = arith.constant 0 : i32
    return %c0_i32, %c0_i32_0 : i32, i32
  }
  func.func @transform_16(%arg0: i32) -> (i32, i32) {
    %c0_i32 = arith.constant 0 : i32
    %c0_i32_0 = arith.constant 0 : i32
    %c0_i32_1 = arith.constant 0 : i32
    return %c0_i32, %c0_i32_0 : i32, i32
  }
  func.func @transform_17(%arg0: i32) -> (i32, i32) {
    %c0_i32 = arith.constant 0 : i32
    %c0_i32_0 = arith.constant 0 : i32
    %c0_i32_1 = arith.constant 0 : i32
    return %c0_i32, %c0_i32_0 : i32, i32
  }
  func.func @transform_18(%arg0: i32) -> (i32, i32) {
    %c0_i32 = arith.constant 0 : i32
    %c0_i32_0 = arith.constant 0 : i32
    %c0_i32_1 = arith.constant 0 : i32
    return %c0_i32, %c0_i32_0 : i32, i32
  }
  func.func @transform_19(%arg0: i32) -> (i32, i32) {
    %c0_i32 = arith.constant 0 : i32
    %c0_i32_0 = arith.constant 0 : i32
    %c0_i32_1 = arith.constant 0 : i32
    return %c0_i32, %c0_i32_0 : i32, i32
  }
  func.func @transform_20(%arg0: i32) -> (i32, i32) {
    %c0_i32 = arith.constant 0 : i32
    %c0_i32_0 = arith.constant 0 : i32
    %c0_i32_1 = arith.constant 0 : i32
    return %c0_i32, %c0_i32_0 : i32, i32
  }
  func.func @transform_21(%arg0: i32) -> (i32, i32) {
    %c0_i32 = arith.constant 0 : i32
    %c0_i32_0 = arith.constant 0 : i32
    %c0_i32_1 = arith.constant 0 : i32
    return %c0_i32, %c0_i32_0 : i32, i32
  }
  func.func @transform_22(%arg0: i32) -> (i32, i32, i32) {
    %c0_i32 = arith.constant 0 : i32
    %c0_i32_0 = arith.constant 0 : i32
    %c0_i32_1 = arith.constant 0 : i32
    return %arg0, %c0_i32, %c0_i32_0 : i32, i32, i32
  }
}

</mosaic_0001>

<bundles_post_ra>
// kernel: tpu_custom_call.1
= control target key start
LH: loop header
LB: loop body
LE: loop exit
PB: predicated region body
PF: predicated region fallthrough
CT: control target
= control target key end

     0   :  { %s11914_s0 = inlined_call_operand.vmem [shape: f32[2,8,512], index: 0, kind: input, shape index: {}]   ;;  %s11915_s1 = inlined_call_operand.vmem [shape: f32[27,512], index: 1, kind: input, shape index: {}]   ;;  %s11916_s2 = inlined_call_operand.vmem [shape: bf16[32,144], index: 2, kind: input, shape index: {}]   ;;  %s11917_s3 = inlined_call_operand.vmem [shape: bf16[32,144], index: 3, kind: input, shape index: {}]   ;;  %s11918_s4 = inlined_call_operand.vmem [shape: bf16[32,144], index: 4, kind: input, shape index: {}]   ;;  %s11919_s5 = inlined_call_operand.vmem [shape: f32[32,1], index: 5, kind: input, shape index: {}]   ;;  %s11920_s6 = inlined_call_operand.vmem [shape: f32[32,1], index: 6, kind: input, shape index: {}]   ;;  %s11921_s7 = inlined_call_operand.vmem [shape: f32[32,1], index: 7, kind: input, shape index: {}]   ;;  %s11922_s8 = inlined_call_operand.vmem [shape: bf16[32,288], index: 8, kind: input, shape index: {}]   ;;  %s11923_s9 = inlined_call_operand.vmem [shape: bf16[32,288], index: 9, kind: input, shape index: {}]   ;;  %s11924_s10 = inlined_call_operand.vmem [shape: bf16[32,288], index: 10, kind: input, shape index: {}]   ;;  %s11925_s11 = inlined_call_operand.vmem [shape: f32[32,1], index: 11, kind: input, shape index: {}]   ;;  %s11926_s12 = inlined_call_operand.vmem [shape: f32[32,1], index: 12, kind: input, shape index: {}]   ;;  %s11927_s13 = inlined_call_operand.vmem [shape: f32[32,1], index: 13, kind: input, shape index: {}]   ;;  %s11928_s14 = inlined_call_operand.vmem [shape: bf16[32,8], index: 14, kind: input, shape index: {}]   ;;  %s11929_s15 = inlined_call_operand.vmem [shape: f32[32,1], index: 15, kind: input, shape index: {}]   ;;  %s11930_s16 = inlined_call_operand.vmem [shape: f32[32,1], index: 16, kind: input, shape index: {}]   ;;  %s11931_s17 = inlined_call_operand.vmem [shape: f32[32,1], index: 17, kind: input, shape index: {}]   ;;  %s11932_s18 = inlined_call_operand.vmem [shape: f32[32,2], index: 18, kind: input, shape index: {}]   ;;  %s11933_s19 = inlined_call_operand.vmem [shape: f32[1,2], index: 19, kind: input, shape index: {}]   ;;  %s11934_s20 = inlined_call_operand.vmem [shape: f32[32,2], index: 20, kind: input, shape index: {}]   ;;  %s11935_s21 = inlined_call_operand.vmem [shape: f32[32,1], index: 21, kind: input, shape index: {}]   ;;  %s11936_s22 = inlined_call_operand.hbm [shape: f32[2,32,512], index: 22, kind: output, shape index: {}]  }
   0x1   :  { %12282 = sst [smem:[#allocation138_spill]] %s11914_s0 }
   0x2   :  { %12283 = sst [smem:[#allocation139_spill]] %s11915_s1 }
   0x3   :  { %12284 = sst [smem:[#allocation140_spill]] %s11916_s2 }
   0x4   :  { %12285 = sst [smem:[#allocation141_spill]] %s11917_s3 }
   0x5   :  { %12286 = sst [smem:[#allocation142_spill]] %s11918_s4 }
   0x6   :  { %12287 = sst [smem:[#allocation143_spill]] %s11919_s5 }
   0x7   :  { %12288 = sst [smem:[#allocation144_spill]] %s11920_s6 }
   0x8   :  { %12289 = sst [smem:[#allocation145_spill]] %s11921_s7 }
   0x9   :  { %12290 = sst [smem:[#allocation146_spill]] %s11936_s22 }
   0xa   :  { %27 = vsyncpa [#allocation4], 0 }
   0xb   :  { %29 = vsyncpa [#allocation4 + $0x1], 0  ;;  %s7132_s3 = smov 0   ;;  %s7134_s28 = smov 0  }
   0xc   :  { %s7136_s29 = smov 0   ;;  %s7138_s30 = smov 0  }
   0xd LB: > { %12291 = sst [smem:[#allocation6_spill]] %s6981_s3  ;;  %s7153_s4 = sadd.s32 4294967295, %s6993_s30   ;;  %s6993_s30 = sphi %s7138_s30, %s13011_s30   ;;  %s6989_s29 = sphi %s7136_s29, %s13016_s29   ;;  %s6985_s28 = sphi %s7134_s28, %s13015_s28   ;;  %s6981_s3 = sphi %s7132_s3, %s13014_s3  }
   0xe   : > { %12292 = sst [smem:[#allocation7_spill]] %s6989_s29  ;;  %s6563_s0 = sadd.s32 4294967294, %s6993_s30  }
   0xf   : > { %s7157_s23 = sadd.s32 1, %s6993_s30   ;;  %s509_s1 = sadd.s32 1, %s6989_s29 }
  0x10   : > { %12293 = sst [smem:[#allocation8_spill]] %s7157_s23  ;;  %s506_s5 = ssub.s32 %s6993_s30, %s7157_s23 }
  0x11   : > { %p519_p0 = scmp.ne.s32.totalorder %s6989_s29, %s6985_s28  ;;  %p507_p1 = scmp.eq.s32.totalorder %s506_s5, 0 }
  0x12   : > { %p520_p2 = scmp.eq.s32.totalorder %s7153_s4, 1  ;;  %p525_p3 = scmp.ne.s32.totalorder %s6985_s28, %s6981_s3 }
  0x13   : > { %p526_p4 = scmp.eq.s32.totalorder %s6563_s0, 1  ;;  %p6566_p7 = scmp.ge.s32.totalorder %s6993_s30, 1 }
  0x14   : > { %s7168_s24 = scalar_select %p507_p1, %s6989_s29, %s509_s1  }
  0x15   : > { %p7170_p5 = por %p520_p2, %p519_p0  ;;  %p7174_p6 = por %p526_p4, %p525_p3 }
  0x16   : > { %12294 = sst [smem:[#allocation9_spill]] %s7168_s24  ;;  %p615_p8 = scmp.lt.s32.totalorder %s6993_s30, 3 }
  0x17   : > { %s12296_s25 = scalar_select %p7174_p6, 1, 0 }
  0x18   : > { %p616_p9 = pnand %p6566_p7, %p615_p8 }
  0x19   : > { %12297 = sst [smem:[#allocation10_spill]] %s12296_s25 }
  0x1a   : > { %619 = sbr.rel (%p616_p9) target bundleno = 2090 (0x82a), region = 108 }
  0x21   : > { %p677_p10 = scmp.lt.s32.totalorder %s7153_s4, 1  ;;  %v6995_v0 = vmov 0.0   ;;  %s11953_s26 = smov 9   ;;  %vm1712_vm0 = vcmask 130048   ;;  %v697_v6 = vlaneseq }
  0x22   : > { %1216 = vrot.lane.b32.xlu1 %v6995_v0, %s11953_s26  ;;  %s12298_s5 = sld [smem:[#allocation138_spill]]  ;;  %s11943_s0 = smov 1  }
  0x23   : > { %s678_s2 = scalar_select %p677_p10, %s7153_s4, 1  ;;  %v707_v7 = vshrl.u32 %v697_v6, 7  ;;  %v7327_v11 = vand.u32 127, %v697_v6 }
  0x24   : > { %s11945_s1 = smov 127   ;;  %s12306_s29 = sld [smem:[#allocation140_spill]] }
  0x25   : > { %s6691_s27 = sshll.u32 %s678_s2, 5  ;;  %s11951_s2 = smov 8   ;;  %v7318_v9 = vsub.s32 1, %v707_v7  ;;  %12302 = vst [vmem:[#allocation12_spill] sm:$0xff] %v7327_v11  ;;  %v7329_v14 = vsub.s32 0, %v707_v7  ;;  %v7332_v16 = vsub.s32 2, %v707_v7 }
  0x26   : > { %v7334_v17 = vsub.s32 3, %v707_v7  ;;  %vm1224_vm1 = vcmp.lt.s32.totalorder %v7327_v11, 9  ;;  %vm1278_vm2 = vcmp.lt.s32.totalorder %v7327_v11, 8  ;;  %vm1332_vm3 = vcmp.lt.s32.totalorder %v7327_v11, 7  ;;  %s12309_s3 = sld [smem:[#allocation144_spill]]  ;;  %s12311_s7 = sld [smem:[#allocation145_spill]] }
  0x27   : > { %12300 = vst [vmem:[#allocation11_spill] sm:$0xff] %v7318_v9  ;;  %12303 = vst [vmem:[#allocation13_spill] sm:$0xff] %v7329_v14  ;;  %vm1386_vm4 = vcmp.lt.s32.totalorder %v7327_v11, 1  ;;  %vm1448_vm5 = vcmp.lt.s32.totalorder %v7327_v11, 127  ;;  %vm1502_vm6 = vcmp.lt.s32.totalorder %v7327_v11, 121  ;;  %vm1556_vm7 = vcmp.lt.s32.totalorder %v7327_v11, 120 }
  0x28   : > { %s7187_s24 = scalar_lea.vmem %s12298_s5, %s6691_s27  ;;  %s11949_s27 = smov 7   ;;  %12304 = vst [vmem:[#allocation14_spill] sm:$0xff] %v7332_v16  ;;  %12305 = vst [vmem:[#allocation15_spill] sm:$0xff] %v7334_v17  ;;  %vm1610_vm8 = vcmp.lt.s32.totalorder %v7327_v11, 119  ;;  %vm699_vm9 = vcmp.lt.s32.totalorder %v7327_v11, 73  ;;  %vm752_vm10 = vcmp.lt.s32.totalorder %v7327_v11, 72 }
  0x29   : > { %v7190_v1 = vld [vmem:[%s7187_s24 + $0x10] sm:$0xff]  ;;  %v7193_v2 = vld [vmem:[%s7187_s24] sm:$0xff]  ;;  %v7200_v3 = vld [vmem:[%s7187_s24 + $0x8] sm:$0xff]  ;;  %s11947_s5 = smov 121   ;;  %vm806_vm11 = vcmp.lt.s32.totalorder %v7327_v11, 71  ;;  %vm860_vm12 = vcmp.lt.s32.totalorder %v7327_v11, 65 }
  0x2a   : > { %1220 = vrot.lane.b32.xlu1 %v7190_v1, %s11953_s26  ;;  %1214 = vrot.lane.b32.xlu0 %v7193_v2, %s11953_s26  ;;  %v7207_v4 = vld [vmem:[%s7187_s24 + $0x18] sm:$0xff]  ;;  %s12307_s23 = smov %s12306_s29  ;;  %vm12018_vm13 = vcmp.lt.s32.totalorder %v7327_v11, 64  ;;  %vm11984_vm14 = vcmp.lt.s32.totalorder %v7327_v11, 63  ;;  %vm11987_vm15 = vcmp.lt.s32.totalorder %v7327_v11, 57  ;;  %s12333_s25 = sld [smem:[#allocation142_spill]] }
  0x2c   : > { %s12310_s22 = smov %s12309_s3 }
  0x2e   : > { %1268 = vrot.lane.b32.xlu1 %v7193_v2, %s11951_s2  ;;  %1218 = vrot.lane.b32.xlu0 %v7200_v3, %s11953_s26 }
  0x32   : > { %1270 = vrot.lane.b32.xlu1 %v6995_v0, %s11951_s2  ;;  %1222 = vrot.lane.b32.xlu0 %v7207_v4, %s11953_s26  ;;  %s12299_s26 = sld [smem:[#allocation141_spill]] }
  0x36   : > { %1276 = vrot.lane.b32.xlu1 %v7207_v4, %s11951_s2  ;;  %1272 = vrot.lane.b32.xlu0 %v7200_v3, %s11951_s2 }
  0x38   : > { %v6869_v5 = vld [vmem:[%s12299_s26 + $0x4] ss:$8 sps:$4 sm:$0xff]  }
  0x39   : > { %6590 = vmatprep.mubr.msk.bf16.mxu0 %vm1712_vm0, %v6869_v5  ;;  %6592 = vmatprep.mubr.msk.bf16.mxu1 %vm1712_vm0, %v6869_v5 }
  0x3a   : > { %1326 = vrot.lane.b32.xlu1 %v7200_v3, %s11949_s27  ;;  %1274 = vrot.lane.b32.xlu0 %v7190_v1, %s11951_s2  ;;  %s11963_s2 = smov 71  }
  0x3e   : > { %1328 = vrot.lane.b32.xlu1 %v7190_v1, %s11949_s27  ;;  %1322 = vrot.lane.b32.xlu0 %v7193_v2, %s11949_s27 }
  0x42   : > { %1376 = vrot.lane.b32.xlu1 %v7193_v2, %s11943_s0  ;;  %1324 = vrot.lane.b32.xlu0 %v6995_v0, %s11949_s27 }
  0x46   : > { %1378 = vrot.lane.b32.xlu1 %v6995_v0, %s11943_s0  ;;  %1330 = vrot.lane.b32.xlu0 %v7207_v4, %s11949_s27  ;;  %s11967_s27 = smov 65  }
  0x4a   : > { %1384 = vrot.lane.b32.xlu1 %v7207_v4, %s11943_s0  ;;  %1380 = vrot.lane.b32.xlu0 %v7200_v3, %s11943_s0 }
  0x4e   : > { %1444 = vrot.lane.b32.xlu1 %v7190_v1, %s11945_s1  ;;  %1382 = vrot.lane.b32.xlu0 %v7190_v1, %s11943_s0  ;;  %s11961_s0 = smov 120  }
  0x52   : > { %1440 = vrot.lane.b32.xlu1 %v6995_v0, %s11945_s1  ;;  %1442 = vrot.lane.b32.xlu0 %v7200_v3, %s11945_s1 }
  0x56   : > { %1496 = vrot.lane.b32.xlu1 %v7200_v3, %s11947_s5  ;;  %1438 = vrot.lane.b32.xlu0 %v7193_v2, %s11945_s1 }
  0x5a   : > { %1492 = vrot.lane.b32.xlu1 %v7193_v2, %s11947_s5  ;;  %1446 = vrot.lane.b32.xlu0 %v7207_v4, %s11945_s1  ;;  %s11955_s1 = smov 119  }
  0x5e   : > { %1500 = vrot.lane.b32.xlu1 %v7207_v4, %s11947_s5  ;;  %1498 = vrot.lane.b32.xlu0 %v7190_v1, %s11947_s5 }
  0x62   : > { %1552 = vrot.lane.b32.xlu1 %v7190_v1, %s11961_s0  ;;  %1494 = vrot.lane.b32.xlu0 %v6995_v0, %s11947_s5  ;;  %s11959_s5 = smov 73  }
  0x66   : > { %1548 = vrot.lane.b32.xlu1 %v6995_v0, %s11961_s0  ;;  %1550 = vrot.lane.b32.xlu0 %v7200_v3, %s11961_s0 }
  0x6a   : > { %1604 = vrot.lane.b32.xlu1 %v7200_v3, %s11955_s1  ;;  %1546 = vrot.lane.b32.xlu0 %v7193_v2, %s11961_s0 }
  0x6e   : > { %1600 = vrot.lane.b32.xlu1 %v7193_v2, %s11955_s1  ;;  %1554 = vrot.lane.b32.xlu0 %v7207_v4, %s11961_s0  ;;  %s12301_s0 = sld [smem:[#allocation139_spill]] }
  0x72   : > { %1608 = vrot.lane.b32.xlu1 %v7207_v4, %s11955_s1  ;;  %1606 = vrot.lane.b32.xlu0 %v7190_v1, %s11955_s1 }
  0x74   : > { %v6578_v10 = vld [vmem:[%s12301_s0 + $0x21] ss:$8 sm:$0xf]  ;;  %v6579_v23 = vld [vmem:[%s12301_s0 + $0x22] ss:$8 sm:$0xf] }
  0x75   : > { %v1239_v15 = vrot.slane %v6578_v10, %v7318_v9  ;;  %v1235_v21 = vrot.slane %v6578_v10, %v7329_v14  ;;  %v1247_v24 = vrot.slane %v6578_v10, %v7334_v17  ;;  %v1243_v25 = vrot.slane %v6578_v10, %v7332_v16  ;;  %v6580_v5 = vld [vmem:[%s12301_s0 + $0x23] ss:$8 sm:$0xf] }
  0x76   : > { %1602 = vrot.lane.b32.xlu0 %v6995_v0, %s11955_s1  ;;  %691 = vrot.lane.b32.xlu1 %v7200_v3, %s11959_s5  ;;  %s11957_s1 = smov 72   ;;  %v1289_v31 = vrot.slane %v6579_v23, %v7329_v14  ;;  %v1293_v32 = vrot.slane %v6579_v23, %v7318_v9  ;;  %v1297_v41 = vrot.slane %v6579_v23, %v7332_v16 }
  0x77   : > { %v1301_v42 = vrot.slane %v6579_v23, %v7334_v17  ;;  %v6581_v23 = vld [vmem:[%s12301_s0 + $0x24] ss:$8 sm:$0xf] }
  0x7a   : > { %687 = vrot.lane.b32.xlu0 %v7193_v2, %s11959_s5  ;;  %693 = vrot.lane.b32.xlu1 %v7190_v1, %s11959_s5 }
  0x7e   : > { %689 = vrot.lane.b32.xlu0 %v6995_v0, %s11959_s5  ;;  %742 = vrot.lane.b32.xlu1 %v7193_v2, %s11957_s1 }
  0x82   : > { %695 = vrot.lane.b32.xlu0 %v7207_v4, %s11959_s5  ;;  %744 = vrot.lane.b32.xlu1 %v6995_v0, %s11957_s1  ;;  %s12308_s5 = sld [smem:[#allocation143_spill]] }
  0x86   : > { %746 = vrot.lane.b32.xlu0 %v7200_v3, %s11957_s1  ;;  %750 = vrot.lane.b32.xlu1 %v7207_v4, %s11957_s1 }
  0x8a   : > { %748 = vrot.lane.b32.xlu0 %v7190_v1, %s11957_s1  ;;  %800 = vrot.lane.b32.xlu1 %v7200_v3, %s11963_s2  ;;  %s11965_s1 = smov 64  }
  0x8e   : > { %796 = vrot.lane.b32.xlu0 %v7193_v2, %s11963_s2  ;;  %802 = vrot.lane.b32.xlu1 %v7190_v1, %s11963_s2 }
  0x92   : > { %798 = vrot.lane.b32.xlu0 %v6995_v0, %s11963_s2  ;;  %850 = vrot.lane.b32.xlu1 %v7193_v2, %s11967_s27 }
  0x94   : > { %v1217_v8 = vpop.permute.xlu1 %1216 }
  0x95   : > { %v1257_v20 = vmul.f32 %v1239_v15, %v1217_v8  ;;  %v1256_v33 = vmul.f32 %v1235_v21, %v1217_v8  ;;  %v1259_v36 = vmul.f32 %v1247_v24, %v1217_v8  ;;  %v1258_v37 = vmul.f32 %v1243_v25, %v1217_v8 }
  0x96   : > { %804 = vrot.lane.b32.xlu0 %v7207_v4, %s11963_s2  ;;  %852 = vrot.lane.b32.xlu1 %v6995_v0, %s11967_s27  ;;  %s11969_s2 = smov 63  }
  0x9a   : > { %854 = vrot.lane.b32.xlu0 %v7200_v3, %s11967_s27  ;;  %858 = vrot.lane.b32.xlu1 %v7207_v4, %s11967_s27 }
  0x9c   : > { %v1221_v12 = vpop.permute.xlu1 %1220  ;;  %v1215_v13 = vpop.permute.xlu0 %1214 }
  0x9e   : > { %856 = vrot.lane.b32.xlu0 %v7190_v1, %s11967_s27  ;;  %908 = vrot.lane.b32.xlu1 %v7200_v3, %s11965_s1  ;;  %s11971_s27 = smov 56  }
  0xa0   : > { %v1269_v18 = vpop.permute.xlu1 %1268  ;;  %v1219_v19 = vpop.permute.xlu0 %1218 }
  0xa1   : > { %v1227_v22 = vsel %vm1224_vm1, %v1215_v13, %v1219_v19  ;;  %v1226_v27 = vsel %vm1224_vm1, %v1219_v19, %v1221_v12  ;;  %v1351_v19 = vrot.slane %v6580_v5, %v7332_v16 }
  0xa2   : > { %904 = vrot.lane.b32.xlu0 %v7193_v2, %s11965_s1  ;;  %910 = vrot.lane.b32.xlu1 %v7190_v1, %s11965_s1  ;;  %v1253_v26 = vmul.f32 %v1239_v15, %v1227_v22  ;;  %v1254_v40 = vmul.f32 %v1243_v25, %v1226_v27  ;;  %v1355_v25 = vrot.slane %v6580_v5, %v7334_v17 }
  0xa4   : > { %v1271_v28 = vpop.permute.xlu1 %1270  ;;  %v1223_v29 = vpop.permute.xlu0 %1222  ;;  %v1261_v30 = vpack.c.bf16 %v1257_v20, %v1253_v26  ;;  %v1262_v53 = vpack.c.bf16 %v1258_v37, %v1254_v40  ;;  %v1409_v40 = vrot.slane %v6581_v23, %v7334_v17 }
  0xa5   : > { %v1228_v34 = vsel %vm1224_vm1, %v1223_v29, %v1215_v13  ;;  %v1225_v35 = vsel %vm1224_vm1, %v1221_v12, %v1223_v29  ;;  %v1311_v47 = vmul.f32 %v1293_v32, %v1271_v28  ;;  %v1310_v48 = vmul.f32 %v1289_v31, %v1271_v28 }
  0xa6   : > { %906 = vrot.lane.b32.xlu0 %v6995_v0, %s11965_s1  ;;  %1719 = vmatprep.subr.bf16.mxu0 %v1261_v30  ;;  %v1252_v38 = vmul.f32 %v1235_v21, %v1228_v34  ;;  %v1255_v39 = vmul.f32 %v1247_v24, %v1225_v35  ;;  %v1313_v58 = vmul.f32 %v1301_v42, %v1271_v28 }
  0xa7   : > { %958 = vrot.lane.b32.xlu1 %v7193_v2, %s11969_s2  ;;  %v1312_v59 = vmul.f32 %v1297_v41, %v1271_v28  ;;  %v1347_v12 = vrot.slane %v6580_v5, %v7318_v9  ;;  %v1343_v21 = vrot.slane %v6580_v5, %v7329_v14  ;;  %v1397_v29 = vrot.slane %v6581_v23, %v7329_v14 }
  0xa8   : > { %v1277_v43 = vpop.permute.xlu1 %1276  ;;  %v1273_v44 = vpop.permute.xlu0 %1272  ;;  %v1260_v45 = vpack.c.bf16 %v1256_v33, %v1252_v38  ;;  %v1263_v46 = vpack.c.bf16 %v1259_v36, %v1255_v39  ;;  %v1401_v30 = vrot.slane %v6581_v23, %v7318_v9  ;;  %v1405_v39 = vrot.slane %v6581_v23, %v7332_v16 }
  0xa9   : > { %v1282_v49 = vsel %vm1278_vm2, %v1277_v43, %v1269_v18  ;;  %v1281_v50 = vsel %vm1278_vm2, %v1269_v18, %v1273_v44 }
  0xaa   : > { %v1306_v51 = vmul.f32 %v1289_v31, %v1282_v49  ;;  %v1307_v52 = vmul.f32 %v1293_v32, %v1281_v50  ;;  %912 = vrot.lane.b32.xlu0 %v7207_v4, %s11965_s1  ;;  %1720 = vmatpush1.bf16.msra.mxu0 %v1260_v45  ;;  %s11975_s1 = smov 57  }
  0xab   : > { %1772 = vmatprep.subr.bf16.mxu1 %v1263_v46  ;;  %960 = vrot.lane.b32.xlu1 %v6995_v0, %s11969_s2 }
  0xac   : > { %1773 = vmatpush1.bf16.msra.mxu1 %v1262_v53  ;;  %v1327_v54 = vpop.permute.xlu1 %1326  ;;  %v1275_v55 = vpop.permute.xlu0 %1274  ;;  %v1315_v56 = vpack.c.bf16 %v1311_v47, %v1307_v52  ;;  %v1314_v57 = vpack.c.bf16 %v1310_v48, %v1306_v51  ;;  %v6582_v52 = vld [vmem:[%s12301_s0 + $0x26] ss:$8 sm:$0xf]  ;;  %v1431_v53 = vpack.c.bf16 %v6995_v0, %v7200_v3 }
  0xad   : > { %v1279_v60 = vsel %vm1278_vm2, %v1275_v55, %v1277_v43  ;;  %v1280_v61 = vsel %vm1278_vm2, %v1273_v44, %v1275_v55 }
  0xae   : > { %v1308_v62 = vmul.f32 %v1297_v41, %v1280_v61  ;;  %v1309_v63 = vmul.f32 %v1301_v42, %v1279_v60  ;;  %962 = vrot.lane.b32.xlu0 %v7200_v3, %s11969_s2  ;;  %1721 = vmatprep.subr.bf16.mxu0 %v1315_v56 }
  0xaf   : > { %966 = vrot.lane.b32.xlu1 %v7207_v4, %s11969_s2  ;;  %1722 = vmatpush1.bf16.msra.mxu0 %v1314_v57 }
  0xb0   : > { %v1329_v6 = vpop.permute.xlu1 %1328  ;;  %v1323_v7 = vpop.permute.xlu0 %1322  ;;  %v1317_v8 = vpack.c.bf16 %v1313_v58, %v1309_v63  ;;  %v1316_v10 = vpack.c.bf16 %v1312_v59, %v1308_v62  ;;  %v1463_v62 = vrot.slane %v6582_v52, %v7318_v9 }
  0xb1   : > { %v1335_v13 = vsel %vm1332_vm3, %v1323_v7, %v1327_v54  ;;  %v1334_v24 = vsel %vm1332_vm3, %v1327_v54, %v1329_v6 }
  0xb2   : > { %964 = vrot.lane.b32.xlu0 %v7190_v1, %s11969_s2  ;;  %1774 = vmatprep.subr.bf16.mxu1 %v1317_v8  ;;  %v1361_v20 = vmul.f32 %v1347_v12, %v1335_v13  ;;  %v1362_v31 = vmul.f32 %v1351_v19, %v1334_v24  ;;  %v1430_v13 = vpack.c.bf16 %v6995_v0, %v7193_v2  ;;  %s11973_s2 = smov 55  }
  0xb3   : > { %1775 = vmatpush1.bf16.msra.mxu1 %v1316_v10  ;;  %1016 = vrot.lane.b32.xlu1 %v7200_v3, %s11975_s1 }
  0xb4   : > { %v1377_v15 = vpop.permute.xlu1 %1376  ;;  %v1325_v18 = vpop.permute.xlu0 %1324 }
  0xb5   : > { %v1365_v22 = vmul.f32 %v1347_v12, %v1325_v18  ;;  %v1364_v34 = vmul.f32 %v1343_v21, %v1325_v18  ;;  %v1367_v37 = vmul.f32 %v1355_v25, %v1325_v18  ;;  %v1366_v38 = vmul.f32 %v1351_v19, %v1325_v18 }
  0xb6   : > { %1012 = vrot.lane.b32.xlu0 %v7193_v2, %s11975_s1 }
  0xb7   : > { %1018 = vrot.lane.b32.xlu1 %v7190_v1, %s11975_s1  ;;  %v1369_v26 = vpack.c.bf16 %v1365_v22, %v1361_v20  ;;  %v1370_v51 = vpack.c.bf16 %v1366_v38, %v1362_v31  ;;  %v1432_v22 = vpack.c.bf16 %v6995_v0, %v7190_v1 }
  0xb8   : > { %v1379_v27 = vpop.permute.xlu1 %1378  ;;  %v1331_v28 = vpop.permute.xlu0 %1330 }
  0xb9   : > { %v1333_v32 = vsel %vm1332_vm3, %v1329_v6, %v1331_v28  ;;  %v1336_v33 = vsel %vm1332_vm3, %v1331_v28, %v1323_v7  ;;  %1723 = vmatprep.subr.bf16.mxu0 %v1369_v26  ;;  %v1419_v45 = vmul.f32 %v1401_v30, %v1379_v27  ;;  %v1418_v46 = vmul.f32 %v1397_v29, %v1379_v27 }
  0xba   : > { %v1360_v35 = vmul.f32 %v1343_v21, %v1336_v33  ;;  %v1363_v36 = vmul.f32 %v1355_v25, %v1333_v32  ;;  %1014 = vrot.lane.b32.xlu0 %v6995_v0, %s11975_s1  ;;  %v1421_v58 = vmul.f32 %v1409_v40, %v1379_v27  ;;  %v1420_v59 = vmul.f32 %v1405_v39, %v1379_v27 }
  0xbb   : > { %1066 = vrot.lane.b32.xlu1 %v7193_v2, %s11971_s27  ;;  %v1459_v6 = vrot.slane %v6582_v52, %v7329_v14  ;;  %v1467_v21 = vrot.slane %v6582_v52, %v7332_v16  ;;  %v1471_v26 = vrot.slane %v6582_v52, %v7334_v17 }
  0xbc   : > { %v1385_v41 = vpop.permute.xlu1 %1384  ;;  %v1381_v42 = vpop.permute.xlu0 %1380  ;;  %v1368_v43 = vpack.c.bf16 %v1364_v34, %v1360_v35  ;;  %v1371_v44 = vpack.c.bf16 %v1367_v37, %v1363_v36 }
  0xbd   : > { %v1390_v47 = vsel %vm1386_vm4, %v1385_v41, %v1377_v15  ;;  %v1389_v48 = vsel %vm1386_vm4, %v1377_v15, %v1381_v42  ;;  %v1433_v15 = vpack.c.bf16 %v6995_v0, %v7207_v4 }
  0xbe   : > { %v1414_v49 = vmul.f32 %v1397_v29, %v1390_v47  ;;  %v1415_v50 = vmul.f32 %v1401_v30, %v1389_v48  ;;  %1020 = vrot.lane.b32.xlu0 %v7207_v4, %s11975_s1  ;;  %1724 = vmatpush1.bf16.msra.mxu0 %v1368_v43  ;;  %v6584_v48 = vld [vmem:[%s12301_s0 + $0x40] ss:$8 sm:$0xf]  ;;  %s12364_s1 = smov 121  }
  0xbf   : > { %1776 = vmatprep.subr.bf16.mxu1 %v1371_v44  ;;  %1068 = vrot.lane.b32.xlu1 %v6995_v0, %s11971_s27 }
  0xc0   : > { %1777 = vmatpush1.bf16.msra.mxu1 %v1370_v51  ;;  %v1445_v54 = vpop.permute.xlu1 %1444  ;;  %v1383_v55 = vpop.permute.xlu0 %1382  ;;  %v1423_v56 = vpack.c.bf16 %v1419_v45, %v1415_v50  ;;  %v1422_v57 = vpack.c.bf16 %v1418_v46, %v1414_v49 }
  0xc1   : > { %v1387_v60 = vsel %vm1386_vm4, %v1383_v55, %v1385_v41  ;;  %v1388_v61 = vsel %vm1386_vm4, %v1381_v42, %v1383_v55  ;;  %v1571_v55 = vrot.slane %v6584_v48, %v7318_v9 }
  0xc2   : > { %v1416_v63 = vmul.f32 %v1405_v39, %v1388_v61  ;;  %v1417_v5 = vmul.f32 %v1409_v40, %v1387_v60  ;;  %1070 = vrot.lane.b32.xlu0 %v7200_v3, %s11971_s27  ;;  %1725 = vmatprep.subr.bf16.mxu0 %v1423_v56 }
  0xc3   : > { %1074 = vrot.lane.b32.xlu1 %v7207_v4, %s11971_s27  ;;  %1726 = vmatpush1.bf16.msra.mxu0 %v1422_v57 }
  0xc4   : > { %v1441_v7 = vpop.permute.xlu1 %1440  ;;  %v1443_v8 = vpop.permute.xlu0 %1442  ;;  %v1425_v10 = vpack.c.bf16 %v1421_v58, %v1417_v5  ;;  %v1424_v12 = vpack.c.bf16 %v1420_v59, %v1416_v63  ;;  %1727 = vmatprep.subr.bf16.mxu0 %v1431_v53 }
  0xc5   : > { %v1450_v18 = vsel %vm1448_vm5, %v1443_v8, %v1445_v54  ;;  %v1481_v19 = vmul.f32 %v1463_v62, %v1441_v7  ;;  %v1480_v27 = vmul.f32 %v1459_v6, %v1441_v7  ;;  %v1483_v33 = vmul.f32 %v1471_v26, %v1441_v7 }
  0xc6   : > { %v1477_v20 = vmul.f32 %v1463_v62, %v1450_v18  ;;  %1072 = vrot.lane.b32.xlu0 %v7190_v1, %s11971_s27  ;;  %1778 = vmatprep.subr.bf16.mxu1 %v1425_v10  ;;  %v1482_v34 = vmul.f32 %v1467_v21, %v1441_v7  ;;  %v1575_v18 = vrot.slane %v6584_v48, %v7332_v16  ;;  %s12363_s27 = smov 127  }
  0xc7   : > { %1779 = vmatpush1.bf16.msra.mxu1 %v1424_v12  ;;  %1124 = vrot.lane.b32.xlu1 %v7200_v3, %s11973_s2  ;;  %v6583_v3 = vld [vmem:[%s12301_s0 + $0x27] ss:$8 sm:$0xf] }
  0xc8   : > { %v1497_v23 = vpop.permute.xlu1 %1496  ;;  %v1439_v24 = vpop.permute.xlu0 %1438  ;;  %1728 = vmatpush1.bf16.msra.mxu0 %v1430_v13  ;;  %v1485_v25 = vpack.c.bf16 %v1481_v19, %v1477_v20  ;;  %1780 = vmatprep.subr.bf16.mxu1 %v1433_v15  ;;  %v1513_v37 = vrot.slane %v6583_v3, %v7329_v14  ;;  %v1525_v38 = vrot.slane %v6583_v3, %v7334_v17 }
  0xc9   : > { %v1451_v28 = vsel %vm1448_vm5, %v1439_v24, %v1443_v8  ;;  %v1517_v39 = vrot.slane %v6583_v3, %v7318_v9  ;;  %v1521_v42 = vrot.slane %v6583_v3, %v7332_v16  ;;  %v1579_v19 = vrot.slane %v6584_v48, %v7334_v17 }
  0xca   : > { %v1476_v29 = vmul.f32 %v1459_v6, %v1451_v28  ;;  %1120 = vrot.lane.b32.xlu0 %v7193_v2, %s11973_s2  ;;  %1729 = vmatprep.subr.bf16.mxu0 %v1485_v25  ;;  %v1567_v6 = vrot.slane %v6584_v48, %v7329_v14 }
  0xcb   : > { %1126 = vrot.lane.b32.xlu1 %v7190_v1, %s11973_s2  ;;  %1781 = vmatpush1.bf16.msra.mxu1 %v1432_v22 }
  0xcc   : > { %v1493_v30 = vpop.permute.xlu1 %1492  ;;  %v1447_v31 = vpop.permute.xlu0 %1446  ;;  %v1484_v32 = vpack.c.bf16 %v1480_v27, %v1476_v29 }
  0xcd   : > { %v1449_v35 = vsel %vm1448_vm5, %v1445_v54, %v1447_v31  ;;  %v1452_v2 = vsel %vm1448_vm5, %v1447_v31, %v1439_v24  ;;  %v1505_v40 = vsel %vm1502_vm6, %v1493_v30, %v1497_v23 }
  0xce   : > { %v1478_v36 = vmul.f32 %v1467_v21, %v1449_v35  ;;  %v1479_v1 = vmul.f32 %v1471_v26, %v1452_v2  ;;  %1122 = vrot.lane.b32.xlu0 %v6995_v0, %s11973_s2  ;;  %1730 = vmatpush1.bf16.msra.mxu0 %v1484_v32  ;;  %v1530_v49 = vmul.f32 %v1513_v37, %v1505_v40 }
  0xd0   : > { %v1501_v41 = vpop.permute.xlu1 %1500  ;;  %v1499_v43 = vpop.permute.xlu0 %1498  ;;  %v1487_v44 = vpack.c.bf16 %v1483_v33, %v1479_v1  ;;  %v1486_v45 = vpack.c.bf16 %v1482_v34, %v1478_v36 }
  0xd1   : > { %v1506_v46 = vsel %vm1502_vm6, %v1501_v41, %v1493_v30  ;;  %v1503_v0 = vsel %vm1502_vm6, %v1499_v43, %v1501_v41  ;;  %v1504_v47 = vsel %vm1502_vm6, %v1497_v23, %v1499_v43  ;;  %v6585_v23 = vld [vmem:[%s12301_s0 + $0x41] ss:$8 sm:$0xf] }
  0xd2   : > { %1128 = vrot.lane.b32.xlu0 %v7207_v4, %s11973_s2  ;;  %1782 = vmatprep.subr.bf16.mxu1 %v1487_v44  ;;  %v1533_v50 = vmul.f32 %v1525_v38, %v1506_v46  ;;  %v1531_v51 = vmul.f32 %v1517_v39, %v1504_v47  ;;  %v1532_v52 = vmul.f32 %v1521_v42, %v1503_v0  ;;  %s12356_s2 = smov 9  }
  0xd3   : > { %1783 = vmatpush1.bf16.msra.mxu1 %v1486_v45  ;;  %v1621_v32 = vrot.slane %v6585_v23, %v7329_v14  ;;  %v1633_v33 = vrot.slane %v6585_v23, %v7334_v17  ;;  %v1625_v34 = vrot.slane %v6585_v23, %v7318_v9  ;;  %v1629_v36 = vrot.slane %v6585_v23, %v7332_v16 }
  0xd4   : > { %v1553_v53 = vpop.permute.xlu1 %1552  ;;  %v1495_v54 = vpop.permute.xlu0 %1494 }
  0xd5   : > { %v1535_v56 = vmul.f32 %v1517_v39, %v1495_v54  ;;  %v1537_v57 = vmul.f32 %v1525_v38, %v1495_v54  ;;  %v1534_v58 = vmul.f32 %v1513_v37, %v1495_v54  ;;  %v1536_v59 = vmul.f32 %v1521_v42, %v1495_v54 }
  0xd7   : > { %v1539_v60 = vpack.c.bf16 %v1535_v56, %v1531_v51  ;;  %v1541_v61 = vpack.c.bf16 %v1537_v57, %v1533_v50  ;;  %v1538_v62 = vpack.c.bf16 %v1534_v58, %v1530_v49  ;;  %v1540_v4 = vpack.c.bf16 %v1536_v59, %v1532_v52  ;;  %v704_v51 = vld [vmem:[%s12301_s0] ss:$8 sm:$0xf] }
  0xd8   : > { %v1549_v63 = vpop.permute.xlu1 %1548  ;;  %v1551_v5 = vpop.permute.xlu0 %1550  ;;  %v713_v58 = vrot.slane %v704_v51, %v7318_v9  ;;  %v6867_v59 = vld [vmem:[%s12299_s26] ss:$8 sps:$4 sm:$0xff]  }
  0xd9   : > { %v1558_v7 = vsel %vm1556_vm7, %v1551_v5, %v1553_v53  ;;  %1731 = vmatprep.subr.bf16.mxu0 %v1539_v60  ;;  %1784 = vmatprep.subr.bf16.mxu1 %v1541_v61  ;;  %v1589_v8 = vmul.f32 %v1571_v55, %v1549_v63  ;;  %v1588_v20 = vmul.f32 %v1567_v6, %v1549_v63  ;;  %v6870_v61 = vld [vmem:[%s12299_s26 + $0x14] ss:$8 sps:$4 sm:$0xff]  }
  0xda   : > { %v1585_v10 = vmul.f32 %v1571_v55, %v1558_v7  ;;  %1732 = vmatpush1.bf16.msra.mxu0 %v1538_v62  ;;  %1785 = vmatpush1.bf16.msra.mxu1 %v1540_v4  ;;  %v1591_v27 = vmul.f32 %v1579_v19, %v1549_v63  ;;  %v1590_v28 = vmul.f32 %v1575_v18, %v1549_v63  ;;  %v6570_v7 = vld [vmem:[%s12301_s0 + $0x1] ss:$8 sm:$0xf] }
  0xdc   : > { %v1605_v12 = vpop.permute.xlu1 %1604  ;;  %v1547_v13 = vpop.permute.xlu0 %1546  ;;  %v1593_v15 = vpack.c.bf16 %v1589_v8, %v1585_v10  ;;  %v709_v10 = vrot.slane %v704_v51, %v7329_v14 }
  0xdd   : > { %v1559_v21 = vsel %vm1556_vm7, %v1547_v13, %v1551_v5  ;;  %v717_v5 = vrot.slane %v704_v51, %v7332_v16 }
  0xde   : > { %v1584_v22 = vmul.f32 %v1567_v6, %v1559_v21  ;;  %1733 = vmatprep.subr.bf16.mxu0 %v1593_v15 }
  0xe0   : > { %v1601_v24 = vpop.permute.xlu1 %1600  ;;  %v1555_v25 = vpop.permute.xlu0 %1554  ;;  %v1592_v26 = vpack.c.bf16 %v1588_v20, %v1584_v22  ;;  %v763_v20 = vrot.slane %v6570_v7, %v7329_v14 }
  0xe1   : > { %v1557_v29 = vsel %vm1556_vm7, %v1553_v53, %v1555_v25  ;;  %v1560_v3 = vsel %vm1556_vm7, %v1555_v25, %v1547_v13  ;;  %v1613_v35 = vsel %vm1610_vm8, %v1601_v24, %v1605_v12  ;;  %v6872_v25 = vld [vmem:[%s12299_s26 + $0x10] ss:$8 sps:$4 sm:$0xff]   ;;  %s12361_s26 = smov 7  }
  0xe2   : > { %v1586_v30 = vmul.f32 %v1575_v18, %v1557_v29  ;;  %v1587_v31 = vmul.f32 %v1579_v19, %v1560_v3  ;;  %1734 = vmatpush1.bf16.msra.mxu0 %v1592_v26  ;;  %v1638_v42 = vmul.f32 %v1621_v32, %v1613_v35  ;;  %v767_v19 = vrot.slane %v6570_v7, %v7318_v9 }
  0xe3   : > { %v771_v3 = vrot.slane %v6570_v7, %v7332_v16 }
  0xe4   : > { %v1609_v2 = vpop.permute.xlu1 %1608  ;;  %v1607_v1 = vpop.permute.xlu0 %1606  ;;  %v1595_v37 = vpack.c.bf16 %v1591_v27, %v1587_v31  ;;  %v1594_v38 = vpack.c.bf16 %v1590_v28, %v1586_v30  ;;  %v775_v30 = vrot.slane %v6570_v7, %v7334_v17  ;;  %v6875_v31 = vld [vmem:[%s12306_s29 + $0x4] ss:$8 sps:$4 sm:$0xff]   ;;  %s12362_s29 = smov 1  }
  0xe5   : > { %v1614_v39 = vsel %vm1610_vm8, %v1609_v2, %v1601_v24  ;;  %v1611_v40 = vsel %vm1610_vm8, %v1607_v1, %v1609_v2  ;;  %v1612_v41 = vsel %vm1610_vm8, %v1605_v12, %v1607_v1  ;;  %v721_v12 = vrot.slane %v704_v51, %v7334_v17 }
  0xe6   : > { %1786 = vmatprep.subr.bf16.mxu1 %v1595_v37  ;;  %v1641_v43 = vmul.f32 %v1633_v33, %v1614_v39  ;;  %v1639_v44 = vmul.f32 %v1625_v34, %v1612_v41  ;;  %v1640_v45 = vmul.f32 %v1629_v36, %v1611_v40  ;;  %v2492_v41 = vld [vmem:[%s12308_s5] sm:$0xff] }
  0xe7   : > { %1787 = vmatpush1.bf16.msra.mxu1 %v1594_v38 }
  0xe8   : > { %v1603_v46 = vpop.permute.xlu0 %1602  ;;  %v692_v0 = vpop.permute.xlu1 %691 }
  0xe9   : > { %v1643_v47 = vmul.f32 %v1625_v34, %v1603_v46  ;;  %v1645_v48 = vmul.f32 %v1633_v33, %v1603_v46  ;;  %v1642_v49 = vmul.f32 %v1621_v32, %v1603_v46  ;;  %v1644_v50 = vmul.f32 %v1629_v36, %v1603_v46 }
  0xeb   : > { %v1647_v52 = vpack.c.bf16 %v1643_v47, %v1639_v44  ;;  %v1649_v53 = vpack.c.bf16 %v1645_v48, %v1641_v43  ;;  %v1646_v54 = vpack.c.bf16 %v1642_v49, %v1638_v42  ;;  %v1648_v55 = vpack.c.bf16 %v1644_v50, %v1640_v45  ;;  %v2493_v50 = vld [vmem:[%s12308_s5 + $0x8] sm:$0xff] }
  0xec   : > { %v688_v56 = vpop.permute.xlu0 %687  ;;  %v694_v57 = vpop.permute.xlu1 %693  ;;  %v11985_v47 = vmov 0  }
  0xed   : > { %1735 = vmatprep.subr.bf16.mxu0 %v1647_v52  ;;  %1788 = vmatprep.subr.bf16.mxu1 %v1649_v53  ;;  %v7530_v60 = vsel %vm699_vm9, %v688_v56, %v692_v0  ;;  %v7545_v8 = vsel %vm699_vm9, %v692_v0, %v694_v57  ;;  %v6571_v53 = vld [vmem:[%s12301_s0 + $0x2] ss:$8 sm:$0xf] }
  0xee   : > { %1736 = vmatpush1.bf16.msra.mxu0 %v1646_v54  ;;  %1789 = vmatpush1.bf16.msra.mxu1 %v1648_v55  ;;  %v727_v63 = vmul.f32 %v713_v58, %v7530_v60  ;;  %v728_v21 = vmul.f32 %v717_v5, %v7545_v8  ;;  %v2532_v54 = vld [vmem:[%s12309_s3] sm:$0xff]  ;;  %s12360_s3 = smov 8  }
  0xef   : > { %6865 = vset.pattern.permute.xlu1 %v11985_v47  ;;  %6866 = vset.pattern.permute.xlu0 %v11985_v47 }
  0xf0   : > { %v7535_v62 = vpop.permute.xlu0 %689  ;;  %v743_v4 = vpop.permute.xlu1 %742  ;;  %2498 = vperm.xlu1 %6865, %v2492_v41   ;;  %2503 = vperm.xlu0 %6866, %v2493_v50  }
  0xf1   : > { %v731_v6 = vmul.f32 %v713_v58, %v7535_v62  ;;  %1752 = vmatmul.mubr.bf16.vlgmr.msra.gmra.mrb[0].mxu0 %v6867_v59  ;;  %1805 = vmatmul.mubr.bf16.vlgmr.msra.gmra.mrb[0].mxu1 %v6867_v59  ;;  %v732_v24 = vmul.f32 %v717_v5, %v7535_v62  ;;  %v730_v26 = vmul.f32 %v709_v10, %v7535_v62 }
  0xf2   : > { %6591 = vmatprep.mubr.msk.bf16.mxu0 %vm1712_vm0, %v6870_v61  ;;  %6593 = vmatprep.mubr.msk.bf16.mxu1 %vm1712_vm0, %v6870_v61  ;;  %v733_v29 = vmul.f32 %v721_v12, %v7535_v62  ;;  %v821_v59 = vrot.slane %v6571_v53, %v7318_v9  ;;  %v2494_v61 = vld [vmem:[%s12308_s5 + $0x10] sm:$0xff] }
  0xf3   : > { %v735_v13 = vpack.c.bf16 %v731_v6, %v727_v63  ;;  %v736_v38 = vpack.c.bf16 %v732_v24, %v728_v21  ;;  %v2533_v63 = vld [vmem:[%s12310_s22 + $0x8] sm:$0xff]  ;;  %v829_v21 = vrot.slane %v6571_v53, %v7334_v17 }
  0xf4   : > { %v696_v15 = vpop.permute.xlu0 %695  ;;  %v7551_v18 = vpop.permute.xlu1 %744  ;;  %2538 = vperm.xlu1 %6865, %v2532_v54   ;;  %2508 = vperm.xlu0 %6866, %v2494_v61  }
  0xf5   : > { %v7559_v22 = vsel %vm699_vm9, %v694_v57, %v696_v15  ;;  %v7563_v23 = vsel %vm699_vm9, %v696_v15, %v688_v56  ;;  %1849 = vmatprep.subr.bf16.mxu0 %v735_v13  ;;  %v784_v35 = vmul.f32 %v763_v20, %v7551_v18  ;;  %v785_v36 = vmul.f32 %v767_v19, %v7551_v18  ;;  %v6572_v13 = vld [vmem:[%s12301_s0 + $0x3] ss:$8 sm:$0xf] }
  0xf6   : > { %v726_v27 = vmul.f32 %v709_v10, %v7563_v23  ;;  %v729_v28 = vmul.f32 %v721_v12, %v7559_v22  ;;  %v786_v42 = vmul.f32 %v771_v3, %v7551_v18  ;;  %v787_v0 = vmul.f32 %v775_v30, %v7551_v18  ;;  %v2572_v15 = vld [vmem:[%s12311_s7] sm:$0xff] }
  0xf7   : > { %v825_v10 = vrot.slane %v6571_v53, %v7332_v16 }
  0xf8   : > { %v734_v32 = vpack.c.bf16 %v730_v26, %v726_v27  ;;  %v747_v33 = vpop.permute.xlu0 %746  ;;  %v737_v34 = vpack.c.bf16 %v733_v29, %v729_v28  ;;  %v751_v2 = vpop.permute.xlu1 %750  ;;  %2543 = vperm.xlu1 %6865, %v2533_v63   ;;  %v875_v28 = vrot.slane %v6572_v13, %v7318_v9  ;;  %v871_v29 = vrot.slane %v6572_v13, %v7329_v14  ;;  %v2535_v63 = vld [vmem:[%s12310_s22 + $0x18] sm:$0xff] }
  0xf9   : > { %v7582_v1 = vsel %vm752_vm10, %v743_v4, %v747_v33  ;;  %v7586_v37 = vsel %vm752_vm10, %v751_v2, %v743_v4  ;;  %1762 = vmatmul.mubr.bf16.gmra.mrb[4].mxu0 %v6872_v25  ;;  %1815 = vmatmul.mubr.bf16.gmra.mrb[4].mxu1 %v6872_v25  ;;  %v2495_v25 = vld [vmem:[%s12308_s5 + $0x18] sm:$0xff]  ;;  %s12365_s5 = smov 120  }
  0xfa   : > { %v781_v39 = vmul.f32 %v767_v19, %v7582_v1  ;;  %1850 = vmatpush1.bf16.msra.mxu0 %v734_v32  ;;  %1902 = vmatprep.subr.bf16.mxu1 %v737_v34  ;;  %v780_v40 = vmul.f32 %v763_v20, %v7586_v37  ;;  %v817_v20 = vrot.slane %v6571_v53, %v7329_v14 }
  0xfb   : > { %1903 = vmatpush1.bf16.msra.mxu1 %v736_v38  ;;  %6598 = vmatprep.mubr.msk.bf16.mxu0 %vm1712_vm0, %v6875_v31  ;;  %v879_v38 = vrot.slane %v6572_v13, %v7332_v16 }
  0xfc   : > { %v788_v43 = vpack.c.bf16 %v784_v35, %v780_v40  ;;  %v749_v44 = vpop.permute.xlu0 %748  ;;  %v789_v45 = vpack.c.bf16 %v785_v36, %v781_v39  ;;  %v801_v46 = vpop.permute.xlu1 %800  ;;  %6600 = vmatprep.mubr.msk.bf16.mxu1 %vm1712_vm0, %v6875_v31  ;;  %2578 = vperm.xlu0 %6866, %v2572_v15   ;;  %v883_v39 = vrot.slane %v6572_v13, %v7334_v17  ;;  %v6573_v13 = vld [vmem:[%s12301_s0 + $0x4] ss:$8 sm:$0xf] }
  0xfd   : > { %v7599_v48 = vsel %vm752_vm10, %v749_v44, %v751_v2  ;;  %v7603_v49 = vsel %vm752_vm10, %v747_v33, %v749_v44  ;;  %v2534_v33 = vld [vmem:[%s12310_s22 + $0x10] sm:$0xff]  ;;  %2513 = vperm.xlu1 %6865, %v2495_v25   ;;  %v2575_v25 = vld [vmem:[%s12311_s7 + $0x18] sm:$0xff]  ;;  %s12367_s22 = smov 73  }
  0xfe   : > { %v782_v51 = vmul.f32 %v771_v3, %v7603_v49  ;;  %v783_v52 = vmul.f32 %v775_v30, %v7599_v48  ;;  %1851 = vmatprep.subr.bf16.mxu0 %v789_v45 }
  0xff   : > { %1852 = vmatpush1.bf16.msra.mxu0 %v788_v43 }
 0x100   : > { %v790_v55 = vpack.c.bf16 %v786_v42, %v782_v51  ;;  %v797_v56 = vpop.permute.xlu0 %796  ;;  %v791_v57 = vpack.c.bf16 %v787_v0, %v783_v52  ;;  %v803_v58 = vpop.permute.xlu1 %802  ;;  %2548 = vperm.xlu0 %6866, %v2534_v33   ;;  %v2574_v52 = vld [vmem:[%s12311_s7 + $0x10] sm:$0xff] }
 0x101   : > { %v7625_v4 = vsel %vm806_vm11, %v797_v56, %v801_v46  ;;  %v7643_v19 = vsel %vm806_vm11, %v801_v46, %v803_v58  ;;  %v2573_v46 = vld [vmem:[%s12311_s7 + $0x8] sm:$0xff]  ;;  %s12366_s7 = smov 119  }
 0x102   : > { %1904 = vmatprep.subr.bf16.mxu1 %v791_v57  ;;  %v835_v7 = vmul.f32 %v821_v59, %v7625_v4  ;;  %v836_v3 = vmul.f32 %v825_v10, %v7643_v19  ;;  %2583 = vperm.xlu1 %6865, %v2573_v46  }
 0x103   : > { %1905 = vmatpush1.bf16.msra.mxu1 %v790_v55 }
 0x104   : > { %v7630_v5 = vpop.permute.xlu0 %798  ;;  %v851_v6 = vpop.permute.xlu1 %850  ;;  %2588 = vperm.xlu0 %6866, %v2574_v52  }
 0x105   : > { %v839_v12 = vmul.f32 %v821_v59, %v7630_v5  ;;  %v840_v32 = vmul.f32 %v825_v10, %v7630_v5  ;;  %v838_v34 = vmul.f32 %v817_v20, %v7630_v5  ;;  %v841_v36 = vmul.f32 %v829_v21, %v7630_v5 }
 0x106   : > { %2553 = vperm.xlu1 %6865, %v2535_v63  }
 0x107   : > { %v843_v24 = vpack.c.bf16 %v839_v12, %v835_v7  ;;  %v844_v51 = vpack.c.bf16 %v840_v32, %v836_v3  ;;  %v933_v32 = vrot.slane %v6573_v13, %v7332_v16 }
 0x108   : > { %v805_v26 = vpop.permute.xlu0 %804  ;;  %v7650_v27 = vpop.permute.xlu1 %852 }
 0x109   : > { %v7658_v30 = vsel %vm806_vm11, %v803_v58, %v805_v26  ;;  %v7662_v31 = vsel %vm806_vm11, %v805_v26, %v797_v56  ;;  %1853 = vmatprep.subr.bf16.mxu0 %v843_v24  ;;  %v892_v43 = vmul.f32 %v871_v29, %v7650_v27  ;;  %v893_v45 = vmul.f32 %v875_v28, %v7650_v27 }
 0x10a   : > { %v834_v35 = vmul.f32 %v817_v20, %v7662_v31  ;;  %v837_v2 = vmul.f32 %v829_v21, %v7658_v30  ;;  %v894_v56 = vmul.f32 %v879_v38, %v7650_v27  ;;  %v895_v61 = vmul.f32 %v883_v39, %v7650_v27  ;;  %2593 = vperm.xlu1 %6865, %v2575_v25  }
 0x10b   : > { %v929_v26 = vrot.slane %v6573_v13, %v7318_v9 }
 0x10c   : > { %v842_v40 = vpack.c.bf16 %v838_v34, %v834_v35  ;;  %v855_v41 = vpop.permute.xlu0 %854  ;;  %v845_v42 = vpack.c.bf16 %v841_v36, %v837_v2  ;;  %v859_v44 = vpop.permute.xlu1 %858  ;;  %v6574_v35 = vld [vmem:[%s12301_s0 + $0x5] ss:$8 sm:$0xf]  ;;  %v925_v36 = vrot.slane %v6573_v13, %v7329_v14 }
 0x10d   : > { %v7681_v0 = vsel %vm860_vm12, %v851_v6, %v855_v41  ;;  %v7685_v50 = vsel %vm860_vm12, %v859_v44, %v851_v6 }
 0x10e   : > { %v889_v53 = vmul.f32 %v875_v28, %v7681_v0  ;;  %1854 = vmatpush1.bf16.msra.mxu0 %v842_v40  ;;  %1906 = vmatprep.subr.bf16.mxu1 %v845_v42  ;;  %v888_v54 = vmul.f32 %v871_v29, %v7685_v50  ;;  %v979_v42 = vrot.slane %v6574_v35, %v7329_v14 }
 0x10f   : > { %1907 = vmatpush1.bf16.msra.mxu1 %v844_v51 }
 0x110   : > { %v896_v55 = vpack.c.bf16 %v892_v43, %v888_v54  ;;  %v857_v57 = vpop.permute.xlu0 %856  ;;  %v897_v58 = vpack.c.bf16 %v893_v45, %v889_v53  ;;  %v909_v59 = vpop.permute.xlu1 %908 }
 0x111   : > { %v7699_v6 = vsel %vm860_vm12, %v857_v57, %v859_v44  ;;  %v7703_v7 = vsel %vm860_vm12, %v855_v41, %v857_v57  ;;  %v983_v41 = vrot.slane %v6574_v35, %v7318_v9 }
 0x112   : > { %v890_v10 = vmul.f32 %v879_v38, %v7703_v7  ;;  %v891_v12 = vmul.f32 %v883_v39, %v7699_v6  ;;  %1855 = vmatprep.subr.bf16.mxu0 %v897_v58  ;;  %v937_v38 = vrot.slane %v6573_v13, %v7334_v17 }
 0x113   : > { %1856 = vmatpush1.bf16.msra.mxu0 %v896_v55 }
 0x114   : > { %v898_v15 = vpack.c.bf16 %v894_v56, %v890_v10  ;;  %v905_v20 = vpop.permute.xlu0 %904  ;;  %v899_v21 = vpack.c.bf16 %v895_v61, %v891_v12  ;;  %v911_v24 = vpop.permute.xlu1 %910  ;;  %v987_v56 = vrot.slane %v6574_v35, %v7332_v16  ;;  %v991_v61 = vrot.slane %v6574_v35, %v7334_v17 }
 0x115   : > { %v7717_v28 = vsel %vm12018_vm13, %v905_v20, %v909_v59  ;;  %v7729_v2 = vsel %vm12018_vm13, %v909_v59, %v911_v24 }
 0x116   : > { %12312 = vst [vmem:[#allocation16_spill] sm:$0xff] %v7717_v28  ;;  %1908 = vmatprep.subr.bf16.mxu1 %v899_v21  ;;  %v943_v3 = vmul.f32 %v929_v26, %v7717_v28  ;;  %v944_v43 = vmul.f32 %v933_v32, %v7729_v2 }
 0x117   : > { %1909 = vmatpush1.bf16.msra.mxu1 %v898_v15 }
 0x118   : > { %v7719_v29 = vpop.permute.xlu0 %906 }
 0x119   : > { %v959_v33 = vpop.permute.xlu1 %958  ;;  %v947_v34 = vmul.f32 %v929_v26, %v7719_v29  ;;  %v948_v51 = vmul.f32 %v933_v32, %v7719_v29  ;;  %v946_v52 = vmul.f32 %v925_v36, %v7719_v29  ;;  %v949_v55 = vmul.f32 %v937_v38, %v7719_v29 }
 0x11b   : > { %v951_v39 = vpack.c.bf16 %v947_v34, %v943_v3  ;;  %v952_v15 = vpack.c.bf16 %v948_v51, %v944_v43 }
 0x11c   : > { %v913_v40 = vpop.permute.xlu0 %912 }
 0x11d   : > { %v7739_v44 = vsel %vm12018_vm13, %v911_v24, %v913_v40  ;;  %v7743_v45 = vsel %vm12018_vm13, %v913_v40, %v905_v20  ;;  %1857 = vmatprep.subr.bf16.mxu0 %v951_v39  ;;  %v7745_v46 = vpop.permute.xlu1 %960  ;;  %v6575_v40 = vld [vmem:[%s12301_s0 + $0x6] ss:$8 sm:$0xf] }
 0x11e   : > { %12313 = vst [vmem:[#allocation17_spill] sm:$0xff] %v7739_v44  ;;  %12314 = vst [vmem:[#allocation18_spill] sm:$0xff] %v7745_v46  ;;  %v942_v53 = vmul.f32 %v925_v36, %v7743_v45  ;;  %v945_v54 = vmul.f32 %v937_v38, %v7739_v44  ;;  %v1001_v63 = vmul.f32 %v983_v41, %v7745_v46 }
 0x11f   : > { %v1000_v12 = vmul.f32 %v979_v42, %v7745_v46  ;;  %v1002_v25 = vmul.f32 %v987_v56, %v7745_v46  ;;  %v1003_v32 = vmul.f32 %v991_v61, %v7745_v46  ;;  %v1037_v51 = vrot.slane %v6575_v40, %v7318_v9 }
 0x120   : > { %v950_v57 = vpack.c.bf16 %v946_v52, %v942_v53  ;;  %v963_v58 = vpop.permute.xlu0 %962  ;;  %v953_v59 = vpack.c.bf16 %v949_v55, %v945_v54 }
 0x121   : > { %v7757_v10 = vsel %vm11984_vm14, %v959_v33, %v963_v58  ;;  %v967_v13 = vpop.permute.xlu1 %966 }
 0x122   : > { %12315 = vst [vmem:[#allocation19_spill] sm:$0xff] %v7757_v10  ;;  %v997_v20 = vmul.f32 %v983_v41, %v7757_v10  ;;  %1858 = vmatpush1.bf16.msra.mxu0 %v950_v57  ;;  %1910 = vmatprep.subr.bf16.mxu1 %v953_v59  ;;  %v7763_v21 = vsel %vm11984_vm14, %v967_v13, %v959_v33  ;;  %v6576_v59 = vld [vmem:[%s12301_s0 + $0x7] ss:$8 sm:$0xf] }
 0x123   : > { %12316 = vst [vmem:[#allocation20_spill] sm:$0xff] %v7763_v21  ;;  %v996_v24 = vmul.f32 %v979_v42, %v7763_v21  ;;  %1911 = vmatpush1.bf16.msra.mxu1 %v952_v15 }
 0x124   : > { %v965_v26 = vpop.permute.xlu0 %964  ;;  %v1005_v3 = vpack.c.bf16 %v1001_v63, %v997_v20  ;;  %v1033_v63 = vrot.slane %v6575_v40, %v7329_v14  ;;  %v1091_v20 = vrot.slane %v6576_v59, %v7318_v9 }
 0x125   : > { %v1004_v34 = vpack.c.bf16 %v1000_v12, %v996_v24  ;;  %v7770_v35 = vsel %vm11984_vm14, %v965_v26, %v967_v13  ;;  %v7774_v36 = vsel %vm11984_vm14, %v963_v58, %v965_v26  ;;  %v1017_v33 = vpop.permute.xlu1 %1016  ;;  %v1045_v12 = vrot.slane %v6575_v40, %v7334_v17 }
 0x126   : > { %12317 = vst [vmem:[#allocation21_spill] sm:$0xff] %v7770_v35  ;;  %12318 = vst [vmem:[#allocation22_spill] sm:$0xff] %v7774_v36  ;;  %v998_v38 = vmul.f32 %v987_v56, %v7774_v36  ;;  %v999_v39 = vmul.f32 %v991_v61, %v7770_v35  ;;  %1859 = vmatprep.subr.bf16.mxu0 %v1005_v3  ;;  %v1041_v56 = vrot.slane %v6575_v40, %v7332_v16 }
 0x127   : > { %1860 = vmatpush1.bf16.msra.mxu0 %v1004_v34  ;;  %vm12015_vm14 = vcmp.lt.s32.totalorder %v7327_v11, 56  ;;  %v1087_v24 = vrot.slane %v6576_v59, %v7329_v14 }
 0x128   : > { %v1006_v41 = vpack.c.bf16 %v1002_v25, %v998_v38  ;;  %v1013_v42 = vpop.permute.xlu0 %1012  ;;  %v1007_v43 = vpack.c.bf16 %v1003_v32, %v999_v39 }
 0x129   : > { %v1019_v52 = vpop.permute.xlu1 %1018  ;;  %v7785_v53 = vsel %vm11987_vm15, %v1013_v42, %v1017_v33 }
 0x12a   : > { %12319 = vst [vmem:[#allocation23_spill] sm:$0xff] %v7785_v53  ;;  %1912 = vmatprep.subr.bf16.mxu1 %v1007_v43  ;;  %v1051_v55 = vmul.f32 %v1037_v51, %v7785_v53  ;;  %v7797_v61 = vsel %vm11987_vm15, %v1017_v33, %v1019_v52 }
 0x12b   : > { %1913 = vmatpush1.bf16.msra.mxu1 %v1006_v41  ;;  %12321 = vst [vmem:[#allocation25_spill] sm:$0xff] %v7797_v61  ;;  %v1052_v25 = vmul.f32 %v1041_v56, %v7797_v61  ;;  %v1095_v41 = vrot.slane %v6576_v59, %v7332_v16 }
 0x12c   : > { %v7787_v54 = vpop.permute.xlu0 %1014 }
 0x12d   : > { %12320 = vst [vmem:[#allocation24_spill] sm:$0xff] %v7787_v54  ;;  %v1067_v57 = vpop.permute.xlu1 %1066  ;;  %v1055_v58 = vmul.f32 %v1037_v51, %v7787_v54  ;;  %v1056_v34 = vmul.f32 %v1041_v56, %v7787_v54  ;;  %v1054_v33 = vmul.f32 %v1033_v63, %v7787_v54  ;;  %v1057_v40 = vmul.f32 %v1045_v12, %v7787_v54 }
 0x12f   : > { %v1059_v13 = vpack.c.bf16 %v1055_v58, %v1051_v55 }
 0x130   : > { %v1021_v15 = vpop.permute.xlu0 %1020 }
 0x131   : > { %v7807_v26 = vsel %vm11987_vm15, %v1019_v52, %v1021_v15  ;;  %v7811_v3 = vsel %vm11987_vm15, %v1021_v15, %v1013_v42  ;;  %1861 = vmatprep.subr.bf16.mxu0 %v1059_v13  ;;  %v7813_v32 = vpop.permute.xlu1 %1068  ;;  %v1099_v42 = vrot.slane %v6576_v59, %v7334_v17  ;;  %v1060_v13 = vpack.c.bf16 %v1056_v34, %v1052_v25 }
 0x132   : > { %12322 = vst [vmem:[#allocation26_spill] sm:$0xff] %v7807_v26  ;;  %12323 = vst [vmem:[#allocation27_spill] sm:$0xff] %v7811_v3  ;;  %v1050_v38 = vmul.f32 %v1033_v63, %v7811_v3  ;;  %v1053_v39 = vmul.f32 %v1045_v12, %v7807_v26  ;;  %v1109_v55 = vmul.f32 %v1091_v20, %v7813_v32  ;;  %vm12014_vm15 = vcmp.lt.s32.totalorder %v7327_v11, 55 }
 0x133   : > { %12324 = vst [vmem:[#allocation28_spill] sm:$0xff] %v7813_v32  ;;  %v1108_v58 = vmul.f32 %v1087_v24, %v7813_v32 }
 0x134   : > { %v1058_v43 = vpack.c.bf16 %v1054_v33, %v1050_v38  ;;  %v1071_v51 = vpop.permute.xlu0 %1070  ;;  %v1061_v52 = vpack.c.bf16 %v1057_v40, %v1053_v39  ;;  %v1110_v33 = vmul.f32 %v1095_v41, %v7813_v32  ;;  %v1111_v40 = vmul.f32 %v1099_v42, %v7813_v32  ;;  %v6606_v32 = vld [vmem:[%s12301_s0 + $0x46] ss:$8 sm:$0xf] }
 0x135   : > { %v7825_v56 = vsel %vm12015_vm14, %v1067_v57, %v1071_v51  ;;  %v1075_v63 = vpop.permute.xlu1 %1074  ;;  %v7914_v10 = vrot.slane %v6606_v32, %v7329_v14  ;;  %v7941_v11 = vrot.slane %v6606_v32, %v7334_v17 }
 0x136   : > { %12325 = vst [vmem:[#allocation29_spill] sm:$0xff] %v7825_v56  ;;  %v1105_v15 = vmul.f32 %v1091_v20, %v7825_v56  ;;  %1862 = vmatpush1.bf16.msra.mxu0 %v1058_v43  ;;  %1914 = vmatprep.subr.bf16.mxu1 %v1061_v52  ;;  %v7831_v12 = vsel %vm12015_vm14, %v1075_v63, %v1067_v57  ;;  %v6577_v52 = vld [vmem:[%s12301_s0 + $0x20] ss:$8 sm:$0xf] }
 0x137   : > { %12326 = vst [vmem:[#allocation30_spill] sm:$0xff] %v7831_v12  ;;  %v1104_v59 = vmul.f32 %v1087_v24, %v7831_v12  ;;  %1915 = vmatpush1.bf16.msra.mxu1 %v1060_v13  ;;  %v6602_v24 = vld [vmem:[%s12301_s0 + $0x42] ss:$8 sm:$0xf]  ;;  %v1149_v53 = vrot.slane %v6577_v52, %v7332_v16  ;;  %v1141_v54 = vrot.slane %v6577_v52, %v7329_v14  ;;  %12331 = vst [vmem:[#allocation35_spill] sm:$0xff] %v7914_v10 }
 0x138   : > { %v1073_v38 = vpop.permute.xlu0 %1072  ;;  %v1113_v39 = vpack.c.bf16 %v1109_v55, %v1105_v15  ;;  %v1961_v13 = vrot.slane %v6602_v24, %v7329_v14  ;;  %v1965_v15 = vrot.slane %v6602_v24, %v7318_v9  ;;  %v1153_v61 = vrot.slane %v6577_v52, %v7334_v17 }
 0x139   : > { %v1112_v47 = vpack.c.bf16 %v1108_v58, %v1104_v59  ;;  %v7838_v25 = vsel %vm12015_vm14, %v1073_v38, %v1075_v63  ;;  %v7842_v20 = vsel %vm12015_vm14, %v1071_v51, %v1073_v38  ;;  %v1125_v57 = vpop.permute.xlu1 %1124  ;;  %v6603_v51 = vld [vmem:[%s12301_s0 + $0x43] ss:$8 sm:$0xf]  ;;  %v1969_v59 = vrot.slane %v6602_v24, %v7332_v16 }
 0x13a   : > { %12327 = vst [vmem:[#allocation31_spill] sm:$0xff] %v7838_v25  ;;  %12328 = vst [vmem:[#allocation32_spill] sm:$0xff] %v7842_v20  ;;  %v1106_v34 = vmul.f32 %v1095_v41, %v7842_v20  ;;  %v1107_v43 = vmul.f32 %v1099_v42, %v7838_v25  ;;  %1863 = vmatprep.subr.bf16.mxu0 %v1113_v39  ;;  %v6604_v41 = vld [vmem:[%s12301_s0 + $0x44] ss:$8 sm:$0xf]  ;;  %v1145_v42 = vrot.slane %v6577_v52, %v7318_v9 }
 0x13b   : > { %1864 = vmatpush1.bf16.msra.mxu0 %v1112_v47  ;;  %v1973_v47 = vrot.slane %v6602_v24, %v7334_v17  ;;  %v2000_v39 = vrot.slane %v6603_v51, %v7329_v14  ;;  %v7876_v24 = vrot.slane %v6604_v41, %v7329_v14  ;;  %v7879_v56 = vrot.slane %v6604_v41, %v7318_v9 }
 0x13c   : > { %v1114_v55 = vpack.c.bf16 %v1110_v33, %v1106_v34  ;;  %v1121_v58 = vpop.permute.xlu0 %1120  ;;  %v1115_v63 = vpack.c.bf16 %v1111_v40, %v1107_v43  ;;  %v6605_v33 = vld [vmem:[%s12301_s0 + $0x45] ss:$8 sm:$0xf]  ;;  %v2012_v40 = vrot.slane %v6603_v51, %v7334_v17  ;;  %v2004_v34 = vrot.slane %v6603_v51, %v7318_v9 }
 0x13d   : > { %v7869_v38 = vsel %vm12014_vm15, %v1121_v58, %v1125_v57  ;;  %v2008_v43 = vrot.slane %v6603_v51, %v7332_v16  ;;  %v1127_v25 = vpop.permute.xlu1 %1126  ;;  %v7882_v12 = vrot.slane %v6604_v41, %v7332_v16  ;;  %v7893_v51 = vrot.slane %v6605_v33, %v7329_v14 }
 0x13e   : > { %12329 = vst [vmem:[#allocation33_spill] sm:$0xff] %v7869_v38  ;;  %1916 = vmatprep.subr.bf16.mxu1 %v1115_v63  ;;  %v7885_v63 = vrot.slane %v6604_v41, %v7334_v17  ;;  %v7899_v3 = vrot.slane %v6605_v33, %v7334_v17  ;;  %v7903_v41 = vsel %vm12014_vm15, %v1125_v57, %v1127_v25 }
 0x13f   : > { %1917 = vmatpush1.bf16.msra.mxu1 %v1114_v55  ;;  %v1159_v55 = vmul.f32 %v1145_v42, %v7869_v38  ;;  %12330 = vst [vmem:[#allocation34_spill] sm:$0xff] %v7903_v41  ;;  %v7908_v35 = vrot.slane %v6605_v33, %v7318_v9  ;;  %v7911_v38 = vrot.slane %v6605_v33, %v7332_v16 }
 0x140   : > { %v7890_v20 = vpop.permute.xlu0 %1122  ;;  %v1979_v21 = vmul.f32 %v1965_v15, %v7545_v8  ;;  %v1981_v46 = vmul.f32 %v1973_v47, %v7563_v23  ;;  %v7919_v57 = vrot.slane %v6606_v32, %v7318_v9  ;;  %v1983_v52 = vmul.f32 %v1965_v15, %v7535_v62 }
 0x141   : > { %v1163_v26 = vmul.f32 %v1145_v42, %v7890_v20  ;;  %v1160_v44 = vmul.f32 %v1149_v53, %v7903_v41  ;;  %v1164_v8 = vmul.f32 %v1149_v53, %v7890_v20  ;;  %v1162_v23 = vmul.f32 %v1141_v54, %v7890_v20 }
 0x142   : > { %v1165_v15 = vmul.f32 %v1153_v61, %v7890_v20  ;;  %v1978_v41 = vmul.f32 %v1961_v13, %v7530_v60  ;;  %v1982_v10 = vmul.f32 %v1961_v13, %v7535_v62  ;;  %v6607_v60 = vld [vmem:[%s12301_s0 + $0x47] ss:$8 sm:$0xf]  ;;  %v2021_v13 = vmul.f32 %v2000_v39, %v7551_v18 }
 0x143   : > { %v1167_v42 = vpack.c.bf16 %v1163_v26, %v1159_v55 }
 0x144   : > { %v1129_v36 = vpop.permute.xlu0 %1128 }
 0x145   : > { %v7925_v33 = vsel %vm12014_vm15, %v1127_v25, %v1129_v36  ;;  %v7929_v28 = vsel %vm12014_vm15, %v1129_v36, %v1121_v58  ;;  %1865 = vmatprep.subr.bf16.mxu0 %v1167_v42  ;;  %v7938_v25 = vrot.slane %v6606_v32, %v7332_v16  ;;  %v1985_v36 = vmul.f32 %v1973_v47, %v7535_v62  ;;  %v6873_v32 = vld [vmem:[%s12307_s23] ss:$8 sps:$4 sm:$0xff]  }
 0x146   : > { %12332 = vst [vmem:[#allocation36_spill] sm:$0xff] %v7925_v33  ;;  %v1158_v26 = vmul.f32 %v1141_v54, %v7929_v28  ;;  %v1161_v55 = vmul.f32 %v1153_v61, %v7925_v33  ;;  %v1987_v42 = vpack.c.bf16 %v1983_v52, %v1979_v21  ;;  %v1980_v54 = vmul.f32 %v1969_v59, %v7559_v22 }
 0x147   : > { %v2018_v33 = vmul.f32 %v2004_v34, %v7603_v49  ;;  %v1168_v61 = vpack.c.bf16 %v1164_v8, %v1160_v44  ;;  %v2022_v47 = vmul.f32 %v2004_v34, %v7551_v18  ;;  %v1989_v21 = vpack.c.bf16 %v1985_v36, %v1981_v46  ;;  %v6876_v46 = vld [vmem:[%s12307_s23 + $0x14] ss:$8 sps:$4 sm:$0xff]  }
 0x148   : > { %v1166_v58 = vpack.c.bf16 %v1162_v23, %v1158_v26  ;;  %v1169_v53 = vpack.c.bf16 %v1165_v15, %v1161_v55  ;;  %v2020_v23 = vmul.f32 %v2012_v40, %v7586_v37  ;;  %v2024_v22 = vmul.f32 %v2012_v40, %v7551_v18  ;;  %v6608_v55 = vld [vmem:[%s12301_s0 + $0x60] ss:$8 sm:$0xf] }
 0x149   : > { %v1984_v49 = vmul.f32 %v1969_v59, %v7535_v62  ;;  %v2017_v52 = vmul.f32 %v2000_v39, %v7582_v1  ;;  %v2023_v44 = vmul.f32 %v2008_v43, %v7551_v18  ;;  %v2019_v8 = vmul.f32 %v2008_v43, %v7599_v48 }
 0x14a   : > { %1866 = vmatpush1.bf16.msra.mxu0 %v1166_v58  ;;  %1918 = vmatprep.subr.bf16.mxu1 %v1169_v53  ;;  %v7962_v34 = vrot.slane %v6607_v60, %v7329_v14  ;;  %v1986_v37 = vpack.c.bf16 %v1982_v10, %v1978_v41  ;;  %v2057_v59 = vmul.f32 %v7879_v56, %v7643_v19 }
 0x14b   : > { %1919 = vmatpush1.bf16.msra.mxu1 %v1168_v61  ;;  %2370 = vmatprep.subr.bf16.mxu0 %v1987_v42  ;;  %v1988_v62 = vpack.c.bf16 %v1984_v49, %v1980_v54  ;;  %v2026_v1 = vpack.c.bf16 %v2022_v47, %v2018_v33  ;;  %v2061_v18 = vmul.f32 %v7879_v56, %v7630_v5 }
 0x14c   : > { %2423 = vmatprep.subr.bf16.mxu1 %v1989_v21  ;;  %v2059_v48 = vmul.f32 %v7885_v63, %v7662_v31  ;;  %v7974_v39 = vrot.slane %v6607_v60, %v7334_v17  ;;  %v2028_v10 = vpack.c.bf16 %v2024_v22, %v2020_v23  ;;  %v2025_v40 = vpack.c.bf16 %v2021_v13, %v2017_v52  ;;  %v12335_v21 = vld [vmem:[#allocation16_spill] sm:$0xff]  ;;  %v12336_v22 = vld [vmem:[#allocation17_spill] sm:$0xff]  ;;  %v12337_v13 = vld [vmem:[#allocation22_spill] sm:$0xff] }
 0x14d   : > { %1882 = vmatmul.mubr.bf16.vlgmr.msra.gmra.mrb[0].mxu0 %v6873_v32  ;;  %v2160_v43 = vrot.slane %v6607_v60, %v7318_v9  ;;  %v7978_v41 = vrot.slane %v6607_v60, %v7332_v16  ;;  %v2027_v19 = vpack.c.bf16 %v2023_v44, %v2019_v8  ;;  %v2063_v56 = vmul.f32 %v7885_v63, %v7630_v5  ;;  %v6878_v63 = vld [vmem:[%s12307_s23 + $0x10] ss:$8 sps:$4 sm:$0xff]   ;;  %s12483_s23 = smov 71  }
 0x14e   : > { %2371 = vmatpush1.bf16.msra.mxu0 %v1986_v37  ;;  %1935 = vmatmul.mubr.bf16.vlgmr.msra.gmra.mrb[0].mxu1 %v6873_v32  ;;  %v2060_v31 = vmul.f32 %v7876_v24, %v7630_v5  ;;  %v2058_v33 = vmul.f32 %v7882_v12, %v7658_v30  ;;  %v2096_v26 = vmul.f32 %v7908_v35, %v7703_v7  ;;  %v12338_v8 = vld [vmem:[#allocation18_spill] sm:$0xff] }
 0x14f   : > { %2372 = vmatprep.subr.bf16.mxu0 %v2026_v1  ;;  %2424 = vmatpush1.bf16.msra.mxu1 %v1988_v62  ;;  %v2065_v15 = vpack.c.bf16 %v2061_v18, %v2057_v59  ;;  %v2100_v36 = vmul.f32 %v7908_v35, %v7650_v27  ;;  %v2056_v30 = vmul.f32 %v7876_v24, %v7625_v4 }
 0x150   : > { %2425 = vmatprep.subr.bf16.mxu1 %v2028_v10  ;;  %6599 = vmatprep.mubr.msk.bf16.mxu0 %vm1712_vm0, %v6876_v46  ;;  %v2098_v7 = vmul.f32 %v7899_v3, %v7685_v50  ;;  %v2067_v58 = vpack.c.bf16 %v2063_v56, %v2059_v48  ;;  %v2102_v53 = vmul.f32 %v7899_v3, %v7650_v27 }
 0x151   : > { %6601 = vmatprep.mubr.msk.bf16.mxu1 %vm1712_vm0, %v6876_v46  ;;  %v2062_v35 = vmul.f32 %v7882_v12, %v7630_v5  ;;  %v2099_v42 = vmul.f32 %v7893_v51, %v7650_v27  ;;  %v2095_v54 = vmul.f32 %v7893_v51, %v7681_v0  ;;  %v2101_v4 = vmul.f32 %v7911_v38, %v7650_v27  ;;  %v6881_v5 = vld [vmem:[%s12333_s25 + $0x4] ss:$8 sps:$4 sm:$0xff]  }
 0x152   : > { %2373 = vmatpush1.bf16.msra.mxu0 %v2025_v40  ;;  %v2097_v50 = vmul.f32 %v7911_v38, %v7699_v6  ;;  %v8015_v24 = vrot.slane %v6608_v55, %v7329_v14  ;;  %v2064_v3 = vpack.c.bf16 %v2060_v31, %v2056_v30  ;;  %v2135_v0 = vmul.f32 %v7919_v57, %v7729_v2  ;;  %v12334_v2 = vld [vmem:[#allocation35_spill] sm:$0xff]  ;;  %v12339_v46 = vld [vmem:[#allocation20_spill] sm:$0xff] }
 0x153   : > { %2374 = vmatprep.subr.bf16.mxu0 %v2065_v15  ;;  %2426 = vmatpush1.bf16.msra.mxu1 %v2027_v19  ;;  %v2066_v12 = vpack.c.bf16 %v2062_v35, %v2058_v33  ;;  %v2104_v51 = vpack.c.bf16 %v2100_v36, %v2096_v26  ;;  %v2139_v27 = vmul.f32 %v7919_v57, %v7719_v29  ;;  %v12340_v19 = vld [vmem:[#allocation19_spill] sm:$0xff]  ;;  %v12341_v33 = vld [vmem:[#allocation21_spill] sm:$0xff]  ;;  %v12343_v15 = vld [vmem:[#allocation24_spill] sm:$0xff] }
 0x154   : > { %2427 = vmatprep.subr.bf16.mxu1 %v2067_v58  ;;  %v2137_v6 = vmul.f32 %v7941_v11, %v7743_v45  ;;  %v2199_v38 = vrot.slane %v6608_v55, %v7318_v9  ;;  %v2106_v60 = vpack.c.bf16 %v2102_v53, %v2098_v7  ;;  %v2103_v61 = vpack.c.bf16 %v2099_v42, %v2095_v54 }
 0x155   : > { %1892 = vmatmul.mubr.bf16.gmra.mrb[4].mxu0 %v6878_v63  ;;  %v2203_v32 = vrot.slane %v6608_v55, %v7332_v16  ;;  %v2138_v47 = vmul.f32 %v12334_v2, %v7719_v29  ;;  %v2105_v23 = vpack.c.bf16 %v2101_v4, %v2097_v50  ;;  %v2134_v57 = vmul.f32 %v12334_v2, %v12335_v21  ;;  %v12345_v50 = vld [vmem:[#allocation26_spill] sm:$0xff] }
 0x156   : > { %2375 = vmatpush1.bf16.msra.mxu0 %v2064_v3  ;;  %1945 = vmatmul.mubr.bf16.gmra.mrb[4].mxu1 %v6878_v63  ;;  %v2141_v45 = vmul.f32 %v7941_v11, %v7719_v29  ;;  %v2136_v49 = vmul.f32 %v7938_v25, %v12336_v22  ;;  %v2174_v52 = vmul.f32 %v2160_v43, %v12337_v13  ;;  %v6609_v11 = vld [vmem:[%s12301_s0 + $0x61] ss:$8 sm:$0xf] }
 0x157   : > { %2376 = vmatprep.subr.bf16.mxu0 %v2104_v51  ;;  %2428 = vmatpush1.bf16.msra.mxu1 %v2066_v12  ;;  %v2143_v44 = vpack.c.bf16 %v2139_v27, %v2135_v0  ;;  %v2178_v37 = vmul.f32 %v2160_v43, %v12338_v8  ;;  %v2176_v62 = vmul.f32 %v7974_v39, %v12339_v46  ;;  %v12344_v63 = vld [vmem:[#allocation27_spill] sm:$0xff]  ;;  %v12347_v51 = vld [vmem:[#allocation32_spill] sm:$0xff]  ;;  %v12349_v2 = vld [vmem:[#allocation30_spill] sm:$0xff] }
 0x158   : > { %2429 = vmatprep.subr.bf16.mxu1 %v2106_v60  ;;  %6615 = vmatprep.mubr.msk.bf16.mxu0 %vm1712_vm0, %v6881_v5  ;;  %v2207_v59 = vrot.slane %v6608_v55, %v7334_v17  ;;  %v2145_v1 = vpack.c.bf16 %v2141_v45, %v2137_v6  ;;  %v2180_v18 = vmul.f32 %v7974_v39, %v12338_v8  ;;  %v12346_v12 = vld [vmem:[#allocation23_spill] sm:$0xff] }
 0x159   : > { %6617 = vmatprep.mubr.msk.bf16.mxu1 %vm1712_vm0, %v6881_v5  ;;  %v2140_v48 = vmul.f32 %v7938_v25, %v7719_v29  ;;  %v2238_v10 = vrot.slane %v6609_v11, %v7318_v9  ;;  %v2142_v40 = vpack.c.bf16 %v2138_v47, %v2134_v57  ;;  %v2177_v43 = vmul.f32 %v7962_v34, %v12338_v8  ;;  %v12342_v29 = vld [vmem:[#allocation25_spill] sm:$0xff] }
 0x15a   : > { %2377 = vmatpush1.bf16.msra.mxu0 %v2103_v61  ;;  %v2173_v56 = vmul.f32 %v7962_v34, %v12340_v19  ;;  %v2179_v31 = vmul.f32 %v7978_v41, %v12338_v8  ;;  %v2175_v39 = vmul.f32 %v7978_v41, %v12341_v33  ;;  %v2213_v25 = vmul.f32 %v2199_v38, %v12342_v29  ;;  %v6610_v34 = vld [vmem:[%s12301_s0 + $0x62] ss:$8 sm:$0xf] }
 0x15b   : > { %2378 = vmatprep.subr.bf16.mxu0 %v2143_v44  ;;  %2430 = vmatpush1.bf16.msra.mxu1 %v2105_v23  ;;  %v2144_v26 = vpack.c.bf16 %v2140_v48, %v2136_v49  ;;  %v2182_v55 = vpack.c.bf16 %v2178_v37, %v2174_v52  ;;  %v2217_v36 = vmul.f32 %v2199_v38, %v12343_v15  ;;  %v12348_v38 = vld [vmem:[#allocation28_spill] sm:$0xff]  ;;  %v12350_v49 = vld [vmem:[#allocation29_spill] sm:$0xff]  ;;  %v12352_v8 = vld [vmem:[#allocation34_spill] sm:$0xff] }
 0x15c   : > { %2431 = vmatprep.subr.bf16.mxu1 %v2145_v1  ;;  %v2215_v30 = vmul.f32 %v2207_v59, %v12344_v63  ;;  %v2234_v7 = vrot.slane %v6609_v11, %v7329_v14  ;;  %v2246_v58 = vrot.slane %v6609_v11, %v7334_v17  ;;  %v2184_v53 = vpack.c.bf16 %v2180_v18, %v2176_v62  ;;  %v12353_v19 = vld [vmem:[#allocation36_spill] sm:$0xff]  ;;  %v12354_v33 = vld [vmem:[#allocation33_spill] sm:$0xff] }
 0x15d   : > { %v2242_v41 = vrot.slane %v6609_v11, %v7332_v16  ;;  %v2277_v35 = vrot.slane %v6610_v34, %v7318_v9  ;;  %v2216_v42 = vmul.f32 %v8015_v24, %v12343_v15  ;;  %v2181_v54 = vpack.c.bf16 %v2177_v43, %v2173_v56 }
 0x15e   : > { %2379 = vmatpush1.bf16.msra.mxu0 %v2142_v40  ;;  %v2183_v4 = vpack.c.bf16 %v2179_v31, %v2175_v39  ;;  %v2214_v3 = vmul.f32 %v2203_v32, %v12345_v50  ;;  %v2219_v5 = vmul.f32 %v2207_v59, %v12343_v15  ;;  %v2212_v0 = vmul.f32 %v8015_v24, %v12346_v12 }
 0x15f   : > { %2380 = vmatprep.subr.bf16.mxu0 %v2182_v55  ;;  %2432 = vmatpush1.bf16.msra.mxu1 %v2144_v26  ;;  %v2252_v27 = vmul.f32 %v2238_v10, %v12347_v51  ;;  %v2221_v6 = vpack.c.bf16 %v2217_v36, %v2213_v25  ;;  %v2256_v60 = vmul.f32 %v2238_v10, %v12348_v38  ;;  %v6879_v55 = vld [vmem:[%s12333_s25] ss:$8 sps:$4 sm:$0xff]  }
 0x160   : > { %2433 = vmatprep.subr.bf16.mxu1 %v2184_v53  ;;  %v2218_v61 = vmul.f32 %v2203_v32, %v12343_v15  ;;  %v2254_v47 = vmul.f32 %v2246_v58, %v12349_v2  ;;  %v2223_v23 = vpack.c.bf16 %v2219_v5, %v2215_v30  ;;  %v2258_v21 = vmul.f32 %v2246_v58, %v12348_v38  ;;  %v12351_v32 = vld [vmem:[#allocation31_spill] sm:$0xff]  ;;  %v6882_v15 = vld [vmem:[%s12333_s25 + $0x14] ss:$8 sps:$4 sm:$0xff]  }
 0x161   : > { %v2285_v57 = vrot.slane %v6610_v34, %v7334_v17  ;;  %v2220_v45 = vpack.c.bf16 %v2216_v42, %v2212_v0  ;;  %v2255_v24 = vmul.f32 %v2234_v7, %v12348_v38  ;;  %v2251_v13 = vmul.f32 %v2234_v7, %v12350_v49 }
 0x162   : > { %2381 = vmatpush1.bf16.msra.mxu0 %v2181_v54  ;;  %v2222_v22 = vpack.c.bf16 %v2218_v61, %v2214_v3  ;;  %v2257_v52 = vmul.f32 %v2242_v41, %v12348_v38  ;;  %v2253_v44 = vmul.f32 %v2242_v41, %v12351_v32  ;;  %v2291_v37 = vmul.f32 %v2277_v35, %v12352_v8 }
 0x163   : > { %2382 = vmatprep.subr.bf16.mxu0 %v2221_v6  ;;  %2434 = vmatpush1.bf16.msra.mxu1 %v2183_v4  ;;  %v2260_v46 = vpack.c.bf16 %v2256_v60, %v2252_v27  ;;  %v2295_v62 = vmul.f32 %v2277_v35, %v7890_v20  ;;  %v2273_v59 = vrot.slane %v6610_v34, %v7329_v14 }
 0x164   : > { %2435 = vmatprep.subr.bf16.mxu1 %v2223_v23  ;;  %v2293_v11 = vmul.f32 %v2285_v57, %v7929_v28  ;;  %v2262_v1 = vpack.c.bf16 %v2258_v21, %v2254_v47  ;;  %v2281_v18 = vrot.slane %v6610_v34, %v7332_v16  ;;  %v2259_v48 = vpack.c.bf16 %v2255_v24, %v2251_v13 }
 0x165   : > { %v2297_v10 = vmul.f32 %v2285_v57, %v7890_v20  ;;  %v2294_v40 = vmul.f32 %v2273_v59, %v7890_v20  ;;  %v2261_v43 = vpack.c.bf16 %v2257_v52, %v2253_v44  ;;  %v2299_v31 = vpack.c.bf16 %v2295_v62, %v2291_v37 }
 0x166   : > { %2383 = vmatpush1.bf16.msra.mxu0 %v2220_v45  ;;  %v2292_v56 = vmul.f32 %v2281_v18, %v12353_v19  ;;  %v2290_v39 = vmul.f32 %v2273_v59, %v12354_v33  ;;  %v2296_v26 = vmul.f32 %v2281_v18, %v7890_v20  ;;  %v6884_v20 = vld [vmem:[%s12333_s25 + $0x10] ss:$8 sps:$4 sm:$0xff]   ;;  %s12624_s25 = smov 64  }
 0x167   : > { %2384 = vmatprep.subr.bf16.mxu0 %v2260_v46  ;;  %2436 = vmatpush1.bf16.msra.mxu1 %v2222_v22  ;;  %v2301_v28 = vpack.c.bf16 %v2297_v10, %v2293_v11 }
 0x168   : > { %2437 = vmatprep.subr.bf16.mxu1 %v2262_v1  ;;  %v2298_v29 = vpack.c.bf16 %v2294_v40, %v2290_v39  ;;  %v2300_v25 = vpack.c.bf16 %v2296_v26, %v2292_v56 }
 0x16a   : > { %2385 = vmatpush1.bf16.msra.mxu0 %v2259_v48 }
 0x16b   : > { %2386 = vmatprep.subr.bf16.mxu0 %v2299_v31  ;;  %2438 = vmatpush1.bf16.msra.mxu1 %v2261_v43 }
 0x16c   : > { %2439 = vmatprep.subr.bf16.mxu1 %v2301_v28 }
 0x16e   : > { %2387 = vmatpush1.bf16.msra.mxu0 %v2298_v29 }
 0x16f   : > { %2440 = vmatpush1.bf16.msra.mxu1 %v2300_v25  ;;  %v8106_v36 = vpop.permute.xlu1 %2498  ;;  %v8110_v30 = vpop.permute.xlu0 %2503 }
 0x171   : > { %2403 = vmatmul.mubr.bf16.vlgmr.msra.gmra.mrb[0].mxu0 %v6879_v55 }
 0x172   : > { %2456 = vmatmul.mubr.bf16.vlgmr.msra.gmra.mrb[0].mxu1 %v6879_v55  ;;  %6616 = vmatprep.mubr.msk.bf16.mxu0 %vm1712_vm0, %v6882_v15 }
 0x173   : > { %6618 = vmatprep.mubr.msk.bf16.mxu1 %vm1712_vm0, %v6882_v15  ;;  %v8108_v63 = vpop.permute.xlu1 %2538  ;;  %v8114_v58 = vpop.permute.xlu0 %2508 }
 0x177   : > { %v8112_v7 = vpop.permute.xlu1 %2543 }
 0x179   : > { %2413 = vmatmul.mubr.bf16.gmra.mrb[4].mxu0 %v6884_v20 }
 0x17a   : > { %2466 = vmatmul.mubr.bf16.gmra.mrb[4].mxu1 %v6884_v20 }
 0x17b   : > { %v8128_v51 = vpop.permute.xlu0 %2578 }
 0x17c   : > { %v8116_v34 = vpop.permute.xlu1 %2513 }
 0x181   : > { %v8136_v2 = vpop.permute.xlu1 %2583 }
 0x244   : > { %v2404_v53 = vpop.f32.mrb[0].mxu0 }
 0x245   : > { %v2516_v41 = vadd.f32 %v8106_v36, %v2404_v53  ;;  %v8119_v35 = vpop.f32.mrb[1].mxu0  ;;  %v2457_v42 = vpop.f32.mrb[0].mxu1 }
 0x246   : > { %v2518_v54 = vadd.f32 %v8106_v36, %v2457_v42  ;;  %v2408_v4 = vpop.f32.mrb[2].mxu0  ;;  %v8122_v50 = vpop.f32.mrb[1].mxu1  ;;  %v2517_v48 = vadd.f32 %v8106_v36, %v8119_v35 }
 0x247   : > { %v2556_v3 = vmul.f32 %v8108_v63, %v2516_v41  ;;  %v2520_v5 = vadd.f32 %v8110_v30, %v2408_v4  ;;  %v8126_v12 = vpop.f32.mrb[3].mxu0  ;;  %v2461_v0 = vpop.f32.mrb[2].mxu1  ;;  %v2519_v43 = vadd.f32 %v8106_v36, %v8122_v50 }
 0x248   : > { %v2558_v27 = vmul.f32 %v8108_v63, %v2518_v54  ;;  %v2522_v6 = vadd.f32 %v8110_v30, %v2461_v0  ;;  %v8132_v38 = vpop.f32.mrb[3].mxu1  ;;  %v2521_v10 = vadd.f32 %v8110_v30, %v8126_v12  ;;  %v2557_v40 = vmul.f32 %v8108_v63, %v2517_v48  ;;  %v8294_v53 = vpop.permute.xlu0 %2548 }
 0x249   : > { %v2596_v60 = vadd.f32 %v8128_v51, %v2556_v3  ;;  %v2560_v61 = vmul.f32 %v8112_v7, %v2520_v5  ;;  %v2523_v56 = vadd.f32 %v8110_v30, %v8132_v38  ;;  %v2559_v33 = vmul.f32 %v8108_v63, %v2519_v43  ;;  %v8298_v41 = vpop.permute.xlu1 %2553 }
 0x24a   : > { %v2598_v47 = vadd.f32 %v8128_v51, %v2558_v27  ;;  %v2562_v57 = vmul.f32 %v8112_v7, %v2522_v6  ;;  %v2561_v19 = vmul.f32 %v8112_v7, %v2521_v10  ;;  %v2597_v31 = vadd.f32 %v8128_v51, %v2557_v40 }
 0x24b   : > { %vm2612_vm0 = vcmp.gt.f32.partialorder %v2596_v60, 0.0  ;;  %v2628_v23 = vmul.f32 0.01, %v2596_v60  ;;  %v2600_v21 = vadd.f32 %v8136_v2, %v2560_v61  ;;  %v2563_v28 = vmul.f32 %v8112_v7, %v2523_v56 }
 0x24c   : > { %v2630_v45 = vmul.f32 0.01, %v2598_v47  ;;  %v8143_v49 = vpop.f32.mrb[4].mxu0  ;;  %vm2614_vm14 = vcmp.gt.f32.partialorder %v2598_v47, 0.0  ;;  %v2602_v8 = vadd.f32 %v8136_v2, %v2562_v57  ;;  %v2601_v39 = vadd.f32 %v8136_v2, %v2561_v19  ;;  %v8304_v35 = vpop.permute.xlu0 %2588 }
 0x24d   : > { %v8141_v22 = vsel %vm2612_vm0, %v2596_v60, %v2628_v23  ;;  %vm2616_vm15 = vcmp.gt.f32.partialorder %v2600_v21, 0.0  ;;  %v2632_v24 = vmul.f32 0.01, %v2600_v21  ;;  %v8145_v13 = vpop.f32.mrb[4].mxu1  ;;  %v8147_v52 = vpop.f32.mrb[5].mxu0  ;;  %v2599_v29 = vadd.f32 %v8128_v51, %v2559_v33 }
 0x24e   : > { %12355 = vst [vmem:[#allocation35_spill] sm:$0xff] %v8141_v22  ;;  %v8149_v32 = vpop.f32.mrb[5].mxu1  ;;  %3658 = vrot.lane.b32.xlu0 %v8141_v22, %s12356_s2  ;;  %v8156_v37 = vpop.f32.mrb[6].mxu0  ;;  %v8166_v11 = vsel %vm2614_vm14, %v2598_v47, %v2630_v45  ;;  %vm2618_vm0 = vcmp.gt.f32.partialorder %v2602_v8, 0.0  ;;  %v2634_v1 = vmul.f32 0.01, %v2602_v8  ;;  %v2603_v55 = vadd.f32 %v8136_v2, %v2563_v28 }
 0x24f   : > { %v8153_v44 = vsel %vm2616_vm15, %v2600_v21, %v2632_v24  ;;  %v8158_v46 = vpop.f32.mrb[6].mxu1  ;;  %v8160_v62 = vpop.f32.mrb[7].mxu0  ;;  %12358 = vst [vmem:[#allocation17_spill] sm:$0xff] %v8166_v11  ;;  %v2629_v26 = vmul.f32 0.01, %v2597_v31  ;;  %vm2613_vm14 = vcmp.gt.f32.partialorder %v2597_v31, 0.0  ;;  %v2524_v51 = vadd.f32 %v8114_v58, %v8143_v49 }
 0x250   : > { %12357 = vst [vmem:[#allocation16_spill] sm:$0xff] %v8153_v44  ;;  %v8162_v59 = vpop.f32.mrb[7].mxu1  ;;  %3660 = vrot.lane.b32.xlu1 %v8153_v44, %s12356_s2  ;;  %v8170_v18 = vsel %vm2618_vm0, %v2602_v8, %v2634_v1  ;;  %v2633_v25 = vmul.f32 0.01, %v2601_v39  ;;  %vm2617_vm15 = vcmp.gt.f32.partialorder %v2601_v39, 0.0  ;;  %vm2615_vm0 = vcmp.gt.f32.partialorder %v2599_v29, 0.0  ;;  %v8308_v42 = vpop.permute.xlu1 %2593 }
 0x251   : > { %12359 = vst [vmem:[#allocation22_spill] sm:$0xff] %v8170_v18  ;;  %v8254_v15 = vsel %vm2613_vm14, %v2597_v31, %v2629_v26  ;;  %v2631_v20 = vmul.f32 0.01, %v2599_v29  ;;  %v2635_v63 = vmul.f32 0.01, %v2603_v55  ;;  %vm2619_vm13 = vcmp.gt.f32.partialorder %v2603_v55, 0.0 }
 0x252   : > { %3674 = vrot.lane.b32.xlu0 %v8166_v11, %s12356_s2  ;;  %12368 = vst [vmem:[#allocation18_spill] sm:$0xff] %v8254_v15  ;;  %v8258_v36 = vsel %vm2617_vm15, %v2601_v39, %v2633_v25  ;;  %v2528_v6 = vadd.f32 %v8116_v34, %v8156_v37  ;;  %v2564_v60 = vmul.f32 %v8294_v53, %v2524_v51 }
 0x253   : > { %12369 = vst [vmem:[#allocation20_spill] sm:$0xff] %v8258_v36  ;;  %v8262_v30 = vsel %vm2615_vm0, %v2599_v29, %v2631_v20  ;;  %v8266_v7 = vsel %vm2619_vm13, %v2603_v55, %v2635_v63  ;;  %v2526_v61 = vadd.f32 %v8114_v58, %v8145_v13  ;;  %v2530_v23 = vadd.f32 %v8116_v34, %v8158_v46 }
 0x254   : > { %3676 = vrot.lane.b32.xlu1 %v8170_v18, %s12356_s2  ;;  %12370 = vst [vmem:[#allocation19_spill] sm:$0xff] %v8262_v30  ;;  %12371 = vst [vmem:[#allocation21_spill] sm:$0xff] %v8266_v7  ;;  %v2568_v47 = vmul.f32 %v8298_v41, %v2528_v6  ;;  %v2604_v57 = vadd.f32 %v8304_v35, %v2564_v60 }
 0x255   : > { %v2566_v45 = vmul.f32 %v8294_v53, %v2526_v61  ;;  %v2570_v13 = vmul.f32 %v8298_v41, %v2530_v23 }
 0x256   : > { %3760 = vrot.lane.b32.xlu0 %v8141_v22, %s12360_s3  ;;  %v2608_v49 = vadd.f32 %v8308_v42, %v2568_v47  ;;  %v2636_v37 = vmul.f32 0.01, %v2604_v57  ;;  %vm2620_vm13 = vcmp.gt.f32.partialorder %v2604_v57, 0.0 }
 0x257   : > { %v2606_v46 = vadd.f32 %v8304_v35, %v2566_v45  ;;  %v2610_v10 = vadd.f32 %v8308_v42, %v2570_v13 }
 0x258   : > { %3762 = vrot.lane.b32.xlu1 %v8153_v44, %s12360_s3  ;;  %v2640_v48 = vmul.f32 0.01, %v2608_v49  ;;  %vm2624_vm14 = vcmp.gt.f32.partialorder %v2608_v49, 0.0  ;;  %v8388_v43 = vsel %vm2620_vm13, %v2604_v57, %v2636_v37 }
 0x259   : > { %12372 = vst [vmem:[#allocation25_spill] sm:$0xff] %v8388_v43  ;;  %v2638_v19 = vmul.f32 0.01, %v2606_v46  ;;  %vm2622_vm15 = vcmp.gt.f32.partialorder %v2606_v46, 0.0  ;;  %v2642_v33 = vmul.f32 0.01, %v2610_v10 }
 0x25a   : > { %3776 = vrot.lane.b32.xlu0 %v8166_v11, %s12360_s3  ;;  %v8394_v31 = vsel %vm2624_vm14, %v2608_v49, %v2640_v48  ;;  %vm2626_vm0 = vcmp.gt.f32.partialorder %v2610_v10, 0.0 }
 0x25b   : > { %12373 = vst [vmem:[#allocation24_spill] sm:$0xff] %v8394_v31  ;;  %v8400_v28 = vsel %vm2622_vm15, %v2606_v46, %v2638_v19  ;;  %v8406_v29 = vsel %vm2626_vm0, %v2610_v10, %v2642_v33  ;;  %v6627_v10 = vld [vmem:[%s12301_s0 + $0x21] ss:$8 sm:$0xf] }
 0x25c   : > { %3778 = vrot.lane.b32.xlu1 %v8170_v18, %s12360_s3  ;;  %v8484_v33 = vrot.slane %v6627_v10, %v7318_v9 }
 0x25e   : > { %3862 = vrot.lane.b32.xlu0 %v8141_v22, %s12361_s26  ;;  %12390 = vst [vmem:[#allocation42_spill] sm:$0xff] %v8484_v33 }
 0x260   : > { %3864 = vrot.lane.b32.xlu1 %v8153_v44, %s12361_s26 }
 0x262   : > { %3878 = vrot.lane.b32.xlu0 %v8166_v11, %s12361_s26 }
 0x264   : > { %3880 = vrot.lane.b32.xlu1 %v8170_v18, %s12361_s26 }
 0x266   : > { %3964 = vrot.lane.b32.xlu0 %v8141_v22, %s12362_s29 }
 0x268   : > { %3966 = vrot.lane.b32.xlu1 %v8153_v44, %s12362_s29 }
 0x26a   : > { %3980 = vrot.lane.b32.xlu0 %v8166_v11, %s12362_s29 }
 0x26c   : > { %3982 = vrot.lane.b32.xlu1 %v8170_v18, %s12362_s29 }
 0x26e   : > { %4098 = vrot.lane.b32.xlu0 %v8166_v11, %s12363_s27 }
 0x270   : > { %4100 = vrot.lane.b32.xlu1 %v8170_v18, %s12363_s27 }
 0x272   : > { %4082 = vrot.lane.b32.xlu0 %v8141_v22, %s12363_s27 }
 0x274   : > { %4084 = vrot.lane.b32.xlu1 %v8153_v44, %s12363_s27 }
 0x276   : > { %4200 = vrot.lane.b32.xlu0 %v8166_v11, %s12364_s1 }
 0x278   : > { %4202 = vrot.lane.b32.xlu1 %v8170_v18, %s12364_s1 }
 0x27a   : > { %4184 = vrot.lane.b32.xlu0 %v8141_v22, %s12364_s1 }
 0x27c   : > { %4186 = vrot.lane.b32.xlu1 %v8153_v44, %s12364_s1 }
 0x27e   : > { %4302 = vrot.lane.b32.xlu0 %v8166_v11, %s12365_s5 }
 0x280   : > { %4304 = vrot.lane.b32.xlu1 %v8170_v18, %s12365_s5 }
 0x282   : > { %4286 = vrot.lane.b32.xlu0 %v8141_v22, %s12365_s5 }
 0x284   : > { %4288 = vrot.lane.b32.xlu1 %v8153_v44, %s12365_s5 }
 0x286   : > { %4404 = vrot.lane.b32.xlu0 %v8166_v11, %s12366_s7 }
 0x288   : > { %4406 = vrot.lane.b32.xlu1 %v8170_v18, %s12366_s7 }
 0x28a   : > { %4388 = vrot.lane.b32.xlu0 %v8141_v22, %s12366_s7 }
 0x28c   : > { %4390 = vrot.lane.b32.xlu1 %v8153_v44, %s12366_s7 }
 0x28e   : > { %2660 = vrot.lane.b32.xlu0 %v8141_v22, %s12367_s22 }
 0x290   : > { %2662 = vrot.lane.b32.xlu1 %v8153_v44, %s12367_s22 }
 0x292   : > { %2676 = vrot.lane.b32.xlu0 %v8166_v11, %s12367_s22 }
 0x294   : > { %2678 = vrot.lane.b32.xlu1 %v8170_v18, %s12367_s22 }
 0x296   : > { %3666 = vrot.lane.b32.xlu0 %v8254_v15, %s12356_s2 }
 0x298   : > { %3668 = vrot.lane.b32.xlu1 %v8258_v36, %s12356_s2 }
 0x29a   : > { %3682 = vrot.lane.b32.xlu0 %v8262_v30, %s12356_s2 }
 0x29c   : > { %3684 = vrot.lane.b32.xlu1 %v8266_v7, %s12356_s2 }
 0x29e   : > { %3768 = vrot.lane.b32.xlu0 %v8254_v15, %s12360_s3 }
 0x2a0   : > { %3770 = vrot.lane.b32.xlu1 %v8258_v36, %s12360_s3 }
 0x2a2   : > { %3784 = vrot.lane.b32.xlu0 %v8262_v30, %s12360_s3 }
 0x2a4   : > { %3786 = vrot.lane.b32.xlu1 %v8266_v7, %s12360_s3 }
 0x2a6   : > { %3870 = vrot.lane.b32.xlu0 %v8254_v15, %s12361_s26 }
 0x2a8   : > { %3872 = vrot.lane.b32.xlu1 %v8258_v36, %s12361_s26 }
 0x2aa   : > { %3886 = vrot.lane.b32.xlu0 %v8262_v30, %s12361_s26 }
 0x2ac   : > { %3888 = vrot.lane.b32.xlu1 %v8266_v7, %s12361_s26 }
 0x2ae   : > { %3972 = vrot.lane.b32.xlu0 %v8254_v15, %s12362_s29 }
 0x2b0   : > { %3974 = vrot.lane.b32.xlu1 %v8258_v36, %s12362_s29 }
 0x2b2   : > { %3988 = vrot.lane.b32.xlu0 %v8262_v30, %s12362_s29 }
 0x2b4   : > { %3990 = vrot.lane.b32.xlu1 %v8266_v7, %s12362_s29 }
 0x2b6   : > { %4090 = vrot.lane.b32.xlu0 %v8254_v15, %s12363_s27 }
 0x2b8   : > { %4092 = vrot.lane.b32.xlu1 %v8258_v36, %s12363_s27 }
 0x2ba   : > { %4106 = vrot.lane.b32.xlu0 %v8262_v30, %s12363_s27 }
 0x2bc   : > { %4108 = vrot.lane.b32.xlu1 %v8266_v7, %s12363_s27 }
 0x2be   : > { %4192 = vrot.lane.b32.xlu0 %v8254_v15, %s12364_s1 }
 0x2c0   : > { %v8312_v54 = vpop.permute.xlu0 %3658  ;;  %4194 = vrot.lane.b32.xlu1 %v8258_v36, %s12364_s1 }
 0x2c2   : > { %4208 = vrot.lane.b32.xlu0 %v8262_v30, %s12364_s1  ;;  %v8318_v4 = vpop.permute.xlu1 %3660 }
 0x2c4   : > { %v8320_v50 = vpop.permute.xlu0 %3674  ;;  %4210 = vrot.lane.b32.xlu1 %v8266_v7, %s12364_s1 }
 0x2c6   : > { %4294 = vrot.lane.b32.xlu0 %v8254_v15, %s12365_s5  ;;  %v8326_v3 = vpop.permute.xlu1 %3676 }
 0x2c8   : > { %v8328_v5 = vpop.permute.xlu0 %3760  ;;  %4296 = vrot.lane.b32.xlu1 %v8258_v36, %s12365_s5 }
 0x2ca   : > { %4310 = vrot.lane.b32.xlu0 %v8262_v30, %s12365_s5  ;;  %v8334_v12 = vpop.permute.xlu1 %3762 }
 0x2cc   : > { %v8336_v0 = vpop.permute.xlu0 %3776  ;;  %4312 = vrot.lane.b32.xlu1 %v8266_v7, %s12365_s5 }
 0x2ce   : > { %4396 = vrot.lane.b32.xlu0 %v8254_v15, %s12366_s7  ;;  %v8344_v27 = vpop.permute.xlu1 %3778 }
 0x2d0   : > { %v8348_v38 = vpop.permute.xlu0 %3862  ;;  %4398 = vrot.lane.b32.xlu1 %v8258_v36, %s12366_s7 }
 0x2d2   : > { %4412 = vrot.lane.b32.xlu0 %v8262_v30, %s12366_s7  ;;  %v8357_v2 = vpop.permute.xlu1 %3864 }
 0x2d4   : > { %v8362_v21 = vpop.permute.xlu0 %3878  ;;  %4414 = vrot.lane.b32.xlu1 %v8266_v7, %s12366_s7 }
 0x2d6   : > { %2668 = vrot.lane.b32.xlu0 %v8254_v15, %s12367_s22  ;;  %v8370_v24 = vpop.permute.xlu1 %3880 }
 0x2d8   : > { %v8374_v8 = vpop.permute.xlu0 %3964  ;;  %2670 = vrot.lane.b32.xlu1 %v8258_v36, %s12367_s22 }
 0x2da   : > { %2684 = vrot.lane.b32.xlu0 %v8262_v30, %s12367_s22  ;;  %v8381_v1 = vpop.permute.xlu1 %3966 }
 0x2dc   : > { %v8384_v40 = vpop.permute.xlu0 %3980  ;;  %2686 = vrot.lane.b32.xlu1 %v8266_v7, %s12367_s22 }
 0x2de   : > { %v8390_v56 = vpop.permute.xlu1 %3982  ;;  %3662 = vrot.lane.b32.xlu0 %v8388_v43, %s12356_s2 }
 0x2e0   : > { %v8396_v39 = vpop.permute.xlu0 %4098  ;;  %3664 = vrot.lane.b32.xlu1 %v8394_v31, %s12356_s2 }
 0x2e1   : > { %12374 = vst [vmem:[#allocation27_spill] sm:$0xff] %v8396_v39 }
 0x2e2   : > { %v8402_v26 = vpop.permute.xlu1 %4100  ;;  %3678 = vrot.lane.b32.xlu0 %v8400_v28, %s12356_s2 }
 0x2e3   : > { %12375 = vst [vmem:[#allocation26_spill] sm:$0xff] %v8402_v26  ;;  %v8512_v26 = vrot.slane %v6627_v10, %v7332_v16 }
 0x2e4   : > { %v8408_v25 = vpop.permute.xlu0 %4082  ;;  %3680 = vrot.lane.b32.xlu1 %v8406_v29, %s12356_s2 }
 0x2e5   : > { %12376 = vst [vmem:[#allocation23_spill] sm:$0xff] %v8408_v25  ;;  %12394 = vst [vmem:[#allocation44_spill] sm:$0xff] %v8512_v26 }
 0x2e6   : > { %v8412_v55 = vpop.permute.xlu1 %4084  ;;  %3764 = vrot.lane.b32.xlu0 %v8388_v43, %s12360_s3 }
 0x2e7   : > { %12377 = vst [vmem:[#allocation32_spill] sm:$0xff] %v8412_v55 }
 0x2e8   : > { %v8416_v20 = vpop.permute.xlu0 %4200  ;;  %3766 = vrot.lane.b32.xlu1 %v8394_v31, %s12360_s3 }
 0x2e9   : > { %12378 = vst [vmem:[#allocation28_spill] sm:$0xff] %v8416_v20  ;;  %v2525_v20 = vadd.f32 %v8114_v58, %v8147_v52 }
 0x2ea   : > { %v8420_v63 = vpop.permute.xlu1 %4202  ;;  %3780 = vrot.lane.b32.xlu0 %v8400_v28, %s12360_s3 }
 0x2eb   : > { %12379 = vst [vmem:[#allocation30_spill] sm:$0xff] %v8420_v63 }
 0x2ec   : > { %v8424_v51 = vpop.permute.xlu0 %4184  ;;  %3782 = vrot.lane.b32.xlu1 %v8406_v29, %s12360_s3 }
 0x2ed   : > { %12380 = vst [vmem:[#allocation29_spill] sm:$0xff] %v8424_v51 }
 0x2ee   : > { %v8428_v6 = vpop.permute.xlu1 %4186  ;;  %3866 = vrot.lane.b32.xlu0 %v8388_v43, %s12361_s26 }
 0x2ef   : > { %12381 = vst [vmem:[#allocation31_spill] sm:$0xff] %v8428_v6  ;;  %v8505_v6 = vrot.slane %v6627_v10, %v7334_v17 }
 0x2f0   : > { %v8432_v60 = vpop.permute.xlu0 %4302  ;;  %3868 = vrot.lane.b32.xlu1 %v8394_v31, %s12361_s26 }
 0x2f1   : > { %12382 = vst [vmem:[#allocation34_spill] sm:$0xff] %v8432_v60  ;;  %12393 = vst [vmem:[#allocation43_spill] sm:$0xff] %v8505_v6 }
 0x2f2   : > { %v8436_v61 = vpop.permute.xlu1 %4304  ;;  %3882 = vrot.lane.b32.xlu0 %v8400_v28, %s12361_s26 }
 0x2f3   : > { %12383 = vst [vmem:[#allocation36_spill] sm:$0xff] %v8436_v61  ;;  %v8497_v61 = vrot.slane %v6627_v10, %v7329_v14 }
 0x2f4   : > { %v8440_v47 = vpop.permute.xlu0 %4286  ;;  %3884 = vrot.lane.b32.xlu1 %v8406_v29, %s12361_s26 }
 0x2f5   : > { %12384 = vst [vmem:[#allocation33_spill] sm:$0xff] %v8440_v47 }
 0x2f6   : > { %v8444_v23 = vpop.permute.xlu1 %4288  ;;  %3968 = vrot.lane.b32.xlu0 %v8388_v43, %s12362_s29 }
 0x2f7   : > { %12385 = vst [vmem:[#allocation37_spill] sm:$0xff] %v8444_v23 }
 0x2f8   : > { %v8448_v57 = vpop.permute.xlu0 %4404  ;;  %3970 = vrot.lane.b32.xlu1 %v8394_v31, %s12362_s29 }
 0x2f9   : > { %12386 = vst [vmem:[#allocation38_spill] sm:$0xff] %v8448_v57 }
 0x2fa   : > { %v8452_v45 = vpop.permute.xlu1 %4406  ;;  %3984 = vrot.lane.b32.xlu0 %v8400_v28, %s12362_s29 }
 0x2fb   : > { %12387 = vst [vmem:[#allocation39_spill] sm:$0xff] %v8452_v45 }
 0x2fc   : > { %v8456_v49 = vpop.permute.xlu0 %4388  ;;  %3986 = vrot.lane.b32.xlu1 %v8406_v29, %s12362_s29 }
 0x2fd   : > { %12388 = vst [vmem:[#allocation40_spill] sm:$0xff] %v8456_v49 }
 0x2fe   : > { %v8460_v13 = vpop.permute.xlu1 %4390  ;;  %4102 = vrot.lane.b32.xlu0 %v8400_v28, %s12363_s27 }
 0x2ff   : > { %12389 = vst [vmem:[#allocation41_spill] sm:$0xff] %v8460_v13  ;;  %v12391_v13 = vld [vmem:[#allocation12_spill] sm:$0xff] }
 0x300   : > { %v8464_v37 = vpop.permute.xlu0 %2660  ;;  %4104 = vrot.lane.b32.xlu1 %v8406_v29, %s12363_s27  ;;  %12392 = vst [vmem:[#allocation12_spill] sm:$0xff] %v8497_v61 }
 0x302   : > { %v8468_v46 = vpop.permute.xlu1 %2662  ;;  %4086 = vrot.lane.b32.xlu0 %v8388_v43, %s12363_s27 }
 0x304   : > { %v8472_v48 = vpop.permute.xlu0 %2676  ;;  %4088 = vrot.lane.b32.xlu1 %v8394_v31, %s12363_s27 }
 0x306   : > { %v8479_v19 = vpop.permute.xlu1 %2678  ;;  %4204 = vrot.lane.b32.xlu0 %v8400_v28, %s12364_s1 }
 0x308   : > { %v3667_v45 = vpop.permute.xlu0 %3666  ;;  %4206 = vrot.lane.b32.xlu1 %v8406_v29, %s12364_s1 }
 0x309   : > { %v3698_v49 = vsel %vm1224_vm1, %v8312_v54, %v3667_v45  ;;  %v3694_v55 = vsel %vm1224_vm1, %v3667_v45, %v8320_v50 }
 0x30a   : > { %v3669_v57 = vpop.permute.xlu1 %3668  ;;  %4188 = vrot.lane.b32.xlu0 %v8388_v43, %s12364_s1  ;;  %v3729_v47 = vmul.f32 %v8484_v33, %v3698_v49 }
 0x30b   : > { %v3699_v60 = vsel %vm1224_vm1, %v8318_v4, %v3669_v57  ;;  %v3695_v23 = vsel %vm1224_vm1, %v3669_v57, %v8326_v3  ;;  %v2529_v57 = vadd.f32 %v8116_v34, %v8160_v62 }
 0x30c   : > { %v3733_v63 = vmul.f32 %v8484_v33, %v3699_v60  ;;  %v3683_v51 = vpop.permute.xlu0 %3682  ;;  %4190 = vrot.lane.b32.xlu1 %v8394_v31, %s12364_s1  ;;  %v3734_v10 = vmul.f32 %v8512_v26, %v3695_v23 }
 0x30d   : > { %v3690_v49 = vsel %vm1224_vm1, %v8320_v50, %v3683_v51  ;;  %v3702_v60 = vsel %vm1224_vm1, %v3683_v51, %v8312_v54 }
 0x30e   : > { %v3685_v25 = vpop.permute.xlu1 %3684  ;;  %4306 = vrot.lane.b32.xlu0 %v8400_v28, %s12365_s5  ;;  %v3745_v52 = vpack.c.bf16 %v3733_v63, %v3729_v47  ;;  %v3728_v39 = vmul.f32 %v8497_v61, %v3702_v60  ;;  %v3731_v51 = vmul.f32 %v8505_v6, %v3690_v49  ;;  %v2565_v63 = vmul.f32 %v8294_v53, %v2525_v20 }
 0x30f   : > { %v3691_v54 = vsel %vm1224_vm1, %v8326_v3, %v3685_v25  ;;  %v3703_v62 = vsel %vm1224_vm1, %v3685_v25, %v8318_v4  ;;  %v2527_v3 = vadd.f32 %v8114_v58, %v8149_v32  ;;  %v3730_v47 = vmul.f32 %v8512_v26, %v3694_v55 }
 0x310   : > { %v3732_v50 = vmul.f32 %v8497_v61, %v3703_v62  ;;  %v3735_v45 = vmul.f32 %v8505_v6, %v3691_v54  ;;  %v8538_v33 = vpop.permute.xlu0 %3768  ;;  %4607 = vmatprep.subr.bf16.mxu0 %v3745_v52  ;;  %4308 = vrot.lane.b32.xlu1 %v8406_v29, %s12365_s5  ;;  %v2569_v60 = vmul.f32 %v8298_v41, %v2529_v57 }
 0x311   : > { %v3746_v49 = vpack.c.bf16 %v3734_v10, %v3730_v47  ;;  %v2531_v52 = vadd.f32 %v8116_v34, %v8162_v59  ;;  %v2605_v58 = vadd.f32 %v8304_v35, %v2565_v63  ;;  %v2567_v32 = vmul.f32 %v8294_v53, %v2527_v3 }
 0x312   : > { %v3744_v4 = vpack.c.bf16 %v3732_v50, %v3728_v39  ;;  %v8546_v25 = vpop.permute.xlu1 %3770  ;;  %4290 = vrot.lane.b32.xlu0 %v8388_v43, %s12365_s5  ;;  %v3747_v23 = vpack.c.bf16 %v3735_v45, %v3731_v51  ;;  %v2609_v55 = vadd.f32 %v8308_v42, %v2569_v60 }
 0x313   : > { %v2571_v34 = vmul.f32 %v8298_v41, %v2531_v52  ;;  %v2637_v20 = vmul.f32 0.01, %v2605_v58  ;;  %v2607_v57 = vadd.f32 %v8304_v35, %v2567_v32  ;;  %vm2621_vm13 = vcmp.gt.f32.partialorder %v2605_v58, 0.0 }
 0x314   : > { %v8553_v54 = vpop.permute.xlu0 %3784  ;;  %4608 = vmatpush1.bf16.msra.mxu0 %v3744_v4  ;;  %4713 = vmatprep.subr.bf16.mxu1 %v3747_v23  ;;  %v2641_v10 = vmul.f32 0.01, %v2609_v55  ;;  %vm2625_vm14 = vcmp.gt.f32.partialorder %v2609_v55, 0.0 }
 0x315   : > { %4292 = vrot.lane.b32.xlu1 %v8394_v31, %s12365_s5  ;;  %4714 = vmatpush1.bf16.msra.mxu1 %v3746_v49  ;;  %v2611_v62 = vadd.f32 %v8308_v42, %v2571_v34  ;;  %v8577_v41 = vsel %vm2621_vm13, %v2605_v58, %v2637_v20  ;;  %v2639_v50 = vmul.f32 0.01, %v2607_v57  ;;  %vm2623_vm15 = vcmp.gt.f32.partialorder %v2607_v57, 0.0 }
 0x316   : > { %v8559_v39 = vpop.permute.xlu1 %3786  ;;  %4408 = vrot.lane.b32.xlu0 %v8400_v28, %s12366_s7  ;;  %12395 = vst [vmem:[#allocation45_spill] sm:$0xff] %v8577_v41  ;;  %v8585_v45 = vsel %vm2625_vm14, %v2609_v55, %v2641_v10 }
 0x317   : > { %v2643_v63 = vmul.f32 0.01, %v2611_v62  ;;  %v8589_v42 = vsel %vm2623_vm15, %v2607_v57, %v2639_v50  ;;  %vm2627_vm0 = vcmp.gt.f32.partialorder %v2611_v62, 0.0 }
 0x318   : > { %v8565_v59 = vpop.permute.xlu0 %3870 }
 0x319   : > { %4410 = vrot.lane.b32.xlu1 %v8406_v29, %s12366_s7  ;;  %v8597_v4 = vsel %vm2627_vm0, %v2611_v62, %v2643_v63 }
 0x31a   : > { %v8570_v53 = vpop.permute.xlu1 %3872  ;;  %4392 = vrot.lane.b32.xlu0 %v8388_v43, %s12366_s7 }
 0x31c   : > { %v8575_v51 = vpop.permute.xlu0 %3886 }
 0x31d   : > { %4394 = vrot.lane.b32.xlu1 %v8394_v31, %s12366_s7 }
 0x31e   : > { %v8581_v35 = vpop.permute.xlu1 %3888  ;;  %3670 = vrot.lane.b32.xlu0 %v8577_v41, %s12356_s2 }
 0x320   : > { %v8587_v3 = vpop.permute.xlu0 %3972 }
 0x321   : > { %3672 = vrot.lane.b32.xlu1 %v8585_v45, %s12356_s2 }
 0x322   : > { %v8593_v47 = vpop.permute.xlu1 %3974  ;;  %3686 = vrot.lane.b32.xlu0 %v8589_v42, %s12356_s2 }
 0x324   : > { %v8599_v23 = vpop.permute.xlu0 %3988 }
 0x325   : > { %3688 = vrot.lane.b32.xlu1 %v8597_v4, %s12356_s2 }
 0x326   : > { %v8603_v49 = vpop.permute.xlu1 %3990  ;;  %3772 = vrot.lane.b32.xlu0 %v8577_v41, %s12360_s3 }
 0x328   : > { %v8607_v60 = vpop.permute.xlu0 %4090 }
 0x329   : > { %12396 = vst [vmem:[#allocation46_spill] sm:$0xff] %v8607_v60  ;;  %3774 = vrot.lane.b32.xlu1 %v8585_v45, %s12360_s3  ;;  %v3805_v60 = vsel %vm1278_vm2, %v8559_v39, %v8334_v12 }
 0x32a   : > { %v8611_v52 = vpop.permute.xlu1 %4092  ;;  %3788 = vrot.lane.b32.xlu0 %v8589_v42, %s12360_s3 }
 0x32b   : > { %12397 = vst [vmem:[#allocation47_spill] sm:$0xff] %v8611_v52 }
 0x32c   : > { %v8615_v58 = vpop.permute.xlu0 %4106 }
 0x32d   : > { %12398 = vst [vmem:[#allocation48_spill] sm:$0xff] %v8615_v58  ;;  %3790 = vrot.lane.b32.xlu1 %v8597_v4, %s12360_s3  ;;  %s12694_s3 = smov 56  }
 0x32e   : > { %v8619_v32 = vpop.permute.xlu1 %4108  ;;  %3874 = vrot.lane.b32.xlu0 %v8577_v41, %s12361_s26 }
 0x32f   : > { %12399 = vst [vmem:[#allocation49_spill] sm:$0xff] %v8619_v32 }
 0x330   : > { %v8623_v55 = vpop.permute.xlu0 %4192 }
 0x331   : > { %12400 = vst [vmem:[#allocation50_spill] sm:$0xff] %v8623_v55  ;;  %3876 = vrot.lane.b32.xlu1 %v8585_v45, %s12361_s26 }
 0x332   : > { %v8627_v34 = vpop.permute.xlu1 %4194  ;;  %3890 = vrot.lane.b32.xlu0 %v8589_v42, %s12361_s26 }
 0x333   : > { %12401 = vst [vmem:[#allocation51_spill] sm:$0xff] %v8627_v34 }
 0x334   : > { %v8631_v20 = vpop.permute.xlu0 %4208 }
 0x335   : > { %12402 = vst [vmem:[#allocation52_spill] sm:$0xff] %v8631_v20  ;;  %3892 = vrot.lane.b32.xlu1 %v8597_v4, %s12361_s26 }
 0x336   : > { %v8635_v57 = vpop.permute.xlu1 %4210  ;;  %3976 = vrot.lane.b32.xlu0 %v8577_v41, %s12362_s29 }
 0x337   : > { %12403 = vst [vmem:[#allocation53_spill] sm:$0xff] %v8635_v57 }
 0x338   : > { %v8639_v10 = vpop.permute.xlu0 %4294 }
 0x339   : > { %12404 = vst [vmem:[#allocation54_spill] sm:$0xff] %v8639_v10  ;;  %3978 = vrot.lane.b32.xlu1 %v8585_v45, %s12362_s29 }
 0x33a   : > { %v8643_v62 = vpop.permute.xlu1 %4296  ;;  %3992 = vrot.lane.b32.xlu0 %v8589_v42, %s12362_s29 }
 0x33b   : > { %12405 = vst [vmem:[#allocation55_spill] sm:$0xff] %v8643_v62 }
 0x33c   : > { %v8647_v50 = vpop.permute.xlu0 %4310 }
 0x33d   : > { %12406 = vst [vmem:[#allocation56_spill] sm:$0xff] %v8647_v50  ;;  %3994 = vrot.lane.b32.xlu1 %v8597_v4, %s12362_s29 }
 0x33e   : > { %v8651_v63 = vpop.permute.xlu1 %4312  ;;  %4094 = vrot.lane.b32.xlu0 %v8577_v41, %s12363_s27 }
 0x33f   : > { %12407 = vst [vmem:[#allocation57_spill] sm:$0xff] %v8651_v63  ;;  %v6655_v63 = vld [vmem:[%s12301_s0 + $0x42] ss:$8 sm:$0xf] }
 0x340   : > { %v8655_v20 = vpop.permute.xlu0 %4396  ;;  %v8700_v32 = vrot.slane %v6655_v63, %v7332_v16  ;;  %v8716_v26 = vrot.slane %v6655_v63, %v7334_v17 }
 0x341   : > { %12408 = vst [vmem:[#allocation58_spill] sm:$0xff] %v8655_v20  ;;  %4096 = vrot.lane.b32.xlu1 %v8585_v45, %s12363_s27  ;;  %v8675_v20 = vrot.slane %v6655_v63, %v7329_v14 }
 0x342   : > { %v8659_v10 = vpop.permute.xlu1 %4398  ;;  %4110 = vrot.lane.b32.xlu0 %v8589_v42, %s12363_s27  ;;  %12417 = vst [vmem:[#allocation67_spill] sm:$0xff] %v8700_v32  ;;  %12421 = vst [vmem:[#allocation71_spill] sm:$0xff] %v8716_v26 }
 0x343   : > { %12409 = vst [vmem:[#allocation59_spill] sm:$0xff] %v8659_v10  ;;  %12412 = vst [vmem:[#allocation62_spill] sm:$0xff] %v8675_v20 }
 0x344   : > { %v8663_v62 = vpop.permute.xlu0 %4412 }
 0x345   : > { %12410 = vst [vmem:[#allocation60_spill] sm:$0xff] %v8663_v62  ;;  %4112 = vrot.lane.b32.xlu1 %v8597_v4, %s12363_s27  ;;  %s12678_s27 = smov 57  }
 0x346   : > { %v8670_v50 = vpop.permute.xlu1 %4414  ;;  %4196 = vrot.lane.b32.xlu0 %v8577_v41, %s12364_s1 }
 0x347   : > { %12411 = vst [vmem:[#allocation61_spill] sm:$0xff] %v8670_v50  ;;  %v8687_v50 = vrot.slane %v6655_v63, %v7318_v9 }
 0x348   : > { %v2669_v10 = vpop.permute.xlu0 %2668 }
 0x349   : > { %v8680_v62 = vsel %vm699_vm9, %v8464_v37, %v2669_v10  ;;  %4198 = vrot.lane.b32.xlu1 %v8585_v45, %s12364_s1  ;;  %12414 = vst [vmem:[#allocation64_spill] sm:$0xff] %v8687_v50  ;;  %v8705_v58 = vsel %vm699_vm9, %v2669_v10, %v8472_v48 }
 0x34a   : > { %12413 = vst [vmem:[#allocation63_spill] sm:$0xff] %v8680_v62  ;;  %v2671_v57 = vpop.permute.xlu1 %2670  ;;  %4212 = vrot.lane.b32.xlu0 %v8589_v42, %s12364_s1  ;;  %12418 = vst [vmem:[#allocation68_spill] sm:$0xff] %v8705_v58  ;;  %v8709_v6 = vmul.f32 %v8675_v20, %v8680_v62 }
 0x34b   : > { %v8692_v34 = vsel %vm699_vm9, %v2671_v57, %v8479_v19  ;;  %v8697_v55 = vsel %vm699_vm9, %v8468_v46, %v2671_v57 }
 0x34c   : > { %12415 = vst [vmem:[#allocation65_spill] sm:$0xff] %v8692_v34  ;;  %12416 = vst [vmem:[#allocation66_spill] sm:$0xff] %v8697_v55  ;;  %v8713_v61 = vmul.f32 %v8675_v20, %v8697_v55  ;;  %v2685_v57 = vpop.permute.xlu0 %2684  ;;  %v8720_v52 = vmul.f32 %v8687_v50, %v8692_v34  ;;  %v8740_v34 = vmul.f32 %v8687_v50, %v8705_v58 }
 0x34d   : > { %12419 = vst [vmem:[#allocation69_spill] sm:$0xff] %v8709_v6  ;;  %v8725_v10 = vsel %vm699_vm9, %v8472_v48, %v2685_v57  ;;  %v8730_v62 = vsel %vm699_vm9, %v2685_v57, %v8464_v37  ;;  %4214 = vrot.lane.b32.xlu1 %v8597_v4, %s12364_s1  ;;  %s12713_s1 = smov 55  }
 0x34e   : > { %12420 = vst [vmem:[#allocation70_spill] sm:$0xff] %v8713_v61  ;;  %12422 = vst [vmem:[#allocation72_spill] sm:$0xff] %v8720_v52  ;;  %v2687_v20 = vpop.permute.xlu1 %2686  ;;  %4298 = vrot.lane.b32.xlu0 %v8577_v41, %s12365_s5  ;;  %v8754_v57 = vmul.f32 %v8700_v32, %v8725_v10  ;;  %v8758_v63 = vmul.f32 %v8716_v26, %v8730_v62 }
 0x34f   : > { %12423 = vst [vmem:[#allocation73_spill] sm:$0xff] %v8725_v10  ;;  %12424 = vst [vmem:[#allocation74_spill] sm:$0xff] %v8730_v62  ;;  %v8745_v48 = vsel %vm699_vm9, %v8479_v19, %v2687_v20  ;;  %v8750_v37 = vsel %vm699_vm9, %v2687_v20, %v8468_v46  ;;  %v6887_v20 = vld [vmem:[%s11923_s9 + $0x4] ss:$12 sps:$4 sm:$0xff]  }
 0x350   : > { %12425 = vst [vmem:[#allocation75_spill] sm:$0xff] %v8740_v34  ;;  %12426 = vst [vmem:[#allocation76_spill] sm:$0xff] %v8745_v48  ;;  %v8762_v6 = vmul.f32 %v8700_v32, %v8745_v48  ;;  %v8766_v19 = vmul.f32 %v8716_v26, %v8750_v37  ;;  %v8768_v61 = vpop.permute.xlu0 %3662  ;;  %4639 = vmatprep.mubr.bf16.mxu0 %v6887_v20  ;;  %4745 = vmatprep.mubr.bf16.mxu1 %v6887_v20 }
 0x351   : > { %12427 = vst [vmem:[#allocation77_spill] sm:$0xff] %v8750_v37  ;;  %12428 = vst [vmem:[#allocation78_spill] sm:$0xff] %v8754_v57  ;;  %4300 = vrot.lane.b32.xlu1 %v8585_v45, %s12365_s5 }
 0x352   : > { %12429 = vst [vmem:[#allocation79_spill] sm:$0xff] %v8758_v63  ;;  %12430 = vst [vmem:[#allocation80_spill] sm:$0xff] %v8762_v6  ;;  %4314 = vrot.lane.b32.xlu0 %v8589_v42, %s12365_s5  ;;  %v8778_v62 = vpop.permute.xlu1 %3664 }
 0x353   : > { %12431 = vst [vmem:[#allocation81_spill] sm:$0xff] %v8766_v19 }
 0x354   : > { %v8782_v50 = vpop.permute.xlu0 %3678 }
 0x355   : > { %12432 = vst [vmem:[#allocation82_spill] sm:$0xff] %v8782_v50  ;;  %4316 = vrot.lane.b32.xlu1 %v8597_v4, %s12365_s5  ;;  %s6692_s5 = sshll.u32 %s7153_s4, 11 }
 0x356   : > { %4400 = vrot.lane.b32.xlu0 %v8577_v41, %s12366_s7  ;;  %v8788_v46 = vpop.permute.xlu1 %3680 }
 0x358   : > { %v8793_v57 = vpop.permute.xlu0 %3764 }
 0x359   : > { %12433 = vst [vmem:[#allocation83_spill] sm:$0xff] %v8793_v57  ;;  %4402 = vrot.lane.b32.xlu1 %v8585_v45, %s12366_s7 }
 0x35a   : > { %4416 = vrot.lane.b32.xlu0 %v8589_v42, %s12366_s7  ;;  %v8799_v58 = vpop.permute.xlu1 %3766 }
 0x35b   : > { %12434 = vst [vmem:[#allocation84_spill] sm:$0xff] %v8799_v58 }
 0x35c   : > { %v8801_v6 = vpop.permute.xlu0 %3780 }
 0x35d   : > { %12435 = vst [vmem:[#allocation85_spill] sm:$0xff] %v8801_v6  ;;  %4418 = vrot.lane.b32.xlu1 %v8597_v4, %s12366_s7  ;;  %s12444_s7 = smov 72  }
 0x35e   : > { %2664 = vrot.lane.b32.xlu0 %v8388_v43, %s12367_s22  ;;  %v8807_v63 = vpop.permute.xlu1 %3782 }
 0x35f   : > { %12436 = vst [vmem:[#allocation86_spill] sm:$0xff] %v8807_v63 }
 0x360   : > { %v8809_v19 = vpop.permute.xlu0 %3866 }
 0x361   : > { %12437 = vst [vmem:[#allocation87_spill] sm:$0xff] %v8809_v19  ;;  %2666 = vrot.lane.b32.xlu1 %v8394_v31, %s12367_s22 }
 0x362   : > { %2672 = vrot.lane.b32.xlu0 %v8577_v41, %s12367_s22  ;;  %v8815_v34 = vpop.permute.xlu1 %3868 }
 0x363   : > { %12438 = vst [vmem:[#allocation88_spill] sm:$0xff] %v8815_v34 }
 0x364   : > { %v8817_v20 = vpop.permute.xlu0 %3882 }
 0x365   : > { %12439 = vst [vmem:[#allocation89_spill] sm:$0xff] %v8817_v20  ;;  %2674 = vrot.lane.b32.xlu1 %v8585_v45, %s12367_s22 }
 0x366   : > { %2688 = vrot.lane.b32.xlu0 %v8589_v42, %s12367_s22  ;;  %v8823_v52 = vpop.permute.xlu1 %3884 }
 0x367   : > { %12440 = vst [vmem:[#allocation90_spill] sm:$0xff] %v8823_v52 }
 0x368   : > { %v8825_v32 = vpop.permute.xlu0 %3968 }
 0x369   : > { %12441 = vst [vmem:[#allocation91_spill] sm:$0xff] %v8825_v32  ;;  %2690 = vrot.lane.b32.xlu1 %v8597_v4, %s12367_s22  ;;  %v6631_v32 = vld [vmem:[%s12301_s0 + $0x26] ss:$8 sm:$0xf] }
 0x36a   : > { %2680 = vrot.lane.b32.xlu0 %v8400_v28, %s12367_s22  ;;  %v8831_v37 = vpop.permute.xlu1 %3970  ;;  %v8957_v50 = vrot.slane %v6631_v32, %v7334_v17 }
 0x36b   : > { %12442 = vst [vmem:[#allocation92_spill] sm:$0xff] %v8831_v37 }
 0x36c   : > { %v8833_v26 = vpop.permute.xlu0 %3984  ;;  %12461 = vst [vmem:[#allocation110_spill] sm:$0xff] %v8957_v50 }
 0x36d   : > { %12443 = vst [vmem:[#allocation93_spill] sm:$0xff] %v8833_v26  ;;  %2682 = vrot.lane.b32.xlu1 %v8406_v29, %s12367_s22  ;;  %s12666_s22 = smov 63  }
 0x36e   : > { %2762 = vrot.lane.b32.xlu0 %v8141_v22, %s12444_s7  ;;  %v8839_v10 = vpop.permute.xlu1 %3986 }
 0x36f   : > { %12445 = vst [vmem:[#allocation94_spill] sm:$0xff] %v8839_v10 }
 0x370   : > { %v8841_v48 = vpop.permute.xlu0 %4102 }
 0x371   : > { %12446 = vst [vmem:[#allocation95_spill] sm:$0xff] %v8841_v48  ;;  %2764 = vrot.lane.b32.xlu1 %v8153_v44, %s12444_s7 }
 0x372   : > { %2770 = vrot.lane.b32.xlu0 %v8254_v15, %s12444_s7  ;;  %v8847_v55 = vpop.permute.xlu1 %4104 }
 0x373   : > { %12447 = vst [vmem:[#allocation96_spill] sm:$0xff] %v8847_v55 }
 0x374   : > { %v8849_v37 = vpop.permute.xlu0 %4086 }
 0x375   : > { %12448 = vst [vmem:[#allocation97_spill] sm:$0xff] %v8849_v37  ;;  %2772 = vrot.lane.b32.xlu1 %v8258_v36, %s12444_s7  ;;  %v6628_v37 = vld [vmem:[%s12301_s0 + $0x22] ss:$8 sm:$0xf] }
 0x376   : > { %2786 = vrot.lane.b32.xlu0 %v8262_v30, %s12444_s7  ;;  %v8855_v26 = vpop.permute.xlu1 %4088  ;;  %v8899_v34 = vrot.slane %v6628_v37, %v7318_v9  ;;  %v8902_v19 = vrot.slane %v6628_v37, %v7332_v16  ;;  %v8954_v30 = vrot.slane %v6631_v32, %v7332_v16 }
 0x377   : > { %12449 = vst [vmem:[#allocation98_spill] sm:$0xff] %v8855_v26  ;;  %v6629_v26 = vld [vmem:[%s12301_s0 + $0x23] ss:$8 sm:$0xf] }
 0x378   : > { %v8857_v10 = vpop.permute.xlu0 %4204  ;;  %v8917_v20 = vrot.slane %v6629_v26, %v7332_v16  ;;  %v8923_v6 = vrot.slane %v6629_v26, %v7334_v17  ;;  %12460 = vst [vmem:[#allocation109_spill] sm:$0xff] %v8954_v30 }
 0x379   : > { %12450 = vst [vmem:[#allocation99_spill] sm:$0xff] %v8857_v10  ;;  %2788 = vrot.lane.b32.xlu1 %v8266_v7, %s12444_s7  ;;  %v8908_v10 = vrot.slane %v6628_v37, %v7334_v17  ;;  %v8951_v7 = vrot.slane %v6631_v32, %v7318_v9 }
 0x37a   : > { %2778 = vrot.lane.b32.xlu0 %v8166_v11, %s12444_s7  ;;  %v8863_v48 = vpop.permute.xlu1 %4206 }
 0x37b   : > { %12451 = vst [vmem:[#allocation100_spill] sm:$0xff] %v8863_v48  ;;  %v8914_v48 = vrot.slane %v6629_v26, %v7318_v9  ;;  %12459 = vst [vmem:[#allocation108_spill] sm:$0xff] %v8951_v7 }
 0x37c   : > { %v8868_v55 = vpop.permute.xlu0 %4188 }
 0x37d   : > { %12452 = vst [vmem:[#allocation101_spill] sm:$0xff] %v8868_v55  ;;  %2780 = vrot.lane.b32.xlu1 %v8170_v18, %s12444_s7  ;;  %v6630_v55 = vld [vmem:[%s12301_s0 + $0x24] ss:$8 sm:$0xf] }
 0x37e   : > { %2766 = vrot.lane.b32.xlu0 %v8388_v43, %s12444_s7  ;;  %v8888_v52 = vpop.permute.xlu1 %4190  ;;  %v8920_v43 = vrot.slane %v6629_v26, %v7329_v14  ;;  %v8931_v63 = vrot.slane %v6630_v55, %v7318_v9  ;;  %v8934_v58 = vrot.slane %v6630_v55, %v7332_v16  ;;  %v8937_v11 = vrot.slane %v6630_v55, %v7329_v14  ;;  %v6633_v26 = vld [vmem:[%s12301_s0 + $0x40] ss:$8 sm:$0xf] }
 0x37f   : > { %12453 = vst [vmem:[#allocation102_spill] sm:$0xff] %v8888_v52  ;;  %v8905_v52 = vrot.slane %v6628_v37, %v7329_v14  ;;  %v6632_v37 = vld [vmem:[%s12301_s0 + $0x27] ss:$8 sm:$0xf]  ;;  %v8940_v57 = vrot.slane %v6630_v55, %v7334_v17 }
 0x380   : > { %v8928_v18 = vpop.permute.xlu0 %4306  ;;  %12455 = vst [vmem:[#allocation104_spill] sm:$0xff] %v8934_v58  ;;  %12456 = vst [vmem:[#allocation105_spill] sm:$0xff] %v8937_v11  ;;  %v8971_v7 = vrot.slane %v6632_v37, %v7318_v9  ;;  %v8974_v30 = vrot.slane %v6632_v37, %v7332_v16 }
 0x381   : > { %12454 = vst [vmem:[#allocation103_spill] sm:$0xff] %v8928_v18  ;;  %12457 = vst [vmem:[#allocation106_spill] sm:$0xff] %v8940_v57  ;;  %2768 = vrot.lane.b32.xlu1 %v8394_v31, %s12444_s7  ;;  %v8948_v18 = vrot.slane %v6631_v32, %v7329_v14  ;;  %v3797_v31 = vsel %vm1278_vm2, %v8546_v25, %v8344_v27  ;;  %v6634_v32 = vld [vmem:[%s12301_s0 + $0x41] ss:$8 sm:$0xf] }
 0x382   : > { %2774 = vrot.lane.b32.xlu0 %v8577_v41, %s12444_s7  ;;  %v8961_v55 = vpop.permute.xlu1 %4308  ;;  %12464 = vst [vmem:[#allocation113_spill] sm:$0xff] %v8971_v7  ;;  %12465 = vst [vmem:[#allocation114_spill] sm:$0xff] %v8974_v30  ;;  %v8984_v41 = vrot.slane %v6632_v37, %v7334_v17  ;;  %v8990_v7 = vrot.slane %v6633_v26, %v7318_v9  ;;  %v3801_v30 = vsel %vm1278_vm2, %v8334_v12, %v8546_v25 }
 0x383   : > { %12458 = vst [vmem:[#allocation107_spill] sm:$0xff] %v8948_v18  ;;  %12462 = vst [vmem:[#allocation111_spill] sm:$0xff] %v8961_v55  ;;  %v8968_v18 = vrot.slane %v6632_v37, %v7329_v14  ;;  %v3796_v55 = vsel %vm1278_vm2, %v8538_v33, %v8336_v0  ;;  %v9003_v37 = vrot.slane %v6633_v26, %v7332_v16 }
 0x384   : > { %12466 = vst [vmem:[#allocation115_spill] sm:$0xff] %v8984_v41  ;;  %12468 = vst [vmem:[#allocation117_spill] sm:$0xff] %v8990_v7  ;;  %v8992_v50 = vpop.permute.xlu0 %4290  ;;  %v9015_v25 = vmul.f32 %v8902_v19, %v3797_v31  ;;  %v9018_v7 = vrot.slane %v6634_v32, %v7329_v14  ;;  %v9021_v12 = vrot.slane %v6634_v32, %v7318_v9 }
 0x385   : > { %12463 = vst [vmem:[#allocation112_spill] sm:$0xff] %v8968_v18  ;;  %v8987_v18 = vrot.slane %v6633_v26, %v7329_v14  ;;  %12469 = vst [vmem:[#allocation118_spill] sm:$0xff] %v8992_v50  ;;  %2776 = vrot.lane.b32.xlu1 %v8585_v45, %s12444_s7  ;;  %v3800_v50 = vsel %vm1278_vm2, %v8328_v5, %v8538_v33  ;;  %v3804_v31 = vsel %vm1278_vm2, %v8553_v54, %v8328_v5 }
 0x386   : > { %12470 = vst [vmem:[#allocation119_spill] sm:$0xff] %v9003_v37  ;;  %12472 = vst [vmem:[#allocation121_spill] sm:$0xff] %v9018_v7  ;;  %2790 = vrot.lane.b32.xlu0 %v8589_v42, %s12444_s7  ;;  %v9038_v33 = vrot.slane %v6634_v32, %v7332_v16  ;;  %v9041_v14 = vrot.slane %v6634_v32, %v7334_v17  ;;  %v9046_v7 = vmul.f32 %v8899_v34, %v3801_v30 }
 0x387   : > { %12467 = vst [vmem:[#allocation116_spill] sm:$0xff] %v8987_v18  ;;  %v9006_v18 = vrot.slane %v6633_v26, %v7334_v17  ;;  %12473 = vst [vmem:[#allocation122_spill] sm:$0xff] %v9021_v12  ;;  %v9026_v26 = vld [vmem:[%s12301_s0] ss:$8 sm:$0xf]  ;;  %v9043_v12 = vpop.permute.xlu1 %4292  ;;  %v9053_v37 = vmul.f32 %v8905_v52, %v3805_v60  ;;  %v3899_v5 = vsel %vm1332_vm3, %v8570_v53, %v8370_v24 }
 0x388   : > { %12474 = vst [vmem:[#allocation123_spill] sm:$0xff] %v9026_v26  ;;  %12475 = vst [vmem:[#allocation124_spill] sm:$0xff] %v9038_v33  ;;  %v9059_v32 = vpop.permute.xlu0 %4408  ;;  %v9062_v16 = vmul.f32 %v8899_v34, %v3800_v50  ;;  %v3792_v30 = vsel %vm1278_vm2, %v8336_v0, %v8553_v54  ;;  %v9081_v50 = vmul.f32 %v8905_v52, %v3804_v31  ;;  %v12492_v33 = vld [vmem:[#allocation46_spill] sm:$0xff] }
 0x389   : > { %12471 = vst [vmem:[#allocation120_spill] sm:$0xff] %v9006_v18  ;;  %v9031_v18 = vmul.f32 %v8902_v19, %v3796_v55  ;;  %12476 = vst [vmem:[#allocation125_spill] sm:$0xff] %v9041_v14  ;;  %v3793_v55 = vsel %vm1278_vm2, %v8344_v27, %v8559_v39  ;;  %v9070_v27 = vrot.slane %v9026_v26, %v7318_v9  ;;  %2792 = vrot.lane.b32.xlu1 %v8597_v4, %s12444_s7 }
 0x38a   : > { %12477 = vst [vmem:[#allocation126_spill] sm:$0xff] %v9043_v12  ;;  %12478 = vst [vmem:[#allocation127_spill] sm:$0xff] %v9059_v32  ;;  %v9074_v39 = vrot.slane %v9026_v26, %v7334_v17  ;;  %v3898_v0 = vsel %vm1332_vm3, %v8565_v59, %v8362_v21  ;;  %v3902_v54 = vsel %vm1332_vm3, %v8348_v38, %v8565_v59  ;;  %2782 = vrot.lane.b32.xlu0 %v8400_v28, %s12444_s7  ;;  %v12491_v32 = vld [vmem:[#allocation27_spill] sm:$0xff]  ;;  %v12493_v12 = vld [vmem:[#allocation82_spill] sm:$0xff] }
 0x38b   : > { %12479 = vst [vmem:[#allocation128_spill] sm:$0xff] %v9070_v27  ;;  %v9094_v17 = vmul.f32 %v8908_v10, %v3793_v55  ;;  %v3903_v31 = vsel %vm1332_vm3, %v8357_v2, %v8570_v53  ;;  %v9101_v60 = vmul.f32 %v8917_v20, %v3899_v5  ;;  %v3907_v9 = vsel %vm1332_vm3, %v8581_v35, %v8357_v2  ;;  %v9107_v59 = vpop.permute.xlu1 %4410 }
 0x38c   : > { %12480 = vst [vmem:[#allocation129_spill] sm:$0xff] %v9074_v39  ;;  %12481 = vst [vmem:[#allocation130_spill] sm:$0xff] %v9107_v59  ;;  %v9110_v26 = vmul.f32 %v8908_v10, %v3792_v30  ;;  %v3895_v53 = vsel %vm1332_vm3, %v8370_v24, %v8581_v35  ;;  %v9118_v5 = vpop.permute.xlu0 %4392  ;;  %v9123_v2 = vmul.f32 %v8914_v48, %v3902_v54 }
 0x38d   : > { %12482 = vst [vmem:[#allocation131_spill] sm:$0xff] %v9118_v5  ;;  %v9126_v27 = vmul.f32 %v8917_v20, %v3898_v0  ;;  %v3906_v30 = vsel %vm1332_vm3, %v8575_v51, %v8348_v38  ;;  %v4001_v24 = vsel %vm1386_vm4, %v8593_v47, %v8390_v56  ;;  %2784 = vrot.lane.b32.xlu1 %v8406_v29, %s12444_s7  ;;  %s12545_s7 = smov 65  }
 0x38e   : > { %v9139_v35 = vmul.f32 %v8914_v48, %v3903_v31  ;;  %v3894_v0 = vsel %vm1332_vm3, %v8362_v21, %v8575_v51  ;;  %v9146_v54 = vmul.f32 %v8920_v43, %v3907_v9  ;;  %v4005_v38 = vsel %vm1386_vm4, %v8381_v1, %v8593_v47  ;;  %2864 = vrot.lane.b32.xlu0 %v8141_v22, %s12483_s23 }
 0x38f   : > { %v9157_v55 = vmul.f32 %v8923_v6, %v3895_v53  ;;  %v4000_v9 = vsel %vm1386_vm4, %v8587_v3, %v8384_v40  ;;  %v9163_v21 = vpop.permute.xlu1 %4394  ;;  %v9168_v47 = vmul.f32 %v8920_v43, %v3906_v30  ;;  %v4004_v31 = vsel %vm1386_vm4, %v8374_v8, %v8587_v3 }
 0x390   : > { %12484 = vst [vmem:[#allocation132_spill] sm:$0xff] %v9163_v21  ;;  %v9175_v53 = vmul.f32 %v8934_v58, %v4001_v24  ;;  %v4009_v39 = vsel %vm1386_vm4, %v8603_v49, %v8381_v1  ;;  %v3671_v5 = vpop.permute.xlu0 %3670  ;;  %v9182_v21 = vmul.f32 %v8923_v6, %v3894_v0  ;;  %v9185_v30 = vmul.f32 %v8931_v63, %v4005_v38 }
 0x391   : > { %v3996_v3 = vsel %vm1386_vm4, %v8384_v40, %v8599_v23  ;;  %v4008_v24 = vsel %vm1386_vm4, %v8599_v23, %v8374_v8  ;;  %2866 = vrot.lane.b32.xlu1 %v8153_v44, %s12483_s23  ;;  %v9200_v0 = vmul.f32 %v8934_v58, %v4000_v9  ;;  %v3700_v38 = vsel %vm1224_vm1, %v8768_v61, %v3671_v5 }
 0x392   : > { %12485 = vst [vmem:[#allocation133_spill] sm:$0xff] %v9175_v53  ;;  %2872 = vrot.lane.b32.xlu0 %v8254_v15, %s12483_s23  ;;  %v9210_v8 = vmul.f32 %v8931_v63, %v4004_v31  ;;  %v3997_v23 = vsel %vm1386_vm4, %v8390_v56, %v8603_v49  ;;  %v9217_v9 = vmul.f32 %v8937_v11, %v4009_v39  ;;  %v12490_v39 = vld [vmem:[#allocation42_spill] sm:$0xff]  ;;  %v12497_v15 = vld [vmem:[#allocation32_spill] sm:$0xff] }
 0x393   : > { %12486 = vst [vmem:[#allocation134_spill] sm:$0xff] %v9200_v0  ;;  %v3673_v1 = vpop.permute.xlu1 %3672  ;;  %v9224_v40 = vmul.f32 %v8937_v11, %v4008_v24  ;;  %v9227_v31 = vmul.f32 %v8940_v57, %v3996_v3  ;;  %v3737_v59 = vmul.f32 %v12490_v39, %v3700_v38  ;;  %v9242_v24 = vmul.f32 %v8940_v57, %v3997_v23  ;;  %v12495_v3 = vld [vmem:[#allocation23_spill] sm:$0xff] }
 0x394   : > { %12487 = vst [vmem:[#allocation135_spill] sm:$0xff] %v9210_v8  ;;  %12488 = vst [vmem:[#allocation136_spill] sm:$0xff] %v9217_v9  ;;  %v3701_v56 = vsel %vm1224_vm1, %v8778_v62, %v3673_v1  ;;  %v3687_v49 = vpop.permute.xlu0 %3686  ;;  %v3697_v51 = vsel %vm1224_vm1, %v3673_v1, %v8788_v46  ;;  %v4118_v38 = vsel %vm1448_vm5, %v12492_v33, %v12491_v32  ;;  %v12499_v9 = vld [vmem:[#allocation12_spill] sm:$0xff]  ;;  %v12500_v11 = vld [vmem:[#allocation43_spill] sm:$0xff] }
 0x395   : > { %12489 = vst [vmem:[#allocation137_spill] sm:$0xff] %v9224_v40  ;;  %v3741_v14 = vmul.f32 %v12490_v39, %v3701_v56  ;;  %2874 = vrot.lane.b32.xlu1 %v8258_v36, %s12483_s23  ;;  %v3692_v1 = vsel %vm1224_vm1, %v12493_v12, %v3687_v49  ;;  %v3704_v56 = vsel %vm1224_vm1, %v3687_v49, %v8768_v61  ;;  %v12494_v39 = vld [vmem:[#allocation19_spill] sm:$0xff]  ;;  %v12498_v49 = vld [vmem:[#allocation44_spill] sm:$0xff] }
 0x396   : > { %2888 = vrot.lane.b32.xlu0 %v12494_v39, %s12483_s23  ;;  %v4122_v41 = vsel %vm1448_vm5, %v12495_v3, %v12492_v33  ;;  %v12496_v36 = vld [vmem:[#allocation47_spill] sm:$0xff]  ;;  %v3696_v61 = vsel %vm1224_vm1, %v3671_v5, %v12493_v12  ;;  %v3742_v39 = vmul.f32 %v12498_v49, %v3697_v51  ;;  %v3736_v57 = vmul.f32 %v12499_v9, %v3704_v56  ;;  %v12501_v12 = vld [vmem:[#allocation21_spill] sm:$0xff] }
 0x397   : > { %v4123_v0 = vsel %vm1448_vm5, %v12497_v15, %v12496_v36  ;;  %v3689_v53 = vpop.permute.xlu1 %3688  ;;  %v3749_v44 = vpack.c.bf16 %v3741_v14, %v3737_v59  ;;  %v3739_v22 = vmul.f32 %v12500_v11, %v3692_v1  ;;  %v12502_v5 = vld [vmem:[#allocation107_spill] sm:$0xff] }
 0x398   : > { %v3693_v23 = vsel %vm1224_vm1, %v8788_v46, %v3689_v53  ;;  %v3705_v33 = vsel %vm1224_vm1, %v3689_v53, %v8778_v62  ;;  %v3773_v40 = vpop.permute.xlu0 %3772  ;;  %v9283_v51 = vmul.f32 %v12502_v5, %v4122_v41  ;;  %v12503_v46 = vld [vmem:[#allocation108_spill] sm:$0xff]  ;;  %v12504_v8 = vld [vmem:[#allocation83_spill] sm:$0xff]  ;;  %v12505_v53 = vld [vmem:[#allocation17_spill] sm:$0xff]  ;;  %vm4600_vm1 = vcmask 261120  }
 0x399   : > { %v3740_v14 = vmul.f32 %v12499_v9, %v3705_v33  ;;  %v3743_v59 = vmul.f32 %v12500_v11, %v3693_v23  ;;  %2890 = vrot.lane.b32.xlu1 %v12501_v12, %s12483_s23  ;;  %v9286_v58 = vmul.f32 %v12503_v46, %v4118_v38  ;;  %v3802_v62 = vsel %vm1278_vm2, %v12504_v8, %v3773_v40  ;;  %v12506_v23 = vld [vmem:[#allocation26_spill] sm:$0xff] }
 0x39a   : > { %4609 = vmatprep.subr.bf16.mxu0 %v3749_v44  ;;  %2880 = vrot.lane.b32.xlu0 %v12505_v53, %s12483_s23  ;;  %v3738_v9 = vmul.f32 %v12498_v49, %v3696_v61  ;;  %v4119_v38 = vsel %vm1448_vm5, %v12496_v36, %v12506_v23  ;;  %v9301_v33 = vmul.f32 %v12502_v5, %v4123_v0  ;;  %v12507_v44 = vld [vmem:[#allocation48_spill] sm:$0xff]  ;;  %v12510_v41 = vld [vmem:[#allocation22_spill] sm:$0xff]  ;;  %v12511_v5 = vld [vmem:[#allocation85_spill] sm:$0xff] }
 0x39b   : > { %v3748_v11 = vpack.c.bf16 %v3740_v14, %v3736_v57  ;;  %v3775_v1 = vpop.permute.xlu1 %3774  ;;  %v3751_v56 = vpack.c.bf16 %v3743_v59, %v3739_v22  ;;  %v4114_v53 = vsel %vm1448_vm5, %v12491_v32, %v12507_v44  ;;  %v12508_v61 = vld [vmem:[#allocation84_spill] sm:$0xff]  ;;  %v3839_v14 = vmul.f32 %v8899_v34, %v3802_v62  ;;  %v12509_v59 = vld [vmem:[#allocation86_spill] sm:$0xff] }
 0x39c   : > { %v3803_v22 = vsel %vm1278_vm2, %v12508_v61, %v3775_v1  ;;  %v3789_v57 = vpop.permute.xlu0 %3788  ;;  %v3750_v49 = vpack.c.bf16 %v3742_v39, %v3738_v9  ;;  %v3799_v36 = vsel %vm1278_vm2, %v3775_v1, %v12509_v59  ;;  %v4126_v32 = vsel %vm1448_vm5, %v12507_v44, %v12495_v3  ;;  %v12512_v9 = vld [vmem:[#allocation49_spill] sm:$0xff] }
 0x39d   : > { %v3843_v0 = vmul.f32 %v8899_v34, %v3803_v22  ;;  %2882 = vrot.lane.b32.xlu1 %v12510_v41, %s12483_s23  ;;  %v3794_v39 = vsel %vm1278_vm2, %v12511_v5, %v3789_v57  ;;  %v3806_v62 = vsel %vm1278_vm2, %v3789_v57, %v12504_v8  ;;  %4610 = vmatpush1.bf16.msra.mxu0 %v3748_v11  ;;  %v12514_v11 = vld [vmem:[#allocation25_spill] sm:$0xff] }
 0x39e   : > { %4715 = vmatprep.subr.bf16.mxu1 %v3751_v56  ;;  %v4115_v34 = vsel %vm1448_vm5, %v12506_v23, %v12512_v9  ;;  %v3798_v1 = vsel %vm1278_vm2, %v3773_v40, %v12511_v5  ;;  %v12513_v3 = vpack.c.bf16 %v9046_v7, %v9062_v16  ;;  %v3844_v8 = vmul.f32 %v8902_v19, %v3799_v36  ;;  %v12518_v36 = vld [vmem:[#allocation87_spill] sm:$0xff] }
 0x39f   : > { %4716 = vmatpush1.bf16.msra.mxu1 %v3750_v49  ;;  %v3791_v44 = vpop.permute.xlu1 %3790  ;;  %v3851_v22 = vpack.c.bf16 %v3843_v0, %v3839_v14  ;;  %2868 = vrot.lane.b32.xlu0 %v12514_v11, %s12483_s23  ;;  %v12515_v56 = vpack.c.bf16 %v9094_v17, %v9110_v26  ;;  %v3838_v5 = vmul.f32 %v8905_v52, %v3806_v62  ;;  %v12516_v17 = vld [vmem:[#allocation24_spill] sm:$0xff] }
 0x3a0   : > { %4611 = vmatprep.subr.bf16.mxu0 %v12513_v3  ;;  %v3795_v40 = vsel %vm1278_vm2, %v12509_v59, %v3791_v44  ;;  %v3807_v16 = vsel %vm1278_vm2, %v3791_v44, %v12508_v61  ;;  %v3875_v7 = vpop.permute.xlu0 %3874  ;;  %v3841_v23 = vmul.f32 %v8908_v10, %v3794_v39  ;;  %v9356_v26 = vmul.f32 %v12503_v46, %v4119_v38  ;;  %v12517_v59 = vld [vmem:[#allocation109_spill] sm:$0xff] }
 0x3a1   : > { %4717 = vmatprep.subr.bf16.mxu1 %v12515_v56  ;;  %v3842_v57 = vmul.f32 %v8905_v52, %v3807_v16  ;;  %v3845_v49 = vmul.f32 %v8908_v10, %v3795_v40  ;;  %2870 = vrot.lane.b32.xlu1 %v12516_v17, %s12483_s23  ;;  %v9361_v61 = vmul.f32 %v12517_v59, %v4114_v53  ;;  %v12521_v53 = vld [vmem:[#allocation110_spill] sm:$0xff]  ;;  %vm12705_vm2 = vcmp.lt.s32.totalorder %v12391_v13, 64 }
 0x3a2   : > { %v3904_v0 = vsel %vm1332_vm3, %v12518_v36, %v3875_v7  ;;  %v12519_v52 = vpack.c.bf16 %v9053_v37, %v9081_v50  ;;  %v3840_v10 = vmul.f32 %v8902_v19, %v3798_v1  ;;  %v12520_v38 = vpack.c.bf16 %v9015_v25, %v9031_v18  ;;  %v12522_v19 = vld [vmem:[#allocation45_spill] sm:$0xff]  ;;  %v12523_v50 = vld [vmem:[#allocation88_spill] sm:$0xff]  ;;  %vm12719_vm13 = vmmov %vm12705_vm2 }
 0x3a3   : > { %v3850_v39 = vpack.c.bf16 %v3842_v57, %v3838_v5  ;;  %v3877_v62 = vpop.permute.xlu1 %3876  ;;  %v3853_v3 = vpack.c.bf16 %v3845_v49, %v3841_v23  ;;  %v9374_v44 = vmul.f32 %v12521_v53, %v4126_v32  ;;  %v4127_v56 = vsel %vm1448_vm5, %v12512_v9, %v12497_v15  ;;  %2876 = vrot.lane.b32.xlu0 %v12522_v19, %s12483_s23  ;;  %v12525_v9 = vld [vmem:[#allocation28_spill] sm:$0xff]  ;;  %v12527_v5 = vld [vmem:[#allocation89_spill] sm:$0xff]  ;;  %vm12720_vm14 = vmmov %vm12705_vm2 }
 0x3a4   : > { %4612 = vmatpush1.bf16.msra.mxu0 %v12519_v52  ;;  %4718 = vmatpush1.bf16.msra.mxu1 %v12520_v38  ;;  %v9381_v37 = vmul.f32 %v12517_v59, %v4115_v34  ;;  %v3905_v18 = vsel %vm1332_vm3, %v12523_v50, %v3877_v62  ;;  %v3891_v25 = vpop.permute.xlu0 %3890  ;;  %v3852_v1 = vpack.c.bf16 %v3844_v8, %v3840_v10  ;;  %v12526_v34 = vld [vmem:[#allocation50_spill] sm:$0xff]  ;;  %vm12721_vm15 = vmmov %vm12705_vm2 }
 0x3a5   : > { %4613 = vmatprep.subr.bf16.mxu0 %v3851_v22  ;;  %v3941_v32 = vmul.f32 %v8914_v48, %v3904_v0  ;;  %v12524_v22 = vld [vmem:[#allocation90_spill] sm:$0xff]  ;;  %v3945_v15 = vmul.f32 %v8914_v48, %v3905_v18  ;;  %2878 = vrot.lane.b32.xlu1 %v8585_v45, %s12483_s23  ;;  %v4220_v16 = vsel %vm1502_vm6, %v12526_v34, %v12525_v9  ;;  %v12528_v48 = vld [vmem:[#allocation29_spill] sm:$0xff]  ;;  %vm12723_vm0 = vmmov %vm12705_vm2 }
 0x3a6   : > { %v3901_v40 = vsel %vm1332_vm3, %v3877_v62, %v12524_v22  ;;  %v3896_v8 = vsel %vm1332_vm3, %v12527_v5, %v3891_v25  ;;  %v3908_v23 = vsel %vm1332_vm3, %v3891_v25, %v12518_v36  ;;  %4719 = vmatprep.subr.bf16.mxu1 %v3853_v3  ;;  %v4224_v57 = vsel %vm1502_vm6, %v12528_v48, %v12526_v34  ;;  %v12531_v25 = vld [vmem:[#allocation91_spill] sm:$0xff] }
 0x3a7   : > { %v3900_v49 = vsel %vm1332_vm3, %v3875_v7, %v12527_v5  ;;  %v12529_v0 = vpack.c.bf16 %v9139_v35, %v9123_v2  ;;  %v3893_v52 = vpop.permute.xlu1 %3892  ;;  %v3953_v10 = vpack.c.bf16 %v3945_v15, %v3941_v32  ;;  %v3946_v36 = vmul.f32 %v8917_v20, %v3901_v40  ;;  %2892 = vrot.lane.b32.xlu0 %v8589_v42, %s12483_s23  ;;  %v12534_v15 = vld [vmem:[#allocation112_spill] sm:$0xff]  ;;  %v12535_v5 = vld [vmem:[#allocation113_spill] sm:$0xff] }
 0x3a8   : > { %4614 = vmatpush1.bf16.msra.mxu0 %v3850_v39  ;;  %4720 = vmatpush1.bf16.msra.mxu1 %v3852_v1  ;;  %v12530_v39 = vpack.c.bf16 %v9157_v55, %v9182_v21  ;;  %v3897_v7 = vsel %vm1332_vm3, %v12524_v22, %v3893_v52  ;;  %v3909_v2 = vsel %vm1332_vm3, %v3893_v52, %v12523_v50  ;;  %v3977_v35 = vpop.permute.xlu0 %3976  ;;  %vm12706_vm3 = vmmov %vm12705_vm2 }
 0x3a9   : > { %4615 = vmatprep.subr.bf16.mxu0 %v12529_v0  ;;  %v3940_v38 = vmul.f32 %v8920_v43, %v3908_v23  ;;  %v3943_v62 = vmul.f32 %v8923_v6, %v3896_v8  ;;  %v3944_v3 = vmul.f32 %v8920_v43, %v3909_v2  ;;  %v3947_v18 = vmul.f32 %v8923_v6, %v3897_v7  ;;  %v12539_v0 = vld [vmem:[#allocation94_spill] sm:$0xff]  ;;  %v12541_v7 = vld [vmem:[#allocation93_spill] sm:$0xff] }
 0x3aa   : > { %4721 = vmatprep.subr.bf16.mxu1 %v12530_v39  ;;  %2894 = vrot.lane.b32.xlu1 %v8597_v4, %s12483_s23  ;;  %v9434_v55 = vmul.f32 %v12521_v53, %v4127_v56  ;;  %v4006_v50 = vsel %vm1386_vm4, %v12531_v25, %v3977_v35  ;;  %v12532_v1 = vpack.c.bf16 %v9146_v54, %v9168_v47  ;;  %v12536_v54 = vld [vmem:[#allocation51_spill] sm:$0xff]  ;;  %v12582_v43 = vld [vmem:[#allocation98_spill] sm:$0xff] }
 0x3ab   : > { %v3942_v6 = vmul.f32 %v8917_v20, %v3900_v49  ;;  %v3952_v32 = vpack.c.bf16 %v3944_v3, %v3940_v38  ;;  %v12533_v56 = vpack.c.bf16 %v9101_v60, %v9126_v27  ;;  %v3979_v22 = vpop.permute.xlu1 %3978  ;;  %v3955_v40 = vpack.c.bf16 %v3947_v18, %v3943_v62  ;;  %v12537_v47 = vld [vmem:[#allocation31_spill] sm:$0xff]  ;;  %2884 = vrot.lane.b32.xlu0 %v8400_v28, %s12483_s23  ;;  %v12538_v20 = vld [vmem:[#allocation92_spill] sm:$0xff] }
 0x3ac   : > { %4616 = vmatpush1.bf16.msra.mxu0 %v12532_v1  ;;  %v9451_v34 = vmul.f32 %v12534_v15, %v4224_v57  ;;  %v9454_v8 = vmul.f32 %v12535_v5, %v4220_v16  ;;  %v4225_v23 = vsel %vm1502_vm6, %v12537_v47, %v12536_v54  ;;  %v4007_v27 = vsel %vm1386_vm4, %v12538_v20, %v3979_v22  ;;  %v3993_v60 = vpop.permute.xlu0 %3992  ;;  %v12542_v62 = vld [vmem:[#allocation135_spill] sm:$0xff]  ;;  %v12544_v1 = vld [vmem:[#allocation104_spill] sm:$0xff] }
 0x3ad   : > { %4617 = vmatprep.subr.bf16.mxu0 %v3953_v10  ;;  %4722 = vmatpush1.bf16.msra.mxu1 %v12533_v56  ;;  %v3954_v49 = vpack.c.bf16 %v3946_v36, %v3942_v6  ;;  %v4043_v57 = vmul.f32 %v8931_v63, %v4006_v50  ;;  %v4003_v16 = vsel %vm1386_vm4, %v3979_v22, %v12539_v0  ;;  %v12540_v10 = vld [vmem:[#allocation30_spill] sm:$0xff]  ;;  %v12548_v22 = vld [vmem:[#allocation105_spill] sm:$0xff] }
 0x3ae   : > { %v4047_v52 = vmul.f32 %v8931_v63, %v4007_v27  ;;  %2886 = vrot.lane.b32.xlu1 %v8406_v29, %s12483_s23  ;;  %v4221_v39 = vsel %vm1502_vm6, %v12536_v54, %v12540_v10  ;;  %v3998_v36 = vsel %vm1386_vm4, %v12541_v7, %v3993_v60  ;;  %v4010_v2 = vsel %vm1386_vm4, %v3993_v60, %v12531_v25  ;;  %v12546_v25 = vld [vmem:[#allocation35_spill] sm:$0xff]  ;;  %v12549_v54 = vld [vmem:[#allocation106_spill] sm:$0xff] }
 0x3af   : > { %4723 = vmatprep.subr.bf16.mxu1 %v3955_v40  ;;  %v9483_v63 = vmul.f32 %v12534_v15, %v4225_v23  ;;  %v4002_v38 = vsel %vm1386_vm4, %v3977_v35, %v12541_v7  ;;  %v12543_v3 = vpack.c.bf16 %v9185_v30, %v12542_v62  ;;  %v3995_v18 = vpop.permute.xlu1 %3994  ;;  %v4048_v6 = vmul.f32 %v12544_v1, %v4003_v16  ;;  %v12555_v7 = vld [vmem:[#allocation137_spill] sm:$0xff] }
 0x3b0   : > { %4618 = vmatpush1.bf16.msra.mxu0 %v3952_v32  ;;  %v4055_v50 = vpack.c.bf16 %v4047_v52, %v4043_v57  ;;  %2966 = vrot.lane.b32.xlu0 %v12546_v25, %s12545_s7  ;;  %v12547_v32 = vpack.c.bf16 %v9242_v24, %v9227_v31  ;;  %v3999_v35 = vsel %vm1386_vm4, %v12539_v0, %v3995_v18  ;;  %v9503_v56 = vpop.permute.xlu0 %4094  ;;  %v12550_v31 = vld [vmem:[#allocation16_spill] sm:$0xff]  ;;  %v12551_v24 = vld [vmem:[#allocation53_spill] sm:$0xff]  ;;  %v12552_v57 = vld [vmem:[#allocation55_spill] sm:$0xff] }
 0x3b1   : > { %4619 = vmatprep.subr.bf16.mxu0 %v12543_v3  ;;  %4724 = vmatpush1.bf16.msra.mxu1 %v3954_v49  ;;  %v4011_v30 = vsel %vm1386_vm4, %v3995_v18, %v12538_v20  ;;  %v4042_v40 = vmul.f32 %v12548_v22, %v4010_v2  ;;  %v4045_v23 = vmul.f32 %v12549_v54, %v3998_v36  ;;  %v12553_v0 = vld [vmem:[#allocation37_spill] sm:$0xff]  ;;  %v12554_v52 = vld [vmem:[#allocation136_spill] sm:$0xff]  ;;  %v12558_v18 = vld [vmem:[#allocation134_spill] sm:$0xff] }
 0x3b2   : > { %4725 = vmatprep.subr.bf16.mxu1 %v12547_v32  ;;  %v4046_v27 = vmul.f32 %v12548_v22, %v4011_v30  ;;  %v4049_v60 = vmul.f32 %v12549_v54, %v3999_v35  ;;  %2968 = vrot.lane.b32.xlu1 %v12550_v31, %s12545_s7  ;;  %v4217_v49 = vsel %vm1502_vm6, %v12540_v10, %v12551_v24  ;;  %v12557_v3 = vld [vmem:[#allocation133_spill] sm:$0xff]  ;;  %v12560_v22 = vld [vmem:[#allocation52_spill] sm:$0xff]  ;;  %vm12709_vm4 = vmmov %vm12705_vm2 }
 0x3b3   : > { %v4229_v20 = vsel %vm1502_vm6, %v12551_v24, %v12537_v47  ;;  %v4327_v16 = vsel %vm1556_vm7, %v12553_v0, %v12552_v57  ;;  %v12556_v36 = vpack.c.bf16 %v12554_v52, %v12555_v7  ;;  %v4044_v62 = vmul.f32 %v12544_v1, %v4002_v38  ;;  %v4097_v47 = vpop.permute.xlu1 %4096  ;;  %v12562_v1 = vld [vmem:[#allocation33_spill] sm:$0xff]  ;;  %v12565_v24 = vld [vmem:[#allocation36_spill] sm:$0xff] }
 0x3b4   : > { %v4054_v10 = vpack.c.bf16 %v4046_v27, %v4042_v40  ;;  %v12559_v32 = vpack.c.bf16 %v12557_v3, %v12558_v18  ;;  %v4057_v35 = vpack.c.bf16 %v4049_v60, %v4045_v23  ;;  %v9533_v30 = vmul.f32 %v12535_v5, %v4221_v39  ;;  %v12563_v23 = vld [vmem:[#allocation18_spill] sm:$0xff]  ;;  %v9549_v39 = vpop.permute.xlu0 %4110  ;;  %v12566_v7 = vld [vmem:[#allocation20_spill] sm:$0xff] }
 0x3b5   : > { %4620 = vmatpush1.bf16.msra.mxu0 %v12556_v36  ;;  %v4216_v54 = vsel %vm1502_vm6, %v12525_v9, %v12560_v22  ;;  %v4228_v38 = vsel %vm1502_vm6, %v12560_v22, %v12528_v48  ;;  %2974 = vrot.lane.b32.xlu0 %v12563_v23, %s12545_s7  ;;  %v12564_v60 = vld [vmem:[#allocation114_spill] sm:$0xff]  ;;  %v4323_v48 = vsel %vm1556_vm7, %v12552_v57, %v12565_v24  ;;  %v12567_v36 = vld [vmem:[#allocation115_spill] sm:$0xff]  ;;  %v12569_v22 = vld [vmem:[#allocation116_spill] sm:$0xff] }
 0x3b6   : > { %4621 = vmatprep.subr.bf16.mxu0 %v4055_v50  ;;  %4726 = vmatpush1.bf16.msra.mxu1 %v12559_v32  ;;  %v12561_v50 = vld [vmem:[#allocation54_spill] sm:$0xff]  ;;  %v9554_v9 = vmul.f32 %v12564_v60, %v4217_v49  ;;  %v4056_v52 = vpack.c.bf16 %v4048_v6, %v4044_v62  ;;  %v9563_v3 = vmul.f32 %v12567_v36, %v4229_v20 }
 0x3b7   : > { %v4326_v40 = vsel %vm1556_vm7, %v12562_v1, %v12561_v50  ;;  %2976 = vrot.lane.b32.xlu1 %v12566_v7, %s12545_s7  ;;  %v12568_v18 = vld [vmem:[#allocation34_spill] sm:$0xff]  ;;  %v9570_v49 = vmul.f32 %v12569_v22, %v4327_v16  ;;  %4727 = vmatprep.subr.bf16.mxu1 %v4057_v35  ;;  %v9573_v27 = vmul.f32 %v12564_v60, %v4216_v54  ;;  %v4113_v62 = vpop.permute.xlu1 %4112  ;;  %v12575_v54 = vld [vmem:[#allocation57_spill] sm:$0xff] }
 0x3b8   : > { %v4322_v32 = vsel %vm1556_vm7, %v12561_v50, %v12568_v18  ;;  %v9576_v6 = vmul.f32 %v12567_v36, %v4228_v38  ;;  %v9579_v57 = vmul.f32 %v12569_v22, %v4326_v40  ;;  %v12572_v20 = vpack.c.bf16 %v12566_v7, %v12563_v23  ;;  %v12573_v50 = vld [vmem:[#allocation117_spill] sm:$0xff]  ;;  %v12576_v40 = vld [vmem:[#allocation19_spill] sm:$0xff] }
 0x3b9   : > { %12570 = vst [vmem:[#allocation42_spill] sm:$0xff] %v9570_v49  ;;  %4622 = vmatpush1.bf16.msra.mxu0 %v4054_v10  ;;  %v9585_v16 = vmul.f32 %v12573_v50, %v4323_v48  ;;  %v12574_v10 = vld [vmem:[#allocation56_spill] sm:$0xff]  ;;  %v4319_v38 = vsel %vm1556_vm7, %v12565_v24, %v12575_v54  ;;  %2990 = vrot.lane.b32.xlu0 %v12576_v40, %s12545_s7 }
 0x3ba   : > { %12571 = vst [vmem:[#allocation27_spill] sm:$0xff] %v9579_v57  ;;  %4623 = vmatprep.subr.bf16.mxu0 %v12572_v20  ;;  %4728 = vmatpush1.bf16.msra.mxu1 %v4056_v52  ;;  %v4318_v35 = vsel %vm1556_vm7, %v12568_v18, %v12574_v10  ;;  %v12577_v52 = vpack.c.bf16 %v12501_v12, %v12576_v40  ;;  %v9600_v20 = vpop.permute.xlu0 %4196  ;;  %v12579_v48 = vld [vmem:[#allocation96_spill] sm:$0xff]  ;;  %v12581_v18 = vld [vmem:[#allocation119_spill] sm:$0xff] }
 0x3bb   : > { %v9605_v21 = vmul.f32 %v12573_v50, %v4322_v32  ;;  %v4330_v24 = vsel %vm1556_vm7, %v12574_v10, %v12562_v1  ;;  %2992 = vrot.lane.b32.xlu1 %v12501_v12, %s12545_s7  ;;  %v4331_v32 = vsel %vm1556_vm7, %v12575_v54, %v12553_v0  ;;  %v4121_v14 = vsel %vm1448_vm5, %v4097_v47, %v12579_v48  ;;  %v12584_v12 = vld [vmem:[#allocation17_spill] sm:$0xff]  ;;  %v4199_v40 = vpop.permute.xlu1 %4198  ;;  %v12586_v10 = vld [vmem:[#allocation120_spill] sm:$0xff] }
 0x3bc   : > { %4729 = vmatprep.subr.bf16.mxu1 %v12577_v52  ;;  %v12580_v1 = vpack.c.bf16 %v12550_v31, %v12546_v25  ;;  %v9630_v2 = vmul.f32 %v12581_v18, %v4318_v35  ;;  %v9633_v52 = vmul.f32 %v12581_v18, %v4319_v38  ;;  %v4129_v0 = vsel %vm1448_vm5, %v4113_v62, %v12582_v43  ;;  %v12587_v35 = vld [vmem:[#allocation95_spill] sm:$0xff]  ;;  %v12589_v31 = vld [vmem:[#allocation97_spill] sm:$0xff]  ;;  %v12591_v18 = vld [vmem:[#allocation58_spill] sm:$0xff] }
 0x3bd   : > { %12578 = vst [vmem:[#allocation46_spill] sm:$0xff] %v9605_v21  ;;  %v12583_v54 = vpack.c.bf16 %v8585_v45, %v12522_v19  ;;  %v9645_v7 = vmul.f32 %v12586_v10, %v4330_v24  ;;  %v4120_v38 = vsel %vm1448_vm5, %v9503_v56, %v12587_v35  ;;  %2982 = vrot.lane.b32.xlu0 %v12584_v12, %s12545_s7 }
 0x3be   : > { %4624 = vmatpush1.bf16.msra.mxu0 %v12580_v1  ;;  %v12585_v1 = vpack.c.bf16 %v12510_v41, %v12584_v12  ;;  %v12588_v23 = vpack.c.bf16 %v8597_v4, %v8589_v42  ;;  %v9661_v24 = vmul.f32 %v12586_v10, %v4331_v32  ;;  %v4125_v57 = vsel %vm1448_vm5, %v12582_v43, %v4097_v47 }
 0x3bf   : > { %4625 = vmatprep.subr.bf16.mxu0 %v12583_v54  ;;  %v9656_v54 = vpop.permute.xlu0 %4212  ;;  %v4165_v49 = vmul.f32 %v12503_v46, %v4121_v14  ;;  %v4128_v12 = vsel %vm1448_vm5, %v9549_v39, %v12589_v31  ;;  %2984 = vrot.lane.b32.xlu1 %v12510_v41, %s12545_s7  ;;  %v4117_v14 = vsel %vm1448_vm5, %v12579_v48, %v4113_v62  ;;  %v4215_v48 = vpop.permute.xlu1 %4214 }
 0x3c0   : > { %4730 = vmatpush1.bf16.msra.mxu1 %v12585_v1  ;;  %v12592_v1 = vld [vmem:[#allocation40_spill] sm:$0xff]  ;;  %v4167_v47 = vmul.f32 %v12521_v53, %v4129_v0  ;;  %v12593_v25 = vpack.c.bf16 %v12516_v17, %v12514_v11  ;;  %v4124_v22 = vsel %vm1448_vm5, %v12589_v31, %v9503_v56  ;;  %v12594_v21 = vpack.c.bf16 %v9356_v26, %v9286_v58  ;;  %v12598_v26 = vld [vmem:[#allocation121_spill] sm:$0xff]  ;;  %v12599_v31 = vld [vmem:[#allocation59_spill] sm:$0xff] }
 0x3c1   : > { %4731 = vmatprep.subr.bf16.mxu1 %v12588_v23  ;;  %v12590_v23 = vld [vmem:[#allocation38_spill] sm:$0xff]  ;;  %v4428_v43 = vsel %vm1610_vm8, %v12592_v1, %v12591_v18  ;;  %v12595_v62 = vpack.c.bf16 %v8406_v29, %v8400_v28  ;;  %v4116_v41 = vsel %vm1448_vm5, %v12587_v35, %v9549_v39  ;;  %v4163_v56 = vmul.f32 %v12521_v53, %v4128_v12  ;;  %vm12710_vm5 = vmmov %vm12705_vm2 }
 0x3c2   : > { %v4424_v32 = vsel %vm1610_vm8, %v12591_v18, %v12590_v23  ;;  %4626 = vmatpush1.bf16.msra.mxu0 %v12593_v25  ;;  %v4161_v18 = vmul.f32 %v12503_v46, %v4120_v38  ;;  %v12596_v25 = vld [vmem:[#allocation107_spill] sm:$0xff]  ;;  %2970 = vrot.lane.b32.xlu0 %v12514_v11, %s12545_s7  ;;  %v12597_v58 = vpack.c.bf16 %v9434_v55, %v9374_v44  ;;  %v12601_v53 = vld [vmem:[#allocation122_spill] sm:$0xff]  ;;  %v12602_v55 = vld [vmem:[#allocation100_spill] sm:$0xff] }
 0x3c3   : > { %4627 = vmatprep.subr.bf16.mxu0 %v12594_v21  ;;  %v4164_v0 = vmul.f32 %v12596_v25, %v4125_v57  ;;  %v9712_v46 = vpop.permute.xlu0 %4298  ;;  %v9715_v21 = vmul.f32 %v12598_v26, %v4428_v43  ;;  %v12600_v57 = vld [vmem:[#allocation41_spill] sm:$0xff]  ;;  %v4166_v39 = vmul.f32 %v12517_v59, %v4117_v14  ;;  %2972 = vrot.lane.b32.xlu1 %v12516_v17, %s12545_s7  ;;  %v12604_v11 = vld [vmem:[#allocation39_spill] sm:$0xff] }
 0x3c4   : > { %4732 = vmatpush1.bf16.msra.mxu1 %v12595_v62  ;;  %v4429_v38 = vsel %vm1610_vm8, %v12600_v57, %v12599_v31  ;;  %v4173_v12 = vpack.c.bf16 %v4165_v49, %v4161_v18  ;;  %v9725_v35 = vmul.f32 %v12601_v53, %v4424_v32  ;;  %v4160_v44 = vmul.f32 %v12596_v25, %v4124_v22  ;;  %v12605_v32 = vld [vmem:[#allocation102_spill] sm:$0xff]  ;;  %v4301_v25 = vpop.permute.xlu1 %4300 }
 0x3c5   : > { %4733 = vmatprep.subr.bf16.mxu1 %v12597_v58  ;;  %v4223_v43 = vsel %vm1502_vm6, %v4199_v40, %v12602_v55  ;;  %v12603_v62 = vpack.c.bf16 %v9301_v33, %v9283_v51  ;;  %v4175_v58 = vpack.c.bf16 %v4167_v47, %v4163_v56  ;;  %v4425_v14 = vsel %vm1610_vm8, %v12599_v31, %v12604_v11  ;;  %v12607_v47 = vld [vmem:[#allocation99_spill] sm:$0xff]  ;;  %v12608_v31 = vld [vmem:[#allocation101_spill] sm:$0xff] }
 0x3c6   : > { %v4162_v49 = vmul.f32 %v12517_v59, %v4116_v41  ;;  %v4231_v22 = vsel %vm1502_vm6, %v4215_v48, %v12605_v32  ;;  %v12606_v18 = vpack.c.bf16 %v9381_v37, %v9361_v61  ;;  %v9746_v51 = vmul.f32 %v12598_v26, %v4429_v38  ;;  %2978 = vrot.lane.b32.xlu0 %v12522_v19, %s12545_s7 }
 0x3c7   : > { %4628 = vmatpush1.bf16.msra.mxu0 %v12603_v62  ;;  %v4172_v33 = vpack.c.bf16 %v4164_v0, %v4160_v44  ;;  %v4222_v56 = vsel %vm1502_vm6, %v9600_v20, %v12607_v47  ;;  %v9754_v41 = vpop.permute.xlu0 %4314  ;;  %v4227_v61 = vsel %vm1502_vm6, %v12605_v32, %v4199_v40  ;;  %v4267_v37 = vmul.f32 %v12535_v5, %v4223_v43  ;;  %v12609_v44 = vld [vmem:[#allocation60_spill] sm:$0xff] }
 0x3c8   : > { %4629 = vmatprep.subr.bf16.mxu0 %v4173_v12  ;;  %4734 = vmatpush1.bf16.msra.mxu1 %v12606_v18  ;;  %v4174_v59 = vpack.c.bf16 %v4166_v39, %v4162_v49  ;;  %v4230_v0 = vsel %vm1502_vm6, %v9656_v54, %v12608_v31  ;;  %v9767_v38 = vmul.f32 %v12601_v53, %v4425_v14  ;;  %v12612_v14 = vld [vmem:[#allocation61_spill] sm:$0xff]  ;;  %v12613_v49 = vld [vmem:[#allocation111_spill] sm:$0xff] }
 0x3c9   : > { %4735 = vmatprep.subr.bf16.mxu1 %v4175_v58  ;;  %2980 = vrot.lane.b32.xlu1 %v8585_v45, %s12545_s7  ;;  %v4219_v39 = vsel %vm1502_vm6, %v12602_v55, %v4215_v48  ;;  %v4269_v12 = vmul.f32 %v12567_v36, %v4231_v22  ;;  %v4375_v40 = vpack.c.bf16 %v9661_v24, %v9645_v7  ;;  %v4317_v55 = vpop.permute.xlu1 %4316 }
 0x3ca   : > { %v4420_v43 = vsel %vm1610_vm8, %v12590_v23, %v12609_v44  ;;  %v4226_v62 = vsel %vm1502_vm6, %v12608_v31, %v9600_v20  ;;  %v4263_v58 = vmul.f32 %v12535_v5, %v4222_v56  ;;  %v12610_v48 = vpack.c.bf16 %v9533_v30, %v9454_v8  ;;  %2994 = vrot.lane.b32.xlu0 %v8589_v42, %s12545_s7  ;;  %v12619_v31 = vld [vmem:[#allocation118_spill] sm:$0xff] }
 0x3cb   : > { %4630 = vmatpush1.bf16.msra.mxu0 %v4172_v33  ;;  %v4266_v7 = vmul.f32 %v12534_v15, %v4227_v61  ;;  %v4218_v24 = vsel %vm1502_vm6, %v12607_v47, %v9656_v54  ;;  %v4265_v23 = vmul.f32 %v12567_v36, %v4230_v0  ;;  %v12611_v5 = vpack.c.bf16 %v9563_v3, %v9576_v6  ;;  %v9798_v8 = vpop.permute.xlu0 %4400  ;;  %v12615_v47 = vld [vmem:[#allocation126_spill] sm:$0xff]  ;;  %v12618_v61 = vld [vmem:[#allocation103_spill] sm:$0xff]  ;;  %vm12711_vm6 = vmmov %vm12705_vm2 }
 0x3cc   : > { %4631 = vmatprep.subr.bf16.mxu0 %v12610_v48  ;;  %4736 = vmatpush1.bf16.msra.mxu1 %v4174_v59  ;;  %v4474_v30 = vpack.c.bf16 %v9746_v51, %v9715_v21  ;;  %v4432_v20 = vsel %vm1610_vm8, %v12609_v44, %v12592_v1  ;;  %v4268_v54 = vmul.f32 %v12564_v60, %v4219_v39  ;;  %v12647_v21 = vld [vmem:[#allocation17_spill] sm:$0xff] }
 0x3cd   : > { %4737 = vmatprep.subr.bf16.mxu1 %v12611_v5  ;;  %2996 = vrot.lane.b32.xlu1 %v8597_v4, %s12545_s7  ;;  %v4275_v36 = vpack.c.bf16 %v4267_v37, %v4263_v58  ;;  %v4421_v3 = vsel %vm1610_vm8, %v12604_v11, %v12612_v14  ;;  %v4262_v6 = vmul.f32 %v12534_v15, %v4226_v62  ;;  %v4403_v56 = vpop.permute.xlu1 %4402  ;;  %v12623_v5 = vld [vmem:[#allocation116_spill] sm:$0xff] }
 0x3ce   : > { %v4325_v32 = vsel %vm1556_vm7, %v4301_v25, %v12613_v49  ;;  %v12614_v1 = vpack.c.bf16 %v9483_v63, %v9451_v34  ;;  %v4277_v22 = vpack.c.bf16 %v4269_v12, %v4265_v23  ;;  %v4433_v18 = vsel %vm1610_vm8, %v12612_v14, %v12600_v57  ;;  %v12617_v34 = vld [vmem:[#allocation124_spill] sm:$0xff]  ;;  %2986 = vrot.lane.b32.xlu0 %v8400_v28, %s12545_s7  ;;  %v12620_v12 = vld [vmem:[#allocation125_spill] sm:$0xff] }
 0x3cf   : > { %v4264_v33 = vmul.f32 %v12564_v60, %v4218_v24  ;;  %v4333_v11 = vsel %vm1556_vm7, %v4317_v55, %v12615_v47  ;;  %v12616_v15 = vpack.c.bf16 %v9554_v9, %v9573_v27  ;;  %v9832_v63 = vmul.f32 %v12617_v34, %v4420_v43  ;;  %v4417_v60 = vpop.permute.xlu0 %4416 }
 0x3d0   : > { %4632 = vmatpush1.bf16.msra.mxu0 %v12614_v1  ;;  %v4274_v59 = vpack.c.bf16 %v4266_v7, %v4262_v6  ;;  %v4324_v57 = vsel %vm1556_vm7, %v9712_v46, %v12618_v61  ;;  %v4329_v27 = vsel %vm1556_vm7, %v12615_v47, %v4301_v25  ;;  %v4369_v9 = vmul.f32 %v12573_v50, %v4325_v32  ;;  %v12621_v7 = vld [vmem:[#allocation46_spill] sm:$0xff]  ;;  %v12628_v6 = vld [vmem:[#allocation16_spill] sm:$0xff]  ;;  %v12630_v1 = vld [vmem:[#allocation27_spill] sm:$0xff] }
 0x3d1   : > { %4633 = vmatprep.subr.bf16.mxu0 %v4275_v36  ;;  %4738 = vmatpush1.bf16.msra.mxu1 %v12616_v15  ;;  %v4276_v37 = vpack.c.bf16 %v4268_v54, %v4264_v33  ;;  %v4332_v0 = vsel %vm1556_vm7, %v9754_v41, %v12619_v31  ;;  %v9851_v39 = vmul.f32 %v12617_v34, %v4421_v3  ;;  %v4419_v23 = vpop.permute.xlu1 %4418  ;;  %v12625_v36 = vld [vmem:[#allocation35_spill] sm:$0xff] }
 0x3d2   : > { %4739 = vmatprep.subr.bf16.mxu1 %v4277_v22  ;;  %2988 = vrot.lane.b32.xlu1 %v8406_v29, %s12545_s7  ;;  %v4465_v44 = vmul.f32 %v12620_v12, %v4433_v18  ;;  %v4321_v43 = vsel %vm1556_vm7, %v12613_v49, %v4317_v55  ;;  %v4371_v25 = vmul.f32 %v12586_v10, %v4333_v11  ;;  %v12632_v11 = vld [vmem:[#allocation127_spill] sm:$0xff]  ;;  %s7014_s7 = smov [#allocation3]  }
 0x3d3   : > { %v4461_v62 = vmul.f32 %v12620_v12, %v4432_v20  ;;  %v4328_v58 = vsel %vm1556_vm7, %v12619_v31, %v9712_v46  ;;  %v4365_v48 = vmul.f32 %v12573_v50, %v4324_v57  ;;  %v12622_v24 = vpack.c.bf16 %v9585_v16, %v12621_v7  ;;  %3068 = vrot.lane.b32.xlu0 %v12625_v36, %s12624_s25  ;;  %v2665_v50 = vpop.permute.xlu0 %2664  ;;  %v12626_v46 = vld [vmem:[#allocation119_spill] sm:$0xff]  ;;  %v12627_v16 = vld [vmem:[#allocation130_spill] sm:$0xff]  ;;  %s6935_s2 = sshll.u32 %s7014_s7, 4  ;;  %s6936_s2 = int_to_ptr.vmem [resolvable:$false] %s6935_s2 }
 0x3d4   : > { %4634 = vmatpush1.bf16.msra.mxu0 %v4274_v59  ;;  %v4368_v55 = vmul.f32 %v12623_v5, %v4329_v27  ;;  %v4320_v20 = vsel %vm1556_vm7, %v12618_v61, %v9754_v41  ;;  %v4367_v54 = vmul.f32 %v12586_v10, %v4332_v0  ;;  %v4370_v14 = vmul.f32 %v12626_v46, %v4321_v43  ;;  %v12633_v59 = vld [vmem:[#allocation132_spill] sm:$0xff]  ;;  %v12635_v27 = vld [vmem:[#allocation18_spill] sm:$0xff]  ;;  %v12639_v43 = vld [vmem:[#allocation129_spill] sm:$0xff] }
 0x3d5   : > { %4635 = vmatprep.subr.bf16.mxu0 %v12622_v24  ;;  %4740 = vmatpush1.bf16.msra.mxu1 %v4276_v37  ;;  %v4427_v3 = vsel %vm1610_vm8, %v4403_v56, %v12627_v16  ;;  %v4377_v49 = vpack.c.bf16 %v4369_v9, %v4365_v48  ;;  %v4475_v41 = vpack.c.bf16 %v9767_v38, %v9725_v35  ;;  %v12636_v31 = vld [vmem:[#allocation66_spill] sm:$0xff]  ;;  %v12637_v0 = vld [vmem:[#allocation128_spill] sm:$0xff]  ;;  %vm12712_vm7 = vmmov %vm12705_vm2 }
 0x3d6   : > { %4741 = vmatprep.subr.bf16.mxu1 %v4375_v40  ;;  %3070 = vrot.lane.b32.xlu1 %v12628_v6, %s12624_s25  ;;  %v4476_v10 = vpack.c.bf16 %v9851_v39, %v9832_v63  ;;  %v4364_v32 = vmul.f32 %v12623_v5, %v4328_v58  ;;  %v12629_v40 = vld [vmem:[#allocation42_spill] sm:$0xff]  ;;  %v4379_v18 = vpack.c.bf16 %v4371_v25, %v4367_v54  ;;  %v2667_v63 = vpop.permute.xlu1 %2666  ;;  %v12640_v25 = vld [vmem:[#allocation131_spill] sm:$0xff] }
 0x3d7   : > { %v12631_v22 = vpack.c.bf16 %v12629_v40, %v12630_v1  ;;  %v4477_v33 = vpack.c.bf16 %v4465_v44, %v4461_v62  ;;  %v4366_v47 = vmul.f32 %v12626_v46, %v4320_v20  ;;  %v4426_v15 = vsel %vm1610_vm8, %v9798_v8, %v12632_v11  ;;  %3076 = vrot.lane.b32.xlu0 %v12635_v27, %s12624_s25  ;;  %v2673_v9 = vpop.permute.xlu0 %2672  ;;  %v12638_v44 = vld [vmem:[#allocation76_spill] sm:$0xff]  ;;  %v12642_v46 = vld [vmem:[#allocation19_spill] sm:$0xff] }
 0x3d8   : > { %v4435_v35 = vsel %vm1610_vm8, %v4419_v23, %v12633_v59  ;;  %v12634_v38 = vpack.c.bf16 %v9633_v52, %v9630_v2  ;;  %v4376_v61 = vpack.c.bf16 %v4368_v55, %v4364_v32  ;;  %v4431_v57 = vsel %vm1610_vm8, %v12633_v59, %v4403_v56  ;;  %v12641_v56 = vld [vmem:[#allocation20_spill] sm:$0xff] }
 0x3d9   : > { %4636 = vmatpush1.bf16.msra.mxu0 %v12631_v22  ;;  %v4471_v37 = vmul.f32 %v12601_v53, %v4427_v3  ;;  %v2735_v39 = vmul.f32 %v12637_v0, %v12636_v31  ;;  %v9910_v2 = vmul.f32 %v12639_v43, %v12638_v44  ;;  %v4378_v52 = vpack.c.bf16 %v4370_v14, %v4366_v47  ;;  %v6885_v58 = vld [vmem:[%s11923_s9] ss:$12 sps:$4 sm:$0xff]  }
 0x3da   : > { %4637 = vmatprep.subr.bf16.mxu0 %v4377_v49  ;;  %4742 = vmatpush1.bf16.msra.mxu1 %v12634_v38  ;;  %v4434_v62 = vsel %vm1610_vm8, %v4417_v60, %v12640_v25  ;;  %v4467_v48 = vmul.f32 %v12601_v53, %v4426_v15  ;;  %v4423_v7 = vsel %vm1610_vm8, %v12627_v16, %v4419_v23  ;;  %v2675_v23 = vpop.permute.xlu1 %2674  ;;  %v12643_v49 = vld [vmem:[#allocation62_spill] sm:$0xff]  ;;  %v12645_v22 = vld [vmem:[#allocation63_spill] sm:$0xff] }
 0x3db   : > { %4743 = vmatprep.subr.bf16.mxu1 %v4379_v18  ;;  %3078 = vrot.lane.b32.xlu1 %v12641_v56, %s12624_s25  ;;  %v4473_v24 = vmul.f32 %v12620_v12, %v4435_v35  ;;  %v9927_v5 = vsel %vm699_vm9, %v2665_v50, %v2673_v9  ;;  %v4430_v55 = vsel %vm1610_vm8, %v12640_v25, %v9798_v8  ;;  %v2689_v8 = vpop.permute.xlu0 %2688  ;;  %v12650_v38 = vld [vmem:[#allocation22_spill] sm:$0xff]  ;;  %v12652_v31 = vld [vmem:[#allocation123_spill] sm:$0xff] }
 0x3dc   : > { %v4470_v20 = vmul.f32 %v12598_v26, %v4431_v57  ;;  %v4422_v53 = vsel %vm1610_vm8, %v12632_v11, %v4417_v60  ;;  %v4469_v54 = vmul.f32 %v12620_v12, %v4434_v62  ;;  %3092 = vrot.lane.b32.xlu0 %v12642_v46, %s12624_s25  ;;  %v9942_v14 = vsel %vm699_vm9, %v2667_v63, %v2675_v23  ;;  %v12644_v12 = vld [vmem:[#allocation21_spill] sm:$0xff]  ;;  %v6888_v57 = vld [vmem:[%s11923_s9 + $0x1c] ss:$12 sps:$4 sm:$0xff]   ;;  %v6890_v25 = vld [vmem:[%s11923_s9 + $0x18] ss:$12 sps:$4 sm:$0xff]  }
 0x3dd   : > { %4638 = vmatpush1.bf16.msra.mxu0 %v4376_v61  ;;  %v4479_v16 = vpack.c.bf16 %v4471_v37, %v4467_v48  ;;  %v4472_v3 = vmul.f32 %v12617_v34, %v4423_v7  ;;  %v9947_v60 = vmul.f32 %v12643_v49, %v9927_v5  ;;  %v4466_v32 = vmul.f32 %v12598_v26, %v4430_v55  ;;  %v12646_v11 = vld [vmem:[#allocation73_spill] sm:$0xff]  ;;  %v12651_v37 = vld [vmem:[#allocation14_spill] sm:$0xff]  ;;  %vm12714_vm8 = vmmov %vm12705_vm2 }
 0x3de   : > { %4660 = vmatprep.subr.bf16.mxu0 %v4475_v41  ;;  %4744 = vmatpush1.bf16.msra.mxu1 %v4378_v52  ;;  %v9951_v41 = vmul.f32 %v12643_v49, %v9942_v14  ;;  %v9958_v40 = vsel %vm699_vm9, %v2689_v8, %v2665_v50  ;;  %v4481_v1 = vpack.c.bf16 %v4473_v24, %v4469_v54  ;;  %v2691_v26 = vpop.permute.xlu1 %2690  ;;  %v12653_v62 = vld [vmem:[#allocation13_spill] sm:$0xff]  ;;  %v12659_v49 = vld [vmem:[#allocation64_spill] sm:$0xff] }
 0x3df   : > { %4766 = vmatprep.subr.bf16.mxu1 %v4477_v33  ;;  %3094 = vrot.lane.b32.xlu1 %v12644_v12, %s12624_s25  ;;  %v2731_v18 = vmul.f32 %v12637_v0, %v12645_v22  ;;  %v4468_v33 = vmul.f32 %v12617_v34, %v4422_v53  ;;  %v2733_v50 = vmul.f32 %v12639_v43, %v12646_v11  ;;  %v12648_v34 = vld [vmem:[#allocation71_spill] sm:$0xff]  ;;  %v12654_v24 = vld [vmem:[#allocation65_spill] sm:$0xff] }
 0x3e0   : > { %4640 = vmatmul.mubr.bf16.vlgmr.msra.gmra.mrb[8].mxu0 %v6885_v58  ;;  %v4478_v15 = vpack.c.bf16 %v4470_v20, %v4466_v32  ;;  %3084 = vrot.lane.b32.xlu0 %v12647_v21, %s12624_s25  ;;  %v2707_v51 = vsel %vm699_vm9, %v2691_v26, %v2667_v63  ;;  %v9976_v35 = vmul.f32 %v12648_v34, %v9958_v40  ;;  %v12655_v55 = vld [vmem:[#allocation25_spill] sm:$0xff] }
 0x3e1   : > { %4661 = vmatpush1.bf16.msra.mxu0 %v4474_v30  ;;  %4746 = vmatmul.mubr.bf16.vlgmr.msra.gmra.mrb[8].mxu1 %v6885_v58  ;;  %v2681_v30 = vpop.permute.xlu0 %2680  ;;  %v4480_v59 = vpack.c.bf16 %v4472_v3, %v4468_v33  ;;  %v2747_v61 = vpack.c.bf16 %v2735_v39, %v2731_v18  ;;  %v9988_v63 = vrot.slane %v12652_v31, %v12651_v37  ;;  %v12656_v54 = vld [vmem:[#allocation77_spill] sm:$0xff]  ;;  %v12661_v18 = vld [vmem:[#allocation68_spill] sm:$0xff] }
 0x3e2   : > { %4662 = vmatprep.subr.bf16.mxu0 %v4479_v16  ;;  %4767 = vmatpush1.bf16.msra.mxu1 %v4476_v10  ;;  %12649 = vst [vmem:[#allocation82_spill] sm:$0xff] %v9976_v35  ;;  %v9979_v10 = vmul.f32 %v12648_v34, %v2707_v51  ;;  %v2694_v44 = vsel %vm699_vm9, %v2681_v30, %v2689_v8  ;;  %v2683_v48 = vpop.permute.xlu1 %2682  ;;  %v12657_v16 = vld [vmem:[#allocation67_spill] sm:$0xff]  ;;  %v12663_v34 = vmov 0  }
 0x3e3   : > { %4768 = vmatprep.subr.bf16.mxu1 %v4481_v1  ;;  %3086 = vrot.lane.b32.xlu1 %v12650_v38, %s12624_s25  ;;  %v2749_v52 = vpack.c.bf16 %v9910_v2, %v2733_v50  ;;  %v2713_v39 = vrot.slane %v12652_v31, %v12653_v62  ;;  %v10000_v58 = vsel %vm699_vm9, %v2673_v9, %v2681_v30  ;;  %v6619_v30 = vld [vmem:[%s12301_s0 + $0x1] ss:$8 sm:$0xf] }
 0x3e4   : > { %v10006_v2 = vmul.f32 %v9988_v63, %v12654_v24  ;;  %3072 = vrot.lane.b32.xlu0 %v12655_v55, %s12624_s25  ;;  %v2695_v20 = vsel %vm699_vm9, %v2683_v48, %v2691_v26  ;;  %v2699_v9 = vsel %vm699_vm9, %v2675_v23, %v2683_v48  ;;  %v10016_v3 = vmul.f32 %v12657_v16, %v2694_v44  ;;  %v10031_v23 = vld [vmem:[%s12301_s0 + $0x43] ss:$8 sm:$0xf]  ;;  %vm12715_vm9 = vmmov %vm12705_vm2 }
 0x3e5   : > { %4663 = vmatpush1.bf16.msra.mxu0 %v4478_v15  ;;  %v2763_v53 = vpop.permute.xlu0 %2762  ;;  %v2734_v8 = vmul.f32 %v2713_v39, %v12656_v54  ;;  %v10019_v32 = vmul.f32 %v12659_v49, %v2699_v9  ;;  %v10022_v1 = vmul.f32 %v12657_v16, %v2695_v20  ;;  %4649 = vmatprep.mubr.bf16.mxu0 %v6888_v57  ;;  %v12662_v26 = vld [vmem:[#allocation74_spill] sm:$0xff]  ;;  %v12664_v48 = vld [vmem:[#allocation11_spill] sm:$0xff] }
 0x3e6   : > { %4769 = vmatpush1.bf16.msra.mxu1 %v4480_v59  ;;  %4855 = vmatprep.subr.bf16.mxu0 %v2747_v61  ;;  %12658 = vst [vmem:[#allocation23_spill] sm:$0xff] %v10016_v3  ;;  %v10026_v22 = vmul.f32 %v12659_v49, %v10000_v58  ;;  %v2732_v33 = vmul.f32 %v9988_v63, %v12661_v18  ;;  %v2765_v15 = vpop.permute.xlu1 %2764  ;;  %v12665_v18 = vld [vmem:[#allocation15_spill] sm:$0xff] }
 0x3e7   : > { %4961 = vmatprep.subr.bf16.mxu1 %v2749_v52  ;;  %12660 = vst [vmem:[#allocation47_spill] sm:$0xff] %v10022_v1  ;;  %4755 = vmatprep.mubr.bf16.mxu1 %v6888_v57  ;;  %v2730_v11 = vmul.f32 %v2713_v39, %v12662_v26  ;;  %v2743_v52 = vmul.f32 %v12637_v0, %v9942_v14 }
 0x3e8   : > { %4650 = vmatmul.mubr.bf16.gmra.mrb[12].mxu0 %v6890_v25  ;;  %3074 = vrot.lane.b32.xlu1 %v12516_v17, %s12624_s25  ;;  %v2748_v57 = vpack.c.bf16 %v10006_v2, %v2732_v33  ;;  %v10057_v24 = vrot.slane %v6619_v30, %v12664_v48  ;;  %v6891_v2 = vld [vmem:[%s11923_s9 + $0x8] ss:$12 sps:$4 sm:$0xff]   ;;  %v2739_v14 = vmul.f32 %v12637_v0, %v9927_v5 }
 0x3e9   : > { %4756 = vmatmul.mubr.bf16.gmra.mrb[12].mxu1 %v6890_v25  ;;  %3080 = vrot.lane.b32.xlu0 %v12522_v19, %s12624_s25  ;;  %v2771_v59 = vpop.permute.xlu0 %2770  ;;  %v2746_v31 = vpack.c.bf16 %v2734_v8, %v2730_v11  ;;  %v10053_v25 = vrot.slane %v10031_v23, %v12653_v62  ;;  %v10065_v8 = vrot.slane %v6619_v30, %v12653_v62 }
 0x3ea   : > { %4692 = vmatprep.mubr.bf16.mxu0 %v12663_v34  ;;  %4798 = vmatprep.mubr.bf16.mxu1 %v12663_v34  ;;  %v2802_v54 = vsel %vm752_vm10, %v2763_v53, %v2771_v59  ;;  %v2742_v16 = vmul.f32 %v2713_v39, %v2707_v51  ;;  %v2773_v49 = vpop.permute.xlu1 %2772  ;;  %v10073_v33 = vrot.slane %v10031_v23, %v12665_v18 }
 0x3eb   : > { %v10076_v26 = vrot.slane %v6619_v30, %v12651_v37  ;;  %v2738_v11 = vmul.f32 %v2713_v39, %v9958_v40  ;;  %v2745_v50 = vmul.f32 %v12639_v43, %v2695_v20  ;;  %v2803_v0 = vsel %vm752_vm10, %v2765_v15, %v2773_v49 }
 0x3ec   : > { %3082 = vrot.lane.b32.xlu1 %v8585_v45, %s12624_s25  ;;  %v10085_v51 = vrot.slane %v6619_v30, %v12665_v18  ;;  %v10088_v7 = vmul.f32 %v10053_v25, %v2802_v54  ;;  %v2837_v47 = vmul.f32 %v10057_v24, %v2803_v0  ;;  %v10092_v61 = vmul.f32 %v10053_v25, %v2803_v0 }
 0x3ed   : > { %3096 = vrot.lane.b32.xlu0 %v8589_v42, %s12624_s25  ;;  %v2787_v5 = vpop.permute.xlu0 %2786  ;;  %v2751_v40 = vpack.c.bf16 %v2743_v52, %v2739_v14  ;;  %v2741_v39 = vmul.f32 %v12639_v43, %v2694_v44  ;;  %v2744_v20 = vmul.f32 %v9988_v63, %v2699_v9  ;;  %v2833_v3 = vmul.f32 %v10057_v24, %v2802_v54 }
 0x3ee   : > { %v2806_v30 = vsel %vm752_vm10, %v2787_v5, %v2763_v53  ;;  %v2750_v1 = vpack.c.bf16 %v2742_v16, %v2738_v11  ;;  %v2740_v35 = vmul.f32 %v9988_v63, %v10000_v58  ;;  %v2789_v43 = vpop.permute.xlu1 %2788 }
 0x3ef   : > { %v2753_v44 = vpack.c.bf16 %v2745_v50, %v2741_v39  ;;  %v2807_v9 = vsel %vm752_vm10, %v2789_v43, %v2765_v15  ;;  %v2849_v52 = vpack.c.bf16 %v2837_v47, %v2833_v3  ;;  %v2832_v54 = vmul.f32 %v10065_v8, %v2806_v30 }
 0x3f0   : > { %6641 = vmatmul.mubr.msk.bf16.vlgmr.msra.gmra.mrb[8].mxu0 %vm4600_vm1, %v6891_v2  ;;  %3098 = vrot.lane.b32.xlu1 %v8597_v4, %s12624_s25  ;;  %v2836_v63 = vmul.f32 %v10065_v8, %v2807_v9  ;;  %v10117_v50 = vrot.slane %v10031_v23, %v12664_v48  ;;  %v10121_v47 = vrot.slane %v10031_v23, %v12651_v37 }
 0x3f1   : > { %4856 = vmatpush1.bf16.msra.mxu0 %v2746_v31  ;;  %6643 = vmatmul.mubr.msk.bf16.vlgmr.msra.gmra.mrb[8].mxu1 %vm4600_vm1, %v6891_v2  ;;  %v2779_v53 = vpop.permute.xlu0 %2778  ;;  %v2752_v31 = vpack.c.bf16 %v2744_v20, %v2740_v35 }
 0x3f2   : > { %4857 = vmatprep.subr.bf16.mxu0 %v2751_v40  ;;  %4962 = vmatpush1.bf16.msra.mxu1 %v2748_v57  ;;  %v2794_v58 = vsel %vm752_vm10, %v2779_v53, %v2787_v5  ;;  %v2798_v3 = vsel %vm752_vm10, %v2771_v59, %v2779_v53  ;;  %v2848_v15 = vpack.c.bf16 %v2836_v63, %v2832_v54  ;;  %v2781_v35 = vpop.permute.xlu1 %2780 }
 0x3f3   : > { %3088 = vrot.lane.b32.xlu0 %v8400_v28, %s12624_s25  ;;  %4963 = vmatprep.subr.bf16.mxu1 %v2753_v44  ;;  %v10126_v57 = vmul.f32 %v10073_v33, %v2807_v9  ;;  %v2835_v2 = vmul.f32 %v10085_v51, %v2794_v58  ;;  %v2834_v14 = vmul.f32 %v10076_v26, %v2798_v3 }
 0x3f4   : > { %3090 = vrot.lane.b32.xlu1 %v8406_v29, %s12624_s25  ;;  %v2795_v23 = vsel %vm752_vm10, %v2781_v35, %v2789_v43  ;;  %v2799_v59 = vsel %vm752_vm10, %v2773_v49, %v2781_v35  ;;  %4702 = vmatprep.mubr.bf16.mxu0 %v12663_v34  ;;  %v10145_v40 = vmul.f32 %v10073_v33, %v2806_v30 }
 0x3f5   : > { %4858 = vmatpush1.bf16.msra.mxu0 %v2750_v1  ;;  %v2767_v16 = vpop.permute.xlu0 %2766  ;;  %v2838_v1 = vmul.f32 %v10076_v26, %v2799_v59  ;;  %v2839_v11 = vmul.f32 %v10085_v51, %v2795_v23  ;;  %v10142_v5 = vmul.f32 %v10117_v50, %v2799_v59  ;;  %v10148_v39 = vmul.f32 %v10117_v50, %v2798_v3 }
 0x3f6   : > { %4859 = vmatprep.subr.bf16.mxu0 %v2849_v52  ;;  %4964 = vmatpush1.bf16.msra.mxu1 %v2752_v31  ;;  %v10151_v49 = vmul.f32 %v10121_v47, %v2794_v58  ;;  %v10154_v20 = vmul.f32 %v10121_v47, %v2795_v23  ;;  %v2769_v44 = vpop.permute.xlu1 %2768 }
 0x3f7   : > { %3170 = vrot.lane.b32.xlu0 %v12625_v36, %s12666_s22  ;;  %4808 = vmatprep.mubr.bf16.mxu1 %v12663_v34  ;;  %v2850_v43 = vpack.c.bf16 %v2838_v1, %v2834_v14  ;;  %v2851_v9 = vpack.c.bf16 %v2839_v11, %v2835_v2 }
 0x3f8   : > { %12667 = vst [vmem:[#allocation32_spill] sm:$0xff] %v10151_v49  ;;  %12668 = vst [vmem:[#allocation44_spill] sm:$0xff] %v10154_v20  ;;  %3172 = vrot.lane.b32.xlu1 %v12628_v6, %s12666_s22 }
 0x3f9   : > { %4860 = vmatpush1.bf16.msra.mxu0 %v2848_v15  ;;  %v2775_v53 = vpop.permute.xlu0 %2774  ;;  %4965 = vmatprep.subr.bf16.mxu1 %v2851_v9 }
 0x3fa   : > { %v2804_v63 = vsel %vm752_vm10, %v2767_v16, %v2775_v53  ;;  %4966 = vmatpush1.bf16.msra.mxu1 %v2850_v43  ;;  %v2777_v58 = vpop.permute.xlu1 %2776 }
 0x3fb   : > { %3178 = vrot.lane.b32.xlu0 %v12635_v27, %s12666_s22  ;;  %v2841_v31 = vmul.f32 %v10057_v24, %v2804_v63  ;;  %v2805_v3 = vsel %vm752_vm10, %v2769_v44, %v2777_v58  ;;  %v10175_v2 = vmul.f32 %v10053_v25, %v2804_v63 }
 0x3fc   : > { %3180 = vrot.lane.b32.xlu1 %v12641_v56, %s12666_s22  ;;  %v2845_v35 = vmul.f32 %v10057_v24, %v2805_v3  ;;  %v10181_v14 = vmul.f32 %v10053_v25, %v2805_v3 }
 0x3fd   : > { %v2791_v15 = vpop.permute.xlu0 %2790 }
 0x3fe   : > { %v2808_v23 = vsel %vm752_vm10, %v2791_v15, %v2767_v16  ;;  %v2793_v1 = vpop.permute.xlu1 %2792  ;;  %v2853_v11 = vpack.c.bf16 %v2845_v35, %v2841_v31 }
 0x3ff   : > { %3194 = vrot.lane.b32.xlu0 %v12642_v46, %s12666_s22  ;;  %v2840_v43 = vmul.f32 %v10065_v8, %v2808_v23  ;;  %v10191_v9 = vmul.f32 %v10073_v33, %v2808_v23  ;;  %v2809_v25 = vsel %vm752_vm10, %v2793_v1, %v2769_v44 }
 0x400   : > { %3196 = vrot.lane.b32.xlu1 %v12644_v12, %s12666_s22  ;;  %v2844_v16 = vmul.f32 %v10065_v8, %v2809_v25  ;;  %v10199_v63 = vmul.f32 %v10073_v33, %v2809_v25  ;;  %4861 = vmatprep.subr.bf16.mxu0 %v2853_v11 }
 0x401   : > { %12669 = vst [vmem:[#allocation12_spill] sm:$0xff] %v10191_v9  ;;  %v2783_v24 = vpop.permute.xlu0 %2782 }
 0x402   : > { %12670 = vst [vmem:[#allocation43_spill] sm:$0xff] %v10199_v63  ;;  %v2796_v31 = vsel %vm752_vm10, %v2783_v24, %v2791_v15  ;;  %v2800_v3 = vsel %vm752_vm10, %v2775_v53, %v2783_v24  ;;  %v2852_v35 = vpack.c.bf16 %v2844_v16, %v2840_v43  ;;  %v2785_v30 = vpop.permute.xlu1 %2784 }
 0x403   : > { %3186 = vrot.lane.b32.xlu0 %v12647_v21, %s12666_s22  ;;  %v2842_v23 = vmul.f32 %v10076_v26, %v2800_v3  ;;  %v2843_v44 = vmul.f32 %v10085_v51, %v2796_v31  ;;  %v10212_v33 = vmul.f32 %v10117_v50, %v2800_v3  ;;  %v10215_v15 = vmul.f32 %v10121_v47, %v2796_v31 }
 0x404   : > { %3188 = vrot.lane.b32.xlu1 %v12650_v38, %s12666_s22  ;;  %v2797_v53 = vsel %vm752_vm10, %v2785_v30, %v2793_v1  ;;  %v2801_v11 = vsel %vm752_vm10, %v2777_v58, %v2785_v30  ;;  %v6620_v1 = vld [vmem:[%s12301_s0 + $0x2] ss:$8 sm:$0xf]  ;;  %4862 = vmatpush1.bf16.msra.mxu0 %v2852_v35  ;;  %v6657_v30 = vld [vmem:[%s12301_s0 + $0x44] ss:$8 sm:$0xf]  ;;  %vm12716_vm10 = vmmov %vm12705_vm2 }
 0x405   : > { %12671 = vst [vmem:[#allocation108_spill] sm:$0xff] %v10215_v15  ;;  %v2865_v43 = vpop.permute.xlu0 %2864  ;;  %v2846_v25 = vmul.f32 %v10076_v26, %v2801_v11  ;;  %v2847_v24 = vmul.f32 %v10085_v51, %v2797_v53  ;;  %v10226_v16 = vmul.f32 %v10117_v50, %v2801_v11  ;;  %v10229_v31 = vmul.f32 %v10121_v47, %v2797_v53 }
 0x406   : > { %v2867_v51 = vpop.permute.xlu1 %2866  ;;  %v10244_v3 = vrot.slane %v6620_v1, %v12664_v48  ;;  %v10262_v26 = vrot.slane %v6657_v30, %v12665_v18  ;;  %v10276_v47 = vrot.slane %v6620_v1, %v12651_v37  ;;  %v10283_v52 = vrot.slane %v6620_v1, %v12665_v18 }
 0x407   : > { %3174 = vrot.lane.b32.xlu0 %v12655_v55, %s12666_s22  ;;  %12672 = vst [vmem:[#allocation83_spill] sm:$0xff] %v10229_v31  ;;  %v2854_v58 = vpack.c.bf16 %v2846_v25, %v2842_v23  ;;  %v2855_v50 = vpack.c.bf16 %v2847_v24, %v2843_v44  ;;  %v10249_v23 = vrot.slane %v6657_v30, %v12653_v62 }
 0x408   : > { %3176 = vrot.lane.b32.xlu1 %v12516_v17, %s12666_s22  ;;  %v10259_v24 = vrot.slane %v6620_v1, %v12653_v62  ;;  %v10286_v15 = vrot.slane %v6657_v30, %v12664_v48  ;;  %v10295_v0 = vrot.slane %v6657_v30, %v12651_v37 }
 0x409   : > { %v2873_v35 = vpop.permute.xlu0 %2872  ;;  %4967 = vmatprep.subr.bf16.mxu1 %v2855_v50 }
 0x40a   : > { %v2904_v53 = vsel %vm806_vm11, %v2865_v43, %v2873_v35  ;;  %4968 = vmatpush1.bf16.msra.mxu1 %v2854_v58  ;;  %v2875_v44 = vpop.permute.xlu1 %2874 }
 0x40b   : > { %3182 = vrot.lane.b32.xlu0 %v12522_v19, %s12666_s22  ;;  %v2935_v11 = vmul.f32 %v10244_v3, %v2904_v53  ;;  %v2905_v25 = vsel %vm806_vm11, %v2867_v51, %v2875_v44  ;;  %v10265_v59 = vmul.f32 %v10249_v23, %v2904_v53 }
 0x40c   : > { %3184 = vrot.lane.b32.xlu1 %v8585_v45, %s12666_s22  ;;  %v2939_v58 = vmul.f32 %v10244_v3, %v2905_v25  ;;  %v10271_v50 = vmul.f32 %v10249_v23, %v2905_v25 }
 0x40d   : > { %v2889_v8 = vpop.permute.xlu0 %2888  ;;  %12673 = vst [vmem:[#allocation26_spill] sm:$0xff] %v10265_v59 }
 0x40e   : > { %12674 = vst [vmem:[#allocation48_spill] sm:$0xff] %v10271_v50  ;;  %v2908_v54 = vsel %vm806_vm11, %v2889_v8, %v2865_v43  ;;  %v2891_v53 = vpop.permute.xlu1 %2890  ;;  %v2951_v25 = vpack.c.bf16 %v2939_v58, %v2935_v11 }
 0x40f   : > { %3198 = vrot.lane.b32.xlu0 %v8589_v42, %s12666_s22  ;;  %v2934_v31 = vmul.f32 %v10259_v24, %v2908_v54  ;;  %v10290_v43 = vmul.f32 %v10262_v26, %v2908_v54  ;;  %v2909_v9 = vsel %vm806_vm11, %v2891_v53, %v2867_v51 }
 0x410   : > { %3200 = vrot.lane.b32.xlu1 %v8597_v4, %s12666_s22  ;;  %v2938_v1 = vmul.f32 %v10259_v24, %v2909_v9  ;;  %v10301_v50 = vmul.f32 %v10262_v26, %v2909_v9  ;;  %4863 = vmatprep.subr.bf16.mxu0 %v2951_v25 }
 0x411   : > { %12675 = vst [vmem:[#allocation84_spill] sm:$0xff] %v10290_v43  ;;  %v2881_v59 = vpop.permute.xlu0 %2880 }
 0x412   : > { %12676 = vst [vmem:[#allocation86_spill] sm:$0xff] %v10301_v50  ;;  %v2896_v11 = vsel %vm806_vm11, %v2881_v59, %v2889_v8  ;;  %v2900_v54 = vsel %vm806_vm11, %v2873_v35, %v2881_v59  ;;  %v2950_v51 = vpack.c.bf16 %v2938_v1, %v2934_v31  ;;  %v2883_v63 = vpop.permute.xlu1 %2882 }
 0x413   : > { %3190 = vrot.lane.b32.xlu0 %v8400_v28, %s12666_s22  ;;  %v2936_v30 = vmul.f32 %v10276_v47, %v2900_v54  ;;  %v2937_v58 = vmul.f32 %v10283_v52, %v2896_v11  ;;  %v10314_v49 = vmul.f32 %v10286_v15, %v2900_v54  ;;  %v10317_v8 = vmul.f32 %v10295_v0, %v2896_v11 }
 0x414   : > { %3192 = vrot.lane.b32.xlu1 %v8406_v29, %s12666_s22  ;;  %v2897_v59 = vsel %vm806_vm11, %v2883_v63, %v2891_v53  ;;  %v2901_v31 = vsel %vm806_vm11, %v2875_v44, %v2883_v63  ;;  %4864 = vmatpush1.bf16.msra.mxu0 %v2950_v51 }
 0x415   : > { %12677 = vst [vmem:[#allocation85_spill] sm:$0xff] %v10317_v8  ;;  %v2940_v35 = vmul.f32 %v10276_v47, %v2901_v31  ;;  %v2941_v25 = vmul.f32 %v10283_v52, %v2897_v59  ;;  %v10328_v1 = vmul.f32 %v10286_v15, %v2901_v31  ;;  %v10331_v54 = vmul.f32 %v10295_v0, %v2897_v59  ;;  %v2869_v11 = vpop.permute.xlu0 %2868 }
 0x416   : > { %v2871_v63 = vpop.permute.xlu1 %2870 }
 0x417   : > { %3272 = vrot.lane.b32.xlu0 %v12625_v36, %s12678_s27  ;;  %12679 = vst [vmem:[#allocation49_spill] sm:$0xff] %v10331_v54  ;;  %v2952_v9 = vpack.c.bf16 %v2940_v35, %v2936_v30  ;;  %v2953_v44 = vpack.c.bf16 %v2941_v25, %v2937_v58 }
 0x418   : > { %3274 = vrot.lane.b32.xlu1 %v12628_v6, %s12678_s27 }
 0x419   : > { %4969 = vmatprep.subr.bf16.mxu1 %v2953_v44  ;;  %v2877_v59 = vpop.permute.xlu0 %2876 }
 0x41a   : > { %4970 = vmatpush1.bf16.msra.mxu1 %v2952_v9  ;;  %v2906_v51 = vsel %vm806_vm11, %v2869_v11, %v2877_v59  ;;  %v2879_v30 = vpop.permute.xlu1 %2878 }
 0x41b   : > { %3280 = vrot.lane.b32.xlu0 %v12635_v27, %s12678_s27  ;;  %v2907_v31 = vsel %vm806_vm11, %v2871_v63, %v2879_v30  ;;  %v2943_v58 = vmul.f32 %v10244_v3, %v2906_v51  ;;  %v10349_v35 = vmul.f32 %v10249_v23, %v2906_v51 }
 0x41c   : > { %3282 = vrot.lane.b32.xlu1 %v12641_v56, %s12678_s27  ;;  %v2947_v9 = vmul.f32 %v10244_v3, %v2907_v31  ;;  %v10355_v25 = vmul.f32 %v10249_v23, %v2907_v31 }
 0x41d   : > { %12680 = vst [vmem:[#allocation24_spill] sm:$0xff] %v10349_v35  ;;  %v2893_v44 = vpop.permute.xlu0 %2892 }
 0x41e   : > { %12681 = vst [vmem:[#allocation109_spill] sm:$0xff] %v10355_v25  ;;  %v2910_v43 = vsel %vm806_vm11, %v2893_v44, %v2869_v11  ;;  %v2895_v51 = vpop.permute.xlu1 %2894  ;;  %v2955_v8 = vpack.c.bf16 %v2947_v9, %v2943_v58  ;;  %v6621_v9 = vld [vmem:[%s12301_s0 + $0x3] ss:$8 sm:$0xf] }
 0x41f   : > { %3296 = vrot.lane.b32.xlu0 %v12642_v46, %s12678_s27  ;;  %v2942_v54 = vmul.f32 %v10259_v24, %v2910_v43  ;;  %v2911_v3 = vsel %vm806_vm11, %v2895_v51, %v2871_v63  ;;  %v10367_v23 = vmul.f32 %v10262_v26, %v2910_v43  ;;  %v10457_v25 = vrot.slane %v6621_v9, %v12665_v18 }
 0x420   : > { %3298 = vrot.lane.b32.xlu1 %v12644_v12, %s12678_s27  ;;  %v2946_v31 = vmul.f32 %v10259_v24, %v2911_v3  ;;  %v10373_v11 = vmul.f32 %v10262_v26, %v2911_v3  ;;  %4865 = vmatprep.subr.bf16.mxu0 %v2955_v8 }
 0x421   : > { %12682 = vst [vmem:[#allocation87_spill] sm:$0xff] %v10367_v23  ;;  %v2885_v53 = vpop.permute.xlu0 %2884 }
 0x422   : > { %12683 = vst [vmem:[#allocation110_spill] sm:$0xff] %v10373_v11  ;;  %v2954_v35 = vpack.c.bf16 %v2946_v31, %v2942_v54  ;;  %v2898_v58 = vsel %vm806_vm11, %v2885_v53, %v2893_v44  ;;  %v2902_v63 = vsel %vm806_vm11, %v2877_v59, %v2885_v53  ;;  %v2887_v43 = vpop.permute.xlu1 %2886 }
 0x423   : > { %3288 = vrot.lane.b32.xlu0 %v12647_v21, %s12678_s27  ;;  %v2944_v24 = vmul.f32 %v10276_v47, %v2902_v63  ;;  %v2945_v26 = vmul.f32 %v10283_v52, %v2898_v58  ;;  %v10386_v8 = vmul.f32 %v10286_v15, %v2902_v63  ;;  %v10389_v54 = vmul.f32 %v10295_v0, %v2898_v58 }
 0x424   : > { %3290 = vrot.lane.b32.xlu1 %v12650_v38, %s12678_s27  ;;  %v2899_v53 = vsel %vm806_vm11, %v2887_v43, %v2895_v51  ;;  %v2903_v59 = vsel %vm806_vm11, %v2879_v30, %v2887_v43  ;;  %4866 = vmatpush1.bf16.msra.mxu0 %v2954_v35  ;;  %v6658_v30 = vld [vmem:[%s12301_s0 + $0x45] ss:$8 sm:$0xf]  ;;  %v10420_v51 = vrot.slane %v6621_v9, %v12664_v48  ;;  %vm12717_vm11 = vmmov %vm12705_vm2 }
 0x425   : > { %12684 = vst [vmem:[#allocation45_spill] sm:$0xff] %v10386_v8  ;;  %12685 = vst [vmem:[#allocation88_spill] sm:$0xff] %v10389_v54  ;;  %v2948_v44 = vmul.f32 %v10276_v47, %v2903_v59  ;;  %v2949_v3 = vmul.f32 %v10283_v52, %v2899_v53  ;;  %v10400_v31 = vmul.f32 %v10286_v15, %v2903_v59  ;;  %v2967_v63 = vpop.permute.xlu0 %2966 }
 0x426   : > { %v10403_v58 = vmul.f32 %v10295_v0, %v2899_v53  ;;  %v2969_v47 = vpop.permute.xlu1 %2968  ;;  %v10423_v43 = vrot.slane %v6658_v30, %v12653_v62  ;;  %v10466_v23 = vrot.slane %v6658_v30, %v12651_v37 }
 0x427   : > { %3276 = vrot.lane.b32.xlu0 %v12655_v55, %s12678_s27  ;;  %12686 = vst [vmem:[#allocation90_spill] sm:$0xff] %v10400_v31  ;;  %v2956_v52 = vpack.c.bf16 %v2948_v44, %v2944_v24  ;;  %v2957_v35 = vpack.c.bf16 %v2949_v3, %v2945_v26  ;;  %v10432_v44 = vrot.slane %v6621_v9, %v12653_v62 }
 0x428   : > { %12687 = vst [vmem:[#allocation28_spill] sm:$0xff] %v10403_v58  ;;  %3278 = vrot.lane.b32.xlu1 %v12516_v17, %s12678_s27  ;;  %v10435_v3 = vrot.slane %v6658_v30, %v12665_v18  ;;  %v10448_v58 = vrot.slane %v6621_v9, %v12651_v37  ;;  %v10463_v31 = vrot.slane %v6658_v30, %v12664_v48 }
 0x429   : > { %v2975_v53 = vpop.permute.xlu0 %2974  ;;  %4971 = vmatprep.subr.bf16.mxu1 %v2957_v35 }
 0x42a   : > { %v3006_v24 = vsel %vm860_vm12, %v2967_v63, %v2975_v53  ;;  %4972 = vmatpush1.bf16.msra.mxu1 %v2956_v52  ;;  %v2977_v26 = vpop.permute.xlu1 %2976 }
 0x42b   : > { %3284 = vrot.lane.b32.xlu0 %v12522_v19, %s12678_s27  ;;  %v3007_v59 = vsel %vm860_vm12, %v2969_v47, %v2977_v26  ;;  %v3037_v15 = vmul.f32 %v10420_v51, %v3006_v24  ;;  %v10439_v35 = vmul.f32 %v10423_v43, %v3006_v24 }
 0x42c   : > { %3286 = vrot.lane.b32.xlu1 %v8585_v45, %s12678_s27  ;;  %v3041_v52 = vmul.f32 %v10420_v51, %v3007_v59  ;;  %v10445_v0 = vmul.f32 %v10423_v43, %v3007_v59 }
 0x42d   : > { %12688 = vst [vmem:[#allocation50_spill] sm:$0xff] %v10439_v35  ;;  %v2991_v54 = vpop.permute.xlu0 %2990 }
 0x42e   : > { %12689 = vst [vmem:[#allocation89_spill] sm:$0xff] %v10445_v0  ;;  %v3010_v11 = vsel %vm860_vm12, %v2991_v54, %v2967_v63  ;;  %v2993_v24 = vpop.permute.xlu1 %2992  ;;  %v3053_v50 = vpack.c.bf16 %v3041_v52, %v3037_v15 }
 0x42f   : > { %3300 = vrot.lane.b32.xlu0 %v8589_v42, %s12678_s27  ;;  %v3036_v59 = vmul.f32 %v10432_v44, %v3010_v11  ;;  %v3011_v8 = vsel %vm860_vm12, %v2993_v24, %v2969_v47  ;;  %v10469_v63 = vmul.f32 %v10435_v3, %v3010_v11 }
 0x430   : > { %3302 = vrot.lane.b32.xlu1 %v8597_v4, %s12678_s27  ;;  %v3040_v9 = vmul.f32 %v10432_v44, %v3011_v8  ;;  %v10475_v15 = vmul.f32 %v10435_v3, %v3011_v8  ;;  %4867 = vmatprep.subr.bf16.mxu0 %v3053_v50 }
 0x431   : > { %12690 = vst [vmem:[#allocation29_spill] sm:$0xff] %v10469_v63  ;;  %v2983_v52 = vpop.permute.xlu0 %2982 }
 0x432   : > { %12691 = vst [vmem:[#allocation91_spill] sm:$0xff] %v10475_v15  ;;  %v3052_v47 = vpack.c.bf16 %v3040_v9, %v3036_v59  ;;  %v2998_v35 = vsel %vm860_vm12, %v2983_v52, %v2991_v54  ;;  %v3002_v30 = vsel %vm860_vm12, %v2975_v53, %v2983_v52  ;;  %v2985_v11 = vpop.permute.xlu1 %2984 }
 0x433   : > { %3292 = vrot.lane.b32.xlu0 %v8400_v28, %s12678_s27  ;;  %v3038_v20 = vmul.f32 %v10448_v58, %v3002_v30  ;;  %v3039_v8 = vmul.f32 %v10457_v25, %v2998_v35  ;;  %v10488_v50 = vmul.f32 %v10463_v31, %v3002_v30  ;;  %v10491_v59 = vmul.f32 %v10466_v23, %v2998_v35 }
 0x434   : > { %3294 = vrot.lane.b32.xlu1 %v8406_v29, %s12678_s27  ;;  %v2999_v54 = vsel %vm860_vm12, %v2985_v11, %v2993_v24  ;;  %v3003_v53 = vsel %vm860_vm12, %v2977_v26, %v2985_v11  ;;  %4868 = vmatpush1.bf16.msra.mxu0 %v3052_v47 }
 0x435   : > { %12692 = vst [vmem:[#allocation112_spill] sm:$0xff] %v10488_v50  ;;  %12693 = vst [vmem:[#allocation113_spill] sm:$0xff] %v10491_v59  ;;  %v3042_v9 = vmul.f32 %v10448_v58, %v3003_v53  ;;  %v3043_v52 = vmul.f32 %v10457_v25, %v2999_v54  ;;  %v10502_v30 = vmul.f32 %v10463_v31, %v3003_v53  ;;  %v2971_v0 = vpop.permute.xlu0 %2970 }
 0x436   : > { %v10505_v35 = vmul.f32 %v10466_v23, %v2999_v54  ;;  %v2973_v63 = vpop.permute.xlu1 %2972 }
 0x437   : > { %3374 = vrot.lane.b32.xlu0 %v12625_v36, %s12694_s3  ;;  %12695 = vst [vmem:[#allocation51_spill] sm:$0xff] %v10502_v30  ;;  %v3054_v24 = vpack.c.bf16 %v3042_v9, %v3038_v20  ;;  %v3055_v47 = vpack.c.bf16 %v3043_v52, %v3039_v8 }
 0x438   : > { %12696 = vst [vmem:[#allocation31_spill] sm:$0xff] %v10505_v35  ;;  %3376 = vrot.lane.b32.xlu1 %v12628_v6, %s12694_s3 }
 0x439   : > { %v2979_v53 = vpop.permute.xlu0 %2978  ;;  %4973 = vmatprep.subr.bf16.mxu1 %v3055_v47 }
 0x43a   : > { %v3008_v54 = vsel %vm860_vm12, %v2971_v0, %v2979_v53  ;;  %4974 = vmatpush1.bf16.msra.mxu1 %v3054_v24 }
 0x43b   : > { %3382 = vrot.lane.b32.xlu0 %v12635_v27, %s12694_s3  ;;  %v2981_v20 = vpop.permute.xlu1 %2980  ;;  %v3045_v8 = vmul.f32 %v10420_v51, %v3008_v54  ;;  %v10523_v52 = vmul.f32 %v10423_v43, %v3008_v54 }
 0x43c   : > { %3384 = vrot.lane.b32.xlu1 %v12641_v56, %s12694_s3  ;;  %v3009_v9 = vsel %vm860_vm12, %v2973_v63, %v2981_v20 }
 0x43d   : > { %12697 = vst [vmem:[#allocation92_spill] sm:$0xff] %v10523_v52  ;;  %v3049_v47 = vmul.f32 %v10420_v51, %v3009_v9  ;;  %v10529_v26 = vmul.f32 %v10423_v43, %v3009_v9  ;;  %v2995_v11 = vpop.permute.xlu0 %2994 }
 0x43e   : > { %v3012_v59 = vsel %vm860_vm12, %v2995_v11, %v2971_v0 }
 0x43f   : > { %3398 = vrot.lane.b32.xlu0 %v12642_v46, %s12694_s3  ;;  %12698 = vst [vmem:[#allocation94_spill] sm:$0xff] %v10529_v26  ;;  %v2997_v54 = vpop.permute.xlu1 %2996  ;;  %v3057_v35 = vpack.c.bf16 %v3049_v47, %v3045_v8  ;;  %v3044_v15 = vmul.f32 %v10432_v44, %v3012_v59  ;;  %v10541_v43 = vmul.f32 %v10435_v3, %v3012_v59  ;;  %v6622_v47 = vld [vmem:[%s12301_s0 + $0x4] ss:$8 sm:$0xf] }
 0x440   : > { %3400 = vrot.lane.b32.xlu1 %v12644_v12, %s12694_s3  ;;  %v3013_v51 = vsel %vm860_vm12, %v2997_v54, %v2973_v63 }
 0x441   : > { %12699 = vst [vmem:[#allocation30_spill] sm:$0xff] %v10541_v43  ;;  %v3048_v9 = vmul.f32 %v10432_v44, %v3013_v51  ;;  %v10547_v0 = vmul.f32 %v10435_v3, %v3013_v51  ;;  %4869 = vmatprep.subr.bf16.mxu0 %v3057_v35  ;;  %v2987_v24 = vpop.permute.xlu0 %2986 }
 0x442   : > { %v3000_v8 = vsel %vm860_vm12, %v2987_v24, %v2995_v11  ;;  %v3004_v63 = vsel %vm860_vm12, %v2979_v53, %v2987_v24 }
 0x443   : > { %3390 = vrot.lane.b32.xlu0 %v12647_v21, %s12694_s3  ;;  %12700 = vst [vmem:[#allocation93_spill] sm:$0xff] %v10547_v0  ;;  %v3056_v52 = vpack.c.bf16 %v3048_v9, %v3044_v15  ;;  %v3046_v44 = vmul.f32 %v10448_v58, %v3004_v63  ;;  %v3047_v3 = vmul.f32 %v10457_v25, %v3000_v8 }
 0x444   : > { %3392 = vrot.lane.b32.xlu1 %v12650_v38, %s12694_s3  ;;  %v2989_v59 = vpop.permute.xlu1 %2988  ;;  %v10560_v35 = vmul.f32 %v10463_v31, %v3004_v63  ;;  %v10563_v15 = vmul.f32 %v10466_v23, %v3000_v8 }
 0x445   : > { %v3001_v11 = vsel %vm860_vm12, %v2989_v59, %v2997_v54  ;;  %v3005_v53 = vsel %vm860_vm12, %v2981_v20, %v2989_v59  ;;  %4870 = vmatpush1.bf16.msra.mxu0 %v3056_v52  ;;  %v3069_v63 = vpop.permute.xlu0 %3068  ;;  %v6659_v20 = vld [vmem:[%s12301_s0 + $0x46] ss:$8 sm:$0xf]  ;;  %v10594_v54 = vrot.slane %v6622_v47, %v12664_v48  ;;  %vm12718_vm12 = vmmov %vm12705_vm2 }
 0x446   : > { %12701 = vst [vmem:[#allocation135_spill] sm:$0xff] %v10560_v35  ;;  %12702 = vst [vmem:[#allocation104_spill] sm:$0xff] %v10563_v15  ;;  %v3050_v24 = vmul.f32 %v10448_v58, %v3005_v53  ;;  %v3051_v51 = vmul.f32 %v10457_v25, %v3001_v11  ;;  %v10574_v9 = vmul.f32 %v10463_v31, %v3005_v53 }
 0x447   : > { %3378 = vrot.lane.b32.xlu0 %v12655_v55, %s12694_s3  ;;  %v10577_v8 = vmul.f32 %v10466_v23, %v3001_v11  ;;  %v10597_v59 = vrot.slane %v6659_v20, %v12653_v62  ;;  %v10633_v35 = vrot.slane %v6622_v47, %v12665_v18  ;;  %v10636_v15 = vrot.slane %v6659_v20, %v12664_v48 }
 0x448   : > { %12703 = vst [vmem:[#allocation105_spill] sm:$0xff] %v10574_v9  ;;  %3380 = vrot.lane.b32.xlu1 %v12516_v17, %s12694_s3  ;;  %v3071_v58 = vpop.permute.xlu1 %3070  ;;  %v3058_v25 = vpack.c.bf16 %v3050_v24, %v3046_v44  ;;  %v3059_v52 = vpack.c.bf16 %v3051_v51, %v3047_v3  ;;  %v10606_v24 = vrot.slane %v6622_v47, %v12653_v62 }
 0x449   : > { %12704 = vst [vmem:[#allocation106_spill] sm:$0xff] %v10577_v8  ;;  %v3077_v11 = vpop.permute.xlu0 %3076  ;;  %v10621_v8 = vrot.slane %v6659_v20, %v12665_v18 }
 0x44a   : > { %4975 = vmatprep.subr.bf16.mxu1 %v3059_v52  ;;  %v3108_v44 = vsel %vm12705_vm2, %v3069_v63, %v3077_v11  ;;  %vm12724_vm2 = vmmov %vm12723_vm0 }
 0x44b   : > { %3386 = vrot.lane.b32.xlu0 %v12522_v19, %s12694_s3  ;;  %4976 = vmatpush1.bf16.msra.mxu1 %v3058_v25  ;;  %v3139_v51 = vmul.f32 %v10594_v54, %v3108_v44  ;;  %v10610_v31 = vmul.f32 %v10597_v59, %v3108_v44 }
 0x44c   : > { %3388 = vrot.lane.b32.xlu1 %v8585_v45, %s12694_s3 }
 0x44d   : > { %v3079_v3 = vpop.permute.xlu1 %3078  ;;  %12707 = vst [vmem:[#allocation53_spill] sm:$0xff] %v10610_v31 }
 0x44e   : > { %v3109_v53 = vsel %vm12706_vm3, %v3071_v58, %v3079_v3  ;;  %v3093_v25 = vpop.permute.xlu0 %3092  ;;  %vm12726_vm3 = vcmp.lt.s32.totalorder %v12391_v13, 63 }
 0x44f   : > { %3402 = vrot.lane.b32.xlu0 %v8589_v42, %s12694_s3  ;;  %v3143_v52 = vmul.f32 %v10594_v54, %v3109_v53  ;;  %v10616_v23 = vmul.f32 %v10597_v59, %v3109_v53  ;;  %v3112_v43 = vsel %vm12709_vm4, %v3093_v25, %v3069_v63  ;;  %v10630_v53 = vrot.slane %v6622_v47, %v12651_v37  ;;  %vm12727_vm4 = vmmov %vm12726_vm3 }
 0x450   : > { %3404 = vrot.lane.b32.xlu1 %v8597_v4, %s12694_s3  ;;  %v3138_v31 = vmul.f32 %v10606_v24, %v3112_v43 }
 0x451   : > { %12708 = vst [vmem:[#allocation55_spill] sm:$0xff] %v10616_v23  ;;  %v3095_v44 = vpop.permute.xlu1 %3094  ;;  %v3155_v0 = vpack.c.bf16 %v3143_v52, %v3139_v51  ;;  %v10643_v51 = vrot.slane %v6659_v20, %v12651_v37 }
 0x452   : > { %v3113_v26 = vsel %vm12710_vm5, %v3095_v44, %v3071_v58  ;;  %v6892_v58 = vld [vmem:[%s11923_s9 + $0x20] ss:$12 sps:$4 sm:$0xff]   ;;  %v3085_v52 = vpop.permute.xlu0 %3084  ;;  %vm12730_vm5 = vmmov %vm12726_vm3 }
 0x453   : > { %3394 = vrot.lane.b32.xlu0 %v8400_v28, %s12694_s3  ;;  %v3142_v63 = vmul.f32 %v10606_v24, %v3113_v26  ;;  %4871 = vmatprep.subr.bf16.mxu0 %v3155_v0  ;;  %v10649_v47 = vmul.f32 %v10621_v8, %v3113_v26  ;;  %v3100_v9 = vsel %vm12711_vm6, %v3085_v52, %v3093_v25  ;;  %vm12731_vm6 = vmmov %vm12726_vm3 }
 0x454   : > { %v3104_v50 = vsel %vm12712_vm7, %v3077_v11, %v3085_v52  ;;  %3396 = vrot.lane.b32.xlu1 %v8406_v29, %s12694_s3  ;;  %6642 = vmatmul.mubr.msk.bf16.gmra.mrb[12].mxu0 %vm4600_vm1, %v6892_v58  ;;  %v10659_v0 = vmul.f32 %v10621_v8, %v3112_v43  ;;  %v3141_v30 = vmul.f32 %v10633_v35, %v3100_v9  ;;  %vm12734_vm7 = vmmov %vm12726_vm3  ;;  %s674_s3 = sand.u32 1, %s6985_s28  }
 0x455   : > { %v3154_v23 = vpack.c.bf16 %v3142_v63, %v3138_v31  ;;  %v3087_v20 = vpop.permute.xlu1 %3086  ;;  %v3140_v26 = vmul.f32 %v10630_v53, %v3104_v50  ;;  %v10664_v31 = vmul.f32 %v10636_v15, %v3104_v50  ;;  %6644 = vmatmul.mubr.msk.bf16.gmra.mrb[12].mxu1 %vm4600_vm1, %v6892_v58  ;;  %v10668_v11 = vmul.f32 %v10643_v51, %v3100_v9  ;;  %s6567_s22 = sshll.u32 %s674_s3, 7  ;;  %s11873_s4 = scalar_lea.sflag [#allocation4], %s674_s3 }
 0x456   : > { %v3101_v25 = vsel %vm12714_vm8, %v3087_v20, %v3095_v44  ;;  %v3105_v43 = vsel %vm12715_vm9, %v3079_v3, %v3087_v20  ;;  %v3073_v58 = vpop.permute.xlu0 %3072  ;;  %vm12735_vm8 = vmmov %vm12726_vm3  ;;  %s11832_s25 = scalar_lea.vmem [#allocation3], %s6567_s22  ;;  %s6937_s22 = scalar_lea.vmem %s6936_s2, 4096 }
 0x457   : > { %3476 = vrot.lane.b32.xlu0 %v12625_v36, %s12713_s1  ;;  %4872 = vmatpush1.bf16.msra.mxu0 %v3154_v23  ;;  %v3144_v63 = vmul.f32 %v10630_v53, %v3105_v43  ;;  %v3145_v50 = vmul.f32 %v10633_v35, %v3101_v25  ;;  %v10679_v52 = vmul.f32 %v10636_v15, %v3105_v43  ;;  %v6895_v43 = vld [vmem:[%s11922_s8 + $0x4] ss:$12 sps:$4 sm:$0xff]   ;;  %vm12737_vm9 = vmmov %vm12726_vm3  ;;  %s6501_s26 = sshll.u32 %s11832_s25, 4  ;;  %s11865_s26 = int_to_ptr.vmem [resolvable:$true] %s6501_s26 }
 0x458   : > { %v10682_v9 = vmul.f32 %v10643_v51, %v3101_v25  ;;  %3478 = vrot.lane.b32.xlu1 %v12628_v6, %s12713_s1  ;;  %4887 = vmatprep.mubr.bf16.mxu0 %v6895_v43  ;;  %p6938_p0 = scmp.lt.s32.totalorder %s11865_s26, %s6936_s2 }
 0x459   : > { %v3156_v44 = vpack.c.bf16 %v3144_v63, %v3140_v26  ;;  %v3157_v3 = vpack.c.bf16 %v3145_v50, %v3141_v30  ;;  %4993 = vmatprep.mubr.bf16.mxu1 %v6895_v43 }
 0x45a   : > { %v3075_v25 = vpop.permute.xlu1 %3074 }
 0x45b   : > { %3484 = vrot.lane.b32.xlu0 %v12635_v27, %s12713_s1  ;;  %v3081_v6 = vpop.permute.xlu0 %3080  ;;  %4977 = vmatprep.subr.bf16.mxu1 %v3157_v3 }
 0x45c   : > { %3486 = vrot.lane.b32.xlu1 %v12641_v56, %s12713_s1  ;;  %4978 = vmatpush1.bf16.msra.mxu1 %v3156_v44  ;;  %v3110_v30 = vsel %vm12716_vm10, %v3073_v58, %v3081_v6  ;;  %vm12738_vm10 = vmmov %vm12726_vm3 }
 0x45d   : > { %v3147_v50 = vmul.f32 %v10594_v54, %v3110_v30  ;;  %v10707_v3 = vmul.f32 %v10597_v59, %v3110_v30 }
 0x45e   : > { %v3083_v27 = vpop.permute.xlu1 %3082 }
 0x45f   : > { %3500 = vrot.lane.b32.xlu0 %v12642_v46, %s12713_s1  ;;  %v3111_v26 = vsel %vm12717_vm11, %v3075_v25, %v3083_v27  ;;  %v3097_v63 = vpop.permute.xlu0 %3096  ;;  %vm12740_vm11 = vmmov %vm12726_vm3 }
 0x460   : > { %v3151_v56 = vmul.f32 %v10594_v54, %v3111_v26  ;;  %v10711_v44 = vmul.f32 %v10597_v59, %v3111_v26  ;;  %3502 = vrot.lane.b32.xlu1 %v12644_v12, %s12713_s1  ;;  %v3114_v46 = vsel %vm12718_vm12, %v3097_v63, %v3073_v58  ;;  %vm12741_vm12 = vmmov %vm12726_vm3 }
 0x461   : > { %v3146_v59 = vmul.f32 %v10606_v24, %v3114_v46  ;;  %v10731_v58 = vmul.f32 %v10621_v8, %v3114_v46 }
 0x462   : > { %v3099_v23 = vpop.permute.xlu1 %3098  ;;  %v3159_v30 = vpack.c.bf16 %v3151_v56, %v3147_v50 }
 0x463   : > { %3492 = vrot.lane.b32.xlu0 %v12647_v21, %s12713_s1  ;;  %v3115_v54 = vsel %vm12719_vm13, %v3099_v23, %v3075_v25  ;;  %vm12744_vm13 = vmmov %vm12726_vm3 }
 0x464   : > { %v3150_v26 = vmul.f32 %v10606_v24, %v3115_v54  ;;  %v10726_v12 = vmul.f32 %v10621_v8, %v3115_v54  ;;  %3494 = vrot.lane.b32.xlu1 %v12650_v38, %s12713_s1  ;;  %4873 = vmatprep.subr.bf16.mxu0 %v3159_v30 }
 0x465   : > { %v3089_v36 = vpop.permute.xlu0 %3088 }
 0x466   : > { %v3102_v21 = vsel %vm12720_vm14, %v3089_v36, %v3097_v63  ;;  %v3106_v25 = vsel %vm12721_vm15, %v3081_v6, %v3089_v36  ;;  %v3158_v50 = vpack.c.bf16 %v3150_v26, %v3146_v59  ;;  %v3091_v38 = vpop.permute.xlu1 %3090  ;;  %vm12745_vm14 = vmmov %vm12726_vm3 }
 0x467   : > { %v3148_v24 = vmul.f32 %v10630_v53, %v3106_v25  ;;  %v3149_v56 = vmul.f32 %v10633_v35, %v3102_v21  ;;  %v10740_v54 = vmul.f32 %v10636_v15, %v3106_v25  ;;  %3480 = vrot.lane.b32.xlu0 %v12655_v55, %s12713_s1  ;;  %v10745_v8 = vmul.f32 %v10643_v51, %v3102_v21  ;;  %vm12748_vm15 = vmmov %vm12726_vm3 }
 0x468   : > { %v3103_v63 = vsel %vm12723_vm0, %v3091_v38, %v3099_v23  ;;  %v3107_v36 = vsel %vm12724_vm2, %v3083_v27, %v3091_v38  ;;  %3482 = vrot.lane.b32.xlu1 %v12516_v17, %s12713_s1  ;;  %4874 = vmatpush1.bf16.msra.mxu0 %v3158_v50  ;;  %v6623_v23 = vld [vmem:[%s12301_s0 + $0x5] ss:$8 sm:$0xf]  ;;  %vm12749_vm0 = vmmov %vm12726_vm3 }
 0x469   : > { %12722 = vst [vmem:[#allocation37_spill] sm:$0xff] %v10745_v8  ;;  %v3152_v46 = vmul.f32 %v10630_v53, %v3107_v36  ;;  %v3153_v30 = vmul.f32 %v10633_v35, %v3103_v63  ;;  %v10756_v59 = vmul.f32 %v10636_v15, %v3107_v36  ;;  %v10759_v55 = vmul.f32 %v10643_v51, %v3103_v63  ;;  %v3171_v26 = vpop.permute.xlu0 %3170  ;;  %v6660_v53 = vld [vmem:[%s12301_s0 + $0x47] ss:$8 sm:$0xf]  ;;  %vm12752_vm2 = vmmov %vm12749_vm0 }
 0x46a   : > { %v3173_v51 = vpop.permute.xlu1 %3172  ;;  %v10776_v21 = vrot.slane %v6623_v23, %v12664_v48  ;;  %v10779_v25 = vrot.slane %v6660_v53, %v12653_v62  ;;  %v10790_v38 = vrot.slane %v6623_v23, %v12653_v62  ;;  %v10815_v15 = vrot.slane %v6623_v23, %v12665_v18 }
 0x46b   : > { %12725 = vst [vmem:[#allocation136_spill] sm:$0xff] %v10759_v55  ;;  %v3160_v35 = vpack.c.bf16 %v3152_v46, %v3148_v24  ;;  %3488 = vrot.lane.b32.xlu0 %v12522_v19, %s12713_s1  ;;  %v3161_v27 = vpack.c.bf16 %v3153_v30, %v3149_v56  ;;  %v10823_v43 = vrot.slane %v6660_v53, %v12651_v37 }
 0x46c   : > { %3490 = vrot.lane.b32.xlu1 %v8585_v45, %s12713_s1 }
 0x46d   : > { %v3179_v50 = vpop.permute.xlu0 %3178  ;;  %4979 = vmatprep.subr.bf16.mxu1 %v3161_v27  ;;  %v10808_v27 = vrot.slane %v6623_v23, %v12651_v37 }
 0x46e   : > { %v3210_v24 = vsel %vm12726_vm3, %v3171_v26, %v3179_v50  ;;  %4980 = vmatpush1.bf16.msra.mxu1 %v3160_v35  ;;  %v3181_v19 = vpop.permute.xlu1 %3180  ;;  %vm12753_vm3 = vmmov %vm12749_vm0 }
 0x46f   : > { %3504 = vrot.lane.b32.xlu0 %v8589_v42, %s12713_s1  ;;  %v3211_v56 = vsel %vm12727_vm4, %v3173_v51, %v3181_v19  ;;  %v3241_v63 = vmul.f32 %v10776_v21, %v3210_v24  ;;  %v10794_v36 = vmul.f32 %v10779_v25, %v3210_v24  ;;  %v10803_v42 = vrot.slane %v6660_v53, %v12665_v18  ;;  %v5897_v24 = vld [vmem:[%s11925_s11] sm:$0xff] }
 0x470   : > { %v3245_v45 = vmul.f32 %v10776_v21, %v3211_v56  ;;  %v10798_v46 = vmul.f32 %v10779_v25, %v3211_v56  ;;  %3506 = vrot.lane.b32.xlu1 %v8597_v4, %s12713_s1  ;;  %v10818_v4 = vrot.slane %v6660_v53, %v12664_v48  ;;  %vm12756_vm4 = vcmp.lt.s32.totalorder %v12391_v13, 57 }
 0x471   : > { %12728 = vst [vmem:[#allocation137_spill] sm:$0xff] %v10794_v36  ;;  %v3195_v30 = vpop.permute.xlu0 %3194 }
 0x472   : > { %12729 = vst [vmem:[#allocation133_spill] sm:$0xff] %v10798_v46  ;;  %v3214_v35 = vsel %vm12730_vm5, %v3195_v30, %v3171_v26  ;;  %v3197_v56 = vpop.permute.xlu1 %3196  ;;  %v3257_v6 = vpack.c.bf16 %v3245_v45, %v3241_v63  ;;  %v5898_v45 = vld [vmem:[%s11925_s11 + $0x8] sm:$0xff]  ;;  %vm12757_vm5 = vmmov %vm12756_vm4 }
 0x473   : > { %3496 = vrot.lane.b32.xlu0 %v8400_v28, %s12713_s1  ;;  %v3215_v26 = vsel %vm12731_vm6, %v3197_v56, %v3173_v51  ;;  %v3240_v28 = vmul.f32 %v10790_v38, %v3214_v35  ;;  %v10836_v51 = vmul.f32 %v10803_v42, %v3214_v35  ;;  %vm12760_vm6 = vmmov %vm12756_vm4 }
 0x474   : > { %v3244_v17 = vmul.f32 %v10790_v38, %v3215_v26  ;;  %v10831_v23 = vmul.f32 %v10803_v42, %v3215_v26  ;;  %3498 = vrot.lane.b32.xlu1 %v8406_v29, %s12713_s1  ;;  %4875 = vmatprep.subr.bf16.mxu0 %v3257_v6  ;;  %s13008_s1 = sld [smem:[#allocation146_spill]] }
 0x475   : > { %v3187_v20 = vpop.permute.xlu0 %3186  ;;  %12733 = vst [vmem:[#allocation52_spill] sm:$0xff] %v10836_v51 }
 0x476   : > { %12732 = vst [vmem:[#allocation134_spill] sm:$0xff] %v10831_v23  ;;  %v3202_v53 = vsel %vm12734_vm7, %v3187_v20, %v3195_v30  ;;  %v3206_v63 = vsel %vm12735_vm8, %v3179_v50, %v3187_v20  ;;  %v3256_v26 = vpack.c.bf16 %v3244_v17, %v3240_v28  ;;  %v3189_v6 = vpop.permute.xlu1 %3188  ;;  %v5899_v17 = vld [vmem:[%s11925_s11 + $0x10] sm:$0xff]  ;;  %vm12761_vm7 = vmmov %vm12756_vm4 }
 0x477   : > { %v3242_v8 = vmul.f32 %v10808_v27, %v3206_v63  ;;  %v3243_v55 = vmul.f32 %v10815_v15, %v3202_v53  ;;  %v10848_v29 = vmul.f32 %v10818_v4, %v3206_v63  ;;  %5903 = vperm.xlu0 %6866, %v5897_v24   ;;  %v10851_v35 = vmul.f32 %v10823_v43, %v3202_v53  ;;  %vm12764_vm8 = vmmov %vm12756_vm4 }
 0x478   : > { %v3203_v20 = vsel %vm12737_vm9, %v3189_v6, %v3197_v56  ;;  %v3207_v50 = vsel %vm12738_vm10, %v3181_v19, %v3189_v6  ;;  %5908 = vperm.xlu1 %6865, %v5898_v45   ;;  %4876 = vmatpush1.bf16.msra.mxu0 %v3256_v26  ;;  %v5937_v19 = vld [vmem:[%s11926_s12] sm:$0xff]  ;;  %vm12765_vm9 = vmmov %vm12756_vm4 }
 0x479   : > { %12736 = vst [vmem:[#allocation54_spill] sm:$0xff] %v10851_v35  ;;  %v3246_v28 = vmul.f32 %v10808_v27, %v3207_v50  ;;  %v3247_v24 = vmul.f32 %v10815_v15, %v3203_v20  ;;  %v10865_v53 = vmul.f32 %v10818_v4, %v3207_v50  ;;  %v10868_v63 = vmul.f32 %v10823_v43, %v3203_v20  ;;  %v3175_v56 = vpop.permute.xlu0 %3174  ;;  %v5938_v20 = vld [vmem:[%s11926_s12 + $0x8] sm:$0xff]  ;;  %v5977_v50 = vld [vmem:[%s11927_s13] sm:$0xff]  ;;  %vm12768_vm10 = vmmov %vm12756_vm4 }
 0x47a   : > { %v3177_v51 = vpop.permute.xlu1 %3176  ;;  %s11863_s23 = scalar_lea.hbm %s13008_s1, %s6692_s5 }
 0x47b   : > { %12739 = vst [vmem:[#allocation33_spill] sm:$0xff] %v10868_v63  ;;  %v3258_v6 = vpack.c.bf16 %v3246_v28, %v3242_v8  ;;  %5913 = vperm.xlu0 %6866, %v5899_v17   ;;  %v3259_v23 = vpack.c.bf16 %v3247_v24, %v3243_v55  ;;  %v5900_v8 = vld [vmem:[%s11925_s11 + $0x18] sm:$0xff]  ;;  %v5939_v28 = vld [vmem:[%s11926_s12 + $0x10] sm:$0xff] }
 0x47c   : > { %5943 = vperm.xlu1 %6865, %v5937_v19  }
 0x47d   : > { %v3183_v45 = vpop.permute.xlu0 %3182  ;;  %4981 = vmatprep.subr.bf16.mxu1 %v3259_v23 }
 0x47e   : > { %v3212_v26 = vsel %vm12740_vm11, %v3175_v56, %v3183_v45  ;;  %4982 = vmatpush1.bf16.msra.mxu1 %v3258_v6  ;;  %v3185_v55 = vpop.permute.xlu1 %3184  ;;  %vm12769_vm11 = vmmov %vm12756_vm4 }
 0x47f   : > { %5948 = vperm.xlu0 %6866, %v5938_v20   ;;  %v3213_v17 = vsel %vm12741_vm12, %v3177_v51, %v3185_v55  ;;  %v3249_v24 = vmul.f32 %v10776_v21, %v3212_v26  ;;  %v10892_v23 = vmul.f32 %v10779_v25, %v3212_v26  ;;  %vm12772_vm12 = vmmov %vm12756_vm4 }
 0x480   : > { %v3253_v19 = vmul.f32 %v10776_v21, %v3213_v17  ;;  %v10896_v6 = vmul.f32 %v10779_v25, %v3213_v17  ;;  %5918 = vperm.xlu1 %6865, %v5900_v8   ;;  %v5978_v25 = vld [vmem:[%s11927_s13 + $0x8] sm:$0xff] }
 0x481   : > { %12742 = vst [vmem:[#allocation114_spill] sm:$0xff] %v10892_v23  ;;  %v3199_v30 = vpop.permute.xlu0 %3198 }
 0x482   : > { %12743 = vst [vmem:[#allocation36_spill] sm:$0xff] %v10896_v6  ;;  %v3216_v20 = vsel %vm12744_vm13, %v3199_v30, %v3175_v56  ;;  %v3201_v26 = vpop.permute.xlu1 %3200  ;;  %v3261_v63 = vpack.c.bf16 %v3253_v19, %v3249_v24  ;;  %v5940_v19 = vld [vmem:[%s11926_s12 + $0x18] sm:$0xff]  ;;  %vm12773_vm13 = vmmov %vm12756_vm4 }
 0x483   : > { %5953 = vperm.xlu0 %6866, %v5939_v28   ;;  %v3217_v21 = vsel %vm12745_vm14, %v3201_v26, %v3177_v51  ;;  %v3248_v8 = vmul.f32 %v10790_v38, %v3216_v20  ;;  %v10916_v28 = vmul.f32 %v10803_v42, %v3216_v20  ;;  %vm12776_vm14 = vmmov %vm12756_vm4 }
 0x484   : > { %v3252_v56 = vmul.f32 %v10790_v38, %v3217_v21  ;;  %v10913_v17 = vmul.f32 %v10803_v42, %v3217_v21  ;;  %5983 = vperm.xlu1 %6865, %v5977_v50   ;;  %4877 = vmatprep.subr.bf16.mxu0 %v3261_v63 }
 0x485   : > { %v3191_v36 = vpop.permute.xlu0 %3190  ;;  %12747 = vst [vmem:[#allocation34_spill] sm:$0xff] %v10916_v28 }
 0x486   : > { %12746 = vst [vmem:[#allocation115_spill] sm:$0xff] %v10913_v17  ;;  %v3204_v51 = vsel %vm12748_vm15, %v3191_v36, %v3199_v30  ;;  %v3208_v24 = vsel %vm12749_vm0, %v3183_v45, %v3191_v36  ;;  %v3260_v38 = vpack.c.bf16 %v3252_v56, %v3248_v8  ;;  %v3193_v42 = vpop.permute.xlu1 %3192  ;;  %v5979_v45 = vld [vmem:[%s11927_s13 + $0x10] sm:$0xff]  ;;  %vm12777_vm15 = vmmov %vm12756_vm4 }
 0x487   : > { %v3250_v21 = vmul.f32 %v10808_v27, %v3208_v24  ;;  %v3251_v35 = vmul.f32 %v10815_v15, %v3204_v51  ;;  %v10928_v63 = vmul.f32 %v10818_v4, %v3208_v24  ;;  %5988 = vperm.xlu0 %6866, %v5978_v25   ;;  %v10931_v50 = vmul.f32 %v10823_v43, %v3204_v51  ;;  %v6661_v24 = vld [vmem:[%s12301_s0 + $0x60] ss:$8 sm:$0xf]  ;;  %vm12780_vm0 = vmmov %vm12756_vm4 }
 0x488   : > { %v3205_v36 = vsel %vm12752_vm2, %v3193_v42, %v3201_v26  ;;  %v3209_v30 = vsel %vm12753_vm3, %v3185_v55, %v3193_v42  ;;  %5958 = vperm.xlu1 %6865, %v5940_v19   ;;  %v6624_v55 = vld [vmem:[%s12301_s0 + $0x6] ss:$8 sm:$0xf]  ;;  %4878 = vmatpush1.bf16.msra.mxu0 %v3260_v38  ;;  %v10991_v6 = vrot.slane %v6661_v24, %v12651_v37  ;;  %vm12781_vm2 = vmmov %vm12780_vm0 }
 0x489   : > { %12750 = vst [vmem:[#allocation117_spill] sm:$0xff] %v10928_v63  ;;  %12751 = vst [vmem:[#allocation56_spill] sm:$0xff] %v10931_v50  ;;  %v3254_v8 = vmul.f32 %v10808_v27, %v3209_v30  ;;  %v3255_v25 = vmul.f32 %v10815_v15, %v3205_v36  ;;  %v10945_v56 = vmul.f32 %v10818_v4, %v3209_v30  ;;  %v3273_v26 = vpop.permute.xlu0 %3272  ;;  %v5980_v15 = vld [vmem:[%s11927_s13 + $0x18] sm:$0xff] }
 0x48a   : > { %v10948_v51 = vmul.f32 %v10823_v43, %v3205_v36  ;;  %v3275_v4 = vpop.permute.xlu1 %3274  ;;  %v3329_v38 = vrot.slane %v6624_v55, %v12664_v48  ;;  %v5396_v36 = vrot.slane %v6661_v24, %v12653_v62  ;;  %v10983_v17 = vrot.slane %v6624_v55, %v12665_v18  ;;  %vm12784_vm3 = vmmov %vm12780_vm0 }
 0x48b   : > { %12754 = vst [vmem:[#allocation57_spill] sm:$0xff] %v10945_v56  ;;  %v3262_v27 = vpack.c.bf16 %v3254_v8, %v3250_v21  ;;  %5993 = vperm.xlu0 %6866, %v5979_v45   ;;  %v3263_v19 = vpack.c.bf16 %v3255_v25, %v3251_v35  ;;  %v3325_v35 = vrot.slane %v6624_v55, %v12653_v62 }
 0x48c   : > { %12755 = vst [vmem:[#allocation96_spill] sm:$0xff] %v10948_v51  ;;  %5998 = vperm.xlu1 %6865, %v5980_v15   ;;  %v5408_v15 = vrot.slane %v6661_v24, %v12665_v18 }
 0x48d   : > { %v3281_v30 = vpop.permute.xlu0 %3280  ;;  %4983 = vmatprep.subr.bf16.mxu1 %v3263_v19 }
 0x48e   : > { %v3312_v20 = vsel %vm12756_vm4, %v3273_v26, %v3281_v30  ;;  %4984 = vmatpush1.bf16.msra.mxu1 %v3262_v27  ;;  %v3283_v21 = vpop.permute.xlu1 %3282  ;;  %v10978_v27 = vrot.slane %v6624_v55, %v12651_v37  ;;  %vm12785_vm4 = vmmov %vm12780_vm0 }
 0x48f   : > { %v3313_v45 = vsel %vm12757_vm5, %v3275_v4, %v3283_v21  ;;  %v3343_v8 = vmul.f32 %v3329_v38, %v3312_v20  ;;  %v10970_v25 = vmul.f32 %v5396_v36, %v3312_v20  ;;  %v10986_v20 = vrot.slane %v6661_v24, %v12664_v48 }
 0x490   : > { %v3347_v43 = vmul.f32 %v3329_v38, %v3313_v45  ;;  %v10972_v42 = vmul.f32 %v5396_v36, %v3313_v45  ;;  %vm12788_vm5 = vcmp.lt.s32.totalorder %v12391_v13, 56 }
 0x491   : > { %12758 = vst [vmem:[#allocation98_spill] sm:$0xff] %v10970_v25  ;;  %v3297_v50 = vpop.permute.xlu0 %3296 }
 0x492   : > { %12759 = vst [vmem:[#allocation120_spill] sm:$0xff] %v10972_v42  ;;  %v3316_v19 = vsel %vm12760_vm6, %v3297_v50, %v3273_v26  ;;  %v3299_v28 = vpop.permute.xlu1 %3298  ;;  %v3359_v45 = vpack.c.bf16 %v3347_v43, %v3343_v8  ;;  %vm12789_vm6 = vmmov %vm12788_vm5 }
 0x493   : > { %v3317_v23 = vsel %vm12761_vm7, %v3299_v28, %v3275_v4  ;;  %v3342_v26 = vmul.f32 %v3325_v35, %v3316_v19  ;;  %v10995_v51 = vmul.f32 %v5408_v15, %v3316_v19  ;;  %vm12792_vm7 = vmmov %vm12788_vm5 }
 0x494   : > { %v3346_v63 = vmul.f32 %v3325_v35, %v3317_v23  ;;  %v10993_v56 = vmul.f32 %v5408_v15, %v3317_v23  ;;  %4879 = vmatprep.subr.bf16.mxu0 %v3359_v45 }
 0x495   : > { %v3289_v46 = vpop.permute.xlu0 %3288  ;;  %12763 = vst [vmem:[#allocation97_spill] sm:$0xff] %v10995_v51 }
 0x496   : > { %12762 = vst [vmem:[#allocation95_spill] sm:$0xff] %v10993_v56  ;;  %v3304_v55 = vsel %vm12764_vm8, %v3289_v46, %v3297_v50  ;;  %v3308_v43 = vsel %vm12765_vm9, %v3281_v30, %v3289_v46  ;;  %v3358_v8 = vpack.c.bf16 %v3346_v63, %v3342_v26  ;;  %v3291_v23 = vpop.permute.xlu1 %3290  ;;  %vm12793_vm8 = vmmov %vm12788_vm5 }
 0x497   : > { %v3344_v4 = vmul.f32 %v10978_v27, %v3308_v43  ;;  %v3345_v24 = vmul.f32 %v10983_v17, %v3304_v55  ;;  %v11004_v25 = vmul.f32 %v10986_v20, %v3308_v43  ;;  %v11007_v42 = vmul.f32 %v10991_v6, %v3304_v55  ;;  %vm12796_vm9 = vmmov %vm12788_vm5 }
 0x498   : > { %v3305_v19 = vsel %vm12768_vm10, %v3291_v23, %v3299_v28  ;;  %v3309_v50 = vsel %vm12769_vm11, %v3283_v21, %v3291_v23  ;;  %4880 = vmatpush1.bf16.msra.mxu0 %v3358_v8  ;;  %vm12797_vm10 = vmmov %vm12788_vm5 }
 0x499   : > { %12766 = vst [vmem:[#allocation38_spill] sm:$0xff] %v11004_v25  ;;  %12767 = vst [vmem:[#allocation58_spill] sm:$0xff] %v11007_v42  ;;  %v3348_v63 = vmul.f32 %v10978_v27, %v3309_v50  ;;  %v3349_v30 = vmul.f32 %v10983_v17, %v3305_v19  ;;  %v11018_v45 = vmul.f32 %v10986_v20, %v3309_v50  ;;  %v3277_v55 = vpop.permute.xlu0 %3276 }
 0x49a   : > { %v11021_v26 = vmul.f32 %v10991_v6, %v3305_v19  ;;  %v3279_v21 = vpop.permute.xlu1 %3278  ;;  %vm12800_vm11 = vmmov %vm12788_vm5 }
 0x49b   : > { %12770 = vst [vmem:[#allocation40_spill] sm:$0xff] %v11018_v45  ;;  %v3360_v43 = vpack.c.bf16 %v3348_v63, %v3344_v4  ;;  %v3361_v23 = vpack.c.bf16 %v3349_v30, %v3345_v24 }
 0x49c   : > { %12771 = vst [vmem:[#allocation107_spill] sm:$0xff] %v11021_v26 }
 0x49d   : > { %v3285_v51 = vpop.permute.xlu0 %3284  ;;  %4985 = vmatprep.subr.bf16.mxu1 %v3361_v23 }
 0x49e   : > { %v3314_v50 = vsel %vm12772_vm12, %v3277_v55, %v3285_v51  ;;  %4986 = vmatpush1.bf16.msra.mxu1 %v3360_v43  ;;  %v3287_v56 = vpop.permute.xlu1 %3286  ;;  %vm12801_vm12 = vmmov %vm12788_vm5 }
 0x49f   : > { %v3315_v19 = vsel %vm12773_vm13, %v3279_v21, %v3287_v56  ;;  %v3351_v8 = vmul.f32 %v3329_v38, %v3314_v50  ;;  %v11031_v4 = vmul.f32 %v5396_v36, %v3314_v50  ;;  %vm12804_vm13 = vmmov %vm12788_vm5 }
 0x4a0   : > { %v3355_v63 = vmul.f32 %v3329_v38, %v3315_v19  ;;  %v11033_v28 = vmul.f32 %v5396_v36, %v3315_v19 }
 0x4a1   : > { %12774 = vst [vmem:[#allocation121_spill] sm:$0xff] %v11031_v4  ;;  %v3301_v24 = vpop.permute.xlu0 %3300 }
 0x4a2   : > { %12775 = vst [vmem:[#allocation59_spill] sm:$0xff] %v11033_v28  ;;  %v3318_v30 = vsel %vm12776_vm14, %v3301_v24, %v3277_v55  ;;  %v3303_v46 = vpop.permute.xlu1 %3302  ;;  %v3363_v42 = vpack.c.bf16 %v3355_v63, %v3351_v8  ;;  %vm12805_vm14 = vmmov %vm12788_vm5 }
 0x4a3   : > { %v3319_v43 = vsel %vm12777_vm15, %v3303_v46, %v3279_v21  ;;  %v3350_v26 = vmul.f32 %v3325_v35, %v3318_v30  ;;  %v11043_v38 = vmul.f32 %v5408_v15, %v3318_v30  ;;  %vm12808_vm15 = vmmov %vm12788_vm5 }
 0x4a4   : > { %v3354_v25 = vmul.f32 %v3325_v35, %v3319_v43  ;;  %v11041_v45 = vmul.f32 %v5408_v15, %v3319_v43  ;;  %4881 = vmatprep.subr.bf16.mxu0 %v3363_v42 }
 0x4a5   : > { %v3293_v50 = vpop.permute.xlu0 %3292  ;;  %12779 = vst [vmem:[#allocation122_spill] sm:$0xff] %v11043_v38 }
 0x4a6   : > { %12778 = vst [vmem:[#allocation41_spill] sm:$0xff] %v11041_v45  ;;  %v3306_v36 = vsel %vm12780_vm0, %v3293_v50, %v3301_v24  ;;  %v3310_v55 = vsel %vm12781_vm2, %v3285_v51, %v3293_v50  ;;  %v3362_v19 = vpack.c.bf16 %v3354_v25, %v3350_v26  ;;  %v3295_v35 = vpop.permute.xlu1 %3294  ;;  %vm12809_vm0 = vmmov %vm12788_vm5 }
 0x4a7   : > { %v3352_v8 = vmul.f32 %v10978_v27, %v3310_v55  ;;  %v3353_v63 = vmul.f32 %v10983_v17, %v3306_v36  ;;  %v11052_v21 = vmul.f32 %v10986_v20, %v3310_v55  ;;  %v11055_v43 = vmul.f32 %v10991_v6, %v3306_v36  ;;  %vm12812_vm2 = vmmov %vm12809_vm0 }
 0x4a8   : > { %v3307_v42 = vsel %vm12784_vm3, %v3295_v35, %v3303_v46  ;;  %v3311_v15 = vsel %vm12785_vm4, %v3287_v56, %v3295_v35  ;;  %4882 = vmatpush1.bf16.msra.mxu0 %v3362_v19  ;;  %v6625_v46 = vld [vmem:[%s12301_s0 + $0x7] ss:$8 sm:$0xf]  ;;  %v6662_v56 = vld [vmem:[%s12301_s0 + $0x61] ss:$8 sm:$0xf]  ;;  %vm12813_vm3 = vmmov %vm12809_vm0 }
 0x4a9   : > { %12782 = vst [vmem:[#allocation100_spill] sm:$0xff] %v11052_v21  ;;  %12783 = vst [vmem:[#allocation39_spill] sm:$0xff] %v11055_v43  ;;  %v3356_v25 = vmul.f32 %v10978_v27, %v3311_v15  ;;  %v3357_v26 = vmul.f32 %v10983_v17, %v3307_v42  ;;  %v11066_v24 = vmul.f32 %v10986_v20, %v3311_v15  ;;  %v3375_v50 = vpop.permute.xlu0 %3374 }
 0x4aa   : > { %v11069_v30 = vmul.f32 %v10991_v6, %v3307_v42  ;;  %v3377_v27 = vpop.permute.xlu1 %3376  ;;  %v3431_v55 = vrot.slane %v6625_v46, %v12664_v48  ;;  %v5450_v19 = vrot.slane %v6662_v56, %v12653_v62  ;;  %v5462_v6 = vrot.slane %v6662_v56, %v12665_v18  ;;  %vm12815_vm4 = vmmov %vm12809_vm0 }
 0x4ab   : > { %12786 = vst [vmem:[#allocation102_spill] sm:$0xff] %v11066_v24  ;;  %v3364_v36 = vpack.c.bf16 %v3356_v25, %v3352_v8  ;;  %v3365_v20 = vpack.c.bf16 %v3357_v26, %v3353_v63  ;;  %v3427_v25 = vrot.slane %v6625_v46, %v12653_v62  ;;  %v11101_v38 = vrot.slane %v6625_v46, %v12665_v18 }
 0x4ac   : > { %12787 = vst [vmem:[#allocation99_spill] sm:$0xff] %v11069_v30  ;;  %v11109_v4 = vrot.slane %v6662_v56, %v12651_v37 }
 0x4ad   : > { %v3383_v35 = vpop.permute.xlu0 %3382  ;;  %4987 = vmatprep.subr.bf16.mxu1 %v3365_v20 }
 0x4ae   : > { %v3414_v42 = vsel %vm12788_vm5, %v3375_v50, %v3383_v35  ;;  %4988 = vmatpush1.bf16.msra.mxu1 %v3364_v36  ;;  %v3385_v15 = vpop.permute.xlu1 %3384  ;;  %v11096_v36 = vrot.slane %v6625_v46, %v12651_v37  ;;  %vm12816_vm5 = vmmov %vm12809_vm0 }
 0x4af   : > { %v3415_v8 = vsel %vm12789_vm6, %v3377_v27, %v3385_v15  ;;  %v3445_v63 = vmul.f32 %v3431_v55, %v3414_v42  ;;  %v11088_v26 = vmul.f32 %v5450_v19, %v3414_v42  ;;  %v11104_v42 = vrot.slane %v6662_v56, %v12664_v48 }
 0x4b0   : > { %v3449_v17 = vmul.f32 %v3431_v55, %v3415_v8  ;;  %v11090_v51 = vmul.f32 %v5450_v19, %v3415_v8  ;;  %vm12818_vm6 = vcmp.lt.s32.totalorder %v12391_v13, 55  ;;  %v12838_v13 = vld [vmem:[#allocation72_spill] sm:$0xff] }
 0x4b1   : > { %12790 = vst [vmem:[#allocation101_spill] sm:$0xff] %v11088_v26  ;;  %v3399_v23 = vpop.permute.xlu0 %3398 }
 0x4b2   : > { %12791 = vst [vmem:[#allocation60_spill] sm:$0xff] %v11090_v51  ;;  %v3418_v20 = vsel %vm12792_vm7, %v3399_v23, %v3375_v50  ;;  %v3401_v30 = vpop.permute.xlu1 %3400  ;;  %v3461_v8 = vpack.c.bf16 %v3449_v17, %v3445_v63  ;;  %vm12819_vm7 = vmmov %vm12818_vm6 }
 0x4b3   : > { %v3419_v45 = vsel %vm12793_vm8, %v3401_v30, %v3377_v27  ;;  %v3444_v50 = vmul.f32 %v3427_v25, %v3418_v20  ;;  %v11113_v43 = vmul.f32 %v5462_v6, %v3418_v20  ;;  %vm12821_vm8 = vmmov %vm12818_vm6 }
 0x4b4   : > { %v3448_v28 = vmul.f32 %v3427_v25, %v3419_v45  ;;  %v11111_v21 = vmul.f32 %v5462_v6, %v3419_v45  ;;  %4883 = vmatprep.subr.bf16.mxu0 %v3461_v8 }
 0x4b5   : > { %v3391_v24 = vpop.permute.xlu0 %3390  ;;  %12795 = vst [vmem:[#allocation111_spill] sm:$0xff] %v11113_v43 }
 0x4b6   : > { %12794 = vst [vmem:[#allocation61_spill] sm:$0xff] %v11111_v21  ;;  %v3406_v46 = vsel %vm12796_vm9, %v3391_v24, %v3399_v23  ;;  %v3410_v17 = vsel %vm12797_vm10, %v3383_v35, %v3391_v24  ;;  %v3460_v63 = vpack.c.bf16 %v3448_v28, %v3444_v50  ;;  %v3393_v45 = vpop.permute.xlu1 %3392  ;;  %vm12822_vm9 = vmmov %vm12818_vm6 }
 0x4b7   : > { %v3446_v27 = vmul.f32 %v11096_v36, %v3410_v17  ;;  %v3447_v56 = vmul.f32 %v11101_v38, %v3406_v46  ;;  %v11122_v26 = vmul.f32 %v11104_v42, %v3410_v17  ;;  %v11125_v51 = vmul.f32 %v11109_v4, %v3406_v46  ;;  %vm12824_vm10 = vmmov %vm12818_vm6 }
 0x4b8   : > { %v3407_v20 = vsel %vm12800_vm11, %v3393_v45, %v3401_v30  ;;  %v3411_v23 = vsel %vm12801_vm12, %v3385_v15, %v3393_v45  ;;  %4884 = vmatpush1.bf16.msra.mxu0 %v3460_v63  ;;  %vm12825_vm11 = vmmov %vm12818_vm6 }
 0x4b9   : > { %12798 = vst [vmem:[#allocation126_spill] sm:$0xff] %v11122_v26  ;;  %12799 = vst [vmem:[#allocation124_spill] sm:$0xff] %v11125_v51  ;;  %v3450_v24 = vmul.f32 %v11096_v36, %v3411_v23  ;;  %v3451_v35 = vmul.f32 %v11101_v38, %v3407_v20  ;;  %v11136_v8 = vmul.f32 %v11104_v42, %v3411_v23  ;;  %v3379_v46 = vpop.permute.xlu0 %3378 }
 0x4ba   : > { %v11139_v50 = vmul.f32 %v11109_v4, %v3407_v20  ;;  %v3381_v15 = vpop.permute.xlu1 %3380  ;;  %vm12827_vm12 = vmmov %vm12818_vm6 }
 0x4bb   : > { %12802 = vst [vmem:[#allocation103_spill] sm:$0xff] %v11136_v8  ;;  %v3462_v17 = vpack.c.bf16 %v3450_v24, %v3446_v27  ;;  %v3463_v45 = vpack.c.bf16 %v3451_v35, %v3447_v56 }
 0x4bc   : > { %12803 = vst [vmem:[#allocation118_spill] sm:$0xff] %v11139_v50 }
 0x4bd   : > { %v3387_v43 = vpop.permute.xlu0 %3386  ;;  %4989 = vmatprep.subr.bf16.mxu1 %v3463_v45 }
 0x4be   : > { %v3416_v23 = vsel %vm12804_vm13, %v3379_v46, %v3387_v43  ;;  %4990 = vmatpush1.bf16.msra.mxu1 %v3462_v17  ;;  %v3389_v21 = vpop.permute.xlu1 %3388  ;;  %vm12828_vm13 = vmmov %vm12818_vm6 }
 0x4bf   : > { %v3417_v20 = vsel %vm12805_vm14, %v3381_v15, %v3389_v21  ;;  %v3453_v63 = vmul.f32 %v3431_v55, %v3416_v23  ;;  %v11149_v27 = vmul.f32 %v5450_v19, %v3416_v23  ;;  %vm12830_vm14 = vmmov %vm12818_vm6 }
 0x4c0   : > { %v3457_v24 = vmul.f32 %v3431_v55, %v3417_v20  ;;  %v11151_v30 = vmul.f32 %v5450_v19, %v3417_v20 }
 0x4c1   : > { %12806 = vst [vmem:[#allocation125_spill] sm:$0xff] %v11149_v27  ;;  %v3403_v56 = vpop.permute.xlu0 %3402 }
 0x4c2   : > { %12807 = vst [vmem:[#allocation46_spill] sm:$0xff] %v11151_v30  ;;  %v3420_v35 = vsel %vm12808_vm15, %v3403_v56, %v3379_v46  ;;  %v3405_v28 = vpop.permute.xlu1 %3404  ;;  %v3465_v51 = vpack.c.bf16 %v3457_v24, %v3453_v63  ;;  %vm12831_vm15 = vmmov %vm12818_vm6 }
 0x4c3   : > { %v3421_v17 = vsel %vm12809_vm0, %v3405_v28, %v3381_v15  ;;  %v3452_v50 = vmul.f32 %v3427_v25, %v3420_v35  ;;  %v11161_v55 = vmul.f32 %v5462_v6, %v3420_v35  ;;  %vm12832_vm0 = vmmov %vm12818_vm6 }
 0x4c4   : > { %v3456_v26 = vmul.f32 %v3427_v25, %v3421_v17  ;;  %v11159_v8 = vmul.f32 %v5462_v6, %v3421_v17  ;;  %4885 = vmatprep.subr.bf16.mxu0 %v3465_v51 }
 0x4c5   : > { %v3395_v23 = vpop.permute.xlu0 %3394  ;;  %12811 = vst [vmem:[#allocation35_spill] sm:$0xff] %v11161_v55 }
 0x4c6   : > { %12810 = vst [vmem:[#allocation116_spill] sm:$0xff] %v11159_v8  ;;  %v3408_v19 = vsel %vm12812_vm2, %v3395_v23, %v3403_v56  ;;  %v3412_v46 = vsel %vm12813_vm3, %v3387_v43, %v3395_v23  ;;  %v3464_v20 = vpack.c.bf16 %v3456_v26, %v3452_v50  ;;  %v3397_v25 = vpop.permute.xlu1 %3396  ;;  %v6893_v43 = vld [vmem:[%s11922_s8] ss:$12 sps:$4 sm:$0xff]   ;;  %vm12833_vm2 = vmmov %vm12832_vm0 }
 0x4c7   : > { %v3454_v63 = vmul.f32 %v11096_v36, %v3412_v46  ;;  %v3455_v24 = vmul.f32 %v11101_v38, %v3408_v19  ;;  %v11170_v15 = vmul.f32 %v11104_v42, %v3412_v46  ;;  %v11173_v17 = vmul.f32 %v11109_v4, %v3408_v19  ;;  %v6626_v19 = vld [vmem:[%s12301_s0 + $0x20] ss:$8 sm:$0xf]  ;;  %vm12834_vm3 = vmmov %vm12832_vm0 }
 0x4c8   : > { %v3409_v51 = vsel %vm12815_vm4, %v3397_v25, %v3405_v28  ;;  %v3413_v6 = vsel %vm12816_vm5, %v3389_v21, %v3397_v25  ;;  %4886 = vmatpush1.bf16.msra.mxu0 %v3464_v20  ;;  %v6896_v21 = vld [vmem:[%s11922_s8 + $0x1c] ss:$12 sps:$4 sm:$0xff]   ;;  %v11206_v25 = vrot.slane %v6626_v19, %v12664_v48  ;;  %v11240_v8 = vrot.slane %v6626_v19, %v12665_v18  ;;  %vm12835_vm4 = vmmov %vm12832_vm0 }
 0x4c9   : > { %12814 = vst [vmem:[#allocation119_spill] sm:$0xff] %v11173_v17  ;;  %v3458_v50 = vmul.f32 %v11096_v36, %v3413_v6  ;;  %v3459_v56 = vmul.f32 %v11101_v38, %v3409_v51  ;;  %v11187_v35 = vmul.f32 %v11104_v42, %v3413_v6  ;;  %v11190_v23 = vmul.f32 %v11109_v4, %v3409_v51  ;;  %v3477_v28 = vpop.permute.xlu0 %3476  ;;  %v6663_v38 = vld [vmem:[%s12301_s0 + $0x62] ss:$8 sm:$0xf]  ;;  %vm12836_vm5 = vmmov %vm12832_vm0 }
 0x4ca   : > { %v3479_v4 = vpop.permute.xlu1 %3478  ;;  %v11209_v51 = vrot.slane %v6663_v38, %v12653_v62  ;;  %v6898_v42 = vld [vmem:[%s11922_s8 + $0x18] ss:$12 sps:$4 sm:$0xff]   ;;  %v11230_v17 = vrot.slane %v6663_v38, %v12665_v18 }
 0x4cb   : > { %12817 = vst [vmem:[#allocation130_spill] sm:$0xff] %v11190_v23  ;;  %v3466_v36 = vpack.c.bf16 %v3458_v50, %v3454_v63  ;;  %v3467_v46 = vpack.c.bf16 %v3459_v56, %v3455_v24  ;;  %4888 = vmatmul.mubr.bf16.vlgmr.msra.gmra.mrb[8].mxu0 %v6893_v43  ;;  %v11216_v56 = vrot.slane %v6626_v19, %v12653_v62 }
 0x4cc   : > { %4897 = vmatprep.mubr.bf16.mxu0 %v6896_v21  ;;  %v11235_v23 = vrot.slane %v6626_v19, %v12651_v37 }
 0x4cd   : > { %v3485_v6 = vpop.permute.xlu0 %3484  ;;  %4991 = vmatprep.subr.bf16.mxu1 %v3467_v46 }
 0x4ce   : > { %v3516_v63 = vsel %vm12818_vm6, %v3477_v28, %v3485_v6  ;;  %4992 = vmatpush1.bf16.msra.mxu1 %v3466_v36  ;;  %v3487_v50 = vpop.permute.xlu1 %3486  ;;  %vm12837_vm6 = vmmov %vm12832_vm0 }
 0x4cf   : > { %v3517_v24 = vsel %vm12819_vm7, %v3479_v4, %v3487_v50  ;;  %v3547_v26 = vmul.f32 %v11206_v25, %v3516_v63  ;;  %v11223_v46 = vmul.f32 %v11209_v51, %v3516_v63  ;;  %vm6208_vm7 = vcmask 1043456  }
 0x4d0   : > { %v3551_v45 = vmul.f32 %v11206_v25, %v3517_v24  ;;  %v11227_v36 = vmul.f32 %v11209_v51, %v3517_v24  ;;  %v11243_v24 = vrot.slane %v6663_v38, %v12664_v48 }
 0x4d1   : > { %12820 = vst [vmem:[#allocation16_spill] sm:$0xff] %v11223_v46  ;;  %v3501_v20 = vpop.permute.xlu0 %3500  ;;  %4994 = vmatmul.mubr.bf16.vlgmr.msra.gmra.mrb[8].mxu1 %v6893_v43 }
 0x4d2   : > { %v3520_v62 = vsel %vm12821_vm8, %v3501_v20, %v3477_v28  ;;  %5003 = vmatprep.mubr.bf16.mxu1 %v6896_v21  ;;  %v3503_v55 = vpop.permute.xlu1 %3502  ;;  %v3563_v43 = vpack.c.bf16 %v3551_v45, %v3547_v26  ;;  %v11248_v28 = vrot.slane %v6663_v38, %v12651_v37  ;;  %vm6050_vm8 = vcmask 15360  }
 0x4d3   : > { %v3521_v27 = vsel %vm12822_vm9, %v3503_v55, %v3479_v4  ;;  %4898 = vmatmul.mubr.bf16.gmra.mrb[12].mxu0 %v6898_v42  ;;  %v3546_v21 = vmul.f32 %v11216_v56, %v3520_v62  ;;  %v11257_v48 = vmul.f32 %v11230_v17, %v3520_v62 }
 0x4d4   : > { %v3550_v30 = vmul.f32 %v11216_v56, %v3521_v27  ;;  %v11253_v63 = vmul.f32 %v11230_v17, %v3521_v27  ;;  %4908 = vmatprep.subr.bf16.mxu0 %v3563_v43  ;;  %4940 = vmatprep.mubr.bf16.mxu0 %v12663_v34 }
 0x4d5   : > { %v3493_v18 = vpop.permute.xlu0 %3492  ;;  %12823 = vst [vmem:[#allocation42_spill] sm:$0xff] %v11257_v48 }
 0x4d6   : > { %v3508_v45 = vsel %vm12824_vm10, %v3493_v18, %v3501_v20  ;;  %v3512_v37 = vsel %vm12825_vm11, %v3485_v6, %v3493_v18  ;;  %v3562_v26 = vpack.c.bf16 %v3550_v30, %v3546_v21  ;;  %v3495_v4 = vpop.permute.xlu1 %3494 }
 0x4d7   : > { %v3548_v19 = vmul.f32 %v11235_v23, %v3512_v37  ;;  %v3549_v38 = vmul.f32 %v11240_v8, %v3508_v45  ;;  %v11266_v27 = vmul.f32 %v11243_v24, %v3512_v37  ;;  %v11269_v43 = vmul.f32 %v11248_v28, %v3508_v45 }
 0x4d8   : > { %v3509_v62 = vsel %vm12827_vm12, %v3495_v4, %v3503_v55  ;;  %v3513_v20 = vsel %vm12828_vm13, %v3487_v50, %v3495_v4  ;;  %4909 = vmatpush1.bf16.msra.mxu0 %v3562_v26 }
 0x4d9   : > { %12826 = vst [vmem:[#allocation27_spill] sm:$0xff] %v11269_v43  ;;  %v3552_v6 = vmul.f32 %v11235_v23, %v3513_v20  ;;  %v3553_v21 = vmul.f32 %v11240_v8, %v3509_v62  ;;  %v11280_v18 = vmul.f32 %v11243_v24, %v3513_v20  ;;  %v11283_v37 = vmul.f32 %v11248_v28, %v3509_v62  ;;  %v3481_v45 = vpop.permute.xlu0 %3480 }
 0x4da   : > { %5004 = vmatmul.mubr.bf16.gmra.mrb[12].mxu1 %v6898_v42  ;;  %v3483_v4 = vpop.permute.xlu1 %3482 }
 0x4db   : > { %12829 = vst [vmem:[#allocation127_spill] sm:$0xff] %v11283_v37  ;;  %v3564_v55 = vpack.c.bf16 %v3552_v6, %v3548_v19  ;;  %v3565_v46 = vpack.c.bf16 %v3553_v21, %v3549_v38  ;;  %5046 = vmatprep.mubr.bf16.mxu1 %v12663_v34 }
 0x4dd   : > { %v3489_v48 = vpop.permute.xlu0 %3488  ;;  %5014 = vmatprep.subr.bf16.mxu1 %v3565_v46 }
 0x4de   : > { %v3518_v62 = vsel %vm12830_vm14, %v3481_v45, %v3489_v48  ;;  %5015 = vmatpush1.bf16.msra.mxu1 %v3564_v55  ;;  %v3491_v20 = vpop.permute.xlu1 %3490 }
 0x4df   : > { %v3519_v42 = vsel %vm12831_vm15, %v3483_v4, %v3491_v20  ;;  %v3555_v26 = vmul.f32 %v11206_v25, %v3518_v62  ;;  %v11296_v19 = vmul.f32 %v11209_v51, %v3518_v62 }
 0x4e0   : > { %v3559_v38 = vmul.f32 %v11206_v25, %v3519_v42  ;;  %v11300_v6 = vmul.f32 %v11209_v51, %v3519_v42 }
 0x4e1   : > { %v3505_v21 = vpop.permute.xlu0 %3504 }
 0x4e2   : > { %v3522_v46 = vsel %vm12832_vm0, %v3505_v21, %v3481_v45  ;;  %v3507_v50 = vpop.permute.xlu1 %3506  ;;  %v3567_v30 = vpack.c.bf16 %v3559_v38, %v3555_v26 }
 0x4e3   : > { %v3523_v43 = vsel %vm12833_vm2, %v3507_v50, %v3483_v4  ;;  %v3554_v62 = vmul.f32 %v11216_v56, %v3522_v46  ;;  %v11314_v42 = vmul.f32 %v11230_v17, %v3522_v46 }
 0x4e4   : > { %v3558_v37 = vmul.f32 %v11216_v56, %v3523_v43  ;;  %v11311_v25 = vmul.f32 %v11230_v17, %v3523_v43  ;;  %4910 = vmatprep.subr.bf16.mxu0 %v3567_v30 }
 0x4e5   : > { %v3497_v51 = vpop.permute.xlu0 %3496 }
 0x4e6   : > { %v3510_v45 = vsel %vm12834_vm3, %v3497_v51, %v3505_v21  ;;  %v3514_v26 = vsel %vm12835_vm4, %v3489_v48, %v3497_v51  ;;  %v3566_v38 = vpack.c.bf16 %v3558_v37, %v3554_v62  ;;  %v3499_v43 = vpop.permute.xlu1 %3498  ;;  %v6899_v48 = vld [vmem:[%s11922_s8 + $0x8] ss:$12 sps:$4 sm:$0xff]  }
 0x4e7   : > { %v3556_v4 = vmul.f32 %v11235_v23, %v3514_v26  ;;  %v3557_v55 = vmul.f32 %v11240_v8, %v3510_v45  ;;  %v11323_v56 = vmul.f32 %v11243_v24, %v3514_v26  ;;  %v11326_v30 = vmul.f32 %v11248_v28, %v3510_v45 }
 0x4e8   : > { %v3511_v17 = vsel %vm12836_vm5, %v3499_v43, %v3507_v50  ;;  %v3515_v21 = vsel %vm12837_vm6, %v3491_v20, %v3499_v43  ;;  %4911 = vmatpush1.bf16.msra.mxu0 %v3566_v38  ;;  %v12839_v50 = vld [vmem:[#allocation75_spill] sm:$0xff]  ;;  %v12844_v38 = vpack.c.bf16 %v10019_v32, %v10026_v22  ;;  %v12849_v22 = vpack.c.bf16 %v10142_v5, %v10148_v39 }
 0x4e9   : > { %v3560_v46 = vmul.f32 %v11235_v23, %v3515_v21  ;;  %v3561_v62 = vmul.f32 %v11240_v8, %v3511_v17  ;;  %v11340_v51 = vmul.f32 %v11243_v24, %v3515_v21  ;;  %v11343_v45 = vmul.f32 %v11248_v28, %v3511_v17  ;;  %v12841_v8 = vld [vmem:[#allocation70_spill] sm:$0xff]  ;;  %v12842_v24 = vld [vmem:[#allocation69_spill] sm:$0xff]  ;;  %v12846_v17 = vld [vmem:[#allocation79_spill] sm:$0xff] }
 0x4ea   : > { %v12840_v20 = vpack.c.bf16 %v12838_v13, %v12839_v50  ;;  %v12843_v28 = vpack.c.bf16 %v12841_v8, %v12842_v24  ;;  %v6903_v32 = vld [vmem:[%s11924_s10 + $0x4] ss:$12 sps:$4 sm:$0xff]   ;;  %v12853_v50 = vld [vmem:[#allocation82_spill] sm:$0xff]  ;;  %v12867_v24 = vld [vmem:[#allocation12_spill] sm:$0xff] }
 0x4eb   : > { %v3568_v26 = vpack.c.bf16 %v3560_v46, %v3556_v4  ;;  %v5543_v43 = vpack.c.bf16 %v11343_v45, %v11326_v30  ;;  %v3569_v37 = vpack.c.bf16 %v3561_v62, %v3557_v55  ;;  %v5542_v23 = vpack.c.bf16 %v11340_v51, %v11323_v56  ;;  %6651 = vmatmul.mubr.msk.bf16.vlgmr.msra.gmra.mrb[8].mxu0 %vm4600_vm1, %v6899_v48  ;;  %v12845_v4 = vld [vmem:[#allocation81_spill] sm:$0xff]  ;;  %v6900_v55 = vld [vmem:[%s11922_s8 + $0x20] ss:$12 sps:$4 sm:$0xff]   ;;  %v12851_v62 = vld [vmem:[#allocation78_spill] sm:$0xff] }
 0x4ec   : > { %5669 = vmatprep.subr.bf16.mxu0 %v12840_v20  ;;  %v12847_v21 = vpack.c.bf16 %v12845_v4, %v12846_v17  ;;  %4950 = vmatprep.mubr.bf16.mxu0 %v12663_v34  ;;  %v12850_v46 = vld [vmem:[#allocation80_spill] sm:$0xff]  ;;  %v12854_v20 = vpack.c.bf16 %v9979_v10, %v12853_v50  ;;  %v12857_v5 = vld [vmem:[#allocation47_spill] sm:$0xff]  ;;  %v12860_v10 = vpack.c.bf16 %v10126_v57, %v10145_v40  ;;  %v12870_v40 = vld [vmem:[#allocation26_spill] sm:$0xff] }
 0x4ed   : > { %5016 = vmatprep.subr.bf16.mxu1 %v3569_v37  ;;  %5670 = vmatpush1.bf16.msra.mxu0 %v12843_v28  ;;  %v12848_v37 = vpack.c.bf16 %v9951_v41, %v9947_v60  ;;  %v12852_v13 = vpack.c.bf16 %v12850_v46, %v12851_v62  ;;  %v12855_v60 = vpack.c.bf16 %v10092_v61, %v10088_v7  ;;  %v12858_v39 = vld [vmem:[#allocation23_spill] sm:$0xff]  ;;  %v12863_v61 = vld [vmem:[#allocation44_spill] sm:$0xff] }
 0x4ee   : > { %5017 = vmatpush1.bf16.msra.mxu1 %v3568_v26  ;;  %5671 = vmatprep.subr.bf16.mxu0 %v12844_v38  ;;  %v12856_v41 = vpack.c.bf16 %v10226_v16, %v10212_v33  ;;  %v12861_v26 = vpack.c.bf16 %v10181_v14, %v10175_v2  ;;  %v12862_v7 = vpack.c.bf16 %v10328_v1, %v10314_v49  ;;  %v12864_v33 = vld [vmem:[#allocation32_spill] sm:$0xff]  ;;  %v12866_v8 = vld [vmem:[#allocation43_spill] sm:$0xff]  ;;  %v12872_v2 = vld [vmem:[#allocation90_spill] sm:$0xff] }
 0x4ef   : > { %5775 = vmatprep.subr.bf16.mxu1 %v12847_v21  ;;  %v12865_v16 = vpack.c.bf16 %v12863_v61, %v12864_v33  ;;  %v12868_v28 = vpack.c.bf16 %v12866_v8, %v12867_v24  ;;  %v12869_v57 = vld [vmem:[#allocation48_spill] sm:$0xff]  ;;  %v12873_v14 = vld [vmem:[#allocation45_spill] sm:$0xff]  ;;  %v12875_v17 = vld [vmem:[#allocation83_spill] sm:$0xff] }
 0x4f0   : > { %v12871_v38 = vpack.c.bf16 %v12869_v57, %v12870_v40  ;;  %v12874_v4 = vpack.c.bf16 %v12872_v2, %v12873_v14  ;;  %v12876_v49 = vld [vmem:[#allocation108_spill] sm:$0xff]  ;;  %v12878_v21 = vld [vmem:[#allocation86_spill] sm:$0xff]  ;;  %v12896_v61 = vld [vmem:[#allocation105_spill] sm:$0xff] }
 0x4f1   : > { %5672 = vmatpush1.bf16.msra.mxu0 %v12848_v37  ;;  %6653 = vmatmul.mubr.msk.bf16.vlgmr.msra.gmra.mrb[8].mxu1 %vm4600_vm1, %v6899_v48  ;;  %v12859_v48 = vpack.c.bf16 %v12857_v5, %v12858_v39  ;;  %v12877_v1 = vpack.c.bf16 %v12875_v17, %v12876_v49  ;;  %v12882_v46 = vld [vmem:[#allocation24_spill] sm:$0xff]  ;;  %v12890_v5 = vld [vmem:[#allocation110_spill] sm:$0xff]  ;;  %v12891_v39 = vld [vmem:[#allocation87_spill] sm:$0xff]  ;;  %v12908_v17 = vpack.c.bf16 %v10679_v52, %v10664_v31 }
 0x4f2   : > { %5673 = vmatprep.subr.bf16.mxu0 %v12849_v22  ;;  %5776 = vmatpush1.bf16.msra.mxu1 %v12852_v13  ;;  %v12881_v22 = vld [vmem:[#allocation109_spill] sm:$0xff]  ;;  %v12885_v13 = vld [vmem:[#allocation112_spill] sm:$0xff]  ;;  %v12897_v33 = vld [vmem:[#allocation135_spill] sm:$0xff]  ;;  %v12922_v52 = vpack.c.bf16 %v10649_v47, %v10659_v0 }
 0x4f3   : > { %5777 = vmatprep.subr.bf16.mxu1 %v12854_v20  ;;  %5056 = vmatprep.mubr.bf16.mxu1 %v12663_v34  ;;  %v12883_v62 = vpack.c.bf16 %v12881_v22, %v12882_v46  ;;  %v12887_v20 = vld [vmem:[#allocation49_spill] sm:$0xff]  ;;  %v12899_v8 = vld [vmem:[#allocation28_spill] sm:$0xff]  ;;  %v12902_v57 = vld [vmem:[#allocation91_spill] sm:$0xff] }
 0x4f4   : > { %6652 = vmatmul.mubr.msk.bf16.gmra.mrb[12].mxu0 %vm4600_vm1, %v6900_v55  ;;  %v12900_v24 = vld [vmem:[#allocation88_spill] sm:$0xff]  ;;  %v12903_v40 = vld [vmem:[#allocation29_spill] sm:$0xff]  ;;  %v12905_v2 = vld [vmem:[#allocation94_spill] sm:$0xff] }
 0x4f5   : > { %5674 = vmatpush1.bf16.msra.mxu0 %v12855_v60  ;;  %5701 = vmatprep.mubr.bf16.mxu0 %v6903_v32  ;;  %v12888_v60 = vld [vmem:[#allocation85_spill] sm:$0xff]  ;;  %v12906_v14 = vld [vmem:[#allocation92_spill] sm:$0xff]  ;;  %v12909_v49 = vld [vmem:[#allocation31_spill] sm:$0xff] }
 0x4f6   : > { %5675 = vmatprep.subr.bf16.mxu0 %v12856_v41  ;;  %5778 = vmatpush1.bf16.msra.mxu1 %v12859_v48  ;;  %v12889_v41 = vpack.c.bf16 %v12887_v20, %v12888_v60  ;;  %v12892_v48 = vpack.c.bf16 %v12890_v5, %v12891_v39  ;;  %v12915_v46 = vld [vmem:[#allocation55_spill] sm:$0xff]  ;;  %v12920_v20 = vld [vmem:[#allocation104_spill] sm:$0xff]  ;;  %v12923_v60 = vpack.c.bf16 %v10711_v44, %v10707_v3  ;;  %v12927_v5 = vld [vmem:[#allocation133_spill] sm:$0xff] }
 0x4f7   : > { %5779 = vmatprep.subr.bf16.mxu1 %v12860_v10  ;;  %v12893_v10 = vld [vmem:[#allocation89_spill] sm:$0xff]  ;;  %v12933_v44 = vld [vmem:[#allocation136_spill] sm:$0xff]  ;;  %v13004_v56 = vld [vmem:[#allocation27_spill] sm:$0xff] }
 0x4f8   : > { %v12928_v39 = vld [vmem:[#allocation137_spill] sm:$0xff]  ;;  %v6929_v45 = vld [vmem:[%s7187_s24] sm:$0xff] }
 0x4f9   : > { %5676 = vmatpush1.bf16.msra.mxu0 %v12861_v26  ;;  %6654 = vmatmul.mubr.msk.bf16.gmra.mrb[12].mxu1 %vm4600_vm1, %v6900_v55  ;;  %v12879_v55 = vld [vmem:[#allocation84_spill] sm:$0xff]  ;;  %v12894_v26 = vld [vmem:[#allocation50_spill] sm:$0xff]  ;;  %v12929_v47 = vpack.c.bf16 %v12927_v5, %v12928_v39  ;;  %v12930_v0 = vld [vmem:[#allocation57_spill] sm:$0xff] }
 0x4fa   : > { %5677 = vmatprep.subr.bf16.mxu0 %v12862_v7  ;;  %5780 = vmatpush1.bf16.msra.mxu1 %v12865_v16  ;;  %v12880_v37 = vpack.c.bf16 %v12878_v21, %v12879_v55  ;;  %v12895_v7 = vpack.c.bf16 %v12893_v10, %v12894_v26  ;;  %v12898_v16 = vpack.c.bf16 %v12896_v61, %v12897_v33  ;;  %v12912_v55 = vld [vmem:[#allocation93_spill] sm:$0xff]  ;;  %v12937_v26 = vld [vmem:[#allocation52_spill] sm:$0xff]  ;;  %v12943_v61 = vld [vmem:[#allocation38_spill] sm:$0xff] }
 0x4fb   : > { %5781 = vmatprep.subr.bf16.mxu1 %v12868_v28  ;;  %5807 = vmatprep.mubr.bf16.mxu1 %v6903_v32  ;;  %v12884_v32 = vld [vmem:[#allocation51_spill] sm:$0xff]  ;;  %v12901_v28 = vpack.c.bf16 %v12899_v8, %v12900_v24  ;;  %v12934_v10 = vld [vmem:[#allocation37_spill] sm:$0xff]  ;;  %v12946_v8 = vld [vmem:[#allocation54_spill] sm:$0xff] }
 0x4fc   : > { %v12886_v50 = vpack.c.bf16 %v12884_v32, %v12885_v13  ;;  %v12918_v13 = vpack.c.bf16 %v10756_v59, %v10740_v54  ;;  %v12925_v54 = vpack.c.bf16 %v10682_v9, %v10668_v11  ;;  %v12926_v59 = vpack.c.bf16 %v10726_v12, %v10731_v58  ;;  %v12939_v9 = vld [vmem:[#allocation36_spill] sm:$0xff] }
 0x4fd   : > { %5678 = vmatpush1.bf16.msra.mxu0 %v12871_v38  ;;  %v12904_v38 = vpack.c.bf16 %v12902_v57, %v12903_v40  ;;  %v12942_v58 = vld [vmem:[#allocation40_spill] sm:$0xff]  ;;  %v12949_v57 = vld [vmem:[#allocation34_spill] sm:$0xff] }
 0x4fe   : > { %5679 = vmatprep.subr.bf16.mxu0 %v12874_v4  ;;  %5782 = vmatpush1.bf16.msra.mxu1 %v12877_v1  ;;  %v12907_v4 = vpack.c.bf16 %v12905_v2, %v12906_v14  ;;  %v12910_v1 = vld [vmem:[#allocation113_spill] sm:$0xff]  ;;  %v12944_v33 = vpack.c.bf16 %v12942_v58, %v12943_v61  ;;  %v12952_v2 = vld [vmem:[#allocation98_spill] sm:$0xff]  ;;  %v12975_v39 = vld [vmem:[#allocation60_spill] sm:$0xff] }
 0x4ff   : > { %5783 = vmatprep.subr.bf16.mxu1 %v12880_v37  ;;  %v12911_v21 = vpack.c.bf16 %v12909_v49, %v12910_v1  ;;  %v12913_v37 = vld [vmem:[#allocation30_spill] sm:$0xff]  ;;  %v12957_v1 = vld [vmem:[#allocation96_spill] sm:$0xff] }
 0x500   : > { %v12914_v22 = vpack.c.bf16 %v12912_v55, %v12913_v37  ;;  %v12960_v37 = vld [vmem:[#allocation95_spill] sm:$0xff]  ;;  %v12989_v58 = vld [vmem:[#allocation118_spill] sm:$0xff]  ;;  %v12990_v61 = vld [vmem:[#allocation124_spill] sm:$0xff] }
 0x501   : > { %5680 = vmatpush1.bf16.msra.mxu0 %v12883_v62  ;;  %v12916_v62 = vld [vmem:[#allocation53_spill] sm:$0xff] }
 0x502   : > { %5681 = vmatprep.subr.bf16.mxu0 %v12886_v50  ;;  %5784 = vmatpush1.bf16.msra.mxu1 %v12889_v41  ;;  %v12917_v32 = vpack.c.bf16 %v12915_v46, %v12916_v62  ;;  %v12919_v50 = vld [vmem:[#allocation106_spill] sm:$0xff]  ;;  %v12924_v41 = vpack.c.bf16 %v10865_v53, %v10848_v29  ;;  %v12935_v29 = vpack.c.bf16 %v12933_v44, %v12934_v10  ;;  %v12963_v62 = vld [vmem:[#allocation59_spill] sm:$0xff] }
 0x503   : > { %5785 = vmatprep.subr.bf16.mxu1 %v12892_v48  ;;  %v12921_v31 = vpack.c.bf16 %v12919_v50, %v12920_v20  ;;  %v12931_v48 = vld [vmem:[#allocation117_spill] sm:$0xff]  ;;  %v12936_v53 = vld [vmem:[#allocation134_spill] sm:$0xff]  ;;  %v12966_v50 = vld [vmem:[#allocation103_spill] sm:$0xff] }
 0x504   : > { %v12932_v3 = vpack.c.bf16 %v12930_v0, %v12931_v48  ;;  %v12938_v11 = vpack.c.bf16 %v12936_v53, %v12937_v26  ;;  %v12967_v20 = vld [vmem:[#allocation126_spill] sm:$0xff]  ;;  %v12978_v48 = vpack.c.bf16 %v11187_v35, %v11170_v15  ;;  %v12980_v44 = vld [vmem:[#allocation39_spill] sm:$0xff]  ;;  %v12988_v35 = vpack.c.bf16 %v11280_v18, %v11266_v27 }
 0x505   : > { %5682 = vmatpush1.bf16.msra.mxu0 %v12895_v7  ;;  %v12940_v7 = vld [vmem:[#allocation114_spill] sm:$0xff]  ;;  %v12983_v53 = vld [vmem:[#allocation111_spill] sm:$0xff] }
 0x506   : > { %5683 = vmatprep.subr.bf16.mxu0 %v12898_v16  ;;  %5786 = vmatpush1.bf16.msra.mxu1 %v12901_v28  ;;  %v12941_v12 = vpack.c.bf16 %v12939_v9, %v12940_v7  ;;  %v12945_v16 = vld [vmem:[#allocation33_spill] sm:$0xff]  ;;  %v12948_v28 = vld [vmem:[#allocation115_spill] sm:$0xff]  ;;  %v12985_v9 = vld [vmem:[#allocation46_spill] sm:$0xff] }
 0x507   : > { %5787 = vmatprep.subr.bf16.mxu1 %v12904_v38  ;;  %v12947_v24 = vpack.c.bf16 %v12945_v16, %v12946_v8  ;;  %v12950_v40 = vpack.c.bf16 %v12948_v28, %v12949_v57  ;;  %v12951_v38 = vld [vmem:[#allocation120_spill] sm:$0xff]  ;;  %v12986_v7 = vld [vmem:[#allocation125_spill] sm:$0xff]  ;;  %v12993_v8 = vld [vmem:[#allocation35_spill] sm:$0xff] }
 0x508   : > { %v12953_v14 = vpack.c.bf16 %v12951_v38, %v12952_v2  ;;  %v6904_v15 = vld [vmem:[%s11924_s10 + $0x1c] ss:$12 sps:$4 sm:$0xff]   ;;  %v12998_v18 = vld [vmem:[#allocation119_spill] sm:$0xff] }
 0x509   : > { %5684 = vmatpush1.bf16.msra.mxu0 %v12907_v4  ;;  %v12954_v4 = vld [vmem:[#allocation102_spill] sm:$0xff]  ;;  %v12992_v16 = vld [vmem:[#allocation116_spill] sm:$0xff] }
 0x50a   : > { %5685 = vmatprep.subr.bf16.mxu0 %v12908_v17  ;;  %5788 = vmatpush1.bf16.msra.mxu1 %v12911_v21  ;;  %v12955_v17 = vld [vmem:[#allocation100_spill] sm:$0xff]  ;;  %v12997_v27 = vld [vmem:[#allocation130_spill] sm:$0xff] }
 0x50b   : > { %5789 = vmatprep.subr.bf16.mxu1 %v12914_v22  ;;  %v12956_v49 = vpack.c.bf16 %v12954_v4, %v12955_v17  ;;  %v12958_v21 = vld [vmem:[#allocation56_spill] sm:$0xff]  ;;  %v12961_v22 = vld [vmem:[#allocation97_spill] sm:$0xff]  ;;  %v13000_v38 = vld [vmem:[#allocation42_spill] sm:$0xff] }
 0x50c   : > { %v12959_v55 = vpack.c.bf16 %v12957_v1, %v12958_v21  ;;  %v12962_v46 = vpack.c.bf16 %v12960_v37, %v12961_v22  ;;  %v12995_v28 = vld [vmem:[#allocation16_spill] sm:$0xff]  ;;  %v13001_v2 = vpack.c.bf16 %v11253_v63, %v13000_v38  ;;  %v13003_v4 = vld [vmem:[#allocation127_spill] sm:$0xff]  ;;  %v6930_v17 = vld [vmem:[%s7187_s24 + $0x10] sm:$0xff]  ;;  %v5904_v22 = vpop.permute.xlu0 %5903 }
 0x50d   : > { %5686 = vmatpush1.bf16.msra.mxu0 %v12917_v32  ;;  %v12964_v32 = vld [vmem:[#allocation121_spill] sm:$0xff]  ;;  %v12996_v57 = vpack.c.bf16 %v11227_v36, %v12995_v28  ;;  %v13002_v36 = vpack.c.bf16 %v11300_v6, %v11296_v19  ;;  %v13005_v51 = vpack.c.bf16 %v13003_v4, %v13004_v56  ;;  %v6908_v19 = vld [vmem:[%s11924_s10 + $0x20] ss:$12 sps:$4 sm:$0xff]  }
 0x50e   : > { %5687 = vmatprep.subr.bf16.mxu0 %v12918_v13  ;;  %5790 = vmatpush1.bf16.msra.mxu1 %v12921_v31  ;;  %v12965_v13 = vpack.c.bf16 %v12963_v62, %v12964_v32  ;;  %v12968_v31 = vpack.c.bf16 %v12966_v50, %v12967_v20  ;;  %v6907_v63 = vld [vmem:[%s11924_s10 + $0x8] ss:$12 sps:$4 sm:$0xff]   ;;  %v6909_v21 = vld [vmem:[%s11928_s14] sm:$0xff]  }
 0x50f   : > { %5791 = vmatprep.subr.bf16.mxu1 %v12922_v52  ;;  %v12969_v52 = vld [vmem:[#allocation107_spill] sm:$0xff]  ;;  %v6927_v6 = vld [vmem:[%s7187_s24 + $0x8] sm:$0xff] }
 0x510   : > { %v6910_v37 = vld [vmem:[%s11928_s14 + $0x8] sm:$0xff]   ;;  %v11614_v62 = vpop.permute.xlu0 %5913 }
 0x511   : > { %5688 = vmatpush1.bf16.msra.mxu0 %v12923_v60  ;;  %v12970_v60 = vld [vmem:[#allocation58_spill] sm:$0xff] }
 0x512   : > { %5689 = vmatprep.subr.bf16.mxu0 %v12924_v41  ;;  %5792 = vmatpush1.bf16.msra.mxu1 %v12925_v54  ;;  %v12971_v41 = vpack.c.bf16 %v12969_v52, %v12970_v60  ;;  %v12972_v54 = vld [vmem:[#allocation41_spill] sm:$0xff] }
 0x513   : > { %5793 = vmatprep.subr.bf16.mxu1 %v12926_v59  ;;  %v12973_v59 = vld [vmem:[#allocation122_spill] sm:$0xff] }
 0x514   : > { %v12974_v5 = vpack.c.bf16 %v12972_v54, %v12973_v59 }
 0x515   : > { %5690 = vmatpush1.bf16.msra.mxu0 %v12929_v47  ;;  %v12976_v47 = vld [vmem:[#allocation101_spill] sm:$0xff] }
 0x516   : > { %5691 = vmatprep.subr.bf16.mxu0 %v12932_v3  ;;  %5794 = vmatpush1.bf16.msra.mxu1 %v12935_v29  ;;  %v12977_v0 = vpack.c.bf16 %v12975_v39, %v12976_v47  ;;  %v12979_v3 = vld [vmem:[#allocation99_spill] sm:$0xff]  ;;  %v12982_v29 = vld [vmem:[#allocation61_spill] sm:$0xff] }
 0x517   : > { %5795 = vmatprep.subr.bf16.mxu1 %v12938_v11  ;;  %v12981_v10 = vpack.c.bf16 %v12979_v3, %v12980_v44  ;;  %v12984_v26 = vpack.c.bf16 %v12982_v29, %v12983_v53  ;;  %v6901_v11 = vld [vmem:[%s11924_s10] ss:$12 sps:$4 sm:$0xff]  }
 0x519   : > { %5692 = vmatpush1.bf16.msra.mxu0 %v12941_v12  ;;  %v12987_v12 = vpack.c.bf16 %v12985_v9, %v12986_v7 }
 0x51a   : > { %5693 = vmatprep.subr.bf16.mxu0 %v12944_v33  ;;  %5796 = vmatpush1.bf16.msra.mxu1 %v12947_v24  ;;  %v12991_v33 = vpack.c.bf16 %v12989_v58, %v12990_v61  ;;  %v12994_v24 = vpack.c.bf16 %v12992_v16, %v12993_v8 }
 0x51b   : > { %5797 = vmatprep.subr.bf16.mxu1 %v12950_v40  ;;  %v12999_v40 = vpack.c.bf16 %v12997_v27, %v12998_v18 }
 0x51d   : > { %5694 = vmatpush1.bf16.msra.mxu0 %v12953_v14  ;;  %v6906_v14 = vld [vmem:[%s11924_s10 + $0x18] ss:$12 sps:$4 sm:$0xff]  }
 0x51e   : > { %5695 = vmatprep.subr.bf16.mxu0 %v12956_v49  ;;  %5798 = vmatpush1.bf16.msra.mxu1 %v12959_v55  ;;  %v6165_v49 = vpack.c.bf16 %v6930_v17, %v6930_v17 }
 0x51f   : > { %5799 = vmatprep.subr.bf16.mxu1 %v12962_v46  ;;  %v5909_v46 = vpop.permute.xlu1 %5908 }
 0x520   : > { %v6216_v55 = vsel %vm6208_vm7, %v6165_v49, 0 }
 0x521   : > { %5696 = vmatpush1.bf16.msra.mxu0 %v12965_v13  ;;  %v5949_v13 = vpop.permute.xlu0 %5948 }
 0x522   : > { %5697 = vmatprep.subr.bf16.mxu0 %v12968_v31  ;;  %5800 = vmatpush1.bf16.msra.mxu1 %v12971_v41 }
 0x523   : > { %5801 = vmatprep.subr.bf16.mxu1 %v12974_v5  ;;  %v5944_v32 = vpop.permute.xlu1 %5943 }
 0x525   : > { %5698 = vmatpush1.bf16.msra.mxu0 %v12977_v0  ;;  %v11618_v20 = vpop.permute.xlu0 %5953 }
 0x526   : > { %5699 = vmatprep.subr.bf16.mxu0 %v12978_v48  ;;  %5802 = vmatpush1.bf16.msra.mxu1 %v12981_v10 }
 0x527   : > { %5803 = vmatprep.subr.bf16.mxu1 %v12984_v26  ;;  %v11616_v50 = vpop.permute.xlu1 %5918 }
 0x529   : > { %5700 = vmatpush1.bf16.msra.mxu0 %v12987_v12  ;;  %v5989_v44 = vpop.permute.xlu0 %5988 }
 0x52a   : > { %5722 = vmatprep.subr.bf16.mxu0 %v12988_v35  ;;  %5804 = vmatpush1.bf16.msra.mxu1 %v12991_v33 }
 0x52b   : > { %5805 = vmatprep.subr.bf16.mxu1 %v12994_v24  ;;  %v5984_v54 = vpop.permute.xlu1 %5983 }
 0x52c   : > { %5702 = vmatmul.mubr.bf16.vlgmr.msra.gmra.mrb[8].mxu0 %v6901_v11 }
 0x52d   : > { %5723 = vmatpush1.bf16.msra.mxu0 %v12996_v57  ;;  %5711 = vmatprep.mubr.bf16.mxu0 %v6904_v15 }
 0x52e   : > { %5724 = vmatprep.subr.bf16.mxu0 %v5542_v23  ;;  %5806 = vmatpush1.bf16.msra.mxu1 %v12999_v40  ;;  %v13006_v23 = vpack.c.bf16 %v11311_v25, %v11314_v42  ;;  %v6164_v25 = vpack.c.bf16 %v6927_v6, %v6927_v6  ;;  %v6928_v42 = vld [vmem:[%s7187_s24 + $0x18] sm:$0xff]  ;;  %s6931_s24 = scalar_lea.vmem %s11865_s26, 2048 }
 0x52f   : > { %5828 = vmatprep.subr.bf16.mxu1 %v13001_v2  ;;  %v6166_v30 = vpack.c.bf16 %v6928_v42, %v6928_v42  ;;  %v5959_v33 = vpop.permute.xlu1 %5958  ;;  %p6932_p11 = scmp.ne.s32.totalorder %s11865_s26, %s6931_s24  ;;  %p6939_p1 = scmp.lt.s32.totalorder %s6937_s22, %s6931_s24 }
 0x531   : > { %5725 = vmatpush1.bf16.msra.mxu0 %v13002_v36  ;;  %5808 = vmatmul.mubr.bf16.vlgmr.msra.gmra.mrb[8].mxu1 %v6901_v11  ;;  %p6933_p12 = pnand %p6932_p11, %p7170_p5  ;;  %p6940_p2 = por %p6939_p1, %p6938_p0 }
 0x532   : > { %5829 = vmatpush1.bf16.msra.mxu1 %v13005_v51  ;;  %5817 = vmatprep.mubr.bf16.mxu1 %v6904_v15 }
 0x533   : > { %5830 = vmatprep.subr.bf16.mxu1 %v13006_v23  ;;  %6680 = vmatprep.subr.msk.bf16.mxu0 %vm6208_vm7, %v6164_v25  ;;  %v5994_v23 = vpop.permute.xlu0 %5993  ;;  %p6934_p13 = pneg %p6933_p12 }
 0x534   : > { %5712 = vmatmul.mubr.bf16.gmra.mrb[12].mxu0 %v6906_v14 }
 0x535   : > { %5754 = vmatprep.mubr.bf16.mxu0 %v12663_v34  ;;  %p6941_p3 = pnand %p6940_p2, %p6934_p13 }
 0x536   : > { %5831 = vmatpush1.bf16.msra.mxu1 %v5543_v43  ;;  %v6163_v43 = vpack.c.bf16 %v6929_v45, %v6929_v45 }
 0x537   : > { %6683 = vmatprep.subr.msk.bf16.mxu1 %vm6208_vm7, %v6166_v30 }
 0x538   : > { %v6210_v1 = vsel %vm6208_vm7, %v6163_v43, 0 }
 0x539   : > { %5818 = vmatmul.mubr.bf16.gmra.mrb[12].mxu1 %v6906_v14 }
 0x53a   : > { %5860 = vmatprep.mubr.bf16.mxu1 %v12663_v34 }
 0x53c   : > { %6670 = vmatmul.mubr.msk.bf16.vlgmr.msra.gmra.mrb[8].mxu0 %vm4600_vm1, %v6907_v63 }
 0x53d   : > { %5764 = vmatprep.mubr.bf16.mxu0 %v12663_v34  ;;  %6222 = vmatpush1.bf16.msra.mxu0 %v6210_v1 }
 0x541   : > { %6672 = vmatmul.mubr.msk.bf16.vlgmr.msra.gmra.mrb[8].mxu1 %vm4600_vm1, %v6907_v63 }
 0x542   : > { %5870 = vmatprep.mubr.bf16.mxu1 %v12663_v34  ;;  %6275 = vmatpush1.bf16.msra.mxu1 %v6216_v55 }
 0x544   : > { %6671 = vmatmul.mubr.msk.bf16.gmra.mrb[12].mxu0 %vm4600_vm1, %v6908_v19 }
 0x545   : > { %6253 = vmatprep.mubr.bf16.mxu0 %v12663_v34 }
 0x549   : > { %6673 = vmatmul.mubr.msk.bf16.gmra.mrb[12].mxu1 %vm4600_vm1, %v6908_v19  ;;  %vm6201_vm1 = vcmask 64512  }
 0x54a   : > { %6306 = vmatprep.mubr.bf16.mxu1 %v12663_v34 }
 0x54c   : > { %6681 = vmatmul.mubr.msk.bf16.vlgmr.msra.gmra.mrb[16].mxu0 %vm6201_vm1, %v6909_v21 }
 0x54d   : > { %6263 = vmatprep.mubr.bf16.mxu0 %v12663_v34 }
 0x551   : > { %6684 = vmatmul.mubr.msk.bf16.vlgmr.msra.gmra.mrb[16].mxu1 %vm6201_vm1, %v6909_v21 }
 0x552   : > { %6316 = vmatprep.mubr.bf16.mxu1 %v12663_v34 }
 0x554   : > { %6682 = vmatmul.mubr.msk.bf16.gmra.mrb[20].mxu0 %vm6201_vm1, %v6910_v37 }
 0x559   : > { %6685 = vmatmul.mubr.msk.bf16.gmra.mrb[20].mxu1 %vm6201_vm1, %v6910_v37 }
 0x60f   : > { %v5756_v31 = vpop.f32.mrb[8].mxu0 }
 0x610   : > { %v5921_v52 = vadd.f32 %v5904_v22, %v5756_v31  ;;  %v5758_v60 = vpop.f32.mrb[9].mxu0 }
 0x611   : > { %v5922_v34 = vadd.f32 %v5904_v22, %v5758_v60  ;;  %v5760_v41 = vpop.f32.mrb[10].mxu0 }
 0x612   : > { %v5961_v59 = vmul.f32 %v5944_v32, %v5921_v52  ;;  %v5925_v5 = vadd.f32 %v5909_v46, %v5760_v41  ;;  %v5762_v39 = vpop.f32.mrb[11].mxu0 }
 0x613   : > { %v5962_v47 = vmul.f32 %v5944_v32, %v5922_v34  ;;  %v5926_v0 = vadd.f32 %v5909_v46, %v5762_v39 }
 0x614   : > { %v5965_v48 = vmul.f32 %v5949_v13, %v5925_v5  ;;  %v5862_v3 = vpop.f32.mrb[8].mxu1  ;;  %v11620_v10 = vadd.f32 %v5984_v54, %v5961_v59 }
 0x615   : > { %v11622_v29 = vadd.f32 %v5984_v54, %v5962_v47  ;;  %v5966_v53 = vmul.f32 %v5949_v13, %v5926_v0  ;;  %v5923_v26 = vadd.f32 %v5904_v22, %v5862_v3  ;;  %v5864_v11 = vpop.f32.mrb[9].mxu1 }
 0x616   : > { %v5924_v9 = vadd.f32 %v5904_v22, %v5864_v11  ;;  %v5866_v7 = vpop.f32.mrb[10].mxu1  ;;  %v11624_v12 = vadd.f32 %v5989_v44, %v5965_v48  ;;  %v5999_v22 = vpop.permute.xlu1 %5998 }
 0x617   : > { %v5963_v15 = vmul.f32 %v5944_v32, %v5923_v26  ;;  %v5927_v35 = vadd.f32 %v5909_v46, %v5866_v7  ;;  %v5766_v58 = vpop.f32.mrb[12].mxu0  ;;  %v5868_v61 = vpop.f32.mrb[11].mxu1  ;;  %v11626_v16 = vadd.f32 %v5989_v44, %v5966_v53  ;;  %v6017_v27 = vadd.f32 %v11622_v29, %v11620_v10 }
 0x618   : > { %v5964_v8 = vmul.f32 %v5944_v32, %v5924_v9  ;;  %v5929_v24 = vadd.f32 %v11614_v62, %v5766_v58  ;;  %v5928_v28 = vadd.f32 %v5909_v46, %v5868_v61  ;;  %v5768_v57 = vpop.f32.mrb[13].mxu0  ;;  %v6042_v61 = vld [vmem:[%s11932_s18] sm:$0xff] }
 0x619   : > { %v11631_v18 = vadd.f32 %v5984_v54, %v5963_v15  ;;  %v5967_v40 = vmul.f32 %v5949_v13, %v5927_v35  ;;  %v5930_v38 = vadd.f32 %v11614_v62, %v5768_v57  ;;  %v5770_v2 = vpop.f32.mrb[14].mxu0  ;;  %v6022_v42 = vadd.f32 %v11626_v16, %v11624_v12  ;;  %v6043_v15 = vld [vmem:[%s11932_s18 + $0x8] sm:$0xff] }
 0x61a   : > { %v11634_v14 = vadd.f32 %v5984_v54, %v5964_v8  ;;  %v5969_v36 = vmul.f32 %v11618_v20, %v5929_v24  ;;  %v5968_v4 = vmul.f32 %v5949_v13, %v5928_v28  ;;  %v5933_v56 = vadd.f32 %v11616_v50, %v5770_v2  ;;  %v5772_v51 = vpop.f32.mrb[15].mxu0  ;;  %v6044_v8 = vld [vmem:[%s11932_s18 + $0x10] sm:$0xff] }
 0x61b   : > { %v11638_v63 = vadd.f32 %v5989_v44, %v5967_v40  ;;  %v5970_v19 = vmul.f32 %v11618_v20, %v5930_v38  ;;  %v5934_v6 = vadd.f32 %v11616_v50, %v5772_v51  ;;  %v6018_v25 = vadd.f32 %v6017_v27, %v11631_v18  ;;  %v6045_v38 = vld [vmem:[%s11932_s18 + $0x18] sm:$0xff] }
 0x61c   : > { %v11645_v30 = vadd.f32 %v5994_v23, %v5969_v36  ;;  %v11647_v45 = vadd.f32 %v5989_v44, %v5968_v4  ;;  %v5973_v43 = vmul.f32 %v5959_v33, %v5933_v56  ;;  %v5872_v17 = vpop.f32.mrb[12].mxu1 }
 0x61d   : > { %v11649_v49 = vadd.f32 %v5994_v23, %v5970_v19  ;;  %v5974_v1 = vmul.f32 %v5959_v33, %v5934_v6  ;;  %v5931_v21 = vadd.f32 %v11614_v62, %v5872_v17  ;;  %v5874_v55 = vpop.f32.mrb[13].mxu1  ;;  %v6019_v37 = vadd.f32 %v6018_v25, %v11634_v14 }
 0x61e   : > { %v5932_v46 = vadd.f32 %v11614_v62, %v5874_v55  ;;  %v5876_v32 = vpop.f32.mrb[14].mxu1  ;;  %v6023_v13 = vadd.f32 %v6022_v42, %v11638_v63  ;;  %v11655_v31 = vadd.f32 %v5999_v22, %v5973_v43  ;;  %v6064_v55 = vld [vmem:[%s11933_s19] sm:$0x1] }
 0x61f   : > { %v11657_v52 = vadd.f32 %v5999_v22, %v5974_v1  ;;  %v5971_v60 = vmul.f32 %v11618_v20, %v5931_v21  ;;  %v5935_v34 = vadd.f32 %v11616_v50, %v5876_v32  ;;  %v5878_v41 = vpop.f32.mrb[15].mxu1  ;;  %6020 = vadd.xlane.f32.xlu0 %v6019_v37  ;;  %v6027_v62 = vadd.f32 %v11649_v49, %v11645_v30  ;;  %v6068_v32 = vld [vmem:[%s11934_s20 + $0x8] sm:$0xff] }
 0x620   : > { %v5972_v54 = vmul.f32 %v11618_v20, %v5932_v46  ;;  %v5936_v59 = vadd.f32 %v11616_v50, %v5878_v41  ;;  %v6024_v5 = vadd.f32 %v6023_v13, %v11647_v45  ;;  %v6067_v13 = vld [vmem:[%s11934_s20] sm:$0xff]  ;;  %v6070_v41 = vld [vmem:[%s11934_s20 + $0x18] sm:$0xff] }
 0x621   : > { %v11666_v39 = vadd.f32 %v5994_v23, %v5971_v60  ;;  %v5975_v47 = vmul.f32 %v5959_v33, %v5935_v34  ;;  %v6032_v3 = vadd.f32 %v11657_v52, %v11655_v31  ;;  %v13007_v60 = vld [vmem:[#allocation13_spill] sm:$0xff] }
 0x622   : > { %v11668_v0 = vadd.f32 %v5994_v23, %v5972_v54  ;;  %v5976_v48 = vmul.f32 %v5959_v33, %v5936_v59  ;;  %6025 = vadd.xlane.f32.xlu1 %v6024_v5  ;;  %v6069_v54 = vld [vmem:[%s11934_s20 + $0x10] sm:$0xff] }
 0x623   : > { %v11672_v44 = vadd.f32 %v5999_v22, %v5975_v47  ;;  %v6028_v20 = vadd.f32 %v6027_v62, %v11666_v39 }
 0x624   : > { %v11675_v50 = vadd.f32 %v5999_v22, %v5976_v48 }
 0x625   : > { %v6029_v53 = vadd.f32 %v6028_v20, %v11668_v0  ;;  %v6033_v26 = vadd.f32 %v6032_v3, %v11672_v44 }
 0x627   : > { %6030 = vadd.xlane.f32.xlu0 %v6029_v53  ;;  %v6034_v11 = vadd.f32 %v6033_v26, %v11675_v50  ;;  %v6168_v26 = vld [vmem:[%s11929_s15 + $0x8] sm:$0xff] }
 0x62b   : > { %6035 = vadd.xlane.f32.xlu0 %v6034_v11  ;;  %v6169_v11 = vld [vmem:[%s11929_s15 + $0x10] sm:$0xff] }
 0x6ac   : > { %v6021_v9 = vpop.xlane.xlu0 %6020 }
 0x6ad   : > { %v6038_v58 = vmul.f32 0.001953125, %v6021_v9  ;;  %v6167_v9 = vld [vmem:[%s11929_s15] sm:$0xff] }
 0x6af   : > { %v6026_v7 = vpop.xlane.xlu1 %6025  ;;  %v6046_v28 = vmul.f32 %v6042_v61, %v6038_v58  ;;  %v11733_v58 = vpop.f32.mrb[16].mxu1 }
 0x6b0   : > { %v6039_v35 = vmul.f32 0.001953125, %v6026_v7  ;;  %v6327_v7 = vld [vmem:[%s11930_s16] sm:$0xff] }
 0x6b1   : > { %v6051_v36 = vsel %vm6050_vm8, %v6046_v28, 0.0  ;;  %v6329_v28 = vld [vmem:[%s11930_s16 + $0x10] sm:$0xff] }
 0x6b2   : > { %v6047_v33 = vmul.f32 %v6043_v15, %v6039_v35  ;;  %v6170_v15 = vld [vmem:[%s11929_s15 + $0x18] sm:$0xff]  ;;  %v11731_v35 = vpop.f32.mrb[16].mxu0 }
 0x6b3   : > { %v11735_v61 = vpop.f32.mrb[17].mxu0 }
 0x6b4   : > { %v6031_v24 = vpop.xlane.xlu0 %6030  ;;  %v6052_v27 = vsel %vm6050_vm8, %v6047_v33, 0.0  ;;  %v11737_v33 = vpop.f32.mrb[17].mxu1 }
 0x6b5   : > { %v6040_v57 = vmul.f32 0.001953125, %v6031_v24  ;;  %v6053_v51 = vadd.f32 %v6052_v27, %v6051_v36  ;;  %v11741_v24 = vpop.f32.mrb[18].mxu1  ;;  %v6368_v36 = vld [vmem:[%s11931_s17 + $0x8] sm:$0xff] }
 0x6b6   : > { %v11748_v27 = vpop.f32.mrb[19].mxu1 }
 0x6b7   : > { %v6048_v40 = vmul.f32 %v6044_v8, %v6040_v57  ;;  %v11739_v8 = vpop.f32.mrb[18].mxu0 }
 0x6b8   : > { %v6036_v2 = vpop.xlane.xlu0 %6035  ;;  %v11746_v57 = vpop.f32.mrb[19].mxu0 }
 0x6b9   : > { %v6054_v4 = vsel %vm6050_vm8, %v6048_v40, 0.0  ;;  %v6041_v56 = vmul.f32 0.001953125, %v6036_v2  ;;  %v6328_v40 = vld [vmem:[%s11930_s16 + $0x8] sm:$0xff]  ;;  %v11755_v2 = vpop.f32.mrb[20].mxu1 }
 0x6ba   : > { %v6055_v19 = vadd.f32 %v6054_v4, %v6053_v51  ;;  %v6330_v51 = vld [vmem:[%s11930_s16 + $0x18] sm:$0xff] }
 0x6bb   : > { %v6049_v23 = vmul.f32 %v6045_v38, %v6041_v56  ;;  %v11753_v38 = vpop.f32.mrb[20].mxu0  ;;  %v11762_v56 = vpop.f32.mrb[21].mxu1 }
 0x6bc   : > { %v11760_v4 = vpop.f32.mrb[21].mxu0 }
 0x6bd   : > { %v6056_v6 = vsel %vm6050_vm8, %v6049_v23, 0.0  ;;  %v11767_v23 = vpop.f32.mrb[22].mxu0 }
 0x6be   : > { %v6057_v25 = vadd.f32 %v6056_v6, %v6055_v19  ;;  %v11769_v19 = vpop.f32.mrb[22].mxu1  ;;  %v11771_v6 = vpop.f32.mrb[23].mxu0 }
 0x6c0   : > { %v6058_v42 = vrot.slane %v6057_v25, 4 }
 0x6c2   : > { %v6059_v43 = vadd.f32 %v6058_v42, %v6057_v25  ;;  %v11773_v25 = vpop.f32.mrb[23].mxu1  ;;  %v6367_v42 = vld [vmem:[%s11931_s17] sm:$0xff] }
 0x6c4   : > { %v6060_v17 = vrot.slane %v6059_v43, 2 }
 0x6c6   : > { %v6061_v1 = vadd.f32 %v6060_v17, %v6059_v43  ;;  %v6092_v43 = vld [vmem:[%s11935_s21 + $0x8] sm:$0xff]  ;;  %v6091_v17 = vld [vmem:[%s11935_s21] sm:$0xff] }
 0x6c8   : > { %v6062_v21 = vrot.slane %v6061_v1, 1 }
 0x6ca   : > { %v6063_v37 = vadd.f32 %v6062_v21, %v6061_v1 }
 0x6cc   : > { %v6065_v22 = vadd.f32 %v6064_v55, %v6063_v37 }
 0x6ce   : > { %v6066_v46 = vmax.f32 %v6065_v22, 0.0  ;;  %v6094_v22 = vld [vmem:[%s11935_s21 + $0x18] sm:$0xff] }
 0x6d0   : > { %v6074_v34 = vrot.slane %v6066_v46, %v13007_v60  ;;  %v6093_v46 = vld [vmem:[%s11935_s21 + $0x10] sm:$0xff] }
 0x6d2   : > { %v6076_v59 = vmul.f32 %v6074_v34, %v6068_v32  ;;  %v6075_v5 = vmul.f32 %v6074_v34, %v6067_v13  ;;  %v6078_v48 = vmul.f32 %v6074_v34, %v6070_v41  ;;  %v6077_v3 = vmul.f32 %v6074_v34, %v6069_v54 }
 0x6d4   : > { %v6082_v62 = vsel %vm6050_vm8, %v6076_v59, 0.0  ;;  %v6079_v47 = vsel %vm6050_vm8, %v6075_v5, 0.0  ;;  %v6088_v20 = vsel %vm6050_vm8, %v6078_v48, 0.0  ;;  %v6085_v53 = vsel %vm6050_vm8, %v6077_v3, 0.0 }
 0x6d5   : > { %6083 = vadd.xlane.f32.xlu0 %v6082_v62  ;;  %6080 = vadd.xlane.f32.xlu1 %v6079_v47 }
 0x6d9   : > { %6089 = vadd.xlane.f32.xlu0 %v6088_v20  ;;  %6086 = vadd.xlane.f32.xlu1 %v6085_v53 }
 0x6ea   : > { %6178 = vperm.xlu1 %6865, %v6168_v26  }
 0x6ee   : > { %6183 = vperm.xlu1 %6865, %v6169_v11  }
 0x6ef   : > { %6173 = vperm.xlu0 %6866, %v6167_v9  }
 0x6f2   : > { %6333 = vperm.xlu1 %6865, %v6327_v7  }
 0x6f3   : > { %6188 = vperm.xlu0 %6866, %v6170_v15  }
 0x6f6   : > { %6343 = vperm.xlu1 %6865, %v6329_v28   ;;  %v6369_v28 = vld [vmem:[%s11931_s17 + $0x10] sm:$0xff] }
 0x6f7   : > { %6338 = vperm.xlu0 %6866, %v6328_v40  }
 0x6fa   : > { %6378 = vperm.xlu1 %6865, %v6368_v36   ;;  %v6370_v36 = vld [vmem:[%s11931_s17 + $0x18] sm:$0xff] }
 0x6fb   : > { %6348 = vperm.xlu0 %6866, %v6330_v51  }
 0x6ff   : > { %6373 = vperm.xlu0 %6866, %v6367_v42  }
 0x762   : > { %v6084_v1 = vpop.xlane.xlu0 %6083  ;;  %v6081_v21 = vpop.xlane.xlu1 %6080 }
 0x763   : > { %v6096_v55 = vadd.f32 %v6092_v43, %v6084_v1  ;;  %v6095_v37 = vadd.f32 %v6091_v17, %v6081_v21 }
 0x765   : > { %v6675_v32 = vmul.f32 -1.442695, %v6096_v55  ;;  %v6674_v13 = vmul.f32 -1.442695, %v6095_v37 }
 0x766   : > { %v6090_v60 = vpop.xlane.xlu0 %6089  ;;  %v6087_v34 = vpop.xlane.xlu1 %6086 }
 0x767   : > { %6911 = vpow2.f32 %v6675_v32  ;;  %v6098_v41 = vadd.f32 %v6094_v22, %v6090_v60  ;;  %v6097_v54 = vadd.f32 %v6093_v46, %v6087_v34 }
 0x768   : > { %6913 = vpow2.f32 %v6674_v13 }
 0x769   : > { %v6677_v59 = vmul.f32 -1.442695, %v6098_v41  ;;  %v6676_v5 = vmul.f32 -1.442695, %v6097_v54 }
 0x76a   : > { %v6179_v51 = vpop.permute.xlu1 %6178 }
 0x76b   : > { %6915 = vpow2.f32 %v6677_v59  ;;  %v6260_v22 = vadd.f32 %v11739_v8, %v6179_v51  ;;  %v6262_v46 = vadd.f32 %v11746_v57, %v6179_v51  ;;  %v6313_v32 = vadd.f32 %v11741_v24, %v6179_v51 }
 0x76c   : > { %6917 = vpow2.f32 %v6676_v5  ;;  %v6315_v13 = vadd.f32 %v11748_v27, %v6179_v51 }
 0x76e   : > { %v6174_v42 = vpop.permute.xlu0 %6173  ;;  %v6184_v43 = vpop.permute.xlu1 %6183 }
 0x76f   : > { %v6256_v60 = vadd.f32 %v11731_v35, %v6174_v42  ;;  %v6258_v34 = vadd.f32 %v11735_v61, %v6174_v42  ;;  %v6309_v41 = vadd.f32 %v11733_v58, %v6174_v42  ;;  %v6311_v54 = vadd.f32 %v11737_v33, %v6174_v42 }
 0x770   : > { %v6266_v59 = vadd.f32 %v11753_v38, %v6184_v43  ;;  %v6268_v5 = vadd.f32 %v11760_v4, %v6184_v43  ;;  %v6319_v8 = vadd.f32 %v11755_v2, %v6184_v43  ;;  %v6321_v57 = vadd.f32 %v11762_v56, %v6184_v43 }
 0x771   : > { %v6912_v62 = vpop.eup %6911 }
 0x772   : > { %v6914_v47 = vpop.eup %6913  ;;  %v6112_v3 = vadd.f32 1.0, %v6912_v62  ;;  %v6189_v17 = vpop.permute.xlu0 %6188 }
 0x773   : > { %v6111_v48 = vadd.f32 1.0, %v6914_v47  ;;  %v6334_v1 = vpop.permute.xlu1 %6333  ;;  %v6270_v24 = vadd.f32 %v11767_v23, %v6189_v17  ;;  %v6272_v27 = vadd.f32 %v11771_v6, %v6189_v17  ;;  %v6323_v35 = vadd.f32 %v11769_v19, %v6189_v17 }
 0x774   : > { %v6325_v61 = vadd.f32 %v11773_v25, %v6189_v17  ;;  %v6351_v62 = vmul.f32 %v6334_v1, %v6256_v60  ;;  %v6352_v33 = vmul.f32 %v6334_v1, %v6258_v34  ;;  %v6353_v47 = vmul.f32 %v6334_v1, %v6309_v41 }
 0x775   : > { %v6916_v20 = vpop.eup %6915  ;;  %6919 = vrcp.f32 %v6111_v48  ;;  %v6354_v38 = vmul.f32 %v6334_v1, %v6311_v54 }
 0x776   : > { %v6918_v53 = vpop.eup %6917  ;;  %6921 = vrcp.f32 %v6112_v3  ;;  %v6114_v11 = vadd.f32 1.0, %v6916_v20  ;;  %v6339_v21 = vpop.permute.xlu0 %6338 }
 0x777   : > { %v6113_v26 = vadd.f32 1.0, %v6918_v53  ;;  %v6344_v55 = vpop.permute.xlu1 %6343  ;;  %v6355_v4 = vmul.f32 %v6339_v21, %v6260_v22  ;;  %v6356_v3 = vmul.f32 %v6339_v21, %v6262_v46  ;;  %v6357_v2 = vmul.f32 %v6339_v21, %v6313_v32 }
 0x778   : > { %v6358_v20 = vmul.f32 %v6339_v21, %v6315_v13  ;;  %v6359_v56 = vmul.f32 %v6344_v55, %v6266_v59  ;;  %v6360_v53 = vmul.f32 %v6344_v55, %v6268_v5  ;;  %v6361_v23 = vmul.f32 %v6344_v55, %v6319_v8 }
 0x779   : > { %6923 = vrcp.f32 %v6113_v26  ;;  %v6362_v6 = vmul.f32 %v6344_v55, %v6321_v57 }
 0x77a   : > { %6925 = vrcp.f32 %v6114_v11  ;;  %v6349_v37 = vpop.permute.xlu0 %6348 }
 0x77b   : > { %v6379_v58 = vpop.permute.xlu1 %6378  ;;  %v11819_v32 = vmul.f32 %v6349_v37, %v6270_v24 }
 0x77c   : > { %v6396_v51 = vadd.f32 %v6379_v58, %v6356_v3  ;;  %v6397_v42 = vadd.f32 %v6379_v58, %v6357_v2  ;;  %v6398_v43 = vadd.f32 %v6379_v58, %v6358_v20 }
 0x77e   : > { %v6374_v48 = vpop.permute.xlu0 %6373 }
 0x77f   : > { %v6920_v9 = vpop.eup %6919  ;;  %v6391_v26 = vadd.f32 %v6374_v48, %v6351_v62  ;;  %v6392_v19 = vadd.f32 %v6374_v48, %v6352_v33  ;;  %v6393_v11 = vadd.f32 %v6374_v48, %v6353_v47  ;;  %v6394_v25 = vadd.f32 %v6374_v48, %v6354_v38 }
 0x780   : > { %6125 = vperm.xlu1 %6865, %v6920_v9   ;;  %v6922_v7 = vpop.eup %6921 }
 0x783   : > { %v6924_v15 = vpop.eup %6923 }
 0x784   : > { %6130 = vperm.xlu1 %6865, %v6922_v7   ;;  %6135 = vperm.xlu0 %6866, %v6924_v15   ;;  %v6926_v40 = vpop.eup %6925 }
 0x788   : > { %6140 = vperm.xlu1 %6865, %v6926_v40   ;;  %6383 = vperm.xlu0 %6866, %v6369_v28  }
 0x78c   : > { %6388 = vperm.xlu1 %6865, %v6370_v36   ;;  %v6395_v36 = vadd.f32 %v6379_v58, %v6355_v4 }
 0x7ff   : > { %v6126_v9 = vpop.permute.xlu1 %6125 }
 0x800   : > { %v6143_v7 = vmul.f32 %v6126_v9, %v11620_v10  ;;  %v6144_v15 = vmul.f32 %v6126_v9, %v11622_v29  ;;  %v6145_v28 = vmul.f32 %v6126_v9, %v11631_v18  ;;  %v6146_v40 = vmul.f32 %v6126_v9, %v11634_v14 }
 0x801   : > { %v11821_v10 = vmul.f32 %v6349_v37, %v6272_v27  ;;  %v11823_v29 = vmul.f32 %v6349_v37, %v6323_v35  ;;  %v11825_v18 = vmul.f32 %v6349_v37, %v6325_v61 }
 0x802   : > { %v6407_v17 = vadd.f32 %v6391_v26, %v6143_v7  ;;  %v6408_v1 = vadd.f32 %v6392_v19, %v6144_v15  ;;  %v6409_v21 = vadd.f32 %v6393_v11, %v6145_v28  ;;  %v6410_v55 = vadd.f32 %v6394_v25, %v6146_v40 }
 0x803   : > { %v6136_v22 = vpop.permute.xlu0 %6135  ;;  %v6131_v46 = vpop.permute.xlu1 %6130 }
 0x804   : > { %vm6423_vm9 = vcmp.gt.f32.partialorder %v6407_v17, 0.0  ;;  %vm6424_vm10 = vcmp.gt.f32.partialorder %v6408_v1, 0.0  ;;  %vm6425_vm11 = vcmp.gt.f32.partialorder %v6409_v21, 0.0  ;;  %vm6426_vm12 = vcmp.gt.f32.partialorder %v6410_v55, 0.0 }
 0x805   : > { %v6439_v14 = vmul.f32 0.01, %v6407_v17  ;;  %v6440_v13 = vmul.f32 0.01, %v6408_v1  ;;  %v6441_v60 = vmul.f32 0.01, %v6409_v21  ;;  %v6151_v34 = vmul.f32 %v6136_v22, %v11645_v30 }
 0x806   : > { %v6442_v41 = vmul.f32 0.01, %v6410_v55  ;;  %v6152_v54 = vmul.f32 %v6136_v22, %v11649_v49  ;;  %v6153_v59 = vmul.f32 %v6136_v22, %v11666_v39  ;;  %v6154_v5 = vmul.f32 %v6136_v22, %v11668_v0 }
 0x807   : > { %v6455_v8 = vsel %vm6423_vm9, %v6407_v17, %v6439_v14  ;;  %v6456_v57 = vsel %vm6424_vm10, %v6408_v1, %v6440_v13  ;;  %v6457_v37 = vsel %vm6425_vm11, %v6409_v21, %v6441_v60  ;;  %v6147_v24 = vmul.f32 %v6131_v46, %v11624_v12  ;;  %v6384_v27 = vpop.permute.xlu0 %6383  ;;  %v6141_v62 = vpop.permute.xlu1 %6140 }
 0x808   : > { %v6458_v35 = vsel %vm6426_vm12, %v6410_v55, %v6442_v41  ;;  %6471 = vst [vmem:[%s11832_s25] sm:$0xff] %v6455_v8  ;;  %6472 = vst [vmem:[%s11832_s25 + $0x8] sm:$0xff] %v6456_v57  ;;  %v6148_v30 = vmul.f32 %v6131_v46, %v11626_v16  ;;  %v6149_v49 = vmul.f32 %v6131_v46, %v11638_v63 }
 0x809   : > { %6473 = vst [vmem:[%s11832_s25 + $0x10] sm:$0xff] %v6457_v37  ;;  %v6150_v39 = vmul.f32 %v6131_v46, %v11647_v45  ;;  %6474 = vst [vmem:[%s11832_s25 + $0x18] sm:$0xff] %v6458_v35  ;;  %v6411_v0 = vadd.f32 %v6395_v36, %v6147_v24  ;;  %v6399_v12 = vadd.f32 %v6384_v27, %v6359_v56 }
 0x80a   : > { %v6400_v61 = vadd.f32 %v6384_v27, %v6360_v53  ;;  %v6401_v58 = vadd.f32 %v6384_v27, %v6361_v23  ;;  %v6412_v33 = vadd.f32 %v6396_v51, %v6148_v30  ;;  %v6413_v47 = vadd.f32 %v6397_v42, %v6149_v49 }
 0x80b   : > { %v6414_v38 = vadd.f32 %v6398_v43, %v6150_v39  ;;  %v6402_v48 = vadd.f32 %v6384_v27, %v6362_v6  ;;  %vm6427_vm13 = vcmp.gt.f32.partialorder %v6411_v0, 0.0  ;;  %v6443_v4 = vmul.f32 0.01, %v6411_v0  ;;  %v6389_v11 = vpop.permute.xlu1 %6388 }
 0x80c   : > { %v6415_v3 = vadd.f32 %v6399_v12, %v6151_v34  ;;  %v6416_v2 = vadd.f32 %v6400_v61, %v6152_v54  ;;  %vm6428_vm14 = vcmp.gt.f32.partialorder %v6412_v33, 0.0  ;;  %vm6429_vm15 = vcmp.gt.f32.partialorder %v6413_v47, 0.0 }
 0x80d   : > { %vm6430_vm0 = vcmp.gt.f32.partialorder %v6414_v38, 0.0  ;;  %v6444_v16 = vmul.f32 0.01, %v6412_v33  ;;  %v6445_v63 = vmul.f32 0.01, %v6413_v47  ;;  %v6459_v20 = vsel %vm6427_vm13, %v6411_v0, %v6443_v4 }
 0x80e   : > { %v6446_v45 = vmul.f32 0.01, %v6414_v38  ;;  %v6417_v56 = vadd.f32 %v6401_v58, %v6153_v59  ;;  %6475 = vst [vmem:[%s11832_s25 + $0x20] sm:$0xff] %v6459_v20  ;;  %v6418_v23 = vadd.f32 %v6402_v48, %v6154_v5  ;;  %vm6431_vm2 = vcmp.gt.f32.partialorder %v6415_v3, 0.0 }
 0x80f   : > { %v6460_v53 = vsel %vm6428_vm14, %v6412_v33, %v6444_v16  ;;  %vm6432_vm3 = vcmp.gt.f32.partialorder %v6416_v2, 0.0  ;;  %v6461_v6 = vsel %vm6429_vm15, %v6413_v47, %v6445_v63  ;;  %v6447_v19 = vmul.f32 0.01, %v6415_v3 }
 0x810   : > { %v6462_v26 = vsel %vm6430_vm0, %v6414_v38, %v6446_v45  ;;  %6476 = vst [vmem:[%s11832_s25 + $0x28] sm:$0xff] %v6460_v53  ;;  %vm6433_vm4 = vcmp.gt.f32.partialorder %v6417_v56, 0.0  ;;  %6477 = vst [vmem:[%s11832_s25 + $0x30] sm:$0xff] %v6461_v6  ;;  %vm6434_vm5 = vcmp.gt.f32.partialorder %v6418_v23, 0.0  ;;  %v6448_v25 = vmul.f32 0.01, %v6416_v2 }
 0x811   : > { %6478 = vst [vmem:[%s11832_s25 + $0x38] sm:$0xff] %v6462_v26  ;;  %v6449_v9 = vmul.f32 0.01, %v6417_v56  ;;  %v6155_v7 = vmul.f32 %v6141_v62, %v11655_v31  ;;  %v6450_v15 = vmul.f32 0.01, %v6418_v23  ;;  %v6463_v28 = vsel %vm6431_vm2, %v6415_v3, %v6447_v19 }
 0x812   : > { %v6156_v40 = vmul.f32 %v6141_v62, %v11657_v52  ;;  %v6157_v36 = vmul.f32 %v6141_v62, %v11672_v44  ;;  %v6464_v51 = vsel %vm6432_vm3, %v6416_v2, %v6448_v25  ;;  %6479 = vst [vmem:[%s11832_s25 + $0x40] sm:$0xff] %v6463_v28  ;;  %v6158_v43 = vmul.f32 %v6141_v62, %v11675_v50 }
 0x813   : > { %v6465_v42 = vsel %vm6433_vm4, %v6417_v56, %v6449_v9  ;;  %v6403_v17 = vadd.f32 %v6389_v11, %v11819_v32  ;;  %v6466_v1 = vsel %vm6434_vm5, %v6418_v23, %v6450_v15  ;;  %6480 = vst [vmem:[%s11832_s25 + $0x48] sm:$0xff] %v6464_v51  ;;  %v6404_v31 = vadd.f32 %v6389_v11, %v11821_v10 }
 0x814   : > { %6481 = vst [vmem:[%s11832_s25 + $0x50] sm:$0xff] %v6465_v42  ;;  %v6405_v21 = vadd.f32 %v6389_v11, %v11823_v29  ;;  %v6406_v52 = vadd.f32 %v6389_v11, %v11825_v18  ;;  %6482 = vst [vmem:[%s11832_s25 + $0x58] sm:$0xff] %v6466_v1 }
 0x815   : > { %v6419_v44 = vadd.f32 %v6403_v17, %v6155_v7  ;;  %v6420_v55 = vadd.f32 %v6404_v31, %v6156_v40 }
 0x816   : > { %v6421_v22 = vadd.f32 %v6405_v21, %v6157_v36  ;;  %v6422_v46 = vadd.f32 %v6406_v52, %v6158_v43 }
 0x817   : > { %vm6435_vm6 = vcmp.gt.f32.partialorder %v6419_v44, 0.0  ;;  %v6451_v50 = vmul.f32 0.01, %v6419_v44  ;;  %vm6436_vm7 = vcmp.gt.f32.partialorder %v6420_v55, 0.0  ;;  %v6452_v32 = vmul.f32 0.01, %v6420_v55 }
 0x818   : > { %vm6437_vm1 = vcmp.gt.f32.partialorder %v6421_v22, 0.0  ;;  %vm6438_vm8 = vcmp.gt.f32.partialorder %v6422_v46, 0.0  ;;  %v6453_v10 = vmul.f32 0.01, %v6421_v22  ;;  %v6454_v29 = vmul.f32 0.01, %v6422_v46 }
 0x819   : > { %v6467_v18 = vsel %vm6435_vm6, %v6419_v44, %v6451_v50  ;;  %v6468_v14 = vsel %vm6436_vm7, %v6420_v55, %v6452_v32 }
 0x81a   : > { %6483 = vst [vmem:[%s11832_s25 + $0x60] sm:$0xff] %v6467_v18  ;;  %v6469_v13 = vsel %vm6437_vm1, %v6421_v22, %v6453_v10  ;;  %v6470_v60 = vsel %vm6438_vm8, %v6422_v46, %v6454_v29  ;;  %6484 = vst [vmem:[%s11832_s25 + $0x68] sm:$0xff] %v6468_v14 }
 0x81b   : > { %6485 = vst [vmem:[%s11832_s25 + $0x70] sm:$0xff] %v6469_v13  ;;  %6486 = vst [vmem:[%s11832_s25 + $0x78] sm:$0xff] %v6470_v60 }
 0x81c   : > { %6944 = shalt.err (!%p6941_p3)
}
 0x81d   : > { %s6945_s3 = scalar_lea.hbm %s11863_s23, 2048  ;;  %s6949_s29 = scalar_lea.hbm %s13008_s1, 4096 }
 0x81e   : > { %p6946_p4 = scmp.ne.s32.totalorder %s11863_s23, %s6945_s3  ;;  %p6950_p9 = scmp.lt.u32.totalorder %s11863_s23, %s13008_s1 }
 0x81f   : > { %p6951_p10 = scmp.lt.u32.totalorder %s6949_s29, %s6945_s3  ;;  %p6953_p12 = scmp.lt.u32.totalorder %s6945_s3, %s11863_s23 }
 0x820   : > { %p6947_p7 = pnand %p6946_p4, %p7170_p5 }
 0x821   : > { %p6952_p11 = por %p6951_p10, %p6950_p9 }
 0x822   : > { %p6948_p8 = pneg %p6947_p7 }
 0x823   : > { %p6954_p13 = por %p6953_p12, %p6952_p11 }
 0x825   : > { %p6955_p0 = pnand %p6954_p13, %p6948_p8 }
 0x827   : > { %6958 = shalt.err (!%p6955_p0)
}
 0x828   : > { %s7015_s24 = smov 512   ;;  %s7016_s2 = smov 32  }
 0x829   : > { %6805 = dma.vmem_to_hbm [thread:$0]  (%p7170_p5), %s11865_s26, 2048, %s11863_s23, %s11873_s4, %s7015_s24, %s7015_s24, %s7016_s2  }
 0x82a PF: > { %s13009_s22 = sld [smem:[#allocation6_spill]]  ;;  %p6811_p1 = scmp.ge.s32.totalorder %s6993_s30, 2 }
 0x82c   : > { %p6808_p2 = pnand %p6811_p1, %p7174_p6 }
 0x830   : > { %s6516_s5 = sand.u32 1, %s13009_s22  }
 0x831   : > { %s6517_s3 = scalar_lea.sflag [#allocation4], %s6516_s5 }
 0x832   : > { %6976 = dma.done.wait (!%p6808_p2), %s6517_s3, 2048  }
 0x833   : > { %6978 = vsyncadd (!%p6808_p2), %s6517_s3, 4294965248  ;;  %s13011_s30 = sld [smem:[#allocation8_spill]]  ;;  %s13012_s29 = sld [smem:[#allocation7_spill]] }
 0x834   : > { %s13013_s27 = sld [smem:[#allocation9_spill]]  ;;  %s13014_s3 = smov %s6985_s28 }
 0x839   : > { %p32_p3 = scmp.ge.s32.totalorder %s13011_s30, 4   ;;  %s13015_s28 = smov %s13012_s29 }
 0x83a   : > { %s13016_s29 = smov %s13013_s27 }
 0x83b   :  { %34 = sbr.rel (!%p32_p3) target bundleno = 13 (0xd), region = 168 }
 0x842   :  { %6522 = vsyncpa [#allocation4], 1 }
 0x843   :  { %6524 = vsyncpa [#allocation4 + $0x1], 1 }

</bundles_post_ra>
